<compile_context>
chip_gen: v6e
topology: v6e:2x2x1
jax: 0.10.0
libtpu: 0.0.40
codegen_flags: <defaults>
</compile_context>

<pallas_src>
import functools

import jax
import jax.numpy as jnp
from jax.experimental import pallas as pl
from jax.experimental.pallas import tpu as pltpu


# ---------------------------------------------------------------------------
# Kernel 1: conv1 (3->64, k5) + BN + ReLU + 2x2 maxpool, fused, one image/step
# ---------------------------------------------------------------------------
def _conv_block1_kernel(x_ref, w_ref, s_ref, b_ref, o_ref, y_scr, row_scr):
    # x_ref: (1, 576, 128) bf16 im2col patches (rows = oh*24+ow, K padded 75->128)
    # w_ref: (128, 128) bf16 ; s_ref/b_ref: (1, 128) f32 folded BN
    # o_ref: (1, 12, 12, 128) bf16 pooled NHWC output (channels padded 64->128)
    y = jnp.dot(x_ref[0], w_ref[...], preferred_element_type=jnp.float32)  # (576,128)
    y_scr[...] = jnp.maximum(y * s_ref[...] + b_ref[...], 0.0)

    # 2x2 maxpool over the (24, 24) spatial grid (row = oh*24 + ow).
    for ph in range(12):
        u = y_scr[pl.ds(48 * ph, 24), :]          # oh = 2*ph   -> (24, 128)
        v = y_scr[pl.ds(48 * ph + 24, 24), :]     # oh = 2*ph+1 -> (24, 128)
        row_scr[...] = jnp.maximum(u, v)          # rows = ow
        c0 = row_scr[pl.ds(0, 12, stride=2), :]   # even ow
        c1 = row_scr[pl.ds(1, 12, stride=2), :]   # odd  ow
        o_ref[0, ph, :, :] = jnp.maximum(c0, c1).astype(jnp.bfloat16)


def conv_block1(patches, w, s, b):
    B = patches.shape[0]
    return pl.pallas_call(
        _conv_block1_kernel,
        out_shape=jax.ShapeDtypeStruct((B, 12, 12, 128), jnp.bfloat16),
        grid_spec=pltpu.PrefetchScalarGridSpec(
            num_scalar_prefetch=0,
            grid=(B,),
            in_specs=[
                pl.BlockSpec((1, 576, 128), lambda i: (i, 0, 0)),
                pl.BlockSpec((128, 128), lambda i: (0, 0)),
                pl.BlockSpec((1, 128), lambda i: (0, 0)),
                pl.BlockSpec((1, 128), lambda i: (0, 0)),
            ],
            out_specs=pl.BlockSpec((1, 12, 12, 128), lambda i: (i, 0, 0, 0)),
            scratch_shapes=[
                pltpu.VMEM((576, 128), jnp.float32),
                pltpu.VMEM((24, 128), jnp.float32),
            ],
        ),
        compiler_params=pltpu.CompilerParams(dimension_semantics=("parallel",)),
    )(patches, w, s, b)


# ---------------------------------------------------------------------------
# Kernel 2: conv2 (64->50, k5) + BN + ReLU + 2x2 maxpool, fused, one image/step
#           (direct conv as 25 accumulated MXU matmuls -- no im2col in HBM)
# ---------------------------------------------------------------------------
def _conv_block2_kernel(x_ref, w_ref, s_ref, b_ref, o_ref, y_scr, row_scr):
    # x_ref: (1, 5, 96, 128) bf16 -- dj-shifted conv1 output; row = h*8 + ow
    # w_ref: (3200, 128) bf16 -- rows ordered (di, dj, cin_padded)
    # o_ref: (1, 4, 4, 128) bf16 pooled feature (channels padded 50->128)
    acc = jnp.zeros((64, 128), jnp.float32)
    for di in range(5):
        for dj in range(5):
            a = x_ref[0, dj, pl.ds(di * 8, 64), :]               # (64, 128) bf16
            wk = w_ref[pl.ds((di * 5 + dj) * 128, 128), :]       # (128, 128) bf16
            acc = acc + jnp.dot(a, wk, preferred_element_type=jnp.float32)

    y_scr[...] = jnp.maximum(acc * s_ref[...] + b_ref[...], 0.0)  # rows = oh*8+ow

    # 2x2 maxpool over the (8, 8) spatial grid.
    for ph in range(4):
        u = y_scr[pl.ds(16 * ph, 8), :]
        v = y_scr[pl.ds(16 * ph + 8, 8), :]
        row_scr[...] = jnp.maximum(u, v)          # rows = ow
        c0 = row_scr[pl.ds(0, 4, stride=2), :]
        c1 = row_scr[pl.ds(1, 4, stride=2), :]
        o_ref[0, ph, :, :] = jnp.maximum(c0, c1).astype(jnp.bfloat16)


def conv_block2(xshift, w, s, b):
    B = xshift.shape[0]
    return pl.pallas_call(
        _conv_block2_kernel,
        out_shape=jax.ShapeDtypeStruct((B, 4, 4, 128), jnp.bfloat16),
        grid_spec=pltpu.PrefetchScalarGridSpec(
            num_scalar_prefetch=0,
            grid=(B,),
            in_specs=[
                pl.BlockSpec((1, 5, 96, 128), lambda i: (i, 0, 0, 0)),
                pl.BlockSpec((3200, 128), lambda i: (0, 0)),
                pl.BlockSpec((1, 128), lambda i: (0, 0)),
                pl.BlockSpec((1, 128), lambda i: (0, 0)),
            ],
            out_specs=pl.BlockSpec((1, 4, 4, 128), lambda i: (i, 0, 0, 0)),
            scratch_shapes=[
                pltpu.VMEM((64, 128), jnp.float32),
                pltpu.VMEM((8, 128), jnp.float32),
            ],
        ),
        compiler_params=pltpu.CompilerParams(dimension_semantics=("parallel",)),
    )(xshift, w, s, b)


# ---------------------------------------------------------------------------
# Kernel 3/4: fused classifier heads (all Linear+BN+ReLU layers + LogSoftmax)
# ---------------------------------------------------------------------------
def _class_head_kernel(f_ref, w1_ref, s1_ref, b1_ref, w2_ref, s2_ref, b2_ref,
                       w3_ref, b3_ref, o_ref):
    h = jnp.dot(f_ref[...], w1_ref[...], preferred_element_type=jnp.float32)
    h = jnp.maximum(h * s1_ref[...] + b1_ref[...], 0.0)
    h = jnp.dot(h.astype(jnp.bfloat16), w2_ref[...],
                preferred_element_type=jnp.float32)
    h = jnp.maximum(h * s2_ref[...] + b2_ref[...], 0.0)
    y = jnp.dot(h.astype(jnp.bfloat16), w3_ref[...],
                preferred_element_type=jnp.float32) + b3_ref[...]
    m = jnp.max(y, axis=-1, keepdims=True)
    z = y - m
    o_ref[...] = z - jnp.log(jnp.sum(jnp.exp(z), axis=-1, keepdims=True))


def _domain_head_kernel(f_ref, w1_ref, s1_ref, b1_ref, w2_ref, b2_ref, o_ref):
    h = jnp.dot(f_ref[...], w1_ref[...], preferred_element_type=jnp.float32)
    h = jnp.maximum(h * s1_ref[...] + b1_ref[...], 0.0)
    y = jnp.dot(h.astype(jnp.bfloat16), w2_ref[...],
                preferred_element_type=jnp.float32) + b2_ref[...]
    m = jnp.max(y, axis=-1, keepdims=True)
    z = y - m
    o_ref[...] = z - jnp.log(jnp.sum(jnp.exp(z), axis=-1, keepdims=True))


def _head_call(kernel, feat, weights, tm):
    Mp = feat.shape[0]
    full = lambda i: (0, 0)
    in_specs = [pl.BlockSpec((tm, 2048), lambda i: (i, 0))]
    in_specs += [pl.BlockSpec(w.shape, full) for w in weights]
    return pl.pallas_call(
        kernel,
        out_shape=jax.ShapeDtypeStruct((Mp, 128), jnp.float32),
        grid_spec=pltpu.PrefetchScalarGridSpec(
            num_scalar_prefetch=0,
            grid=(Mp // tm,),
            in_specs=in_specs,
            out_specs=pl.BlockSpec((tm, 128), lambda i: (i, 0)),
        ),
        compiler_params=pltpu.CompilerParams(dimension_semantics=("parallel",)),
    )(feat, *weights)


# ---------------------------------------------------------------------------
# Parameter preparation (done ONCE): BN folding, permutation, lane padding
# ---------------------------------------------------------------------------
def fold_bn(pre_bias, bn, eps=1e-5):
    scale = bn["gamma"] / jnp.sqrt(bn["var"] + eps)
    bias = bn["beta"] + (pre_bias - bn["mean"]) * scale
    return scale, bias


def _pad_vec(v, value=0.0):
    return jnp.pad(v, (0, 128 - v.shape[0]),
                   constant_values=value).reshape(1, 128).astype(jnp.float32)


def prepare_params(p):
    prep = {}

    # conv1: weight rows ordered (di, dj, cin) to match the JAX-side im2col.
    w = p["conv1_w"].transpose(2, 3, 1, 0).reshape(75, 64)        # (di*5+dj)*3+c
    w = jnp.pad(w, ((0, 53), (0, 64)))                            # K 75->128, N 64->128
    prep["w1"] = w.astype(jnp.bfloat16)
    s, b = fold_bn(p["conv1_b"], p["bn1"])
    prep["s1"], prep["b1"] = _pad_vec(s), _pad_vec(b)

    # conv2: (5,5,64,50) -> pad channels to 128 -> (3200, 128), rows (di,dj,cin).
    w = p["conv2_w"].transpose(2, 3, 1, 0)                        # (5,5,64,50)
    w = jnp.pad(w, ((0, 0), (0, 0), (0, 64), (0, 78)))            # (5,5,128,128)
    prep["w2"] = w.reshape(3200, 128).astype(jnp.bfloat16)
    s, b = fold_bn(p["conv2_b"], p["bn2"])
    prep["s2"], prep["b2"] = _pad_vec(s), _pad_vec(b)

    def fc_from_feature(wmat):
        # PyTorch feature index = c*16 + h*4 + w (NCHW flatten); our feature is
        # (h*4+w)*128 + c (HWC, channels padded). Permute + pad the weight rows.
        o = wmat.shape[0]
        w4 = wmat.reshape(o, 50, 4, 4).transpose(2, 3, 1, 0)      # (h, w, c, o)
        w4 = jnp.pad(w4, ((0, 0), (0, 0), (0, 78), (0, 128 - o)))
        return w4.reshape(2048, 128).astype(jnp.bfloat16)

    def fc_hidden(wmat):
        o, i = wmat.shape
        return jnp.pad(wmat.T, ((0, 128 - i), (0, 128 - o))).astype(jnp.bfloat16)

    # class head
    prep["wc1"] = fc_from_feature(p["fc_c1_w"])
    s, b = fold_bn(p["fc_c1_b"], p["bn_c1"])
    prep["sc1"], prep["bc1"] = _pad_vec(s), _pad_vec(b)
    prep["wc2"] = fc_hidden(p["fc_c2_w"])
    s, b = fold_bn(p["fc_c2_b"], p["bn_c2"])
    prep["sc2"], prep["bc2"] = _pad_vec(s), _pad_vec(b)
    prep["wc3"] = fc_hidden(p["fc_c3_w"])
    prep["bc3"] = _pad_vec(p["fc_c3_b"], value=-1e30)   # mask padded logits

    # domain head
    prep["wd1"] = fc_from_feature(p["fc_d1_w"])
    s, b = fold_bn(p["fc_d1_b"], p["bn_d1"])
    prep["sd1"], prep["bd1"] = _pad_vec(s), _pad_vec(b)
    prep["wd2"] = fc_hidden(p["fc_d2_w"])
    prep["bd2"] = _pad_vec(p["fc_d2_b"], value=-1e30)
    return prep


# ---------------------------------------------------------------------------
# Parameter init (deterministic; shapes from DANN.__init__, PyTorch-style init)
# ---------------------------------------------------------------------------
def init_params(key):
    keys = jax.random.split(key, 16)

    def uni(k, shape, fan_in):
        bound = 1.0 / jnp.sqrt(jnp.float32(fan_in))
        return jax.random.uniform(k, shape, jnp.float32, -bound, bound)

    def bn(n):
        return dict(gamma=jnp.ones((n,), jnp.float32),
                    beta=jnp.zeros((n,), jnp.float32),
                    mean=jnp.zeros((n,), jnp.float32),
                    var=jnp.ones((n,), jnp.float32))

    p = {}
    p["conv1_w"] = uni(keys[0], (64, 3, 5, 5), 3 * 25)
    p["conv1_b"] = uni(keys[1], (64,), 3 * 25)
    p["bn1"] = bn(64)
    p["conv2_w"] = uni(keys[2], (50, 64, 5, 5), 64 * 25)
    p["conv2_b"] = uni(keys[3], (50,), 64 * 25)
    p["bn2"] = bn(50)
    p["fc_c1_w"] = uni(keys[4], (100, 800), 800)
    p["fc_c1_b"] = uni(keys[5], (100,), 800)
    p["bn_c1"] = bn(100)
    p["fc_c2_w"] = uni(keys[6], (100, 100), 100)
    p["fc_c2_b"] = uni(keys[7], (100,), 100)
    p["bn_c2"] = bn(100)
    p["fc_c3_w"] = uni(keys[8], (10, 100), 100)
    p["fc_c3_b"] = uni(keys[9], (10,), 100)
    p["fc_d1_w"] = uni(keys[10], (100, 800), 800)
    p["fc_d1_b"] = uni(keys[11], (100,), 800)
    p["bn_d1"] = bn(100)
    p["fc_d2_w"] = uni(keys[12], (2, 100), 100)
    p["fc_d2_b"] = uni(keys[13], (2,), 100)
    return p


# ---------------------------------------------------------------------------
# DANN forward (Pallas)
# ---------------------------------------------------------------------------
@jax.jit
def dann_forward(prep, data, alpha):
    del alpha  # gradient-reversal scale only affects backward; forward is identity
    B = data.shape[0]
    x = jnp.broadcast_to(data, (B, 3, 28, 28)).astype(jnp.float32)

    # conv1 im2col in HWC order (K = (di,dj,c), padded 75 -> 128), bf16 for the MXU.
    xh = jnp.transpose(x, (0, 2, 3, 1))                               # (B,28,28,3)
    cols = [xh[:, di:di + 24, dj:dj + 24, :]
            for di in range(5) for dj in range(5)]
    patches = jnp.stack(cols, axis=3).reshape(B, 576, 75)
    patches = jnp.pad(patches, ((0, 0), (0, 0), (0, 53))).astype(jnp.bfloat16)

    act1 = conv_block1(patches, prep["w1"], prep["s1"], prep["b1"])   # (B,12,12,128)

    # dj-shifted stack for the fused conv2 kernel (rows = h*8 + ow).
    xs = jnp.stack([act1[:, :, dj:dj + 8, :] for dj in range(5)], axis=1)
    xs = xs.reshape(B, 5, 96, 128)

    feat = conv_block2(xs, prep["w2"], prep["s2"], prep["b2"])        # (B,4,4,128)
    feat = feat.reshape(B, 2048)                                      # HWC, padded C

    # Classifier heads (ReverseLayerF forward == identity).
    tm = 128
    mp = ((B + tm - 1) // tm) * tm
    featp = jnp.pad(feat, ((0, mp - B), (0, 0)))
    cls = _head_call(
        _class_head_kernel, featp,
        (prep["wc1"], prep["sc1"], prep["bc1"],
         prep["wc2"], prep["sc2"], prep["bc2"],
         prep["wc3"], prep["bc3"]), tm)[:B, :10]
    dom = _head_call(
        _domain_head_kernel, featp,
        (prep["wd1"], prep["sd1"], prep["bd1"],
         prep["wd2"], prep["bd2"]), tm)[:B, :2]
    return cls, dom


# ---------------------------------------------------------------------------
# Pure-JAX reference (f32) for correctness checking
# ---------------------------------------------------------------------------
def _reference_forward(p, data):
    B = data.shape[0]
    x = jnp.broadcast_to(data, (B, 3, 28, 28)).astype(jnp.float32)

    def bn(y, b, eps=1e-5):
        sh = (1, -1) + (1,) * (y.ndim - 2)
        return ((y - b["mean"].reshape(sh)) / jnp.sqrt(b["var"].reshape(sh) + eps)
                * b["gamma"].reshape(sh) + b["beta"].reshape(sh))

    def conv(y, w, bias):
        y = jax.lax.conv_general_dilated(
            y, w, (1, 1), "VALID", dimension_numbers=("NCHW", "OIHW", "NCHW"))
        return y + bias.reshape(1, -1, 1, 1)

    def pool(y):
        b_, c, h, w = y.shape
        return y.reshape(b_, c, h // 2, 2, w // 2, 2).max(axis=(3, 5))

    y = jnp.maximum(pool(bn(conv(x, p["conv1_w"], p["conv1_b"]), p["bn1"])), 0.0)
    y = jnp.maximum(pool(bn(conv(y, p["conv2_w"], p["conv2_b"]), p["bn2"])), 0.0)
    feature = y.reshape(B, 800)

    def dense(h, w, bias):
        return h @ w.T + bias

    h = jnp.maximum(bn(dense(feature, p["fc_c1_w"], p["fc_c1_b"]), p["bn_c1"]), 0.0)
    h = jnp.maximum(bn(dense(h, p["fc_c2_w"], p["fc_c2_b"]), p["bn_c2"]), 0.0)
    cls = jax.nn.log_softmax(dense(h, p["fc_c3_w"], p["fc_c3_b"]), axis=-1)
    d = jnp.maximum(bn(dense(feature, p["fc_d1_w"], p["fc_d1_b"]), p["bn_d1"]), 0.0)
    dom = jax.nn.log_softmax(dense(d, p["fc_d2_w"], p["fc_d2_b"]), axis=-1)
    return cls, dom


# ---------------------------------------------------------------------------
if __name__ == "__main__":
    key = jax.random.PRNGKey(0)
    k_param, k_data = jax.random.split(key)
    params = init_params(k_param)
    prep = prepare_params(params)

    # MNIST-style grayscale input; forward expands it to (B, 3, 28, 28).
    data = jax.random.normal(k_data, (2, 1, 28, 28), jnp.float32)
    alpha = 0.5

    class_out, domain_out = dann_forward(prep, data, alpha)
    class_out, domain_out = jax.block_until_ready((class_out, domain_out))

    assert class_out.shape == (2, 10) and domain_out.shape == (2, 2)
    # log-softmax rows must exponentiate-sum to 1
    assert bool(jnp.allclose(jnp.exp(class_out).sum(-1), 1.0, atol=1e-3))
    assert bool(jnp.allclose(jnp.exp(domain_out).sum(-1), 1.0, atol=1e-3))

    # cross-check against a pure-JAX f32 reference (loose tol: bf16 MXU inputs)
    ref_cls, ref_dom = _reference_forward(params, data)
    assert bool(jnp.allclose(class_out, ref_cls, atol=0.15, rtol=0.05))
    assert bool(jnp.allclose(domain_out, ref_dom, atol=0.15, rtol=0.05))

    print("KERNEL_OK")
</pallas_src>

<mosaic_0001>
module attributes {stable_mosaic.version = 11 : i64} {
  func.func @_conv_block1_kernel(%arg0: i32, %arg1: memref<1x576x128xbf16, #tpu.memory_space<vmem>>, %arg2: memref<128x128xbf16, #tpu.memory_space<vmem>>, %arg3: memref<1x128xf32, #tpu.memory_space<vmem>>, %arg4: memref<1x128xf32, #tpu.memory_space<vmem>>, %arg5: memref<1x12x12x128xbf16, #tpu.memory_space<vmem>>, %arg6: memref<576x128xf32, #tpu.memory_space<vmem>>, %arg7: memref<24x128xf32, #tpu.memory_space<vmem>>) attributes {dimension_semantics = [#tpu.dimension_semantics<parallel>], iteration_bounds = array<i64: 2>, scalar_prefetch = 0 : i64, scratch_operands = 2 : i64, tpu.core_type = #tpu.core_type<tc>, window_params = [{transform_indices = @transform_0, window_bounds = array<i64: 1, 576, 128>}, {pipeline_mode = #tpu.pipeline_mode<synchronous>, transform_indices = @transform_1, window_bounds = array<i64: 128, 128>}, {pipeline_mode = #tpu.pipeline_mode<synchronous>, transform_indices = @transform_2, window_bounds = array<i64: 1, 128>}, {pipeline_mode = #tpu.pipeline_mode<synchronous>, transform_indices = @transform_3, window_bounds = array<i64: 1, 128>}, {transform_indices = @transform_4, window_bounds = array<i64: 1, 12, 12, 128>}]} {
    %c0 = arith.constant 0 : index
    %c0_0 = arith.constant 0 : index
    %c0_1 = arith.constant 0 : index
    %0 = vector.load %arg1[%c0, %c0_0, %c0_1] : memref<1x576x128xbf16, #tpu.memory_space<vmem>>, vector<1x576x128xbf16>
    %1 = vector.shape_cast %0 : vector<1x576x128xbf16> to vector<576x128xbf16>
    %c0_2 = arith.constant 0 : index
    %c0_3 = arith.constant 0 : index
    %2 = vector.load %arg2[%c0_2, %c0_3] : memref<128x128xbf16, #tpu.memory_space<vmem>>, vector<128x128xbf16>
    %cst = arith.constant dense<0.000000e+00> : vector<576x128xf32>
    %3 = tpu.matmul %1, %2, %cst {dimension_numbers = #tpu.dot_dimension_numbers<[1], [0], [0], [1], [0, 0, 1, 1], [], []>} : vector<576x128xbf16>, vector<128x128xbf16>, vector<576x128xf32> -> vector<576x128xf32>
    %c0_4 = arith.constant 0 : index
    %c0_5 = arith.constant 0 : index
    %4 = vector.load %arg3[%c0_4, %c0_5] : memref<1x128xf32, #tpu.memory_space<vmem>>, vector<1x128xf32>
    %5 = vector.broadcast %4 : vector<1x128xf32> to vector<576x128xf32>
    %6 = arith.mulf %3, %5 : vector<576x128xf32>
    %c0_6 = arith.constant 0 : index
    %c0_7 = arith.constant 0 : index
    %7 = vector.load %arg4[%c0_6, %c0_7] : memref<1x128xf32, #tpu.memory_space<vmem>>, vector<1x128xf32>
    %8 = vector.broadcast %7 : vector<1x128xf32> to vector<576x128xf32>
    %9 = arith.addf %6, %8 : vector<576x128xf32>
    %cst_8 = arith.constant 0.000000e+00 : f32
    %10 = vector.broadcast %cst_8 : f32 to vector<576x128xf32>
    %11 = arith.maximumf %9, %10 : vector<576x128xf32>
    %c0_9 = arith.constant 0 : index
    %c0_10 = arith.constant 0 : index
    %12 = vector.load %arg6[%c0_9, %c0_10] : memref<576x128xf32, #tpu.memory_space<vmem>>, vector<576x128xf32>
    tpu.vector_store %arg6[%c0_9, %c0_10], %11 {strides = array<i32>} : memref<576x128xf32, #tpu.memory_space<vmem>>, vector<576x128xf32>,
    %c0_11 = arith.constant 0 : index
    %c0_12 = arith.constant 0 : index
    %13 = vector.load %arg6[%c0_11, %c0_12] : memref<576x128xf32, #tpu.memory_space<vmem>>, vector<24x128xf32>
    %c24 = arith.constant 24 : index
    %c0_13 = arith.constant 0 : index
    %14 = vector.load %arg6[%c24, %c0_13] : memref<576x128xf32, #tpu.memory_space<vmem>>, vector<24x128xf32>
    %15 = arith.maximumf %13, %14 : vector<24x128xf32>
    %c0_14 = arith.constant 0 : index
    %c0_15 = arith.constant 0 : index
    %16 = vector.load %arg7[%c0_14, %c0_15] : memref<24x128xf32, #tpu.memory_space<vmem>>, vector<24x128xf32>
    tpu.vector_store %arg7[%c0_14, %c0_15], %15 {strides = array<i32>} : memref<24x128xf32, #tpu.memory_space<vmem>>, vector<24x128xf32>,
    %c0_16 = arith.constant 0 : index
    %c0_17 = arith.constant 0 : index
    %17 = tpu.strided_load %arg7[%c0_16, %c0_17] {strides = array<i32: 2, 1>} : memref<24x128xf32, #tpu.memory_space<vmem>>, vector<12x128xf32>
    %c1 = arith.constant 1 : index
    %c0_18 = arith.constant 0 : index
    %18 = tpu.strided_load %arg7[%c1, %c0_18] {strides = array<i32: 2, 1>} : memref<24x128xf32, #tpu.memory_space<vmem>>, vector<12x128xf32>
    %19 = arith.maximumf %17, %18 : vector<12x128xf32>
    %20 = arith.truncf %19 : vector<12x128xf32> to vector<12x128xbf16>
    %c0_19 = arith.constant 0 : index
    %c0_20 = arith.constant 0 : index
    %c0_21 = arith.constant 0 : index
    %c0_22 = arith.constant 0 : index
    %21 = vector.load %arg5[%c0_19, %c0_20, %c0_21, %c0_22] : memref<1x12x12x128xbf16, #tpu.memory_space<vmem>>, vector<1x1x12x128xbf16>
    %22 = vector.shape_cast %21 : vector<1x1x12x128xbf16> to vector<12x128xbf16>
    %23 = vector.shape_cast %20 : vector<12x128xbf16> to vector<1x1x12x128xbf16>
    tpu.vector_store %arg5[%c0_19, %c0_20, %c0_21, %c0_22], %23 {strides = array<i32>} : memref<1x12x12x128xbf16, #tpu.memory_space<vmem>>, vector<1x1x12x128xbf16>,
    %c48 = arith.constant 48 : index
    %c0_23 = arith.constant 0 : index
    %24 = vector.load %arg6[%c48, %c0_23] : memref<576x128xf32, #tpu.memory_space<vmem>>, vector<24x128xf32>
    %c72 = arith.constant 72 : index
    %c0_24 = arith.constant 0 : index
    %25 = vector.load %arg6[%c72, %c0_24] : memref<576x128xf32, #tpu.memory_space<vmem>>, vector<24x128xf32>
    %26 = arith.maximumf %24, %25 : vector<24x128xf32>
    %c0_25 = arith.constant 0 : index
    %c0_26 = arith.constant 0 : index
    %27 = vector.load %arg7[%c0_25, %c0_26] : memref<24x128xf32, #tpu.memory_space<vmem>>, vector<24x128xf32>
    tpu.vector_store %arg7[%c0_25, %c0_26], %26 {strides = array<i32>} : memref<24x128xf32, #tpu.memory_space<vmem>>, vector<24x128xf32>,
    %c0_27 = arith.constant 0 : index
    %c0_28 = arith.constant 0 : index
    %28 = tpu.strided_load %arg7[%c0_27, %c0_28] {strides = array<i32: 2, 1>} : memref<24x128xf32, #tpu.memory_space<vmem>>, vector<12x128xf32>
    %c1_29 = arith.constant 1 : index
    %c0_30 = arith.constant 0 : index
    %29 = tpu.strided_load %arg7[%c1_29, %c0_30] {strides = array<i32: 2, 1>} : memref<24x128xf32, #tpu.memory_space<vmem>>, vector<12x128xf32>
    %30 = arith.maximumf %28, %29 : vector<12x128xf32>
    %31 = arith.truncf %30 : vector<12x128xf32> to vector<12x128xbf16>
    %c0_31 = arith.constant 0 : index
    %c1_32 = arith.constant 1 : index
    %c0_33 = arith.constant 0 : index
    %c0_34 = arith.constant 0 : index
    %32 = vector.load %arg5[%c0_31, %c1_32, %c0_33, %c0_34] : memref<1x12x12x128xbf16, #tpu.memory_space<vmem>>, vector<1x1x12x128xbf16>
    %33 = vector.shape_cast %32 : vector<1x1x12x128xbf16> to vector<12x128xbf16>
    %34 = vector.shape_cast %31 : vector<12x128xbf16> to vector<1x1x12x128xbf16>
    tpu.vector_store %arg5[%c0_31, %c1_32, %c0_33, %c0_34], %34 {strides = array<i32>} : memref<1x12x12x128xbf16, #tpu.memory_space<vmem>>, vector<1x1x12x128xbf16>,
    %c96 = arith.constant 96 : index
    %c0_35 = arith.constant 0 : index
    %35 = vector.load %arg6[%c96, %c0_35] : memref<576x128xf32, #tpu.memory_space<vmem>>, vector<24x128xf32>
    %c120 = arith.constant 120 : index
    %c0_36 = arith.constant 0 : index
    %36 = vector.load %arg6[%c120, %c0_36] : memref<576x128xf32, #tpu.memory_space<vmem>>, vector<24x128xf32>
    %37 = arith.maximumf %35, %36 : vector<24x128xf32>
    %c0_37 = arith.constant 0 : index
    %c0_38 = arith.constant 0 : index
    %38 = vector.load %arg7[%c0_37, %c0_38] : memref<24x128xf32, #tpu.memory_space<vmem>>, vector<24x128xf32>
    tpu.vector_store %arg7[%c0_37, %c0_38], %37 {strides = array<i32>} : memref<24x128xf32, #tpu.memory_space<vmem>>, vector<24x128xf32>,
    %c0_39 = arith.constant 0 : index
    %c0_40 = arith.constant 0 : index
    %39 = tpu.strided_load %arg7[%c0_39, %c0_40] {strides = array<i32: 2, 1>} : memref<24x128xf32, #tpu.memory_space<vmem>>, vector<12x128xf32>
    %c1_41 = arith.constant 1 : index
    %c0_42 = arith.constant 0 : index
    %40 = tpu.strided_load %arg7[%c1_41, %c0_42] {strides = array<i32: 2, 1>} : memref<24x128xf32, #tpu.memory_space<vmem>>, vector<12x128xf32>
    %41 = arith.maximumf %39, %40 : vector<12x128xf32>
    %42 = arith.truncf %41 : vector<12x128xf32> to vector<12x128xbf16>
    %c0_43 = arith.constant 0 : index
    %c2 = arith.constant 2 : index
    %c0_44 = arith.constant 0 : index
    %c0_45 = arith.constant 0 : index
    %43 = vector.load %arg5[%c0_43, %c2, %c0_44, %c0_45] : memref<1x12x12x128xbf16, #tpu.memory_space<vmem>>, vector<1x1x12x128xbf16>
    %44 = vector.shape_cast %43 : vector<1x1x12x128xbf16> to vector<12x128xbf16>
    %45 = vector.shape_cast %42 : vector<12x128xbf16> to vector<1x1x12x128xbf16>
    tpu.vector_store %arg5[%c0_43, %c2, %c0_44, %c0_45], %45 {strides = array<i32>} : memref<1x12x12x128xbf16, #tpu.memory_space<vmem>>, vector<1x1x12x128xbf16>,
    %c144 = arith.constant 144 : index
    %c0_46 = arith.constant 0 : index
    %46 = vector.load %arg6[%c144, %c0_46] : memref<576x128xf32, #tpu.memory_space<vmem>>, vector<24x128xf32>
    %c168 = arith.constant 168 : index
    %c0_47 = arith.constant 0 : index
    %47 = vector.load %arg6[%c168, %c0_47] : memref<576x128xf32, #tpu.memory_space<vmem>>, vector<24x128xf32>
    %48 = arith.maximumf %46, %47 : vector<24x128xf32>
    %c0_48 = arith.constant 0 : index
    %c0_49 = arith.constant 0 : index
    %49 = vector.load %arg7[%c0_48, %c0_49] : memref<24x128xf32, #tpu.memory_space<vmem>>, vector<24x128xf32>
    tpu.vector_store %arg7[%c0_48, %c0_49], %48 {strides = array<i32>} : memref<24x128xf32, #tpu.memory_space<vmem>>, vector<24x128xf32>,
    %c0_50 = arith.constant 0 : index
    %c0_51 = arith.constant 0 : index
    %50 = tpu.strided_load %arg7[%c0_50, %c0_51] {strides = array<i32: 2, 1>} : memref<24x128xf32, #tpu.memory_space<vmem>>, vector<12x128xf32>
    %c1_52 = arith.constant 1 : index
    %c0_53 = arith.constant 0 : index
    %51 = tpu.strided_load %arg7[%c1_52, %c0_53] {strides = array<i32: 2, 1>} : memref<24x128xf32, #tpu.memory_space<vmem>>, vector<12x128xf32>
    %52 = arith.maximumf %50, %51 : vector<12x128xf32>
    %53 = arith.truncf %52 : vector<12x128xf32> to vector<12x128xbf16>
    %c0_54 = arith.constant 0 : index
    %c3 = arith.constant 3 : index
    %c0_55 = arith.constant 0 : index
    %c0_56 = arith.constant 0 : index
    %54 = vector.load %arg5[%c0_54, %c3, %c0_55, %c0_56] : memref<1x12x12x128xbf16, #tpu.memory_space<vmem>>, vector<1x1x12x128xbf16>
    %55 = vector.shape_cast %54 : vector<1x1x12x128xbf16> to vector<12x128xbf16>
    %56 = vector.shape_cast %53 : vector<12x128xbf16> to vector<1x1x12x128xbf16>
    tpu.vector_store %arg5[%c0_54, %c3, %c0_55, %c0_56], %56 {strides = array<i32>} : memref<1x12x12x128xbf16, #tpu.memory_space<vmem>>, vector<1x1x12x128xbf16>,
    %c192 = arith.constant 192 : index
    %c0_57 = arith.constant 0 : index
    %57 = vector.load %arg6[%c192, %c0_57] : memref<576x128xf32, #tpu.memory_space<vmem>>, vector<24x128xf32>
    %c216 = arith.constant 216 : index
    %c0_58 = arith.constant 0 : index
    %58 = vector.load %arg6[%c216, %c0_58] : memref<576x128xf32, #tpu.memory_space<vmem>>, vector<24x128xf32>
    %59 = arith.maximumf %57, %58 : vector<24x128xf32>
    %c0_59 = arith.constant 0 : index
    %c0_60 = arith.constant 0 : index
    %60 = vector.load %arg7[%c0_59, %c0_60] : memref<24x128xf32, #tpu.memory_space<vmem>>, vector<24x128xf32>
    tpu.vector_store %arg7[%c0_59, %c0_60], %59 {strides = array<i32>} : memref<24x128xf32, #tpu.memory_space<vmem>>, vector<24x128xf32>,
    %c0_61 = arith.constant 0 : index
    %c0_62 = arith.constant 0 : index
    %61 = tpu.strided_load %arg7[%c0_61, %c0_62] {strides = array<i32: 2, 1>} : memref<24x128xf32, #tpu.memory_space<vmem>>, vector<12x128xf32>
    %c1_63 = arith.constant 1 : index
    %c0_64 = arith.constant 0 : index
    %62 = tpu.strided_load %arg7[%c1_63, %c0_64] {strides = array<i32: 2, 1>} : memref<24x128xf32, #tpu.memory_space<vmem>>, vector<12x128xf32>
    %63 = arith.maximumf %61, %62 : vector<12x128xf32>
    %64 = arith.truncf %63 : vector<12x128xf32> to vector<12x128xbf16>
    %c0_65 = arith.constant 0 : index
    %c4 = arith.constant 4 : index
    %c0_66 = arith.constant 0 : index
    %c0_67 = arith.constant 0 : index
    %65 = vector.load %arg5[%c0_65, %c4, %c0_66, %c0_67] : memref<1x12x12x128xbf16, #tpu.memory_space<vmem>>, vector<1x1x12x128xbf16>
    %66 = vector.shape_cast %65 : vector<1x1x12x128xbf16> to vector<12x128xbf16>
    %67 = vector.shape_cast %64 : vector<12x128xbf16> to vector<1x1x12x128xbf16>
    tpu.vector_store %arg5[%c0_65, %c4, %c0_66, %c0_67], %67 {strides = array<i32>} : memref<1x12x12x128xbf16, #tpu.memory_space<vmem>>, vector<1x1x12x128xbf16>,
    %c240 = arith.constant 240 : index
    %c0_68 = arith.constant 0 : index
    %68 = vector.load %arg6[%c240, %c0_68] : memref<576x128xf32, #tpu.memory_space<vmem>>, vector<24x128xf32>
    %c264 = arith.constant 264 : index
    %c0_69 = arith.constant 0 : index
    %69 = vector.load %arg6[%c264, %c0_69] : memref<576x128xf32, #tpu.memory_space<vmem>>, vector<24x128xf32>
    %70 = arith.maximumf %68, %69 : vector<24x128xf32>
    %c0_70 = arith.constant 0 : index
    %c0_71 = arith.constant 0 : index
    %71 = vector.load %arg7[%c0_70, %c0_71] : memref<24x128xf32, #tpu.memory_space<vmem>>, vector<24x128xf32>
    tpu.vector_store %arg7[%c0_70, %c0_71], %70 {strides = array<i32>} : memref<24x128xf32, #tpu.memory_space<vmem>>, vector<24x128xf32>,
    %c0_72 = arith.constant 0 : index
    %c0_73 = arith.constant 0 : index
    %72 = tpu.strided_load %arg7[%c0_72, %c0_73] {strides = array<i32: 2, 1>} : memref<24x128xf32, #tpu.memory_space<vmem>>, vector<12x128xf32>
    %c1_74 = arith.constant 1 : index
    %c0_75 = arith.constant 0 : index
    %73 = tpu.strided_load %arg7[%c1_74, %c0_75] {strides = array<i32: 2, 1>} : memref<24x128xf32, #tpu.memory_space<vmem>>, vector<12x128xf32>
    %74 = arith.maximumf %72, %73 : vector<12x128xf32>
    %75 = arith.truncf %74 : vector<12x128xf32> to vector<12x128xbf16>
    %c0_76 = arith.constant 0 : index
    %c5 = arith.constant 5 : index
    %c0_77 = arith.constant 0 : index
    %c0_78 = arith.constant 0 : index
    %76 = vector.load %arg5[%c0_76, %c5, %c0_77, %c0_78] : memref<1x12x12x128xbf16, #tpu.memory_space<vmem>>, vector<1x1x12x128xbf16>
    %77 = vector.shape_cast %76 : vector<1x1x12x128xbf16> to vector<12x128xbf16>
    %78 = vector.shape_cast %75 : vector<12x128xbf16> to vector<1x1x12x128xbf16>
    tpu.vector_store %arg5[%c0_76, %c5, %c0_77, %c0_78], %78 {strides = array<i32>} : memref<1x12x12x128xbf16, #tpu.memory_space<vmem>>, vector<1x1x12x128xbf16>,
    %c288 = arith.constant 288 : index
    %c0_79 = arith.constant 0 : index
    %79 = vector.load %arg6[%c288, %c0_79] : memref<576x128xf32, #tpu.memory_space<vmem>>, vector<24x128xf32>
    %c312 = arith.constant 312 : index
    %c0_80 = arith.constant 0 : index
    %80 = vector.load %arg6[%c312, %c0_80] : memref<576x128xf32, #tpu.memory_space<vmem>>, vector<24x128xf32>
    %81 = arith.maximumf %79, %80 : vector<24x128xf32>
    %c0_81 = arith.constant 0 : index
    %c0_82 = arith.constant 0 : index
    %82 = vector.load %arg7[%c0_81, %c0_82] : memref<24x128xf32, #tpu.memory_space<vmem>>, vector<24x128xf32>
    tpu.vector_store %arg7[%c0_81, %c0_82], %81 {strides = array<i32>} : memref<24x128xf32, #tpu.memory_space<vmem>>, vector<24x128xf32>,
    %c0_83 = arith.constant 0 : index
    %c0_84 = arith.constant 0 : index
    %83 = tpu.strided_load %arg7[%c0_83, %c0_84] {strides = array<i32: 2, 1>} : memref<24x128xf32, #tpu.memory_space<vmem>>, vector<12x128xf32>
    %c1_85 = arith.constant 1 : index
    %c0_86 = arith.constant 0 : index
    %84 = tpu.strided_load %arg7[%c1_85, %c0_86] {strides = array<i32: 2, 1>} : memref<24x128xf32, #tpu.memory_space<vmem>>, vector<12x128xf32>
    %85 = arith.maximumf %83, %84 : vector<12x128xf32>
    %86 = arith.truncf %85 : vector<12x128xf32> to vector<12x128xbf16>
    %c0_87 = arith.constant 0 : index
    %c6 = arith.constant 6 : index
    %c0_88 = arith.constant 0 : index
    %c0_89 = arith.constant 0 : index
    %87 = vector.load %arg5[%c0_87, %c6, %c0_88, %c0_89] : memref<1x12x12x128xbf16, #tpu.memory_space<vmem>>, vector<1x1x12x128xbf16>
    %88 = vector.shape_cast %87 : vector<1x1x12x128xbf16> to vector<12x128xbf16>
    %89 = vector.shape_cast %86 : vector<12x128xbf16> to vector<1x1x12x128xbf16>
    tpu.vector_store %arg5[%c0_87, %c6, %c0_88, %c0_89], %89 {strides = array<i32>} : memref<1x12x12x128xbf16, #tpu.memory_space<vmem>>, vector<1x1x12x128xbf16>,
    %c336 = arith.constant 336 : index
    %c0_90 = arith.constant 0 : index
    %90 = vector.load %arg6[%c336, %c0_90] : memref<576x128xf32, #tpu.memory_space<vmem>>, vector<24x128xf32>
    %c360 = arith.constant 360 : index
    %c0_91 = arith.constant 0 : index
    %91 = vector.load %arg6[%c360, %c0_91] : memref<576x128xf32, #tpu.memory_space<vmem>>, vector<24x128xf32>
    %92 = arith.maximumf %90, %91 : vector<24x128xf32>
    %c0_92 = arith.constant 0 : index
    %c0_93 = arith.constant 0 : index
    %93 = vector.load %arg7[%c0_92, %c0_93] : memref<24x128xf32, #tpu.memory_space<vmem>>, vector<24x128xf32>
    tpu.vector_store %arg7[%c0_92, %c0_93], %92 {strides = array<i32>} : memref<24x128xf32, #tpu.memory_space<vmem>>, vector<24x128xf32>,
    %c0_94 = arith.constant 0 : index
    %c0_95 = arith.constant 0 : index
    %94 = tpu.strided_load %arg7[%c0_94, %c0_95] {strides = array<i32: 2, 1>} : memref<24x128xf32, #tpu.memory_space<vmem>>, vector<12x128xf32>
    %c1_96 = arith.constant 1 : index
    %c0_97 = arith.constant 0 : index
    %95 = tpu.strided_load %arg7[%c1_96, %c0_97] {strides = array<i32: 2, 1>} : memref<24x128xf32, #tpu.memory_space<vmem>>, vector<12x128xf32>
    %96 = arith.maximumf %94, %95 : vector<12x128xf32>
    %97 = arith.truncf %96 : vector<12x128xf32> to vector<12x128xbf16>
    %c0_98 = arith.constant 0 : index
    %c7 = arith.constant 7 : index
    %c0_99 = arith.constant 0 : index
    %c0_100 = arith.constant 0 : index
    %98 = vector.load %arg5[%c0_98, %c7, %c0_99, %c0_100] : memref<1x12x12x128xbf16, #tpu.memory_space<vmem>>, vector<1x1x12x128xbf16>
    %99 = vector.shape_cast %98 : vector<1x1x12x128xbf16> to vector<12x128xbf16>
    %100 = vector.shape_cast %97 : vector<12x128xbf16> to vector<1x1x12x128xbf16>
    tpu.vector_store %arg5[%c0_98, %c7, %c0_99, %c0_100], %100 {strides = array<i32>} : memref<1x12x12x128xbf16, #tpu.memory_space<vmem>>, vector<1x1x12x128xbf16>,
    %c384 = arith.constant 384 : index
    %c0_101 = arith.constant 0 : index
    %101 = vector.load %arg6[%c384, %c0_101] : memref<576x128xf32, #tpu.memory_space<vmem>>, vector<24x128xf32>
    %c408 = arith.constant 408 : index
    %c0_102 = arith.constant 0 : index
    %102 = vector.load %arg6[%c408, %c0_102] : memref<576x128xf32, #tpu.memory_space<vmem>>, vector<24x128xf32>
    %103 = arith.maximumf %101, %102 : vector<24x128xf32>
    %c0_103 = arith.constant 0 : index
    %c0_104 = arith.constant 0 : index
    %104 = vector.load %arg7[%c0_103, %c0_104] : memref<24x128xf32, #tpu.memory_space<vmem>>, vector<24x128xf32>
    tpu.vector_store %arg7[%c0_103, %c0_104], %103 {strides = array<i32>} : memref<24x128xf32, #tpu.memory_space<vmem>>, vector<24x128xf32>,
    %c0_105 = arith.constant 0 : index
    %c0_106 = arith.constant 0 : index
    %105 = tpu.strided_load %arg7[%c0_105, %c0_106] {strides = array<i32: 2, 1>} : memref<24x128xf32, #tpu.memory_space<vmem>>, vector<12x128xf32>
    %c1_107 = arith.constant 1 : index
    %c0_108 = arith.constant 0 : index
    %106 = tpu.strided_load %arg7[%c1_107, %c0_108] {strides = array<i32: 2, 1>} : memref<24x128xf32, #tpu.memory_space<vmem>>, vector<12x128xf32>
    %107 = arith.maximumf %105, %106 : vector<12x128xf32>
    %108 = arith.truncf %107 : vector<12x128xf32> to vector<12x128xbf16>
    %c0_109 = arith.constant 0 : index
    %c8 = arith.constant 8 : index
    %c0_110 = arith.constant 0 : index
    %c0_111 = arith.constant 0 : index
    %109 = vector.load %arg5[%c0_109, %c8, %c0_110, %c0_111] : memref<1x12x12x128xbf16, #tpu.memory_space<vmem>>, vector<1x1x12x128xbf16>
    %110 = vector.shape_cast %109 : vector<1x1x12x128xbf16> to vector<12x128xbf16>
    %111 = vector.shape_cast %108 : vector<12x128xbf16> to vector<1x1x12x128xbf16>
    tpu.vector_store %arg5[%c0_109, %c8, %c0_110, %c0_111], %111 {strides = array<i32>} : memref<1x12x12x128xbf16, #tpu.memory_space<vmem>>, vector<1x1x12x128xbf16>,
    %c432 = arith.constant 432 : index
    %c0_112 = arith.constant 0 : index
    %112 = vector.load %arg6[%c432, %c0_112] : memref<576x128xf32, #tpu.memory_space<vmem>>, vector<24x128xf32>
    %c456 = arith.constant 456 : index
    %c0_113 = arith.constant 0 : index
    %113 = vector.load %arg6[%c456, %c0_113] : memref<576x128xf32, #tpu.memory_space<vmem>>, vector<24x128xf32>
    %114 = arith.maximumf %112, %113 : vector<24x128xf32>
    %c0_114 = arith.constant 0 : index
    %c0_115 = arith.constant 0 : index
    %115 = vector.load %arg7[%c0_114, %c0_115] : memref<24x128xf32, #tpu.memory_space<vmem>>, vector<24x128xf32>
    tpu.vector_store %arg7[%c0_114, %c0_115], %114 {strides = array<i32>} : memref<24x128xf32, #tpu.memory_space<vmem>>, vector<24x128xf32>,
    %c0_116 = arith.constant 0 : index
    %c0_117 = arith.constant 0 : index
    %116 = tpu.strided_load %arg7[%c0_116, %c0_117] {strides = array<i32: 2, 1>} : memref<24x128xf32, #tpu.memory_space<vmem>>, vector<12x128xf32>
    %c1_118 = arith.constant 1 : index
    %c0_119 = arith.constant 0 : index
    %117 = tpu.strided_load %arg7[%c1_118, %c0_119] {strides = array<i32: 2, 1>} : memref<24x128xf32, #tpu.memory_space<vmem>>, vector<12x128xf32>
    %118 = arith.maximumf %116, %117 : vector<12x128xf32>
    %119 = arith.truncf %118 : vector<12x128xf32> to vector<12x128xbf16>
    %c0_120 = arith.constant 0 : index
    %c9 = arith.constant 9 : index
    %c0_121 = arith.constant 0 : index
    %c0_122 = arith.constant 0 : index
    %120 = vector.load %arg5[%c0_120, %c9, %c0_121, %c0_122] : memref<1x12x12x128xbf16, #tpu.memory_space<vmem>>, vector<1x1x12x128xbf16>
    %121 = vector.shape_cast %120 : vector<1x1x12x128xbf16> to vector<12x128xbf16>
    %122 = vector.shape_cast %119 : vector<12x128xbf16> to vector<1x1x12x128xbf16>
    tpu.vector_store %arg5[%c0_120, %c9, %c0_121, %c0_122], %122 {strides = array<i32>} : memref<1x12x12x128xbf16, #tpu.memory_space<vmem>>, vector<1x1x12x128xbf16>,
    %c480 = arith.constant 480 : index
    %c0_123 = arith.constant 0 : index
    %123 = vector.load %arg6[%c480, %c0_123] : memref<576x128xf32, #tpu.memory_space<vmem>>, vector<24x128xf32>
    %c504 = arith.constant 504 : index
    %c0_124 = arith.constant 0 : index
    %124 = vector.load %arg6[%c504, %c0_124] : memref<576x128xf32, #tpu.memory_space<vmem>>, vector<24x128xf32>
    %125 = arith.maximumf %123, %124 : vector<24x128xf32>
    %c0_125 = arith.constant 0 : index
    %c0_126 = arith.constant 0 : index
    %126 = vector.load %arg7[%c0_125, %c0_126] : memref<24x128xf32, #tpu.memory_space<vmem>>, vector<24x128xf32>
    tpu.vector_store %arg7[%c0_125, %c0_126], %125 {strides = array<i32>} : memref<24x128xf32, #tpu.memory_space<vmem>>, vector<24x128xf32>,
    %c0_127 = arith.constant 0 : index
    %c0_128 = arith.constant 0 : index
    %127 = tpu.strided_load %arg7[%c0_127, %c0_128] {strides = array<i32: 2, 1>} : memref<24x128xf32, #tpu.memory_space<vmem>>, vector<12x128xf32>
    %c1_129 = arith.constant 1 : index
    %c0_130 = arith.constant 0 : index
    %128 = tpu.strided_load %arg7[%c1_129, %c0_130] {strides = array<i32: 2, 1>} : memref<24x128xf32, #tpu.memory_space<vmem>>, vector<12x128xf32>
    %129 = arith.maximumf %127, %128 : vector<12x128xf32>
    %130 = arith.truncf %129 : vector<12x128xf32> to vector<12x128xbf16>
    %c0_131 = arith.constant 0 : index
    %c10 = arith.constant 10 : index
    %c0_132 = arith.constant 0 : index
    %c0_133 = arith.constant 0 : index
    %131 = vector.load %arg5[%c0_131, %c10, %c0_132, %c0_133] : memref<1x12x12x128xbf16, #tpu.memory_space<vmem>>, vector<1x1x12x128xbf16>
    %132 = vector.shape_cast %131 : vector<1x1x12x128xbf16> to vector<12x128xbf16>
    %133 = vector.shape_cast %130 : vector<12x128xbf16> to vector<1x1x12x128xbf16>
    tpu.vector_store %arg5[%c0_131, %c10, %c0_132, %c0_133], %133 {strides = array<i32>} : memref<1x12x12x128xbf16, #tpu.memory_space<vmem>>, vector<1x1x12x128xbf16>,
    %c528 = arith.constant 528 : index
    %c0_134 = arith.constant 0 : index
    %134 = vector.load %arg6[%c528, %c0_134] : memref<576x128xf32, #tpu.memory_space<vmem>>, vector<24x128xf32>
    %c552 = arith.constant 552 : index
    %c0_135 = arith.constant 0 : index
    %135 = vector.load %arg6[%c552, %c0_135] : memref<576x128xf32, #tpu.memory_space<vmem>>, vector<24x128xf32>
    %136 = arith.maximumf %134, %135 : vector<24x128xf32>
    %c0_136 = arith.constant 0 : index
    %c0_137 = arith.constant 0 : index
    %137 = vector.load %arg7[%c0_136, %c0_137] : memref<24x128xf32, #tpu.memory_space<vmem>>, vector<24x128xf32>
    tpu.vector_store %arg7[%c0_136, %c0_137], %136 {strides = array<i32>} : memref<24x128xf32, #tpu.memory_space<vmem>>, vector<24x128xf32>,
    %c0_138 = arith.constant 0 : index
    %c0_139 = arith.constant 0 : index
    %138 = tpu.strided_load %arg7[%c0_138, %c0_139] {strides = array<i32: 2, 1>} : memref<24x128xf32, #tpu.memory_space<vmem>>, vector<12x128xf32>
    %c1_140 = arith.constant 1 : index
    %c0_141 = arith.constant 0 : index
    %139 = tpu.strided_load %arg7[%c1_140, %c0_141] {strides = array<i32: 2, 1>} : memref<24x128xf32, #tpu.memory_space<vmem>>, vector<12x128xf32>
    %140 = arith.maximumf %138, %139 : vector<12x128xf32>
    %141 = arith.truncf %140 : vector<12x128xf32> to vector<12x128xbf16>
    %c0_142 = arith.constant 0 : index
    %c11 = arith.constant 11 : index
    %c0_143 = arith.constant 0 : index
    %c0_144 = arith.constant 0 : index
    %142 = vector.load %arg5[%c0_142, %c11, %c0_143, %c0_144] : memref<1x12x12x128xbf16, #tpu.memory_space<vmem>>, vector<1x1x12x128xbf16>
    %143 = vector.shape_cast %142 : vector<1x1x12x128xbf16> to vector<12x128xbf16>
    %144 = vector.shape_cast %141 : vector<12x128xbf16> to vector<1x1x12x128xbf16>
    tpu.vector_store %arg5[%c0_142, %c11, %c0_143, %c0_144], %144 {strides = array<i32>} : memref<1x12x12x128xbf16, #tpu.memory_space<vmem>>, vector<1x1x12x128xbf16>,
    return
  }
  func.func @transform_0(%arg0: i32) -> (i32, i32, i32) {
    %c0_i32 = arith.constant 0 : i32
    %c0_i32_0 = arith.constant 0 : i32
    %c0_i32_1 = arith.constant 0 : i32
    return %arg0, %c0_i32, %c0_i32_0 : i32, i32, i32
  }
  func.func @transform_1(%arg0: i32) -> (i32, i32) {
    %c0_i32 = arith.constant 0 : i32
    %c0_i32_0 = arith.constant 0 : i32
    %c0_i32_1 = arith.constant 0 : i32
    return %c0_i32, %c0_i32_0 : i32, i32
  }
  func.func @transform_2(%arg0: i32) -> (i32, i32) {
    %c0_i32 = arith.constant 0 : i32
    %c0_i32_0 = arith.constant 0 : i32
    %c0_i32_1 = arith.constant 0 : i32
    return %c0_i32, %c0_i32_0 : i32, i32
  }
  func.func @transform_3(%arg0: i32) -> (i32, i32) {
    %c0_i32 = arith.constant 0 : i32
    %c0_i32_0 = arith.constant 0 : i32
    %c0_i32_1 = arith.constant 0 : i32
    return %c0_i32, %c0_i32_0 : i32, i32
  }
  func.func @transform_4(%arg0: i32) -> (i32, i32, i32, i32) {
    %c0_i32 = arith.constant 0 : i32
    %c0_i32_0 = arith.constant 0 : i32
    %c0_i32_1 = arith.constant 0 : i32
    %c0_i32_2 = arith.constant 0 : i32
    return %arg0, %c0_i32, %c0_i32_0, %c0_i32_1 : i32, i32, i32, i32
  }
}

module attributes {stable_mosaic.version = 11 : i64} {
  func.func @_conv_block2_kernel(%arg0: i32, %arg1: memref<1x5x96x128xbf16, #tpu.memory_space<vmem>>, %arg2: memref<3200x128xbf16, #tpu.memory_space<vmem>>, %arg3: memref<1x128xf32, #tpu.memory_space<vmem>>, %arg4: memref<1x128xf32, #tpu.memory_space<vmem>>, %arg5: memref<1x4x4x128xbf16, #tpu.memory_space<vmem>>, %arg6: memref<64x128xf32, #tpu.memory_space<vmem>>, %arg7: memref<8x128xf32, #tpu.memory_space<vmem>>) attributes {dimension_semantics = [#tpu.dimension_semantics<parallel>], iteration_bounds = array<i64: 2>, scalar_prefetch = 0 : i64, scratch_operands = 2 : i64, tpu.core_type = #tpu.core_type<tc>, window_params = [{transform_indices = @transform_0, window_bounds = array<i64: 1, 5, 96, 128>}, {pipeline_mode = #tpu.pipeline_mode<synchronous>, transform_indices = @transform_1, window_bounds = array<i64: 3200, 128>}, {pipeline_mode = #tpu.pipeline_mode<synchronous>, transform_indices = @transform_2, window_bounds = array<i64: 1, 128>}, {pipeline_mode = #tpu.pipeline_mode<synchronous>, transform_indices = @transform_3, window_bounds = array<i64: 1, 128>}, {transform_indices = @transform_4, window_bounds = array<i64: 1, 4, 4, 128>}]} {
    %cst = arith.constant 0.000000e+00 : f32
    %0 = vector.broadcast %cst : f32 to vector<64x128xf32>
    %c0 = arith.constant 0 : index
    %c0_0 = arith.constant 0 : index
    %c0_1 = arith.constant 0 : index
    %c0_2 = arith.constant 0 : index
    %1 = vector.load %arg1[%c0, %c0_0, %c0_1, %c0_2] : memref<1x5x96x128xbf16, #tpu.memory_space<vmem>>, vector<1x1x64x128xbf16>
    %2 = vector.shape_cast %1 : vector<1x1x64x128xbf16> to vector<64x128xbf16>
    %c0_3 = arith.constant 0 : index
    %c0_4 = arith.constant 0 : index
    %3 = vector.load %arg2[%c0_3, %c0_4] : memref<3200x128xbf16, #tpu.memory_space<vmem>>, vector<128x128xbf16>
    %cst_5 = arith.constant dense<0.000000e+00> : vector<64x128xf32>
    %4 = tpu.matmul %2, %3, %cst_5 {dimension_numbers = #tpu.dot_dimension_numbers<[1], [0], [0], [1], [0, 0, 1, 1], [], []>} : vector<64x128xbf16>, vector<128x128xbf16>, vector<64x128xf32> -> vector<64x128xf32>
    %5 = arith.addf %0, %4 : vector<64x128xf32>
    %c0_6 = arith.constant 0 : index
    %c1 = arith.constant 1 : index
    %c0_7 = arith.constant 0 : index
    %c0_8 = arith.constant 0 : index
    %6 = vector.load %arg1[%c0_6, %c1, %c0_7, %c0_8] : memref<1x5x96x128xbf16, #tpu.memory_space<vmem>>, vector<1x1x64x128xbf16>
    %7 = vector.shape_cast %6 : vector<1x1x64x128xbf16> to vector<64x128xbf16>
    %c128 = arith.constant 128 : index
    %c0_9 = arith.constant 0 : index
    %8 = vector.load %arg2[%c128, %c0_9] : memref<3200x128xbf16, #tpu.memory_space<vmem>>, vector<128x128xbf16>
    %cst_10 = arith.constant dense<0.000000e+00> : vector<64x128xf32>
    %9 = tpu.matmul %7, %8, %cst_10 {dimension_numbers = #tpu.dot_dimension_numbers<[1], [0], [0], [1], [0, 0, 1, 1], [], []>} : vector<64x128xbf16>, vector<128x128xbf16>, vector<64x128xf32> -> vector<64x128xf32>
    %10 = arith.addf %5, %9 : vector<64x128xf32>
    %c0_11 = arith.constant 0 : index
    %c2 = arith.constant 2 : index
    %c0_12 = arith.constant 0 : index
    %c0_13 = arith.constant 0 : index
    %11 = vector.load %arg1[%c0_11, %c2, %c0_12, %c0_13] : memref<1x5x96x128xbf16, #tpu.memory_space<vmem>>, vector<1x1x64x128xbf16>
    %12 = vector.shape_cast %11 : vector<1x1x64x128xbf16> to vector<64x128xbf16>
    %c256 = arith.constant 256 : index
    %c0_14 = arith.constant 0 : index
    %13 = vector.load %arg2[%c256, %c0_14] : memref<3200x128xbf16, #tpu.memory_space<vmem>>, vector<128x128xbf16>
    %cst_15 = arith.constant dense<0.000000e+00> : vector<64x128xf32>
    %14 = tpu.matmul %12, %13, %cst_15 {dimension_numbers = #tpu.dot_dimension_numbers<[1], [0], [0], [1], [0, 0, 1, 1], [], []>} : vector<64x128xbf16>, vector<128x128xbf16>, vector<64x128xf32> -> vector<64x128xf32>
    %15 = arith.addf %10, %14 : vector<64x128xf32>
    %c0_16 = arith.constant 0 : index
    %c3 = arith.constant 3 : index
    %c0_17 = arith.constant 0 : index
    %c0_18 = arith.constant 0 : index
    %16 = vector.load %arg1[%c0_16, %c3, %c0_17, %c0_18] : memref<1x5x96x128xbf16, #tpu.memory_space<vmem>>, vector<1x1x64x128xbf16>
    %17 = vector.shape_cast %16 : vector<1x1x64x128xbf16> to vector<64x128xbf16>
    %c384 = arith.constant 384 : index
    %c0_19 = arith.constant 0 : index
    %18 = vector.load %arg2[%c384, %c0_19] : memref<3200x128xbf16, #tpu.memory_space<vmem>>, vector<128x128xbf16>
    %cst_20 = arith.constant dense<0.000000e+00> : vector<64x128xf32>
    %19 = tpu.matmul %17, %18, %cst_20 {dimension_numbers = #tpu.dot_dimension_numbers<[1], [0], [0], [1], [0, 0, 1, 1], [], []>} : vector<64x128xbf16>, vector<128x128xbf16>, vector<64x128xf32> -> vector<64x128xf32>
    %20 = arith.addf %15, %19 : vector<64x128xf32>
    %c0_21 = arith.constant 0 : index
    %c4 = arith.constant 4 : index
    %c0_22 = arith.constant 0 : index
    %c0_23 = arith.constant 0 : index
    %21 = vector.load %arg1[%c0_21, %c4, %c0_22, %c0_23] : memref<1x5x96x128xbf16, #tpu.memory_space<vmem>>, vector<1x1x64x128xbf16>
    %22 = vector.shape_cast %21 : vector<1x1x64x128xbf16> to vector<64x128xbf16>
    %c512 = arith.constant 512 : index
    %c0_24 = arith.constant 0 : index
    %23 = vector.load %arg2[%c512, %c0_24] : memref<3200x128xbf16, #tpu.memory_space<vmem>>, vector<128x128xbf16>
    %cst_25 = arith.constant dense<0.000000e+00> : vector<64x128xf32>
    %24 = tpu.matmul %22, %23, %cst_25 {dimension_numbers = #tpu.dot_dimension_numbers<[1], [0], [0], [1], [0, 0, 1, 1], [], []>} : vector<64x128xbf16>, vector<128x128xbf16>, vector<64x128xf32> -> vector<64x128xf32>
    %25 = arith.addf %20, %24 : vector<64x128xf32>
    %c0_26 = arith.constant 0 : index
    %c0_27 = arith.constant 0 : index
    %c8 = arith.constant 8 : index
    %c0_28 = arith.constant 0 : index
    %26 = vector.load %arg1[%c0_26, %c0_27, %c8, %c0_28] : memref<1x5x96x128xbf16, #tpu.memory_space<vmem>>, vector<1x1x64x128xbf16>
    %27 = vector.shape_cast %26 : vector<1x1x64x128xbf16> to vector<64x128xbf16>
    %c640 = arith.constant 640 : index
    %c0_29 = arith.constant 0 : index
    %28 = vector.load %arg2[%c640, %c0_29] : memref<3200x128xbf16, #tpu.memory_space<vmem>>, vector<128x128xbf16>
    %cst_30 = arith.constant dense<0.000000e+00> : vector<64x128xf32>
    %29 = tpu.matmul %27, %28, %cst_30 {dimension_numbers = #tpu.dot_dimension_numbers<[1], [0], [0], [1], [0, 0, 1, 1], [], []>} : vector<64x128xbf16>, vector<128x128xbf16>, vector<64x128xf32> -> vector<64x128xf32>
    %30 = arith.addf %25, %29 : vector<64x128xf32>
    %c0_31 = arith.constant 0 : index
    %c1_32 = arith.constant 1 : index
    %c8_33 = arith.constant 8 : index
    %c0_34 = arith.constant 0 : index
    %31 = vector.load %arg1[%c0_31, %c1_32, %c8_33, %c0_34] : memref<1x5x96x128xbf16, #tpu.memory_space<vmem>>, vector<1x1x64x128xbf16>
    %32 = vector.shape_cast %31 : vector<1x1x64x128xbf16> to vector<64x128xbf16>
    %c768 = arith.constant 768 : index
    %c0_35 = arith.constant 0 : index
    %33 = vector.load %arg2[%c768, %c0_35] : memref<3200x128xbf16, #tpu.memory_space<vmem>>, vector<128x128xbf16>
    %cst_36 = arith.constant dense<0.000000e+00> : vector<64x128xf32>
    %34 = tpu.matmul %32, %33, %cst_36 {dimension_numbers = #tpu.dot_dimension_numbers<[1], [0], [0], [1], [0, 0, 1, 1], [], []>} : vector<64x128xbf16>, vector<128x128xbf16>, vector<64x128xf32> -> vector<64x128xf32>
    %35 = arith.addf %30, %34 : vector<64x128xf32>
    %c0_37 = arith.constant 0 : index
    %c2_38 = arith.constant 2 : index
    %c8_39 = arith.constant 8 : index
    %c0_40 = arith.constant 0 : index
    %36 = vector.load %arg1[%c0_37, %c2_38, %c8_39, %c0_40] : memref<1x5x96x128xbf16, #tpu.memory_space<vmem>>, vector<1x1x64x128xbf16>
    %37 = vector.shape_cast %36 : vector<1x1x64x128xbf16> to vector<64x128xbf16>
    %c896 = arith.constant 896 : index
    %c0_41 = arith.constant 0 : index
    %38 = vector.load %arg2[%c896, %c0_41] : memref<3200x128xbf16, #tpu.memory_space<vmem>>, vector<128x128xbf16>
    %cst_42 = arith.constant dense<0.000000e+00> : vector<64x128xf32>
    %39 = tpu.matmul %37, %38, %cst_42 {dimension_numbers = #tpu.dot_dimension_numbers<[1], [0], [0], [1], [0, 0, 1, 1], [], []>} : vector<64x128xbf16>, vector<128x128xbf16>, vector<64x128xf32> -> vector<64x128xf32>
    %40 = arith.addf %35, %39 : vector<64x128xf32>
    %c0_43 = arith.constant 0 : index
    %c3_44 = arith.constant 3 : index
    %c8_45 = arith.constant 8 : index
    %c0_46 = arith.constant 0 : index
    %41 = vector.load %arg1[%c0_43, %c3_44, %c8_45, %c0_46] : memref<1x5x96x128xbf16, #tpu.memory_space<vmem>>, vector<1x1x64x128xbf16>
    %42 = vector.shape_cast %41 : vector<1x1x64x128xbf16> to vector<64x128xbf16>
    %c1024 = arith.constant 1024 : index
    %c0_47 = arith.constant 0 : index
    %43 = vector.load %arg2[%c1024, %c0_47] : memref<3200x128xbf16, #tpu.memory_space<vmem>>, vector<128x128xbf16>
    %cst_48 = arith.constant dense<0.000000e+00> : vector<64x128xf32>
    %44 = tpu.matmul %42, %43, %cst_48 {dimension_numbers = #tpu.dot_dimension_numbers<[1], [0], [0], [1], [0, 0, 1, 1], [], []>} : vector<64x128xbf16>, vector<128x128xbf16>, vector<64x128xf32> -> vector<64x128xf32>
    %45 = arith.addf %40, %44 : vector<64x128xf32>
    %c0_49 = arith.constant 0 : index
    %c4_50 = arith.constant 4 : index
    %c8_51 = arith.constant 8 : index
    %c0_52 = arith.constant 0 : index
    %46 = vector.load %arg1[%c0_49, %c4_50, %c8_51, %c0_52] : memref<1x5x96x128xbf16, #tpu.memory_space<vmem>>, vector<1x1x64x128xbf16>
    %47 = vector.shape_cast %46 : vector<1x1x64x128xbf16> to vector<64x128xbf16>
    %c1152 = arith.constant 1152 : index
    %c0_53 = arith.constant 0 : index
    %48 = vector.load %arg2[%c1152, %c0_53] : memref<3200x128xbf16, #tpu.memory_space<vmem>>, vector<128x128xbf16>
    %cst_54 = arith.constant dense<0.000000e+00> : vector<64x128xf32>
    %49 = tpu.matmul %47, %48, %cst_54 {dimension_numbers = #tpu.dot_dimension_numbers<[1], [0], [0], [1], [0, 0, 1, 1], [], []>} : vector<64x128xbf16>, vector<128x128xbf16>, vector<64x128xf32> -> vector<64x128xf32>
    %50 = arith.addf %45, %49 : vector<64x128xf32>
    %c0_55 = arith.constant 0 : index
    %c0_56 = arith.constant 0 : index
    %c16 = arith.constant 16 : index
    %c0_57 = arith.constant 0 : index
    %51 = vector.load %arg1[%c0_55, %c0_56, %c16, %c0_57] : memref<1x5x96x128xbf16, #tpu.memory_space<vmem>>, vector<1x1x64x128xbf16>
    %52 = vector.shape_cast %51 : vector<1x1x64x128xbf16> to vector<64x128xbf16>
    %c1280 = arith.constant 1280 : index
    %c0_58 = arith.constant 0 : index
    %53 = vector.load %arg2[%c1280, %c0_58] : memref<3200x128xbf16, #tpu.memory_space<vmem>>, vector<128x128xbf16>
    %cst_59 = arith.constant dense<0.000000e+00> : vector<64x128xf32>
    %54 = tpu.matmul %52, %53, %cst_59 {dimension_numbers = #tpu.dot_dimension_numbers<[1], [0], [0], [1], [0, 0, 1, 1], [], []>} : vector<64x128xbf16>, vector<128x128xbf16>, vector<64x128xf32> -> vector<64x128xf32>
    %55 = arith.addf %50, %54 : vector<64x128xf32>
    %c0_60 = arith.constant 0 : index
    %c1_61 = arith.constant 1 : index
    %c16_62 = arith.constant 16 : index
    %c0_63 = arith.constant 0 : index
    %56 = vector.load %arg1[%c0_60, %c1_61, %c16_62, %c0_63] : memref<1x5x96x128xbf16, #tpu.memory_space<vmem>>, vector<1x1x64x128xbf16>
    %57 = vector.shape_cast %56 : vector<1x1x64x128xbf16> to vector<64x128xbf16>
    %c1408 = arith.constant 1408 : index
    %c0_64 = arith.constant 0 : index
    %58 = vector.load %arg2[%c1408, %c0_64] : memref<3200x128xbf16, #tpu.memory_space<vmem>>, vector<128x128xbf16>
    %cst_65 = arith.constant dense<0.000000e+00> : vector<64x128xf32>
    %59 = tpu.matmul %57, %58, %cst_65 {dimension_numbers = #tpu.dot_dimension_numbers<[1], [0], [0], [1], [0, 0, 1, 1], [], []>} : vector<64x128xbf16>, vector<128x128xbf16>, vector<64x128xf32> -> vector<64x128xf32>
    %60 = arith.addf %55, %59 : vector<64x128xf32>
    %c0_66 = arith.constant 0 : index
    %c2_67 = arith.constant 2 : index
    %c16_68 = arith.constant 16 : index
    %c0_69 = arith.constant 0 : index
    %61 = vector.load %arg1[%c0_66, %c2_67, %c16_68, %c0_69] : memref<1x5x96x128xbf16, #tpu.memory_space<vmem>>, vector<1x1x64x128xbf16>
    %62 = vector.shape_cast %61 : vector<1x1x64x128xbf16> to vector<64x128xbf16>
    %c1536 = arith.constant 1536 : index
    %c0_70 = arith.constant 0 : index
    %63 = vector.load %arg2[%c1536, %c0_70] : memref<3200x128xbf16, #tpu.memory_space<vmem>>, vector<128x128xbf16>
    %cst_71 = arith.constant dense<0.000000e+00> : vector<64x128xf32>
    %64 = tpu.matmul %62, %63, %cst_71 {dimension_numbers = #tpu.dot_dimension_numbers<[1], [0], [0], [1], [0, 0, 1, 1], [], []>} : vector<64x128xbf16>, vector<128x128xbf16>, vector<64x128xf32> -> vector<64x128xf32>
    %65 = arith.addf %60, %64 : vector<64x128xf32>
    %c0_72 = arith.constant 0 : index
    %c3_73 = arith.constant 3 : index
    %c16_74 = arith.constant 16 : index
    %c0_75 = arith.constant 0 : index
    %66 = vector.load %arg1[%c0_72, %c3_73, %c16_74, %c0_75] : memref<1x5x96x128xbf16, #tpu.memory_space<vmem>>, vector<1x1x64x128xbf16>
    %67 = vector.shape_cast %66 : vector<1x1x64x128xbf16> to vector<64x128xbf16>
    %c1664 = arith.constant 1664 : index
    %c0_76 = arith.constant 0 : index
    %68 = vector.load %arg2[%c1664, %c0_76] : memref<3200x128xbf16, #tpu.memory_space<vmem>>, vector<128x128xbf16>
    %cst_77 = arith.constant dense<0.000000e+00> : vector<64x128xf32>
    %69 = tpu.matmul %67, %68, %cst_77 {dimension_numbers = #tpu.dot_dimension_numbers<[1], [0], [0], [1], [0, 0, 1, 1], [], []>} : vector<64x128xbf16>, vector<128x128xbf16>, vector<64x128xf32> -> vector<64x128xf32>
    %70 = arith.addf %65, %69 : vector<64x128xf32>
    %c0_78 = arith.constant 0 : index
    %c4_79 = arith.constant 4 : index
    %c16_80 = arith.constant 16 : index
    %c0_81 = arith.constant 0 : index
    %71 = vector.load %arg1[%c0_78, %c4_79, %c16_80, %c0_81] : memref<1x5x96x128xbf16, #tpu.memory_space<vmem>>, vector<1x1x64x128xbf16>
    %72 = vector.shape_cast %71 : vector<1x1x64x128xbf16> to vector<64x128xbf16>
    %c1792 = arith.constant 1792 : index
    %c0_82 = arith.constant 0 : index
    %73 = vector.load %arg2[%c1792, %c0_82] : memref<3200x128xbf16, #tpu.memory_space<vmem>>, vector<128x128xbf16>
    %cst_83 = arith.constant dense<0.000000e+00> : vector<64x128xf32>
    %74 = tpu.matmul %72, %73, %cst_83 {dimension_numbers = #tpu.dot_dimension_numbers<[1], [0], [0], [1], [0, 0, 1, 1], [], []>} : vector<64x128xbf16>, vector<128x128xbf16>, vector<64x128xf32> -> vector<64x128xf32>
    %75 = arith.addf %70, %74 : vector<64x128xf32>
    %c0_84 = arith.constant 0 : index
    %c0_85 = arith.constant 0 : index
    %c24 = arith.constant 24 : index
    %c0_86 = arith.constant 0 : index
    %76 = vector.load %arg1[%c0_84, %c0_85, %c24, %c0_86] : memref<1x5x96x128xbf16, #tpu.memory_space<vmem>>, vector<1x1x64x128xbf16>
    %77 = vector.shape_cast %76 : vector<1x1x64x128xbf16> to vector<64x128xbf16>
    %c1920 = arith.constant 1920 : index
    %c0_87 = arith.constant 0 : index
    %78 = vector.load %arg2[%c1920, %c0_87] : memref<3200x128xbf16, #tpu.memory_space<vmem>>, vector<128x128xbf16>
    %cst_88 = arith.constant dense<0.000000e+00> : vector<64x128xf32>
    %79 = tpu.matmul %77, %78, %cst_88 {dimension_numbers = #tpu.dot_dimension_numbers<[1], [0], [0], [1], [0, 0, 1, 1], [], []>} : vector<64x128xbf16>, vector<128x128xbf16>, vector<64x128xf32> -> vector<64x128xf32>
    %80 = arith.addf %75, %79 : vector<64x128xf32>
    %c0_89 = arith.constant 0 : index
    %c1_90 = arith.constant 1 : index
    %c24_91 = arith.constant 24 : index
    %c0_92 = arith.constant 0 : index
    %81 = vector.load %arg1[%c0_89, %c1_90, %c24_91, %c0_92] : memref<1x5x96x128xbf16, #tpu.memory_space<vmem>>, vector<1x1x64x128xbf16>
    %82 = vector.shape_cast %81 : vector<1x1x64x128xbf16> to vector<64x128xbf16>
    %c2048 = arith.constant 2048 : index
    %c0_93 = arith.constant 0 : index
    %83 = vector.load %arg2[%c2048, %c0_93] : memref<3200x128xbf16, #tpu.memory_space<vmem>>, vector<128x128xbf16>
    %cst_94 = arith.constant dense<0.000000e+00> : vector<64x128xf32>
    %84 = tpu.matmul %82, %83, %cst_94 {dimension_numbers = #tpu.dot_dimension_numbers<[1], [0], [0], [1], [0, 0, 1, 1], [], []>} : vector<64x128xbf16>, vector<128x128xbf16>, vector<64x128xf32> -> vector<64x128xf32>
    %85 = arith.addf %80, %84 : vector<64x128xf32>
    %c0_95 = arith.constant 0 : index
    %c2_96 = arith.constant 2 : index
    %c24_97 = arith.constant 24 : index
    %c0_98 = arith.constant 0 : index
    %86 = vector.load %arg1[%c0_95, %c2_96, %c24_97, %c0_98] : memref<1x5x96x128xbf16, #tpu.memory_space<vmem>>, vector<1x1x64x128xbf16>
    %87 = vector.shape_cast %86 : vector<1x1x64x128xbf16> to vector<64x128xbf16>
    %c2176 = arith.constant 2176 : index
    %c0_99 = arith.constant 0 : index
    %88 = vector.load %arg2[%c2176, %c0_99] : memref<3200x128xbf16, #tpu.memory_space<vmem>>, vector<128x128xbf16>
    %cst_100 = arith.constant dense<0.000000e+00> : vector<64x128xf32>
    %89 = tpu.matmul %87, %88, %cst_100 {dimension_numbers = #tpu.dot_dimension_numbers<[1], [0], [0], [1], [0, 0, 1, 1], [], []>} : vector<64x128xbf16>, vector<128x128xbf16>, vector<64x128xf32> -> vector<64x128xf32>
    %90 = arith.addf %85, %89 : vector<64x128xf32>
    %c0_101 = arith.constant 0 : index
    %c3_102 = arith.constant 3 : index
    %c24_103 = arith.constant 24 : index
    %c0_104 = arith.constant 0 : index
    %91 = vector.load %arg1[%c0_101, %c3_102, %c24_103, %c0_104] : memref<1x5x96x128xbf16, #tpu.memory_space<vmem>>, vector<1x1x64x128xbf16>
    %92 = vector.shape_cast %91 : vector<1x1x64x128xbf16> to vector<64x128xbf16>
    %c2304 = arith.constant 2304 : index
    %c0_105 = arith.constant 0 : index
    %93 = vector.load %arg2[%c2304, %c0_105] : memref<3200x128xbf16, #tpu.memory_space<vmem>>, vector<128x128xbf16>
    %cst_106 = arith.constant dense<0.000000e+00> : vector<64x128xf32>
    %94 = tpu.matmul %92, %93, %cst_106 {dimension_numbers = #tpu.dot_dimension_numbers<[1], [0], [0], [1], [0, 0, 1, 1], [], []>} : vector<64x128xbf16>, vector<128x128xbf16>, vector<64x128xf32> -> vector<64x128xf32>
    %95 = arith.addf %90, %94 : vector<64x128xf32>
    %c0_107 = arith.constant 0 : index
    %c4_108 = arith.constant 4 : index
    %c24_109 = arith.constant 24 : index
    %c0_110 = arith.constant 0 : index
    %96 = vector.load %arg1[%c0_107, %c4_108, %c24_109, %c0_110] : memref<1x5x96x128xbf16, #tpu.memory_space<vmem>>, vector<1x1x64x128xbf16>
    %97 = vector.shape_cast %96 : vector<1x1x64x128xbf16> to vector<64x128xbf16>
    %c2432 = arith.constant 2432 : index
    %c0_111 = arith.constant 0 : index
    %98 = vector.load %arg2[%c2432, %c0_111] : memref<3200x128xbf16, #tpu.memory_space<vmem>>, vector<128x128xbf16>
    %cst_112 = arith.constant dense<0.000000e+00> : vector<64x128xf32>
    %99 = tpu.matmul %97, %98, %cst_112 {dimension_numbers = #tpu.dot_dimension_numbers<[1], [0], [0], [1], [0, 0, 1, 1], [], []>} : vector<64x128xbf16>, vector<128x128xbf16>, vector<64x128xf32> -> vector<64x128xf32>
    %100 = arith.addf %95, %99 : vector<64x128xf32>
    %c0_113 = arith.constant 0 : index
    %c0_114 = arith.constant 0 : index
    %c32 = arith.constant 32 : index
    %c0_115 = arith.constant 0 : index
    %101 = vector.load %arg1[%c0_113, %c0_114, %c32, %c0_115] : memref<1x5x96x128xbf16, #tpu.memory_space<vmem>>, vector<1x1x64x128xbf16>
    %102 = vector.shape_cast %101 : vector<1x1x64x128xbf16> to vector<64x128xbf16>
    %c2560 = arith.constant 2560 : index
    %c0_116 = arith.constant 0 : index
    %103 = vector.load %arg2[%c2560, %c0_116] : memref<3200x128xbf16, #tpu.memory_space<vmem>>, vector<128x128xbf16>
    %cst_117 = arith.constant dense<0.000000e+00> : vector<64x128xf32>
    %104 = tpu.matmul %102, %103, %cst_117 {dimension_numbers = #tpu.dot_dimension_numbers<[1], [0], [0], [1], [0, 0, 1, 1], [], []>} : vector<64x128xbf16>, vector<128x128xbf16>, vector<64x128xf32> -> vector<64x128xf32>
    %105 = arith.addf %100, %104 : vector<64x128xf32>
    %c0_118 = arith.constant 0 : index
    %c1_119 = arith.constant 1 : index
    %c32_120 = arith.constant 32 : index
    %c0_121 = arith.constant 0 : index
    %106 = vector.load %arg1[%c0_118, %c1_119, %c32_120, %c0_121] : memref<1x5x96x128xbf16, #tpu.memory_space<vmem>>, vector<1x1x64x128xbf16>
    %107 = vector.shape_cast %106 : vector<1x1x64x128xbf16> to vector<64x128xbf16>
    %c2688 = arith.constant 2688 : index
    %c0_122 = arith.constant 0 : index
    %108 = vector.load %arg2[%c2688, %c0_122] : memref<3200x128xbf16, #tpu.memory_space<vmem>>, vector<128x128xbf16>
    %cst_123 = arith.constant dense<0.000000e+00> : vector<64x128xf32>
    %109 = tpu.matmul %107, %108, %cst_123 {dimension_numbers = #tpu.dot_dimension_numbers<[1], [0], [0], [1], [0, 0, 1, 1], [], []>} : vector<64x128xbf16>, vector<128x128xbf16>, vector<64x128xf32> -> vector<64x128xf32>
    %110 = arith.addf %105, %109 : vector<64x128xf32>
    %c0_124 = arith.constant 0 : index
    %c2_125 = arith.constant 2 : index
    %c32_126 = arith.constant 32 : index
    %c0_127 = arith.constant 0 : index
    %111 = vector.load %arg1[%c0_124, %c2_125, %c32_126, %c0_127] : memref<1x5x96x128xbf16, #tpu.memory_space<vmem>>, vector<1x1x64x128xbf16>
    %112 = vector.shape_cast %111 : vector<1x1x64x128xbf16> to vector<64x128xbf16>
    %c2816 = arith.constant 2816 : index
    %c0_128 = arith.constant 0 : index
    %113 = vector.load %arg2[%c2816, %c0_128] : memref<3200x128xbf16, #tpu.memory_space<vmem>>, vector<128x128xbf16>
    %cst_129 = arith.constant dense<0.000000e+00> : vector<64x128xf32>
    %114 = tpu.matmul %112, %113, %cst_129 {dimension_numbers = #tpu.dot_dimension_numbers<[1], [0], [0], [1], [0, 0, 1, 1], [], []>} : vector<64x128xbf16>, vector<128x128xbf16>, vector<64x128xf32> -> vector<64x128xf32>
    %115 = arith.addf %110, %114 : vector<64x128xf32>
    %c0_130 = arith.constant 0 : index
    %c3_131 = arith.constant 3 : index
    %c32_132 = arith.constant 32 : index
    %c0_133 = arith.constant 0 : index
    %116 = vector.load %arg1[%c0_130, %c3_131, %c32_132, %c0_133] : memref<1x5x96x128xbf16, #tpu.memory_space<vmem>>, vector<1x1x64x128xbf16>
    %117 = vector.shape_cast %116 : vector<1x1x64x128xbf16> to vector<64x128xbf16>
    %c2944 = arith.constant 2944 : index
    %c0_134 = arith.constant 0 : index
    %118 = vector.load %arg2[%c2944, %c0_134] : memref<3200x128xbf16, #tpu.memory_space<vmem>>, vector<128x128xbf16>
    %cst_135 = arith.constant dense<0.000000e+00> : vector<64x128xf32>
    %119 = tpu.matmul %117, %118, %cst_135 {dimension_numbers = #tpu.dot_dimension_numbers<[1], [0], [0], [1], [0, 0, 1, 1], [], []>} : vector<64x128xbf16>, vector<128x128xbf16>, vector<64x128xf32> -> vector<64x128xf32>
    %120 = arith.addf %115, %119 : vector<64x128xf32>
    %c0_136 = arith.constant 0 : index
    %c4_137 = arith.constant 4 : index
    %c32_138 = arith.constant 32 : index
    %c0_139 = arith.constant 0 : index
    %121 = vector.load %arg1[%c0_136, %c4_137, %c32_138, %c0_139] : memref<1x5x96x128xbf16, #tpu.memory_space<vmem>>, vector<1x1x64x128xbf16>
    %122 = vector.shape_cast %121 : vector<1x1x64x128xbf16> to vector<64x128xbf16>
    %c3072 = arith.constant 3072 : index
    %c0_140 = arith.constant 0 : index
    %123 = vector.load %arg2[%c3072, %c0_140] : memref<3200x128xbf16, #tpu.memory_space<vmem>>, vector<128x128xbf16>
    %cst_141 = arith.constant dense<0.000000e+00> : vector<64x128xf32>
    %124 = tpu.matmul %122, %123, %cst_141 {dimension_numbers = #tpu.dot_dimension_numbers<[1], [0], [0], [1], [0, 0, 1, 1], [], []>} : vector<64x128xbf16>, vector<128x128xbf16>, vector<64x128xf32> -> vector<64x128xf32>
    %125 = arith.addf %120, %124 : vector<64x128xf32>
    %c0_142 = arith.constant 0 : index
    %c0_143 = arith.constant 0 : index
    %126 = vector.load %arg3[%c0_142, %c0_143] : memref<1x128xf32, #tpu.memory_space<vmem>>, vector<1x128xf32>
    %127 = vector.broadcast %126 : vector<1x128xf32> to vector<64x128xf32>
    %128 = arith.mulf %125, %127 : vector<64x128xf32>
    %c0_144 = arith.constant 0 : index
    %c0_145 = arith.constant 0 : index
    %129 = vector.load %arg4[%c0_144, %c0_145] : memref<1x128xf32, #tpu.memory_space<vmem>>, vector<1x128xf32>
    %130 = vector.broadcast %129 : vector<1x128xf32> to vector<64x128xf32>
    %131 = arith.addf %128, %130 : vector<64x128xf32>
    %cst_146 = arith.constant 0.000000e+00 : f32
    %132 = vector.broadcast %cst_146 : f32 to vector<64x128xf32>
    %133 = arith.maximumf %131, %132 : vector<64x128xf32>
    %c0_147 = arith.constant 0 : index
    %c0_148 = arith.constant 0 : index
    %134 = vector.load %arg6[%c0_147, %c0_148] : memref<64x128xf32, #tpu.memory_space<vmem>>, vector<64x128xf32>
    tpu.vector_store %arg6[%c0_147, %c0_148], %133 {strides = array<i32>} : memref<64x128xf32, #tpu.memory_space<vmem>>, vector<64x128xf32>,
    %c0_149 = arith.constant 0 : index
    %c0_150 = arith.constant 0 : index
    %135 = vector.load %arg6[%c0_149, %c0_150] : memref<64x128xf32, #tpu.memory_space<vmem>>, vector<8x128xf32>
    %c8_151 = arith.constant 8 : index
    %c0_152 = arith.constant 0 : index
    %136 = vector.load %arg6[%c8_151, %c0_152] : memref<64x128xf32, #tpu.memory_space<vmem>>, vector<8x128xf32>
    %137 = arith.maximumf %135, %136 : vector<8x128xf32>
    %c0_153 = arith.constant 0 : index
    %c0_154 = arith.constant 0 : index
    %138 = vector.load %arg7[%c0_153, %c0_154] : memref<8x128xf32, #tpu.memory_space<vmem>>, vector<8x128xf32>
    tpu.vector_store %arg7[%c0_153, %c0_154], %137 {strides = array<i32>} : memref<8x128xf32, #tpu.memory_space<vmem>>, vector<8x128xf32>,
    %c0_155 = arith.constant 0 : index
    %c0_156 = arith.constant 0 : index
    %139 = tpu.strided_load %arg7[%c0_155, %c0_156] {strides = array<i32: 2, 1>} : memref<8x128xf32, #tpu.memory_space<vmem>>, vector<4x128xf32>
    %c1_157 = arith.constant 1 : index
    %c0_158 = arith.constant 0 : index
    %140 = tpu.strided_load %arg7[%c1_157, %c0_158] {strides = array<i32: 2, 1>} : memref<8x128xf32, #tpu.memory_space<vmem>>, vector<4x128xf32>
    %141 = arith.maximumf %139, %140 : vector<4x128xf32>
    %142 = arith.truncf %141 : vector<4x128xf32> to vector<4x128xbf16>
    %c0_159 = arith.constant 0 : index
    %c0_160 = arith.constant 0 : index
    %c0_161 = arith.constant 0 : index
    %c0_162 = arith.constant 0 : index
    %143 = vector.load %arg5[%c0_159, %c0_160, %c0_161, %c0_162] : memref<1x4x4x128xbf16, #tpu.memory_space<vmem>>, vector<1x1x4x128xbf16>
    %144 = vector.shape_cast %143 : vector<1x1x4x128xbf16> to vector<4x128xbf16>
    %145 = vector.shape_cast %142 : vector<4x128xbf16> to vector<1x1x4x128xbf16>
    tpu.vector_store %arg5[%c0_159, %c0_160, %c0_161, %c0_162], %145 {strides = array<i32>} : memref<1x4x4x128xbf16, #tpu.memory_space<vmem>>, vector<1x1x4x128xbf16>,
    %c16_163 = arith.constant 16 : index
    %c0_164 = arith.constant 0 : index
    %146 = vector.load %arg6[%c16_163, %c0_164] : memref<64x128xf32, #tpu.memory_space<vmem>>, vector<8x128xf32>
    %c24_165 = arith.constant 24 : index
    %c0_166 = arith.constant 0 : index
    %147 = vector.load %arg6[%c24_165, %c0_166] : memref<64x128xf32, #tpu.memory_space<vmem>>, vector<8x128xf32>
    %148 = arith.maximumf %146, %147 : vector<8x128xf32>
    %c0_167 = arith.constant 0 : index
    %c0_168 = arith.constant 0 : index
    %149 = vector.load %arg7[%c0_167, %c0_168] : memref<8x128xf32, #tpu.memory_space<vmem>>, vector<8x128xf32>
    tpu.vector_store %arg7[%c0_167, %c0_168], %148 {strides = array<i32>} : memref<8x128xf32, #tpu.memory_space<vmem>>, vector<8x128xf32>,
    %c0_169 = arith.constant 0 : index
    %c0_170 = arith.constant 0 : index
    %150 = tpu.strided_load %arg7[%c0_169, %c0_170] {strides = array<i32: 2, 1>} : memref<8x128xf32, #tpu.memory_space<vmem>>, vector<4x128xf32>
    %c1_171 = arith.constant 1 : index
    %c0_172 = arith.constant 0 : index
    %151 = tpu.strided_load %arg7[%c1_171, %c0_172] {strides = array<i32: 2, 1>} : memref<8x128xf32, #tpu.memory_space<vmem>>, vector<4x128xf32>
    %152 = arith.maximumf %150, %151 : vector<4x128xf32>
    %153 = arith.truncf %152 : vector<4x128xf32> to vector<4x128xbf16>
    %c0_173 = arith.constant 0 : index
    %c1_174 = arith.constant 1 : index
    %c0_175 = arith.constant 0 : index
    %c0_176 = arith.constant 0 : index
    %154 = vector.load %arg5[%c0_173, %c1_174, %c0_175, %c0_176] : memref<1x4x4x128xbf16, #tpu.memory_space<vmem>>, vector<1x1x4x128xbf16>
    %155 = vector.shape_cast %154 : vector<1x1x4x128xbf16> to vector<4x128xbf16>
    %156 = vector.shape_cast %153 : vector<4x128xbf16> to vector<1x1x4x128xbf16>
    tpu.vector_store %arg5[%c0_173, %c1_174, %c0_175, %c0_176], %156 {strides = array<i32>} : memref<1x4x4x128xbf16, #tpu.memory_space<vmem>>, vector<1x1x4x128xbf16>,
    %c32_177 = arith.constant 32 : index
    %c0_178 = arith.constant 0 : index
    %157 = vector.load %arg6[%c32_177, %c0_178] : memref<64x128xf32, #tpu.memory_space<vmem>>, vector<8x128xf32>
    %c40 = arith.constant 40 : index
    %c0_179 = arith.constant 0 : index
    %158 = vector.load %arg6[%c40, %c0_179] : memref<64x128xf32, #tpu.memory_space<vmem>>, vector<8x128xf32>
    %159 = arith.maximumf %157, %158 : vector<8x128xf32>
    %c0_180 = arith.constant 0 : index
    %c0_181 = arith.constant 0 : index
    %160 = vector.load %arg7[%c0_180, %c0_181] : memref<8x128xf32, #tpu.memory_space<vmem>>, vector<8x128xf32>
    tpu.vector_store %arg7[%c0_180, %c0_181], %159 {strides = array<i32>} : memref<8x128xf32, #tpu.memory_space<vmem>>, vector<8x128xf32>,
    %c0_182 = arith.constant 0 : index
    %c0_183 = arith.constant 0 : index
    %161 = tpu.strided_load %arg7[%c0_182, %c0_183] {strides = array<i32: 2, 1>} : memref<8x128xf32, #tpu.memory_space<vmem>>, vector<4x128xf32>
    %c1_184 = arith.constant 1 : index
    %c0_185 = arith.constant 0 : index
    %162 = tpu.strided_load %arg7[%c1_184, %c0_185] {strides = array<i32: 2, 1>} : memref<8x128xf32, #tpu.memory_space<vmem>>, vector<4x128xf32>
    %163 = arith.maximumf %161, %162 : vector<4x128xf32>
    %164 = arith.truncf %163 : vector<4x128xf32> to vector<4x128xbf16>
    %c0_186 = arith.constant 0 : index
    %c2_187 = arith.constant 2 : index
    %c0_188 = arith.constant 0 : index
    %c0_189 = arith.constant 0 : index
    %165 = vector.load %arg5[%c0_186, %c2_187, %c0_188, %c0_189] : memref<1x4x4x128xbf16, #tpu.memory_space<vmem>>, vector<1x1x4x128xbf16>
    %166 = vector.shape_cast %165 : vector<1x1x4x128xbf16> to vector<4x128xbf16>
    %167 = vector.shape_cast %164 : vector<4x128xbf16> to vector<1x1x4x128xbf16>
    tpu.vector_store %arg5[%c0_186, %c2_187, %c0_188, %c0_189], %167 {strides = array<i32>} : memref<1x4x4x128xbf16, #tpu.memory_space<vmem>>, vector<1x1x4x128xbf16>,
    %c48 = arith.constant 48 : index
    %c0_190 = arith.constant 0 : index
    %168 = vector.load %arg6[%c48, %c0_190] : memref<64x128xf32, #tpu.memory_space<vmem>>, vector<8x128xf32>
    %c56 = arith.constant 56 : index
    %c0_191 = arith.constant 0 : index
    %169 = vector.load %arg6[%c56, %c0_191] : memref<64x128xf32, #tpu.memory_space<vmem>>, vector<8x128xf32>
    %170 = arith.maximumf %168, %169 : vector<8x128xf32>
    %c0_192 = arith.constant 0 : index
    %c0_193 = arith.constant 0 : index
    %171 = vector.load %arg7[%c0_192, %c0_193] : memref<8x128xf32, #tpu.memory_space<vmem>>, vector<8x128xf32>
    tpu.vector_store %arg7[%c0_192, %c0_193], %170 {strides = array<i32>} : memref<8x128xf32, #tpu.memory_space<vmem>>, vector<8x128xf32>,
    %c0_194 = arith.constant 0 : index
    %c0_195 = arith.constant 0 : index
    %172 = tpu.strided_load %arg7[%c0_194, %c0_195] {strides = array<i32: 2, 1>} : memref<8x128xf32, #tpu.memory_space<vmem>>, vector<4x128xf32>
    %c1_196 = arith.constant 1 : index
    %c0_197 = arith.constant 0 : index
    %173 = tpu.strided_load %arg7[%c1_196, %c0_197] {strides = array<i32: 2, 1>} : memref<8x128xf32, #tpu.memory_space<vmem>>, vector<4x128xf32>
    %174 = arith.maximumf %172, %173 : vector<4x128xf32>
    %175 = arith.truncf %174 : vector<4x128xf32> to vector<4x128xbf16>
    %c0_198 = arith.constant 0 : index
    %c3_199 = arith.constant 3 : index
    %c0_200 = arith.constant 0 : index
    %c0_201 = arith.constant 0 : index
    %176 = vector.load %arg5[%c0_198, %c3_199, %c0_200, %c0_201] : memref<1x4x4x128xbf16, #tpu.memory_space<vmem>>, vector<1x1x4x128xbf16>
    %177 = vector.shape_cast %176 : vector<1x1x4x128xbf16> to vector<4x128xbf16>
    %178 = vector.shape_cast %175 : vector<4x128xbf16> to vector<1x1x4x128xbf16>
    tpu.vector_store %arg5[%c0_198, %c3_199, %c0_200, %c0_201], %178 {strides = array<i32>} : memref<1x4x4x128xbf16, #tpu.memory_space<vmem>>, vector<1x1x4x128xbf16>,
    return
  }
  func.func @transform_0(%arg0: i32) -> (i32, i32, i32, i32) {
    %c0_i32 = arith.constant 0 : i32
    %c0_i32_0 = arith.constant 0 : i32
    %c0_i32_1 = arith.constant 0 : i32
    %c0_i32_2 = arith.constant 0 : i32
    return %arg0, %c0_i32, %c0_i32_0, %c0_i32_1 : i32, i32, i32, i32
  }
  func.func @transform_1(%arg0: i32) -> (i32, i32) {
    %c0_i32 = arith.constant 0 : i32
    %c0_i32_0 = arith.constant 0 : i32
    %c0_i32_1 = arith.constant 0 : i32
    return %c0_i32, %c0_i32_0 : i32, i32
  }
  func.func @transform_2(%arg0: i32) -> (i32, i32) {
    %c0_i32 = arith.constant 0 : i32
    %c0_i32_0 = arith.constant 0 : i32
    %c0_i32_1 = arith.constant 0 : i32
    return %c0_i32, %c0_i32_0 : i32, i32
  }
  func.func @transform_3(%arg0: i32) -> (i32, i32) {
    %c0_i32 = arith.constant 0 : i32
    %c0_i32_0 = arith.constant 0 : i32
    %c0_i32_1 = arith.constant 0 : i32
    return %c0_i32, %c0_i32_0 : i32, i32
  }
  func.func @transform_4(%arg0: i32) -> (i32, i32, i32, i32) {
    %c0_i32 = arith.constant 0 : i32
    %c0_i32_0 = arith.constant 0 : i32
    %c0_i32_1 = arith.constant 0 : i32
    %c0_i32_2 = arith.constant 0 : i32
    return %arg0, %c0_i32, %c0_i32_0, %c0_i32_1 : i32, i32, i32, i32
  }
}

module attributes {stable_mosaic.version = 11 : i64} {
  func.func @_domain_head_kernel(%arg0: i32, %arg1: memref<128x2048xbf16, #tpu.memory_space<vmem>>, %arg2: memref<2048x128xbf16, #tpu.memory_space<vmem>>, %arg3: memref<1x128xf32, #tpu.memory_space<vmem>>, %arg4: memref<1x128xf32, #tpu.memory_space<vmem>>, %arg5: memref<128x128xbf16, #tpu.memory_space<vmem>>, %arg6: memref<1x128xf32, #tpu.memory_space<vmem>>, %arg7: memref<128x128xf32, #tpu.memory_space<vmem>>) attributes {dimension_semantics = [#tpu.dimension_semantics<parallel>], iteration_bounds = array<i64: 1>, scalar_prefetch = 0 : i64, scratch_operands = 0 : i64, tpu.core_type = #tpu.core_type<tc>, window_params = [{transform_indices = @transform_0, window_bounds = array<i64: 128, 2048>}, {pipeline_mode = #tpu.pipeline_mode<synchronous>, transform_indices = @transform_1, window_bounds = array<i64: 2048, 128>}, {pipeline_mode = #tpu.pipeline_mode<synchronous>, transform_indices = @transform_2, window_bounds = array<i64: 1, 128>}, {pipeline_mode = #tpu.pipeline_mode<synchronous>, transform_indices = @transform_3, window_bounds = array<i64: 1, 128>}, {pipeline_mode = #tpu.pipeline_mode<synchronous>, transform_indices = @transform_4, window_bounds = array<i64: 128, 128>}, {pipeline_mode = #tpu.pipeline_mode<synchronous>, transform_indices = @transform_5, window_bounds = array<i64: 1, 128>}, {transform_indices = @transform_6, window_bounds = array<i64: 128, 128>}]} {
    %c0 = arith.constant 0 : index
    %c0_0 = arith.constant 0 : index
    %0 = vector.load %arg1[%c0, %c0_0] : memref<128x2048xbf16, #tpu.memory_space<vmem>>, vector<128x2048xbf16>
    %c0_1 = arith.constant 0 : index
    %c0_2 = arith.constant 0 : index
    %1 = vector.load %arg2[%c0_1, %c0_2] : memref<2048x128xbf16, #tpu.memory_space<vmem>>, vector<2048x128xbf16>
    %cst = arith.constant dense<0.000000e+00> : vector<128x128xf32>
    %2 = tpu.matmul %0, %1, %cst {dimension_numbers = #tpu.dot_dimension_numbers<[1], [0], [0], [1], [0, 0, 1, 1], [], []>} : vector<128x2048xbf16>, vector<2048x128xbf16>, vector<128x128xf32> -> vector<128x128xf32>
    %c0_3 = arith.constant 0 : index
    %c0_4 = arith.constant 0 : index
    %3 = vector.load %arg3[%c0_3, %c0_4] : memref<1x128xf32, #tpu.memory_space<vmem>>, vector<1x128xf32>
    %4 = vector.broadcast %3 : vector<1x128xf32> to vector<128x128xf32>
    %5 = arith.mulf %2, %4 : vector<128x128xf32>
    %c0_5 = arith.constant 0 : index
    %c0_6 = arith.constant 0 : index
    %6 = vector.load %arg4[%c0_5, %c0_6] : memref<1x128xf32, #tpu.memory_space<vmem>>, vector<1x128xf32>
    %7 = vector.broadcast %6 : vector<1x128xf32> to vector<128x128xf32>
    %8 = arith.addf %5, %7 : vector<128x128xf32>
    %cst_7 = arith.constant 0.000000e+00 : f32
    %9 = vector.broadcast %cst_7 : f32 to vector<128x128xf32>
    %10 = arith.maximumf %8, %9 : vector<128x128xf32>
    %11 = arith.truncf %10 : vector<128x128xf32> to vector<128x128xbf16>
    %c0_8 = arith.constant 0 : index
    %c0_9 = arith.constant 0 : index
    %12 = vector.load %arg5[%c0_8, %c0_9] : memref<128x128xbf16, #tpu.memory_space<vmem>>, vector<128x128xbf16>
    %cst_10 = arith.constant dense<0.000000e+00> : vector<128x128xf32>
    %13 = tpu.matmul %11, %12, %cst_10 {dimension_numbers = #tpu.dot_dimension_numbers<[1], [0], [0], [1], [0, 0, 1, 1], [], []>} : vector<128x128xbf16>, vector<128x128xbf16>, vector<128x128xf32> -> vector<128x128xf32>
    %c0_11 = arith.constant 0 : index
    %c0_12 = arith.constant 0 : index
    %14 = vector.load %arg6[%c0_11, %c0_12] : memref<1x128xf32, #tpu.memory_space<vmem>>, vector<1x128xf32>
    %15 = vector.broadcast %14 : vector<1x128xf32> to vector<128x128xf32>
    %16 = arith.addf %13, %15 : vector<128x128xf32>
    %cst_13 = arith.constant dense<0xFF800000> : vector<128xf32>
    %17 = vector.multi_reduction <maximumf>, %16, %cst_13 [1] : vector<128x128xf32> to vector<128xf32>
    %18 = vector.shape_cast %17 : vector<128xf32> to vector<128x1xf32>
    %19 = vector.broadcast %18 : vector<128x1xf32> to vector<128x128xf32>
    %20 = arith.subf %16, %19 : vector<128x128xf32>
    %21 = math.exp %20 : vector<128x128xf32>
    %cst_14 = arith.constant dense<0.000000e+00> : vector<128xf32>
    %22 = vector.multi_reduction <add>, %21, %cst_14 [1] : vector<128x128xf32> to vector<128xf32>
    %23 = vector.shape_cast %22 : vector<128xf32> to vector<128x1xf32>
    %24 = math.log %23 : vector<128x1xf32>
    %25 = vector.broadcast %24 : vector<128x1xf32> to vector<128x128xf32>
    %26 = arith.subf %20, %25 : vector<128x128xf32>
    %c0_15 = arith.constant 0 : index
    %c0_16 = arith.constant 0 : index
    %27 = vector.load %arg7[%c0_15, %c0_16] : memref<128x128xf32, #tpu.memory_space<vmem>>, vector<128x128xf32>
    tpu.vector_store %arg7[%c0_15, %c0_16], %26 {strides = array<i32>} : memref<128x128xf32, #tpu.memory_space<vmem>>, vector<128x128xf32>,
    return
  }
  func.func @transform_0(%arg0: i32) -> (i32, i32) {
    %c0_i32 = arith.constant 0 : i32
    %c0_i32_0 = arith.constant 0 : i32
    return %arg0, %c0_i32 : i32, i32
  }
  func.func @transform_1(%arg0: i32) -> (i32, i32) {
    %c0_i32 = arith.constant 0 : i32
    %c0_i32_0 = arith.constant 0 : i32
    %c0_i32_1 = arith.constant 0 : i32
    return %c0_i32, %c0_i32_0 : i32, i32
  }
  func.func @transform_2(%arg0: i32) -> (i32, i32) {
    %c0_i32 = arith.constant 0 : i32
    %c0_i32_0 = arith.constant 0 : i32
    %c0_i32_1 = arith.constant 0 : i32
    return %c0_i32, %c0_i32_0 : i32, i32
  }
  func.func @transform_3(%arg0: i32) -> (i32, i32) {
    %c0_i32 = arith.constant 0 : i32
    %c0_i32_0 = arith.constant 0 : i32
    %c0_i32_1 = arith.constant 0 : i32
    return %c0_i32, %c0_i32_0 : i32, i32
  }
  func.func @transform_4(%arg0: i32) -> (i32, i32) {
    %c0_i32 = arith.constant 0 : i32
    %c0_i32_0 = arith.constant 0 : i32
    %c0_i32_1 = arith.constant 0 : i32
    return %c0_i32, %c0_i32_0 : i32, i32
  }
  func.func @transform_5(%arg0: i32) -> (i32, i32) {
    %c0_i32 = arith.constant 0 : i32
    %c0_i32_0 = arith.constant 0 : i32
    %c0_i32_1 = arith.constant 0 : i32
    return %c0_i32, %c0_i32_0 : i32, i32
  }
  func.func @transform_6(%arg0: i32) -> (i32, i32) {
    %c0_i32 = arith.constant 0 : i32
    %c0_i32_0 = arith.constant 0 : i32
    return %arg0, %c0_i32 : i32, i32
  }
}

module attributes {stable_mosaic.version = 11 : i64} {
  func.func @_class_head_kernel(%arg0: i32, %arg1: memref<128x2048xbf16, #tpu.memory_space<vmem>>, %arg2: memref<2048x128xbf16, #tpu.memory_space<vmem>>, %arg3: memref<1x128xf32, #tpu.memory_space<vmem>>, %arg4: memref<1x128xf32, #tpu.memory_space<vmem>>, %arg5: memref<128x128xbf16, #tpu.memory_space<vmem>>, %arg6: memref<1x128xf32, #tpu.memory_space<vmem>>, %arg7: memref<1x128xf32, #tpu.memory_space<vmem>>, %arg8: memref<128x128xbf16, #tpu.memory_space<vmem>>, %arg9: memref<1x128xf32, #tpu.memory_space<vmem>>, %arg10: memref<128x128xf32, #tpu.memory_space<vmem>>) attributes {dimension_semantics = [#tpu.dimension_semantics<parallel>], iteration_bounds = array<i64: 1>, scalar_prefetch = 0 : i64, scratch_operands = 0 : i64, tpu.core_type = #tpu.core_type<tc>, window_params = [{transform_indices = @transform_0, window_bounds = array<i64: 128, 2048>}, {pipeline_mode = #tpu.pipeline_mode<synchronous>, transform_indices = @transform_1, window_bounds = array<i64: 2048, 128>}, {pipeline_mode = #tpu.pipeline_mode<synchronous>, transform_indices = @transform_2, window_bounds = array<i64: 1, 128>}, {pipeline_mode = #tpu.pipeline_mode<synchronous>, transform_indices = @transform_3, window_bounds = array<i64: 1, 128>}, {pipeline_mode = #tpu.pipeline_mode<synchronous>, transform_indices = @transform_4, window_bounds = array<i64: 128, 128>}, {pipeline_mode = #tpu.pipeline_mode<synchronous>, transform_indices = @transform_5, window_bounds = array<i64: 1, 128>}, {pipeline_mode = #tpu.pipeline_mode<synchronous>, transform_indices = @transform_6, window_bounds = array<i64: 1, 128>}, {pipeline_mode = #tpu.pipeline_mode<synchronous>, transform_indices = @transform_7, window_bounds = array<i64: 128, 128>}, {pipeline_mode = #tpu.pipeline_mode<synchronous>, transform_indices = @transform_8, window_bounds = array<i64: 1, 128>}, {transform_indices = @transform_9, window_bounds = array<i64: 128, 128>}]} {
    %c0 = arith.constant 0 : index
    %c0_0 = arith.constant 0 : index
    %0 = vector.load %arg1[%c0, %c0_0] : memref<128x2048xbf16, #tpu.memory_space<vmem>>, vector<128x2048xbf16>
    %c0_1 = arith.constant 0 : index
    %c0_2 = arith.constant 0 : index
    %1 = vector.load %arg2[%c0_1, %c0_2] : memref<2048x128xbf16, #tpu.memory_space<vmem>>, vector<2048x128xbf16>
    %cst = arith.constant dense<0.000000e+00> : vector<128x128xf32>
    %2 = tpu.matmul %0, %1, %cst {dimension_numbers = #tpu.dot_dimension_numbers<[1], [0], [0], [1], [0, 0, 1, 1], [], []>} : vector<128x2048xbf16>, vector<2048x128xbf16>, vector<128x128xf32> -> vector<128x128xf32>
    %c0_3 = arith.constant 0 : index
    %c0_4 = arith.constant 0 : index
    %3 = vector.load %arg3[%c0_3, %c0_4] : memref<1x128xf32, #tpu.memory_space<vmem>>, vector<1x128xf32>
    %4 = vector.broadcast %3 : vector<1x128xf32> to vector<128x128xf32>
    %5 = arith.mulf %2, %4 : vector<128x128xf32>
    %c0_5 = arith.constant 0 : index
    %c0_6 = arith.constant 0 : index
    %6 = vector.load %arg4[%c0_5, %c0_6] : memref<1x128xf32, #tpu.memory_space<vmem>>, vector<1x128xf32>
    %7 = vector.broadcast %6 : vector<1x128xf32> to vector<128x128xf32>
    %8 = arith.addf %5, %7 : vector<128x128xf32>
    %cst_7 = arith.constant 0.000000e+00 : f32
    %9 = vector.broadcast %cst_7 : f32 to vector<128x128xf32>
    %10 = arith.maximumf %8, %9 : vector<128x128xf32>
    %11 = arith.truncf %10 : vector<128x128xf32> to vector<128x128xbf16>
    %c0_8 = arith.constant 0 : index
    %c0_9 = arith.constant 0 : index
    %12 = vector.load %arg5[%c0_8, %c0_9] : memref<128x128xbf16, #tpu.memory_space<vmem>>, vector<128x128xbf16>
    %cst_10 = arith.constant dense<0.000000e+00> : vector<128x128xf32>
    %13 = tpu.matmul %11, %12, %cst_10 {dimension_numbers = #tpu.dot_dimension_numbers<[1], [0], [0], [1], [0, 0, 1, 1], [], []>} : vector<128x128xbf16>, vector<128x128xbf16>, vector<128x128xf32> -> vector<128x128xf32>
    %c0_11 = arith.constant 0 : index
    %c0_12 = arith.constant 0 : index
    %14 = vector.load %arg6[%c0_11, %c0_12] : memref<1x128xf32, #tpu.memory_space<vmem>>, vector<1x128xf32>
    %15 = vector.broadcast %14 : vector<1x128xf32> to vector<128x128xf32>
    %16 = arith.mulf %13, %15 : vector<128x128xf32>
    %c0_13 = arith.constant 0 : index
    %c0_14 = arith.constant 0 : index
    %17 = vector.load %arg7[%c0_13, %c0_14] : memref<1x128xf32, #tpu.memory_space<vmem>>, vector<1x128xf32>
    %18 = vector.broadcast %17 : vector<1x128xf32> to vector<128x128xf32>
    %19 = arith.addf %16, %18 : vector<128x128xf32>
    %cst_15 = arith.constant 0.000000e+00 : f32
    %20 = vector.broadcast %cst_15 : f32 to vector<128x128xf32>
    %21 = arith.maximumf %19, %20 : vector<128x128xf32>
    %22 = arith.truncf %21 : vector<128x128xf32> to vector<128x128xbf16>
    %c0_16 = arith.constant 0 : index
    %c0_17 = arith.constant 0 : index
    %23 = vector.load %arg8[%c0_16, %c0_17] : memref<128x128xbf16, #tpu.memory_space<vmem>>, vector<128x128xbf16>
    %cst_18 = arith.constant dense<0.000000e+00> : vector<128x128xf32>
    %24 = tpu.matmul %22, %23, %cst_18 {dimension_numbers = #tpu.dot_dimension_numbers<[1], [0], [0], [1], [0, 0, 1, 1], [], []>} : vector<128x128xbf16>, vector<128x128xbf16>, vector<128x128xf32> -> vector<128x128xf32>
    %c0_19 = arith.constant 0 : index
    %c0_20 = arith.constant 0 : index
    %25 = vector.load %arg9[%c0_19, %c0_20] : memref<1x128xf32, #tpu.memory_space<vmem>>, vector<1x128xf32>
    %26 = vector.broadcast %25 : vector<1x128xf32> to vector<128x128xf32>
    %27 = arith.addf %24, %26 : vector<128x128xf32>
    %cst_21 = arith.constant dense<0xFF800000> : vector<128xf32>
    %28 = vector.multi_reduction <maximumf>, %27, %cst_21 [1] : vector<128x128xf32> to vector<128xf32>
    %29 = vector.shape_cast %28 : vector<128xf32> to vector<128x1xf32>
    %30 = vector.broadcast %29 : vector<128x1xf32> to vector<128x128xf32>
    %31 = arith.subf %27, %30 : vector<128x128xf32>
    %32 = math.exp %31 : vector<128x128xf32>
    %cst_22 = arith.constant dense<0.000000e+00> : vector<128xf32>
    %33 = vector.multi_reduction <add>, %32, %cst_22 [1] : vector<128x128xf32> to vector<128xf32>
    %34 = vector.shape_cast %33 : vector<128xf32> to vector<128x1xf32>
    %35 = math.log %34 : vector<128x1xf32>
    %36 = vector.broadcast %35 : vector<128x1xf32> to vector<128x128xf32>
    %37 = arith.subf %31, %36 : vector<128x128xf32>
    %c0_23 = arith.constant 0 : index
    %c0_24 = arith.constant 0 : index
    %38 = vector.load %arg10[%c0_23, %c0_24] : memref<128x128xf32, #tpu.memory_space<vmem>>, vector<128x128xf32>
    tpu.vector_store %arg10[%c0_23, %c0_24], %37 {strides = array<i32>} : memref<128x128xf32, #tpu.memory_space<vmem>>, vector<128x128xf32>,
    return
  }
  func.func @transform_0(%arg0: i32) -> (i32, i32) {
    %c0_i32 = arith.constant 0 : i32
    %c0_i32_0 = arith.constant 0 : i32
    return %arg0, %c0_i32 : i32, i32
  }
  func.func @transform_1(%arg0: i32) -> (i32, i32) {
    %c0_i32 = arith.constant 0 : i32
    %c0_i32_0 = arith.constant 0 : i32
    %c0_i32_1 = arith.constant 0 : i32
    return %c0_i32, %c0_i32_0 : i32, i32
  }
  func.func @transform_2(%arg0: i32) -> (i32, i32) {
    %c0_i32 = arith.constant 0 : i32
    %c0_i32_0 = arith.constant 0 : i32
    %c0_i32_1 = arith.constant 0 : i32
    return %c0_i32, %c0_i32_0 : i32, i32
  }
  func.func @transform_3(%arg0: i32) -> (i32, i32) {
    %c0_i32 = arith.constant 0 : i32
    %c0_i32_0 = arith.constant 0 : i32
    %c0_i32_1 = arith.constant 0 : i32
    return %c0_i32, %c0_i32_0 : i32, i32
  }
  func.func @transform_4(%arg0: i32) -> (i32, i32) {
    %c0_i32 = arith.constant 0 : i32
    %c0_i32_0 = arith.constant 0 : i32
    %c0_i32_1 = arith.constant 0 : i32
    return %c0_i32, %c0_i32_0 : i32, i32
  }
  func.func @transform_5(%arg0: i32) -> (i32, i32) {
    %c0_i32 = arith.constant 0 : i32
    %c0_i32_0 = arith.constant 0 : i32
    %c0_i32_1 = arith.constant 0 : i32
    return %c0_i32, %c0_i32_0 : i32, i32
  }
  func.func @transform_6(%arg0: i32) -> (i32, i32) {
    %c0_i32 = arith.constant 0 : i32
    %c0_i32_0 = arith.constant 0 : i32
    %c0_i32_1 = arith.constant 0 : i32
    return %c0_i32, %c0_i32_0 : i32, i32
  }
  func.func @transform_7(%arg0: i32) -> (i32, i32) {
    %c0_i32 = arith.constant 0 : i32
    %c0_i32_0 = arith.constant 0 : i32
    %c0_i32_1 = arith.constant 0 : i32
    return %c0_i32, %c0_i32_0 : i32, i32
  }
  func.func @transform_8(%arg0: i32) -> (i32, i32) {
    %c0_i32 = arith.constant 0 : i32
    %c0_i32_0 = arith.constant 0 : i32
    %c0_i32_1 = arith.constant 0 : i32
    return %c0_i32, %c0_i32_0 : i32, i32
  }
  func.func @transform_9(%arg0: i32) -> (i32, i32) {
    %c0_i32 = arith.constant 0 : i32
    %c0_i32_0 = arith.constant 0 : i32
    return %arg0, %c0_i32 : i32, i32
  }
}

</mosaic_0001>

<bundles_post_ra>
// kernel: dann_forward.4
= control target key start
LH: loop header
LB: loop body
LE: loop exit
PB: predicated region body
PF: predicated region fallthrough
CT: control target
= control target key end

     0   :  { %s1939_s15 = smov 0   ;;  %s2298_s0 = inlined_call_operand.vmem [shape: bf16[2,576,128], index: 0, kind: input, shape index: {}]   ;;  %s2299_s1 = inlined_call_operand.vmem [shape: bf16[128,128], index: 1, kind: input, shape index: {}]   ;;  %s2300_s2 = inlined_call_operand.vmem [shape: f32[1,128], index: 2, kind: input, shape index: {}]   ;;  %s2301_s3 = inlined_call_operand.vmem [shape: f32[1,128], index: 3, kind: input, shape index: {}]   ;;  %s2302_s4 = inlined_call_operand.vmem [shape: bf16[2,12,12,128], index: 4, kind: output, shape index: {}]  }
   0x1 LB: > { %s1579_s16 = sadd.s32 4294967295, %s1912_s15   ;;  %p1583_p0 = scmp.ge.s32.totalorder %s1912_s15, 1  ;;  %s1912_s15 = sphi %s1939_s15, %s14_s15  }
   0x2   : > { %p162_p1 = scmp.lt.s32.totalorder %s1912_s15, 3 }
   0x4   : > { %p163_p2 = pnand %p1583_p0, %p162_p1 }
   0x5   : > { %p188_p3 = scmp.lt.s32.totalorder (!%p163_p2), %s1579_s16, 1 }
   0x6   : > { %166 = sbr.rel (%p163_p2) target bundleno = 377 (0x179), region = 36 }
   0xb   : > { %v1862_v0 = vld [vmem:[%s2299_s1 + $0x38] sm:$0xff]   ;;  %v1863_v1 = vld [vmem:[%s2299_s1 + $0x30] sm:$0xff]   ;;  %s2304_s16 = smov (!%p188_p3, %s1579_s16), 1  ;;  %v1864_v2 = vld [vmem:[%s2299_s1 + $0x28] sm:$0xff]  }
   0xc   : > { %1748 = vmatprep.subr.bf16.mxu0 %v1862_v0  ;;  %1836 = vmatprep.subr.bf16.mxu1 %v1862_v0  ;;  %s1852_s23 = smul.u32 288, %s2304_s16  ;;  %v1865_v3 = vld [vmem:[%s2299_s1 + $0x20] sm:$0xff]   ;;  %v1866_v5 = vld [vmem:[%s2299_s1 + $0x18] sm:$0xff]   ;;  %v1867_v6 = vld [vmem:[%s2299_s1 + $0x10] sm:$0xff]  }
   0xd   : > { %1749 = vmatpush3.bf16.msra.mxu0 %v1862_v0  ;;  %1844 = vmatpush3.bf16.msra.mxu1 %v1862_v0  ;;  %v1868_v8 = vld [vmem:[%s2299_s1 + $0x8] sm:$0xff]   ;;  %v1869_v9 = vld [vmem:[%s2299_s1] sm:$0xff]   ;;  %s1853_s17 = smul.u32 96, %s2304_s16 }
   0xe   : > { %1750 = vmatprep.subr.bf16.mxu0 %v1863_v1  ;;  %1837 = vmatprep.subr.bf16.mxu1 %v1863_v1  ;;  %s1962_s26 = scalar_lea.vmem %s2298_s0, %s1852_s23  ;;  %v2020_v46 = vld [vmem:[%s2300_s2] ss:$0 sm:$0xff] }
   0xf   : > { %v1870_v4 = vld [vmem:[%s1962_s26] sm:$0xff]   ;;  %v1880_v7 = vld [vmem:[%s1962_s26 + $0x90] sm:$0xff]   ;;  %v1871_v10 = vld [vmem:[%s1962_s26 + $0x8] sm:$0xff]   ;;  %s2081_s16 = scalar_lea.vmem %s2302_s4, %s1853_s17 }
  0x10   : > { %1764 = vmatprep.mubr.bf16.mxu0 %v1870_v4  ;;  %1800 = vmatprep.mubr.bf16.mxu1 %v1880_v7  ;;  %v1872_v11 = vld [vmem:[%s1962_s26 + $0x10] sm:$0xff]   ;;  %v1881_v12 = vld [vmem:[%s1962_s26 + $0x98] sm:$0xff]   ;;  %v1884_v13 = vld [vmem:[%s1962_s26 + $0xa0] sm:$0xff]  }
  0x11   : > { %1751 = vmatpush3.bf16.msra.mxu0 %v1863_v1  ;;  %1845 = vmatpush3.bf16.msra.mxu1 %v1863_v1  ;;  %v1873_v14 = vld [vmem:[%s1962_s26 + $0x18] sm:$0xff]   ;;  %v1874_v15 = vld [vmem:[%s1962_s26 + $0x20] sm:$0xff]   ;;  %v1885_v16 = vld [vmem:[%s1962_s26 + $0xa8] sm:$0xff]  }
  0x12   : > { %1752 = vmatprep.subr.bf16.mxu0 %v1864_v2  ;;  %1838 = vmatprep.subr.bf16.mxu1 %v1864_v2  ;;  %v1888_v17 = vld [vmem:[%s1962_s26 + $0xb0] sm:$0xff]   ;;  %v1875_v18 = vld [vmem:[%s1962_s26 + $0x28] sm:$0xff]   ;;  %v1889_v19 = vld [vmem:[%s1962_s26 + $0xb8] sm:$0xff]  }
  0x13   : > { %v1876_v20 = vld [vmem:[%s1962_s26 + $0x30] sm:$0xff]   ;;  %v1892_v21 = vld [vmem:[%s1962_s26 + $0xc0] sm:$0xff]   ;;  %v1877_v22 = vld [vmem:[%s1962_s26 + $0x38] sm:$0xff]  }
  0x14   : > { %v1893_v23 = vld [vmem:[%s1962_s26 + $0xc8] sm:$0xff]   ;;  %v1878_v24 = vld [vmem:[%s1962_s26 + $0x40] sm:$0xff]   ;;  %v1896_v25 = vld [vmem:[%s1962_s26 + $0xd0] sm:$0xff]  }
  0x15   : > { %1753 = vmatpush3.bf16.msra.mxu0 %v1864_v2  ;;  %1846 = vmatpush3.bf16.msra.mxu1 %v1864_v2  ;;  %v1879_v26 = vld [vmem:[%s1962_s26 + $0x48] sm:$0xff]   ;;  %v1897_v27 = vld [vmem:[%s1962_s26 + $0xd8] sm:$0xff]   ;;  %v1882_v28 = vld [vmem:[%s1962_s26 + $0x50] sm:$0xff]  }
  0x16   : > { %1754 = vmatprep.subr.bf16.mxu0 %v1865_v3  ;;  %1839 = vmatprep.subr.bf16.mxu1 %v1865_v3  ;;  %v1898_v29 = vld [vmem:[%s1962_s26 + $0xe0] sm:$0xff]   ;;  %v1883_v30 = vld [vmem:[%s1962_s26 + $0x58] sm:$0xff]   ;;  %v1899_v31 = vld [vmem:[%s1962_s26 + $0xe8] sm:$0xff]  }
  0x17   : > { %v1886_v32 = vld [vmem:[%s1962_s26 + $0x60] sm:$0xff]   ;;  %v1900_v33 = vld [vmem:[%s1962_s26 + $0xf0] sm:$0xff]   ;;  %v1887_v34 = vld [vmem:[%s1962_s26 + $0x68] sm:$0xff]  }
  0x18   : > { %v1901_v35 = vld [vmem:[%s1962_s26 + $0xf8] sm:$0xff]   ;;  %v1890_v36 = vld [vmem:[%s1962_s26 + $0x70] sm:$0xff]   ;;  %v1902_v37 = vld [vmem:[%s1962_s26 + $0x100] sm:$0xff]  }
  0x19   : > { %1755 = vmatpush3.bf16.msra.mxu0 %v1865_v3  ;;  %1847 = vmatpush3.bf16.msra.mxu1 %v1865_v3  ;;  %v1891_v38 = vld [vmem:[%s1962_s26 + $0x78] sm:$0xff]   ;;  %v1903_v39 = vld [vmem:[%s1962_s26 + $0x108] sm:$0xff]   ;;  %v1894_v40 = vld [vmem:[%s1962_s26 + $0x80] sm:$0xff]  }
  0x1a   : > { %1756 = vmatprep.subr.bf16.mxu0 %v1866_v5  ;;  %1840 = vmatprep.subr.bf16.mxu1 %v1866_v5  ;;  %v1904_v41 = vld [vmem:[%s1962_s26 + $0x110] sm:$0xff]   ;;  %v1895_v42 = vld [vmem:[%s1962_s26 + $0x88] sm:$0xff]   ;;  %v1905_v43 = vld [vmem:[%s1962_s26 + $0x118] sm:$0xff]  }
  0x1b   : > { %v2028_v50 = vld [vmem:[%s2301_s3] ss:$0 sm:$0xff] }
  0x1d   : > { %1757 = vmatpush3.bf16.msra.mxu0 %v1866_v5  ;;  %1848 = vmatpush3.bf16.msra.mxu1 %v1866_v5 }
  0x1e   : > { %1758 = vmatprep.subr.bf16.mxu0 %v1867_v6  ;;  %1841 = vmatprep.subr.bf16.mxu1 %v1867_v6 }
  0x21   : > { %1759 = vmatpush3.bf16.msra.mxu0 %v1867_v6  ;;  %1849 = vmatpush3.bf16.msra.mxu1 %v1867_v6 }
  0x22   : > { %1760 = vmatprep.subr.bf16.mxu0 %v1868_v8  ;;  %1842 = vmatprep.subr.bf16.mxu1 %v1868_v8 }
  0x25   : > { %1761 = vmatpush3.bf16.msra.mxu0 %v1868_v8  ;;  %1850 = vmatpush3.bf16.msra.mxu1 %v1868_v8 }
  0x26   : > { %1762 = vmatprep.subr.bf16.mxu0 %v1869_v9  ;;  %1843 = vmatprep.subr.bf16.mxu1 %v1869_v9 }
  0x29   : > { %1763 = vmatpush3.bf16.msra.mxu0 %v1869_v9  ;;  %1851 = vmatpush3.bf16.msra.mxu1 %v1869_v9 }
  0x2c   : > { %1765 = vmatmul.mubr.bf16.vlgmr.msra.gmra.mxu0 %v1871_v10  ;;  %1801 = vmatmul.mubr.bf16.vlgmr.msra.gmra.mxu1 %v1881_v12 }
  0x2d   : > { %1768 = vmatprep.mubr.bf16.mxu0 %v1872_v11  ;;  %1804 = vmatprep.mubr.bf16.mxu1 %v1884_v13 }
  0x34   : > { %1769 = vmatmul.mubr.bf16.gmra.mxu0 %v1873_v14  ;;  %1805 = vmatmul.mubr.bf16.gmra.mxu1 %v1885_v16 }
  0x35   : > { %1772 = vmatprep.mubr.bf16.mxu0 %v1874_v15  ;;  %1808 = vmatprep.mubr.bf16.mxu1 %v1888_v17 }
  0x3c   : > { %1773 = vmatmul.mubr.bf16.gmra.mxu0 %v1875_v18  ;;  %1809 = vmatmul.mubr.bf16.gmra.mxu1 %v1889_v19 }
  0x3d   : > { %1776 = vmatprep.mubr.bf16.mxu0 %v1876_v20  ;;  %1812 = vmatprep.mubr.bf16.mxu1 %v1892_v21 }
  0x44   : > { %1777 = vmatmul.mubr.bf16.gmra.mxu0 %v1877_v22  ;;  %1813 = vmatmul.mubr.bf16.gmra.mxu1 %v1893_v23 }
  0x45   : > { %1780 = vmatprep.mubr.bf16.mxu0 %v1878_v24  ;;  %1816 = vmatprep.mubr.bf16.mxu1 %v1896_v25 }
  0x4c   : > { %1781 = vmatmul.mubr.bf16.gmra.mxu0 %v1879_v26  ;;  %1817 = vmatmul.mubr.bf16.gmra.mxu1 %v1897_v27 }
  0x4d   : > { %1784 = vmatprep.mubr.bf16.mxu0 %v1882_v28  ;;  %1820 = vmatprep.mubr.bf16.mxu1 %v1898_v29 }
  0x54   : > { %1785 = vmatmul.mubr.bf16.gmra.mxu0 %v1883_v30  ;;  %1821 = vmatmul.mubr.bf16.gmra.mxu1 %v1899_v31 }
  0x55   : > { %1788 = vmatprep.mubr.bf16.mxu0 %v1886_v32  ;;  %1824 = vmatprep.mubr.bf16.mxu1 %v1900_v33 }
  0x5c   : > { %1789 = vmatmul.mubr.bf16.gmra.mxu0 %v1887_v34  ;;  %1825 = vmatmul.mubr.bf16.gmra.mxu1 %v1901_v35 }
  0x5d   : > { %1792 = vmatprep.mubr.bf16.mxu0 %v1890_v36  ;;  %1828 = vmatprep.mubr.bf16.mxu1 %v1902_v37 }
  0x64   : > { %1793 = vmatmul.mubr.bf16.gmra.mxu0 %v1891_v38  ;;  %1829 = vmatmul.mubr.bf16.gmra.mxu1 %v1903_v39 }
  0x65   : > { %1796 = vmatprep.mubr.bf16.mxu0 %v1894_v40  ;;  %1832 = vmatprep.mubr.bf16.mxu1 %v1904_v41 }
  0x6c   : > { %1797 = vmatmul.mubr.bf16.gmra.mxu0 %v1895_v42  ;;  %1833 = vmatmul.mubr.bf16.gmra.mxu1 %v1905_v43 }
  0xec   : > { %v1766_v44 = vpop.f32.mrf.mxu0  ;;  %v2015_v45 = vpop.f32.mrf.mxu1 }
  0xed   : > { %v881_v63 = vmul.f32 %v1766_v44, %v2020_v46 }
  0xee   : > { %v585_v47 = vpop.f32.mrf.mxu0  ;;  %v2022_v48 = vpop.f32.mrf.mxu1 }
  0xef   : > { %v879_v49 = vmul.f32 %v2020_v46, %v585_v47  ;;  %v960_v8 = vadd.f32 %v2028_v50, %v881_v63 }
  0xf0   : > { %v1767_v51 = vpop.f32.mrf.mxu0  ;;  %v2030_v52 = vpop.f32.mrf.mxu1 }
  0xf1   : > { %v958_v53 = vadd.f32 %v2028_v50, %v879_v49  ;;  %v882_v54 = vmul.f32 %v1767_v51, %v2020_v46  ;;  %v1032_v20 = vmax.f32 %v960_v8, 0.0 }
  0xf2   : > { %v588_v55 = vpop.f32.mrf.mxu0  ;;  %v2034_v56 = vpop.f32.mrf.mxu1 }
  0xf3   : > { %v961_v57 = vadd.f32 %v2028_v50, %v882_v54  ;;  %v880_v58 = vmul.f32 %v2020_v46, %v588_v55  ;;  %v1030_v61 = vmax.f32 %v958_v53, 0.0 }
  0xf4   : > { %v1770_v59 = vpop.f32.mrf.mxu0  ;;  %v2038_v60 = vpop.f32.mrf.mxu1 }
  0xf5   : > { %v1033_v62 = vmax.f32 %v961_v57, 0.0  ;;  %v959_v3 = vadd.f32 %v2028_v50, %v880_v58  ;;  %v885_v21 = vmul.f32 %v1770_v59, %v2020_v46 }
  0xf6   : > { %v601_v0 = vpop.f32.mrf.mxu0  ;;  %v2041_v1 = vpop.f32.mrf.mxu1 }
  0xf7   : > { %v1180_v2 = vmax.f32 %v1030_v61, %v1033_v62  ;;  %v883_v4 = vmul.f32 %v2020_v46, %v601_v0  ;;  %v1031_v11 = vmax.f32 %v959_v3, 0.0  ;;  %v964_v33 = vadd.f32 %v2028_v50, %v885_v21 }
  0xf8   : > { %v1771_v5 = vpop.f32.mrf.mxu0  ;;  %v2045_v6 = vpop.f32.mrf.mxu1 }
  0xf9   : > { %1183 = vst [vmem:[#allocation3] sm:$0xff] %v1180_v2  ;;  %v962_v7 = vadd.f32 %v2028_v50, %v883_v4  ;;  %v886_v13 = vmul.f32 %v1771_v5, %v2020_v46  ;;  %v1036_v54 = vmax.f32 %v964_v33, 0.0 }
  0xfa   : > { %v604_v9 = vpop.f32.mrf.mxu0  ;;  %v2049_v10 = vpop.f32.mrf.mxu1 }
  0xfb   : > { %v1034_v12 = vmax.f32 %v962_v7, 0.0  ;;  %v884_v14 = vmul.f32 %v2020_v46, %v604_v9  ;;  %v965_v24 = vadd.f32 %v2028_v50, %v886_v13 }
  0xfc   : > { %v1774_v15 = vpop.f32.mrf.mxu0  ;;  %v2053_v16 = vpop.f32.mrf.mxu1 }
  0xfd   : > { %v1181_v17 = vmax.f32 %v1031_v11, %v1034_v12  ;;  %v963_v18 = vadd.f32 %v2028_v50, %v884_v14  ;;  %v889_v19 = vmul.f32 %v1774_v15, %v2020_v46  ;;  %v1037_v36 = vmax.f32 %v965_v24, 0.0 }
  0xfe   : > { %v617_v22 = vpop.f32.mrf.mxu0  ;;  %v2058_v23 = vpop.f32.mrf.mxu1 }
  0xff   : > { %1184 = vst [vmem:[#allocation3 + $0x8] sm:$0xff] %v1181_v17  ;;  %v1035_v25 = vmax.f32 %v963_v18, 0.0  ;;  %v968_v26 = vadd.f32 %v2028_v50, %v889_v19  ;;  %v887_v27 = vmul.f32 %v2020_v46, %v617_v22 }
 0x100   : > { %v1775_v28 = vpop.f32.mrf.mxu0  ;;  %v2063_v29 = vpop.f32.mrf.mxu1 }
 0x101   : > { %v1182_v30 = vmax.f32 %v1032_v20, %v1035_v25  ;;  %v1040_v31 = vmax.f32 %v968_v26, 0.0  ;;  %v890_v32 = vmul.f32 %v1775_v28, %v2020_v46  ;;  %v966_v37 = vadd.f32 %v2028_v50, %v887_v27 }
 0x102   : > { %v620_v34 = vpop.f32.mrf.mxu0  ;;  %v2067_v35 = vpop.f32.mrf.mxu1 }
 0x103   : > { %1185 = vst [vmem:[#allocation3 + $0x10] sm:$0xff] %v1182_v30  ;;  %v969_v38 = vadd.f32 %v2028_v50, %v890_v32  ;;  %v888_v39 = vmul.f32 %v2020_v46, %v620_v34  ;;  %v1212_v42 = vmax.f32 %v1037_v36, %v1040_v31  ;;  %v1038_v57 = vmax.f32 %v966_v37, 0.0 }
 0x104   : > { %v1778_v40 = vpop.f32.mrf.mxu0  ;;  %v2073_v41 = vpop.f32.mrf.mxu1 }
 0x105   : > { %v1041_v43 = vmax.f32 %v969_v38, 0.0  ;;  %v967_v44 = vadd.f32 %v2028_v50, %v888_v39  ;;  %v893_v18 = vmul.f32 %v1778_v40, %v2020_v46 }
 0x106   : > { %v1186_v47 = vld [vmem:[#allocation3] ss:$2 sm:$0xff]  ;;  %v1190_v49 = vld [vmem:[#allocation3 + $0x1] ss:$2 sm:$0xff]  ;;  %v633_v51 = vpop.f32.mrf.mxu0  ;;  %v2076_v53 = vpop.f32.mrf.mxu1 }
 0x107   : > { %v1193_v55 = vmax.f32 %v1186_v47, %v1190_v49  ;;  %1215 = vst [vmem:[#allocation3 + $0x8] sm:$0xff] %v1212_v42  ;;  %v1039_v58 = vmax.f32 %v967_v44, 0.0  ;;  %v891_v59 = vmul.f32 %v2020_v46, %v633_v51  ;;  %v1213_v0 = vmax.f32 %v1038_v57, %v1041_v43 }
 0x108   : > { %v1779_v61 = vpop.f32.mrf.mxu0  ;;  %v2084_v62 = vpop.f32.mrf.mxu1  ;;  %v972_v31 = vadd.f32 %v2028_v50, %v893_v18 }
 0x109   : > { %v1680_v63 = vpack.c.bf16 %v1193_v55, %v1193_v55  ;;  %v1211_v2 = vmax.f32 %v1036_v54, %v1039_v58  ;;  %v894_v3 = vmul.f32 %v1779_v61, %v2020_v46  ;;  %v970_v13 = vadd.f32 %v2028_v50, %v891_v59 }
 0x10a   : > { %v1188_v4 = vld [vmem:[#allocation3 + $0x10] ss:$2 sm:$0xf]  ;;  %v1192_v5 = vld [vmem:[#allocation3 + $0x11] ss:$2 sm:$0xf]  ;;  %v636_v7 = vpop.f32.mrf.mxu0  ;;  %v2090_v12 = vpop.f32.mrf.mxu1 }
 0x10b   : > { %1203 = vst [vmem:[%s2081_s16] sm:$0xf] %v1680_v63  ;;  %v1194_v8 = vmax.f32 %v1188_v4, %v1192_v5  ;;  %1216 = vst [vmem:[#allocation3 + $0x10] sm:$0xff] %v1213_v0  ;;  %v973_v9 = vadd.f32 %v2028_v50, %v894_v3  ;;  %v892_v11 = vmul.f32 %v2020_v46, %v636_v7  ;;  %v1042_v24 = vmax.f32 %v970_v13, 0.0 }
 0x10c   : > { %1214 = vst [vmem:[#allocation3] sm:$0xff] %v1211_v2  ;;  %v1782_v14 = vpop.f32.mrf.mxu0  ;;  %v2097_v22 = vpop.f32.mrf.mxu1  ;;  %v1044_v59 = vmax.f32 %v972_v31, 0.0 }
 0x10d   : > { %v1681_v15 = vpack.c.bf16 %v1194_v8, %v1194_v8  ;;  %v971_v17 = vadd.f32 %v2028_v50, %v892_v11  ;;  %v1045_v19 = vmax.f32 %v973_v9, 0.0  ;;  %v897_v55 = vmul.f32 %v1782_v14, %v2020_v46 }
 0x10e   : > { %v649_v20 = vpop.f32.mrf.mxu0  ;;  %v2103_v42 = vpop.f32.mrf.mxu1 }
 0x10f   : > { %1204 = vst [vmem:[%s2081_s16 + $0x4] sm:$0x3] %v1681_v15  ;;  %v895_v21 = vmul.f32 %v2020_v46, %v649_v20  ;;  %v1043_v26 = vmax.f32 %v971_v17, 0.0  ;;  %v1240_v32 = vmax.f32 %v1042_v24, %v1045_v19  ;;  %v976_v8 = vadd.f32 %v2028_v50, %v897_v55 }
 0x110   : > { %v1783_v25 = vpop.f32.mrf.mxu0  ;;  %v2111_v2 = vpop.f32.mrf.mxu1 }
 0x111   : > { %v974_v27 = vadd.f32 %v2028_v50, %v895_v21  ;;  %v898_v39 = vmul.f32 %v1783_v25, %v2020_v46 }
 0x112   : > { %v1218_v28 = vld [vmem:[#allocation3 + $0x10] ss:$2 sm:$0xf]  ;;  %v1220_v30 = vld [vmem:[#allocation3 + $0x11] ss:$2 sm:$0xf]  ;;  %v652_v33 = vpop.f32.mrf.mxu0  ;;  %v2120_v18 = vpop.f32.mrf.mxu1 }
 0x113   : > { %v1222_v34 = vmax.f32 %v1218_v28, %v1220_v30  ;;  %v1217_v36 = vld [vmem:[#allocation3] ss:$2 sm:$0xff]  ;;  %v1219_v37 = vld [vmem:[#allocation3 + $0x1] ss:$2 sm:$0xff]  ;;  %v1046_v38 = vmax.f32 %v974_v27, 0.0  ;;  %v896_v40 = vmul.f32 %v2020_v46, %v652_v33  ;;  %v977_v61 = vadd.f32 %v2028_v50, %v898_v39 }
 0x114   : > { %v1221_v43 = vmax.f32 %v1217_v36, %v1219_v37  ;;  %1243 = vst [vmem:[#allocation3] sm:$0xff] %v1240_v32  ;;  %v1786_v44 = vpop.f32.mrf.mxu0  ;;  %v1048_v28 = vmax.f32 %v976_v8, 0.0  ;;  %v2123_v33 = vpop.f32.mrf.mxu1 }
 0x115   : > { %v1683_v47 = vpack.c.bf16 %v1222_v34, %v1222_v34  ;;  %v1241_v49 = vmax.f32 %v1043_v26, %v1046_v38  ;;  %v975_v51 = vadd.f32 %v2028_v50, %v896_v40  ;;  %v901_v57 = vmul.f32 %v1786_v44, %v2020_v46 }
 0x116   : > { %v1682_v54 = vpack.c.bf16 %v1221_v43, %v1221_v43  ;;  %v665_v58 = vpop.f32.mrf.mxu0  ;;  %v1049_v13 = vmax.f32 %v977_v61, 0.0  ;;  %v2130_v55 = vpop.f32.mrf.mxu1 }
 0x117   : > { %1637 = vst [vmem:[%s2081_s16 + $0xc] sm:$0x3] %v1683_v47  ;;  %1244 = vst [vmem:[#allocation3 + $0x8] sm:$0xff] %v1241_v49  ;;  %v1047_v63 = vmax.f32 %v975_v51, 0.0  ;;  %v899_v0 = vmul.f32 %v2020_v46, %v665_v58  ;;  %v980_v3 = vadd.f32 %v2028_v50, %v901_v57 }
 0x118   : > { %1636 = vst [vmem:[%s2081_s16 + $0x8] sm:$0xf] %v1682_v54  ;;  %v1787_v4 = vpop.f32.mrf.mxu0 }
 0x119   : > { %v1242_v5 = vmax.f32 %v1044_v59, %v1047_v63  ;;  %v902_v7 = vmul.f32 %v1787_v4, %v2020_v46  ;;  %v1052_v9 = vmax.f32 %v980_v3, 0.0  ;;  %v978_v14 = vadd.f32 %v2028_v50, %v899_v0 }
 0x11a   : > { %v668_v11 = vpop.f32.mrf.mxu0 }
 0x11b   : > { %1245 = vst [vmem:[#allocation3 + $0x10] sm:$0xff] %v1242_v5  ;;  %v981_v15 = vadd.f32 %v2028_v50, %v902_v7  ;;  %v900_v17 = vmul.f32 %v2020_v46, %v668_v11  ;;  %v1270_v20 = vmax.f32 %v1049_v13, %v1052_v9  ;;  %v1050_v31 = vmax.f32 %v978_v14, 0.0  ;;  %v2137_v5 = vpop.f32.mrf.mxu1 }
 0x11c   : > { %v1790_v19 = vpop.f32.mrf.mxu0 }
 0x11d   : > { %v1053_v21 = vmax.f32 %v981_v15, 0.0  ;;  %v979_v24 = vadd.f32 %v2028_v50, %v900_v17  ;;  %v905_v63 = vmul.f32 %v1790_v19, %v2020_v46 }
 0x11e   : > { %v1246_v25 = vld [vmem:[#allocation3] ss:$2 sm:$0xff]  ;;  %v1248_v26 = vld [vmem:[#allocation3 + $0x1] ss:$2 sm:$0xff]  ;;  %v681_v27 = vpop.f32.mrf.mxu0 }
 0x11f   : > { %v1250_v30 = vmax.f32 %v1246_v25, %v1248_v26  ;;  %1273 = vst [vmem:[#allocation3 + $0x8] sm:$0xff] %v1270_v20  ;;  %v1051_v32 = vmax.f32 %v979_v24, 0.0  ;;  %v903_v34 = vmul.f32 %v2020_v46, %v681_v27  ;;  %v1271_v38 = vmax.f32 %v1050_v31, %v1053_v21 }
 0x120   : > { %v1791_v36 = vpop.f32.mrf.mxu0  ;;  %v984_v15 = vadd.f32 %v2028_v50, %v905_v63 }
 0x121   : > { %v1684_v37 = vpack.c.bf16 %v1250_v30, %v1250_v30  ;;  %v1269_v39 = vmax.f32 %v1048_v28, %v1051_v32  ;;  %v906_v40 = vmul.f32 %v1791_v36, %v2020_v46  ;;  %v982_v57 = vadd.f32 %v2028_v50, %v903_v34  ;;  %v2143_v28 = vpop.f32.mrf.mxu1 }
 0x122   : > { %v1247_v43 = vld [vmem:[#allocation3 + $0x10] ss:$2 sm:$0xf]  ;;  %v1249_v44 = vld [vmem:[#allocation3 + $0x11] ss:$2 sm:$0xf]  ;;  %v684_v47 = vpop.f32.mrf.mxu0 }
 0x123   : > { %1640 = vst [vmem:[%s2081_s16 + $0x10] sm:$0xf] %v1684_v37  ;;  %v1251_v49 = vmax.f32 %v1247_v43, %v1249_v44  ;;  %1274 = vst [vmem:[#allocation3 + $0x10] sm:$0xff] %v1271_v38  ;;  %v985_v51 = vadd.f32 %v2028_v50, %v906_v40  ;;  %v904_v54 = vmul.f32 %v2020_v46, %v684_v47  ;;  %v1054_v7 = vmax.f32 %v982_v57, 0.0 }
 0x124   : > { %1272 = vst [vmem:[#allocation3] sm:$0xff] %v1269_v39  ;;  %v1794_v58 = vpop.f32.mrf.mxu0  ;;  %v1056_v43 = vmax.f32 %v984_v15, 0.0  ;;  %v920_v15 = vmul.f32 %v2020_v46, %v2049_v10 }
 0x125   : > { %v1685_v59 = vpack.c.bf16 %v1251_v49, %v1251_v49  ;;  %v983_v61 = vadd.f32 %v2028_v50, %v904_v54  ;;  %v1057_v0 = vmax.f32 %v985_v51, 0.0  ;;  %v909_v38 = vmul.f32 %v1794_v58, %v2020_v46  ;;  %v2151_v51 = vpop.f32.mrf.mxu1 }
 0x126   : > { %v697_v3 = vpop.f32.mrf.mxu0 }
 0x127   : > { %1641 = vst [vmem:[%s2081_s16 + $0x14] sm:$0x3] %v1685_v59  ;;  %v907_v4 = vmul.f32 %v2020_v46, %v697_v3  ;;  %v1055_v9 = vmax.f32 %v983_v61, 0.0  ;;  %v1298_v17 = vmax.f32 %v1054_v7, %v1057_v0  ;;  %v988_v61 = vadd.f32 %v2028_v50, %v909_v38 }
 0x128   : > { %v1795_v8 = vpop.f32.mrf.mxu0 }
 0x129   : > { %v986_v11 = vadd.f32 %v2028_v50, %v907_v4  ;;  %v910_v26 = vmul.f32 %v1795_v8, %v2020_v46 }
 0x12a   : > { %v1276_v13 = vld [vmem:[#allocation3 + $0x10] ss:$2 sm:$0xf]  ;;  %v1278_v14 = vld [vmem:[#allocation3 + $0x11] ss:$2 sm:$0xf]  ;;  %v700_v20 = vpop.f32.mrf.mxu0 }
 0x12b   : > { %v1280_v21 = vmax.f32 %v1276_v13, %v1278_v14  ;;  %v1275_v19 = vld [vmem:[#allocation3] ss:$2 sm:$0xff]  ;;  %v1277_v24 = vld [vmem:[#allocation3 + $0x1] ss:$2 sm:$0xff]  ;;  %v1058_v25 = vmax.f32 %v986_v11, 0.0  ;;  %v908_v27 = vmul.f32 %v2020_v46, %v700_v20  ;;  %v989_v44 = vadd.f32 %v2028_v50, %v910_v26 }
 0x12c   : > { %v1279_v30 = vmax.f32 %v1275_v19, %v1277_v24  ;;  %1301 = vst [vmem:[#allocation3] sm:$0xff] %v1298_v17  ;;  %v1798_v31 = vpop.f32.mrf.mxu0  ;;  %v917_v11 = vmul.f32 %v2015_v45, %v2020_v46  ;;  %v915_v13 = vmul.f32 %v2020_v46, %v2022_v48  ;;  %v918_v14 = vmul.f32 %v2030_v52, %v2020_v46 }
 0x12d   : > { %v1687_v32 = vpack.c.bf16 %v1280_v21, %v1280_v21  ;;  %v1299_v34 = vmax.f32 %v1055_v9, %v1058_v25  ;;  %v987_v36 = vadd.f32 %v2028_v50, %v908_v27  ;;  %v913_v39 = vmul.f32 %v1798_v31, %v2020_v46  ;;  %v2160_v9 = vpop.f32.mrf.mxu1 }
 0x12e   : > { %v1686_v37 = vpack.c.bf16 %v1279_v30, %v1279_v30  ;;  %v713_v40 = vpop.f32.mrf.mxu0  ;;  %v1061_v3 = vmax.f32 %v989_v44, 0.0  ;;  %v916_v19 = vmul.f32 %v2020_v46, %v2034_v56  ;;  %v919_v24 = vmul.f32 %v2020_v46, %v2041_v1 }
 0x12f   : > { %1645 = vst [vmem:[%s2081_s16 + $0x1c] sm:$0x3] %v1687_v32  ;;  %1302 = vst [vmem:[#allocation3 + $0x8] sm:$0xff] %v1299_v34  ;;  %v1059_v47 = vmax.f32 %v987_v36, 0.0  ;;  %v911_v49 = vmul.f32 %v2020_v46, %v713_v40  ;;  %v992_v54 = vadd.f32 %v2028_v50, %v913_v39  ;;  %v1060_v26 = vmax.f32 %v988_v61, 0.0  ;;  %v2175_v30 = vpop.f32.mrf.mxu1 }
 0x130   : > { %1644 = vst [vmem:[%s2081_s16 + $0x18] sm:$0xf] %v1686_v37  ;;  %v1799_v57 = vpop.f32.mrf.mxu0  ;;  %v996_v10 = vadd.f32 %v2028_v50, %v917_v11  ;;  %v994_v31 = vadd.f32 %v2028_v50, %v915_v13  ;;  %v997_v32 = vadd.f32 %v2028_v50, %v918_v14  ;;  %v999_v56 = vadd.f32 %v2028_v50, %v920_v15 }
 0x131   : > { %v1300_v59 = vmax.f32 %v1056_v43, %v1059_v47  ;;  %v914_v58 = vmul.f32 %v1799_v57, %v2020_v46  ;;  %v1064_v63 = vmax.f32 %v992_v54, 0.0  ;;  %v990_v4 = vadd.f32 %v2028_v50, %v911_v49  ;;  %v2186_v47 = vpop.f32.mrf.mxu1 }
 0x132   : > { %v716_v0 = vpop.f32.mrf.mxu0  ;;  %v995_v37 = vadd.f32 %v2028_v50, %v916_v19  ;;  %v998_v38 = vadd.f32 %v2028_v50, %v919_v24  ;;  %v921_v43 = vmul.f32 %v2038_v60, %v2020_v46  ;;  %v1068_v49 = vmax.f32 %v996_v10, 0.0 }
 0x133   : > { %1303 = vst [vmem:[#allocation3 + $0x10] sm:$0xff] %v1300_v59  ;;  %v993_v7 = vadd.f32 %v2028_v50, %v914_v58  ;;  %v912_v8 = vmul.f32 %v2020_v46, %v716_v0  ;;  %v1328_v17 = vmax.f32 %v1061_v3, %v1064_v63  ;;  %v1062_v52 = vmax.f32 %v990_v4, 0.0 }
 0x134   : > { %v1066_v54 = vmax.f32 %v994_v31, 0.0  ;;  %v922_v57 = vmul.f32 %v2045_v6, %v2020_v46  ;;  %v923_v59 = vmul.f32 %v2020_v46, %v2058_v23  ;;  %v1069_v58 = vmax.f32 %v997_v32, 0.0  ;;  %v2200_v6 = vpop.f32.mrf.mxu1 }
 0x135   : > { %v1065_v20 = vmax.f32 %v993_v7, 0.0  ;;  %v991_v21 = vadd.f32 %v2028_v50, %v912_v8  ;;  %v1071_v61 = vmax.f32 %v999_v56, 0.0  ;;  %v926_v60 = vmul.f32 %v2063_v29, %v2020_v46 }
 0x136   : > { %v1304_v45 = vld [vmem:[#allocation3] ss:$2 sm:$0xff]  ;;  %v1306_v25 = vld [vmem:[#allocation3 + $0x1] ss:$2 sm:$0xff]  ;;  %v1067_v0 = vmax.f32 %v995_v37, 0.0  ;;  %v1070_v3 = vmax.f32 %v998_v38, 0.0  ;;  %v925_v4 = vmul.f32 %v2053_v16, %v2020_v46  ;;  %v924_v7 = vmul.f32 %v2020_v46, %v2067_v35 }
 0x137   : > { %v1308_v48 = vmax.f32 %v1304_v45, %v1306_v25  ;;  %1331 = vst [vmem:[#allocation3 + $0x8] sm:$0xff] %v1328_v17  ;;  %v1063_v27 = vmax.f32 %v991_v21, 0.0  ;;  %v1329_v1 = vmax.f32 %v1062_v52, %v1065_v20  ;;  %v1000_v8 = vadd.f32 %v2028_v50, %v921_v43 }
 0x138   : > { %v1001_v23 = vadd.f32 %v2028_v50, %v922_v57  ;;  %v1002_v11 = vadd.f32 %v2028_v50, %v923_v59  ;;  %v1358_v13 = vmax.f32 %v1068_v49, %v1071_v61  ;;  %v1005_v29 = vadd.f32 %v2028_v50, %v926_v60 }
 0x139   : > { %v1688_v34 = vpack.c.bf16 %v1308_v48, %v1308_v48  ;;  %v1327_v36 = vmax.f32 %v1060_v26, %v1063_v27  ;;  %v1356_v14 = vmax.f32 %v1066_v54, %v1069_v58  ;;  %v1357_v15 = vmax.f32 %v1067_v0, %v1070_v3  ;;  %v2211_v48 = vpop.f32.mrf.mxu1 }
 0x13a   : > { %v1305_v39 = vld [vmem:[#allocation3 + $0x10] ss:$2 sm:$0xf]  ;;  %v1307_v40 = vld [vmem:[#allocation3 + $0x11] ss:$2 sm:$0xf]  ;;  %v1004_v17 = vadd.f32 %v2028_v50, %v925_v4  ;;  %v1003_v16 = vadd.f32 %v2028_v50, %v924_v7  ;;  %v929_v19 = vmul.f32 %v2073_v41, %v2020_v46  ;;  %v927_v24 = vmul.f32 %v2020_v46, %v2076_v53 }
 0x13b   : > { %1648 = vst [vmem:[%s2081_s16 + $0x20] sm:$0xf] %v1688_v34  ;;  %v1309_v44 = vmax.f32 %v1305_v39, %v1307_v40  ;;  %1332 = vst [vmem:[#allocation3 + $0x10] sm:$0xff] %v1329_v1  ;;  %v1072_v21 = vmax.f32 %v1000_v8, 0.0  ;;  %v1073_v52 = vmax.f32 %v1001_v23, 0.0  ;;  %v1074_v27 = vmax.f32 %v1002_v11, 0.0  ;;  %v2224_v39 = vpop.f32.mrf.mxu1 }
 0x13c   : > { %1330 = vst [vmem:[#allocation3] sm:$0xff] %v1327_v36  ;;  %v930_v10 = vmul.f32 %v2084_v62, %v2020_v46  ;;  %v1077_v41 = vmax.f32 %v1005_v29, 0.0  ;;  %v928_v53 = vmul.f32 %v2020_v46, %v2090_v12  ;;  %v932_v56 = vmul.f32 %v2020_v46, %v2120_v18 }
 0x13d   : > { %v1689_v63 = vpack.c.bf16 %v1309_v44, %v1309_v44  ;;  %v1076_v34 = vmax.f32 %v1004_v17, 0.0  ;;  %v1075_v1 = vmax.f32 %v1003_v16, 0.0  ;;  %v931_v36 = vmul.f32 %v2020_v46, %v2103_v42  ;;  %v844_v3 = vpop.f32.mrf.mxu1 }
 0x13e   : > { %v1008_v62 = vadd.f32 %v2028_v50, %v929_v19  ;;  %v1006_v38 = vadd.f32 %v2028_v50, %v927_v24  ;;  %v1009_v40 = vadd.f32 %v2028_v50, %v930_v10  ;;  %v1387_v12 = vmax.f32 %v1074_v27, %v1077_v41 }
 0x13f   : > { %1649 = vst [vmem:[%s2081_s16 + $0x24] sm:$0x3] %v1689_v63  ;;  %v1007_v43 = vadd.f32 %v2028_v50, %v928_v53  ;;  %v1011_v18 = vadd.f32 %v2028_v50, %v932_v56  ;;  %v1386_v44 = vmax.f32 %v1073_v52, %v1076_v34  ;;  %v1385_v49 = vmax.f32 %v1072_v21, %v1075_v1 }
 0x140   : > { %v1010_v57 = vadd.f32 %v2028_v50, %v931_v36  ;;  %v1080_v59 = vmax.f32 %v1008_v62, 0.0  ;;  %v1078_v58 = vmax.f32 %v1006_v38, 0.0  ;;  %v933_v61 = vmul.f32 %v2097_v22, %v2020_v46 }
 0x141   : > { %v1081_v4 = vmax.f32 %v1009_v40, 0.0  ;;  %v934_v8 = vmul.f32 %v2111_v2, %v2020_v46  ;;  %v935_v23 = vmul.f32 %v2020_v46, %v2130_v55  ;;  %v1079_v11 = vmax.f32 %v1007_v43, 0.0  ;;  %v2245_v2 = vpop.f32.mrf.mxu1 }
 0x142   : > { %v1334_v20 = vld [vmem:[#allocation3 + $0x10] ss:$2 sm:$0xf]  ;;  %v1336_v35 = vld [vmem:[#allocation3 + $0x11] ss:$2 sm:$0xf]  ;;  %v938_v29 = vmul.f32 %v2137_v5, %v2020_v46  ;;  %v937_v17 = vmul.f32 %v2123_v33, %v2020_v46  ;;  %v936_v16 = vmul.f32 %v2020_v46, %v2143_v28  ;;  %v941_v19 = vmul.f32 %v2151_v51, %v2020_v46 }
 0x143   : > { %v1338_v45 = vmax.f32 %v1334_v20, %v1336_v35  ;;  %1361 = vst [vmem:[#allocation3 + $0x10] sm:$0xff] %v1358_v13  ;;  %v1333_v25 = vld [vmem:[#allocation3] ss:$2 sm:$0xff]  ;;  %v1335_v26 = vld [vmem:[#allocation3 + $0x1] ss:$2 sm:$0xff]  ;;  %v1083_v22 = vmax.f32 %v1011_v18, 0.0  ;;  %v1012_v20 = vadd.f32 %v2028_v50, %v933_v61  ;;  %v1013_v55 = vadd.f32 %v2028_v50, %v934_v8  ;;  %v857_v51 = vpop.f32.mrf.mxu1 }
 0x144   : > { %v1337_v31 = vmax.f32 %v1333_v25, %v1335_v26  ;;  %1359 = vst [vmem:[#allocation3] sm:$0xff] %v1356_v14  ;;  %1360 = vst [vmem:[#allocation3 + $0x8] sm:$0xff] %v1357_v15  ;;  %v1082_v14 = vmax.f32 %v1010_v57, 0.0  ;;  %v1014_v35 = vadd.f32 %v2028_v50, %v935_v23  ;;  %v1017_v5 = vadd.f32 %v2028_v50, %v938_v29 }
 0x145   : > { %v1691_v32 = vpack.c.bf16 %v1338_v45, %v1338_v45  ;;  %v1416_v21 = vmax.f32 %v1080_v59, %v1083_v22  ;;  %v1414_v33 = vmax.f32 %v1078_v58, %v1081_v4  ;;  %v1016_v25 = vadd.f32 %v2028_v50, %v937_v17 }
 0x146   : > { %v1690_v37 = vpack.c.bf16 %v1337_v31, %v1337_v31  ;;  %v1415_v28 = vmax.f32 %v1079_v11, %v1082_v14  ;;  %v1015_v26 = vadd.f32 %v2028_v50, %v936_v16  ;;  %v1084_v52 = vmax.f32 %v1012_v20, 0.0 }
 0x147   : > { %1653 = vst [vmem:[%s2081_s16 + $0x2c] sm:$0x3] %v1691_v32  ;;  %v939_v41 = vmul.f32 %v2020_v46, %v2160_v9  ;;  %v942_v53 = vmul.f32 %v2175_v30, %v2020_v46  ;;  %v1085_v56 = vmax.f32 %v1013_v55, 0.0  ;;  %v1086_v34 = vmax.f32 %v1014_v35, 0.0 }
 0x148   : > { %1652 = vst [vmem:[%s2081_s16 + $0x28] sm:$0xf] %v1690_v37  ;;  %v940_v1 = vmul.f32 %v2020_v46, %v2186_v47  ;;  %v1089_v37 = vmax.f32 %v1017_v5, 0.0  ;;  %v1020_v62 = vadd.f32 %v2028_v50, %v941_v19  ;;  %v944_v9 = vmul.f32 %v2020_v46, %v844_v3 }
 0x149   : > { %v1088_v40 = vmax.f32 %v1016_v25, 0.0  ;;  %v1087_v30 = vmax.f32 %v1015_v26, 0.0  ;;  %v1018_v43 = vadd.f32 %v2028_v50, %v939_v41  ;;  %v1021_v18 = vadd.f32 %v2028_v50, %v942_v53 }
 0x14a   : > { %v1363_v54 = vld [vmem:[#allocation3 + $0x10] ss:$2 sm:$0xf]  ;;  %v1365_v42 = vld [vmem:[#allocation3 + $0x11] ss:$2 sm:$0xf]  ;;  %v1019_v47 = vadd.f32 %v2028_v50, %v940_v1  ;;  %v945_v11 = vmul.f32 %v2200_v6, %v2020_v46  ;;  %v947_v14 = vmul.f32 %v2020_v46, %v857_v51  ;;  %v949_v20 = vmul.f32 %v2245_v2, %v2020_v46 }
 0x14b   : > { %v1367_v60 = vmax.f32 %v1363_v54, %v1365_v42  ;;  %1390 = vst [vmem:[#allocation3 + $0x10] sm:$0xff] %v1387_v12  ;;  %v1362_v63 = vld [vmem:[#allocation3] ss:$2 sm:$0xff]  ;;  %v1364_v0 = vld [vmem:[#allocation3 + $0x1] ss:$2 sm:$0xff]  ;;  %v943_v12 = vmul.f32 %v2020_v46, %v2211_v48  ;;  %v1092_v54 = vmax.f32 %v1020_v62, 0.0  ;;  %v1023_v42 = vadd.f32 %v2028_v50, %v944_v9 }
 0x14c   : > { %v1366_v7 = vmax.f32 %v1362_v63, %v1364_v0  ;;  %1388 = vst [vmem:[#allocation3] sm:$0xff] %v1385_v49  ;;  %1389 = vst [vmem:[#allocation3 + $0x8] sm:$0xff] %v1386_v44  ;;  %v1835_v44 = vpop.f32.mrf.mxu1  ;;  %v1445_v49 = vmax.f32 %v1086_v34, %v1089_v37  ;;  %v1444_v58 = vmax.f32 %v1085_v56, %v1088_v40  ;;  %v1090_v3 = vmax.f32 %v1018_v43, 0.0 }
 0x14d   : > { %v1693_v13 = vpack.c.bf16 %v1367_v60, %v1367_v60  ;;  %v1443_v61 = vmax.f32 %v1084_v52, %v1087_v30  ;;  %v1022_v60 = vadd.f32 %v2028_v50, %v943_v12  ;;  %v1093_v4 = vmax.f32 %v1021_v18, 0.0 }
 0x14e   : > { %v1692_v15 = vpack.c.bf16 %v1366_v7, %v1366_v7  ;;  %v860_v7 = vpop.f32.mrf.mxu1  ;;  %v1091_v23 = vmax.f32 %v1019_v47, 0.0  ;;  %v1095_v29 = vmax.f32 %v1023_v42, 0.0  ;;  %v1024_v6 = vadd.f32 %v2028_v50, %v945_v11 }
 0x14f   : > { %1657 = vst [vmem:[%s2081_s16 + $0x34] sm:$0x3] %v1693_v13  ;;  %v946_v13 = vmul.f32 %v2224_v39, %v2020_v46  ;;  %v1094_v16 = vmax.f32 %v1022_v60, 0.0  ;;  %v948_v55 = vmul.f32 %v2020_v46, %v860_v7  ;;  %v1472_v35 = vmax.f32 %v1090_v3, %v1093_v4 }
 0x150   : > { %1656 = vst [vmem:[%s2081_s16 + $0x30] sm:$0xf] %v1692_v15  ;;  %v950_v15 = vmul.f32 %v1835_v44, %v2020_v46  ;;  %v1026_v39 = vadd.f32 %v2028_v50, %v947_v14 }
 0x151   : > { %v1027_v2 = vadd.f32 %v2028_v50, %v948_v55 }
 0x152   : > { %v1392_v24 = vld [vmem:[#allocation3 + $0x10] ss:$2 sm:$0xf]  ;;  %v1394_v45 = vld [vmem:[#allocation3 + $0x11] ss:$2 sm:$0xf]  ;;  %v1029_v5 = vadd.f32 %v2028_v50, %v950_v15 }
 0x153   : > { %v1396_v27 = vmax.f32 %v1392_v24, %v1394_v45  ;;  %v1391_v10 = vld [vmem:[#allocation3] ss:$2 sm:$0xff]  ;;  %v1393_v31 = vld [vmem:[#allocation3 + $0x1] ss:$2 sm:$0xff]  ;;  %1419 = vst [vmem:[#allocation3 + $0x10] sm:$0xff] %v1416_v21  ;;  %v1474_v21 = vmax.f32 %v1092_v54, %v1095_v29  ;;  %v1473_v24 = vmax.f32 %v1091_v23, %v1094_v16  ;;  %v1025_v45 = vadd.f32 %v2028_v50, %v946_v13 }
 0x154   : > { %v1395_v32 = vmax.f32 %v1391_v10, %v1393_v31  ;;  %1417 = vst [vmem:[#allocation3] sm:$0xff] %v1414_v33  ;;  %1418 = vst [vmem:[#allocation3 + $0x8] sm:$0xff] %v1415_v28  ;;  %v1028_v28 = vadd.f32 %v2028_v50, %v949_v20  ;;  %v1096_v10 = vmax.f32 %v1024_v6, 0.0  ;;  %v1098_v31 = vmax.f32 %v1026_v39, 0.0 }
 0x155   : > { %v1695_v36 = vpack.c.bf16 %v1396_v27, %v1396_v27  ;;  %v1101_v41 = vmax.f32 %v1029_v5, 0.0  ;;  %v1097_v51 = vmax.f32 %v1025_v45, 0.0  ;;  %v1099_v56 = vmax.f32 %v1027_v2, 0.0 }
 0x156   : > { %v1694_v38 = vpack.c.bf16 %v1395_v32, %v1395_v32  ;;  %v1100_v32 = vmax.f32 %v1028_v28, 0.0 }
 0x157   : > { %1661 = vst [vmem:[%s2081_s16 + $0x3c] sm:$0x3] %v1695_v36  ;;  %v1503_v50 = vmax.f32 %v1098_v31, %v1101_v41  ;;  %v1501_v37 = vmax.f32 %v1096_v10, %v1099_v56 }
 0x158   : > { %1660 = vst [vmem:[%s2081_s16 + $0x38] sm:$0xf] %v1694_v38  ;;  %v1502_v36 = vmax.f32 %v1097_v51, %v1100_v32 }
 0x15a   : > { %v1421_v57 = vld [vmem:[#allocation3 + $0x10] ss:$2 sm:$0xf]  ;;  %v1423_v59 = vld [vmem:[#allocation3 + $0x11] ss:$2 sm:$0xf] }
 0x15b   : > { %v1420_v48 = vld [vmem:[#allocation3] ss:$2 sm:$0xff]  ;;  %v1422_v63 = vld [vmem:[#allocation3 + $0x1] ss:$2 sm:$0xff]  ;;  %v1425_v0 = vmax.f32 %v1421_v57, %v1423_v59  ;;  %1448 = vst [vmem:[#allocation3 + $0x10] sm:$0xff] %v1445_v49 }
 0x15c   : > { %v1424_v8 = vmax.f32 %v1420_v48, %v1422_v63  ;;  %1447 = vst [vmem:[#allocation3 + $0x8] sm:$0xff] %v1444_v58  ;;  %1446 = vst [vmem:[#allocation3] sm:$0xff] %v1443_v61 }
 0x15d   : > { %v1697_v22 = vpack.c.bf16 %v1425_v0, %v1425_v0 }
 0x15e   : > { %v1696_v17 = vpack.c.bf16 %v1424_v8, %v1424_v8 }
 0x15f   : > { %1665 = vst [vmem:[%s2081_s16 + $0x44] sm:$0x3] %v1697_v22 }
 0x160   : > { %1664 = vst [vmem:[%s2081_s16 + $0x40] sm:$0xf] %v1696_v17 }
 0x162   : > { %v1450_v19 = vld [vmem:[#allocation3 + $0x10] ss:$2 sm:$0xf]  ;;  %v1452_v33 = vld [vmem:[#allocation3 + $0x11] ss:$2 sm:$0xf] }
 0x163   : > { %v1454_v46 = vmax.f32 %v1450_v19, %v1452_v33  ;;  %v1449_v25 = vld [vmem:[#allocation3] ss:$2 sm:$0xff]  ;;  %v1451_v26 = vld [vmem:[#allocation3 + $0x1] ss:$2 sm:$0xff]  ;;  %1477 = vst [vmem:[#allocation3 + $0x10] sm:$0xff] %v1474_v21 }
 0x164   : > { %v1453_v52 = vmax.f32 %v1449_v25, %v1451_v26  ;;  %1475 = vst [vmem:[#allocation3] sm:$0xff] %v1472_v35  ;;  %1476 = vst [vmem:[#allocation3 + $0x8] sm:$0xff] %v1473_v24 }
 0x165   : > { %v1699_v27 = vpack.c.bf16 %v1454_v46, %v1454_v46 }
 0x166   : > { %v1698_v53 = vpack.c.bf16 %v1453_v52, %v1453_v52 }
 0x167   : > { %1669 = vst [vmem:[%s2081_s16 + $0x4c] sm:$0x3] %v1699_v27 }
 0x168   : > { %1668 = vst [vmem:[%s2081_s16 + $0x48] sm:$0xf] %v1698_v53 }
 0x16a   : > { %v1479_v34 = vld [vmem:[#allocation3 + $0x10] ss:$2 sm:$0xf]  ;;  %v1481_v1 = vld [vmem:[#allocation3 + $0x11] ss:$2 sm:$0xf] }
 0x16b   : > { %v1478_v62 = vld [vmem:[#allocation3] ss:$2 sm:$0xff]  ;;  %v1480_v9 = vld [vmem:[#allocation3 + $0x1] ss:$2 sm:$0xff]  ;;  %v1483_v38 = vmax.f32 %v1479_v34, %v1481_v1  ;;  %1506 = vst [vmem:[#allocation3 + $0x10] sm:$0xff] %v1503_v50 }
 0x16c   : > { %v1482_v40 = vmax.f32 %v1478_v62, %v1480_v9  ;;  %1505 = vst [vmem:[#allocation3 + $0x8] sm:$0xff] %v1502_v36  ;;  %1504 = vst [vmem:[#allocation3] sm:$0xff] %v1501_v37 }
 0x16d   : > { %v1701_v30 = vpack.c.bf16 %v1483_v38, %v1483_v38 }
 0x16e   : > { %v1700_v12 = vpack.c.bf16 %v1482_v40, %v1482_v40 }
 0x16f   : > { %1673 = vst [vmem:[%s2081_s16 + $0x54] sm:$0x3] %v1701_v30 }
 0x170   : > { %1672 = vst [vmem:[%s2081_s16 + $0x50] sm:$0xf] %v1700_v12 }
 0x172   : > { %v1508_v43 = vld [vmem:[#allocation3 + $0x10] ss:$2 sm:$0xf]  ;;  %v1510_v18 = vld [vmem:[#allocation3 + $0x11] ss:$2 sm:$0xf] }
 0x173   : > { %v1512_v44 = vmax.f32 %v1508_v43, %v1510_v18  ;;  %v1507_v47 = vld [vmem:[#allocation3] ss:$2 sm:$0xff]  ;;  %v1509_v49 = vld [vmem:[#allocation3 + $0x1] ss:$2 sm:$0xff] }
 0x174   : > { %v1511_v54 = vmax.f32 %v1507_v47, %v1509_v49 }
 0x175   : > { %v1703_v42 = vpack.c.bf16 %v1512_v44, %v1512_v44 }
 0x176   : > { %v1702_v57 = vpack.c.bf16 %v1511_v54, %v1511_v54 }
 0x177   : > { %1677 = vst [vmem:[%s2081_s16 + $0x5c] sm:$0x3] %v1703_v42 }
 0x178   : > { %1676 = vst [vmem:[%s2081_s16 + $0x58] sm:$0xf] %v1702_v57 }
 0x179 PF: > { %s14_s15 = sadd.s32 1, %s1912_s15  }
 0x17a   : > { %p11_p4 = scmp.ge.s32.totalorder %s14_s15, 4  }
 0x17c   :  { %13 = sbr.rel (!%p11_p4) target bundleno = 1 (0x1), region = 80 }

// kernel: dann_forward.7
= control target key start
LH: loop header
LB: loop body
LE: loop exit
PB: predicated region body
PF: predicated region fallthrough
CT: control target
= control target key end

     0   :  { %s5285_s1 = inlined_call_operand.vmem [shape: bf16[2048,128], index: 1, kind: input, shape index: {}]   ;;  %s5286_s0 = inlined_call_operand.vmem [shape: bf16[128,2048], index: 0, kind: input, shape index: {}]   ;;  %s5287_s4 = inlined_call_operand.vmem [shape: bf16[128,128], index: 4, kind: input, shape index: {}]   ;;  %s5288_s2 = inlined_call_operand.vmem [shape: f32[1,128], index: 2, kind: input, shape index: {}]   ;;  %s5289_s3 = inlined_call_operand.vmem [shape: f32[1,128], index: 3, kind: input, shape index: {}]   ;;  %s5290_s5 = inlined_call_operand.vmem [shape: f32[1,128], index: 5, kind: input, shape index: {}]   ;;  %s5291_s6 = inlined_call_operand.vmem [shape: f32[128,128], index: 6, kind: output, shape index: {}]  }
   0x1   :  { %v3853_v0 = vld [vmem:[%s5285_s1 + $0x78] sm:$0xff]   ;;  %v3857_v4 = vld [vmem:[%s5285_s1 + $0x70] sm:$0xff]   ;;  %v3861_v8 = vld [vmem:[%s5285_s1 + $0x68] sm:$0xff]  }
   0x2   :  { %v3854_v1 = vld [vmem:[%s5285_s1 + $0xf8] sm:$0xff]   ;;  %3277 = vmatprep.subr.bf16.mxu0 %v3853_v0  ;;  %v3858_v5 = vld [vmem:[%s5285_s1 + $0xf0] sm:$0xff]   ;;  %v3862_v9 = vld [vmem:[%s5285_s1 + $0xe8] sm:$0xff]  }
   0x3   :  { %v3855_v2 = vld [vmem:[%s5285_s1 + $0x38] sm:$0xff]   ;;  %3341 = vmatprep.subr.bf16.mxu1 %v3854_v1  ;;  %v3859_v6 = vld [vmem:[%s5285_s1 + $0x30] sm:$0xff]   ;;  %v3863_v10 = vld [vmem:[%s5285_s1 + $0x28] sm:$0xff]  }
   0x4   :  { %v3856_v3 = vld [vmem:[%s5285_s1 + $0xb8] sm:$0xff]   ;;  %3278 = vmatpush3.bf16.msra.mxu0 %v3855_v2  ;;  %v3860_v7 = vld [vmem:[%s5285_s1 + $0xb0] sm:$0xff]   ;;  %v3864_v11 = vld [vmem:[%s5285_s1 + $0xa8] sm:$0xff]  }
   0x5   :  { %3342 = vmatpush3.bf16.msra.mxu1 %v3856_v3  ;;  %3279 = vmatprep.subr.bf16.mxu0 %v3857_v4  ;;  %v3865_v12 = vld [vmem:[%s5285_s1 + $0x60] sm:$0xff]   ;;  %v3869_v16 = vld [vmem:[%s5285_s1 + $0x58] sm:$0xff]   ;;  %v3873_v20 = vld [vmem:[%s5285_s1 + $0x50] sm:$0xff]  }
   0x6   :  { %3343 = vmatprep.subr.bf16.mxu1 %v3858_v5  ;;  %v3866_v13 = vld [vmem:[%s5285_s1 + $0xe0] sm:$0xff]   ;;  %v3870_v17 = vld [vmem:[%s5285_s1 + $0xd8] sm:$0xff]   ;;  %v3874_v21 = vld [vmem:[%s5285_s1 + $0xd0] sm:$0xff]  }
   0x7   :  { %v3867_v14 = vld [vmem:[%s5285_s1 + $0x20] sm:$0xff]   ;;  %v3871_v18 = vld [vmem:[%s5285_s1 + $0x18] sm:$0xff]   ;;  %v3875_v22 = vld [vmem:[%s5285_s1 + $0x10] sm:$0xff]  }
   0x8   :  { %3280 = vmatpush3.bf16.msra.mxu0 %v3859_v6  ;;  %v3868_v15 = vld [vmem:[%s5285_s1 + $0xa0] sm:$0xff]   ;;  %v3872_v19 = vld [vmem:[%s5285_s1 + $0x98] sm:$0xff]   ;;  %v3876_v23 = vld [vmem:[%s5285_s1 + $0x90] sm:$0xff]  }
   0x9   :  { %3344 = vmatpush3.bf16.msra.mxu1 %v3860_v7  ;;  %3281 = vmatprep.subr.bf16.mxu0 %v3861_v8  ;;  %v3877_v24 = vld [vmem:[%s5285_s1 + $0x48] sm:$0xff]   ;;  %v3881_v28 = vld [vmem:[%s5285_s1 + $0x40] sm:$0xff]   ;;  %v3885_v40 = vld [vmem:[%s5285_s1 + $0x178] sm:$0xff]  }
   0xa   :  { %3345 = vmatprep.subr.bf16.mxu1 %v3862_v9  ;;  %v3878_v25 = vld [vmem:[%s5285_s1 + $0xc8] sm:$0xff]   ;;  %v3882_v29 = vld [vmem:[%s5285_s1 + $0xc0] sm:$0xff]   ;;  %v3886_v41 = vld [vmem:[%s5285_s1 + $0x138] sm:$0xff]  }
   0xb   :  { %v3879_v26 = vld [vmem:[%s5285_s1 + $0x8] sm:$0xff]   ;;  %v3883_v30 = vld [vmem:[%s5285_s1] sm:$0xff]   ;;  %v3887_v42 = vld [vmem:[%s5285_s1 + $0x1f8] sm:$0xff]  }
   0xc   :  { %3282 = vmatpush3.bf16.msra.mxu0 %v3863_v10  ;;  %v3880_v27 = vld [vmem:[%s5285_s1 + $0x88] sm:$0xff]   ;;  %v3884_v31 = vld [vmem:[%s5285_s1 + $0x80] sm:$0xff]   ;;  %v3888_v43 = vld [vmem:[%s5285_s1 + $0x1b8] sm:$0xff]  }
   0xd   :  { %3346 = vmatpush3.bf16.msra.mxu1 %v3864_v11  ;;  %3283 = vmatprep.subr.bf16.mxu0 %v3865_v12  ;;  %v24_v32 = vld [vmem:[%s5286_s0] sm:$0xff]  ;;  %v25_v34 = vld [vmem:[%s5286_s0 + $0x8] sm:$0xff]  ;;  %v3889_v50 = vld [vmem:[%s5285_s1 + $0x170] sm:$0xff]  }
   0xe   :  { %3347 = vmatprep.subr.bf16.mxu1 %v3866_v13  ;;  %v32_v33 = vld [vmem:[%s5286_s0 + $0x40] sm:$0xff]  ;;  %v33_v37 = vld [vmem:[%s5286_s0 + $0x48] sm:$0xff]  ;;  %v3890_v52 = vld [vmem:[%s5285_s1 + $0x130] sm:$0xff]  }
   0xf   :  { %v3010_v35 = vcombine.low %v24_v32, %v32_v33  ;;  %v3011_v36 = vcombine.high %v24_v32, %v32_v33  ;;  %v3012_v38 = vcombine.low %v25_v34, %v33_v37  ;;  %v3013_v39 = vcombine.high %v25_v34, %v33_v37  ;;  %v40_v44 = vld [vmem:[%s5286_s0 + $0x80] sm:$0xff]  ;;  %v41_v47 = vld [vmem:[%s5286_s0 + $0x88] sm:$0xff]  ;;  %v3891_v54 = vld [vmem:[%s5285_s1 + $0x1f0] sm:$0xff]  }
  0x10   :  { %3284 = vmatpush3.bf16.msra.mxu0 %v3867_v14  ;;  %v48_v45 = vld [vmem:[%s5286_s0 + $0xc0] sm:$0xff]  ;;  %v49_v48 = vld [vmem:[%s5286_s0 + $0xc8] sm:$0xff]  ;;  %v3892_v55 = vld [vmem:[%s5285_s1 + $0x1b0] sm:$0xff]  }
  0x11   :  { %3348 = vmatpush3.bf16.msra.mxu1 %v3868_v15  ;;  %3285 = vmatprep.subr.bf16.mxu0 %v3869_v16  ;;  %v3027_v46 = vcombine.high %v40_v44, %v48_v45  ;;  %v3029_v49 = vcombine.high %v41_v47, %v49_v48  ;;  %v3026_v51 = vcombine.low %v40_v44, %v48_v45  ;;  %v56_v56 = vld [vmem:[%s5286_s0 + $0x100] sm:$0xff]  ;;  %v57_v58 = vld [vmem:[%s5286_s0 + $0x108] sm:$0xff]  ;;  %v3907_v32 = vld [vmem:[%s5285_s1 + $0x1d0] sm:$0xff]  }
  0x12   :  { %3349 = vmatprep.subr.bf16.mxu1 %v3870_v17  ;;  %1848 = vmatprep.mubr.bf16.mxu0 %v3011_v36  ;;  %v3028_v53 = vcombine.low %v41_v47, %v49_v48  ;;  %v64_v57 = vld [vmem:[%s5286_s0 + $0x140] sm:$0xff]  ;;  %v65_v59 = vld [vmem:[%s5286_s0 + $0x148] sm:$0xff]  ;;  %v3908_v33 = vld [vmem:[%s5285_s1 + $0x190] sm:$0xff]  }
  0x13   :  { %1945 = vmatprep.mubr.bf16.mxu1 %v3013_v39  ;;  %v3043_v60 = vcombine.high %v56_v56, %v64_v57  ;;  %v3045_v61 = vcombine.high %v57_v58, %v65_v59  ;;  %v3893_v62 = vld [vmem:[%s5285_s1 + $0x168] sm:$0xff]   ;;  %v3042_v2 = vcombine.low %v56_v56, %v64_v57  ;;  %v72_v3 = vld [vmem:[%s5286_s0 + $0x180] sm:$0xff]  ;;  %v3044_v6 = vcombine.low %v57_v58, %v65_v59  ;;  %v3917_v56 = vld [vmem:[%s5285_s1 + $0x278] sm:$0xff]  }
  0x14   :  { %3286 = vmatpush3.bf16.msra.mxu0 %v3871_v18  ;;  %v3894_v63 = vld [vmem:[%s5285_s1 + $0x128] sm:$0xff]   ;;  %v80_v4 = vld [vmem:[%s5286_s0 + $0x1c0] sm:$0xff]  ;;  %v3901_v18 = vld [vmem:[%s5285_s1 + $0x158] sm:$0xff]  }
  0x15   :  { %3350 = vmatpush3.bf16.msra.mxu1 %v3872_v19  ;;  %3287 = vmatprep.subr.bf16.mxu0 %v3873_v20  ;;  %v3895_v0 = vld [vmem:[%s5285_s1 + $0x1e8] sm:$0xff]   ;;  %v3059_v7 = vcombine.high %v72_v3, %v80_v4  ;;  %v3897_v10 = vld [vmem:[%s5285_s1 + $0x160] sm:$0xff]   ;;  %v3058_v19 = vcombine.low %v72_v3, %v80_v4  ;;  %v3902_v20 = vld [vmem:[%s5285_s1 + $0x118] sm:$0xff]  }
  0x16   :  { %3351 = vmatprep.subr.bf16.mxu1 %v3874_v21  ;;  %v3896_v1 = vld [vmem:[%s5285_s1 + $0x1a8] sm:$0xff]   ;;  %v3898_v11 = vld [vmem:[%s5285_s1 + $0x120] sm:$0xff]   ;;  %v3919_v58 = vld [vmem:[%s5285_s1 + $0x2f8] sm:$0xff]  }
  0x17   :  { %v73_v5 = vld [vmem:[%s5286_s0 + $0x188] sm:$0xff]  ;;  %v3899_v12 = vld [vmem:[%s5285_s1 + $0x1e0] sm:$0xff]   ;;  %v35_v3 = vld [vmem:[%s5286_s0 + $0x58] sm:$0xff] }
  0x18   :  { %3288 = vmatpush3.bf16.msra.mxu0 %v3875_v22  ;;  %v81_v8 = vld [vmem:[%s5286_s0 + $0x1c8] sm:$0xff]  ;;  %v3900_v13 = vld [vmem:[%s5285_s1 + $0x1a0] sm:$0xff]  }
  0x19   :  { %3352 = vmatpush3.bf16.msra.mxu1 %v3876_v23  ;;  %3289 = vmatprep.subr.bf16.mxu0 %v3877_v24  ;;  %v3061_v9 = vcombine.high %v73_v5, %v81_v8  ;;  %v88_v14 = vld [vmem:[%s5286_s0 + $0x200] sm:$0xff]  ;;  %v89_v16 = vld [vmem:[%s5286_s0 + $0x208] sm:$0xff]  ;;  %v3060_v21 = vcombine.low %v73_v5, %v81_v8  ;;  %v3903_v23 = vld [vmem:[%s5285_s1 + $0x1d8] sm:$0xff]  }
  0x1a   :  { %3353 = vmatprep.subr.bf16.mxu1 %v3878_v25  ;;  %v96_v15 = vld [vmem:[%s5286_s0 + $0x240] sm:$0xff]  ;;  %v97_v17 = vld [vmem:[%s5286_s0 + $0x248] sm:$0xff]  ;;  %v3904_v25 = vld [vmem:[%s5285_s1 + $0x198] sm:$0xff]  }
  0x1b   :  { %v3075_v22 = vcombine.high %v88_v14, %v96_v15  ;;  %v3077_v24 = vcombine.high %v89_v16, %v97_v17  ;;  %v3074_v34 = vcombine.low %v88_v14, %v96_v15  ;;  %v3910_v39 = vld [vmem:[%s5285_s1 + $0x108] sm:$0xff]   ;;  %v3914_v48 = vld [vmem:[%s5285_s1 + $0x100] sm:$0xff]   ;;  %v42_v8 = vld [vmem:[%s5286_s0 + $0x90] sm:$0xff] }
  0x1c   :  { %3290 = vmatpush3.bf16.msra.mxu0 %v3879_v26  ;;  %v104_v26 = vld [vmem:[%s5286_s0 + $0x280] sm:$0xff]  ;;  %v121_v44 = vld [vmem:[%s5286_s0 + $0x308] sm:$0xff]  ;;  %v3920_v15 = vld [vmem:[%s5285_s1 + $0x2b8] sm:$0xff]  }
  0x1d   :  { %3354 = vmatpush3.bf16.msra.mxu1 %v3880_v27  ;;  %3291 = vmatprep.subr.bf16.mxu0 %v3881_v28  ;;  %v112_v27 = vld [vmem:[%s5286_s0 + $0x2c0] sm:$0xff]  ;;  %v3905_v28 = vld [vmem:[%s5285_s1 + $0x150] sm:$0xff]   ;;  %v129_v45 = vld [vmem:[%s5286_s0 + $0x348] sm:$0xff] }
  0x1e   :  { %3355 = vmatprep.subr.bf16.mxu1 %v3882_v29  ;;  %v105_v29 = vld [vmem:[%s5286_s0 + $0x288] sm:$0xff]  ;;  %v3091_v36 = vcombine.high %v104_v26, %v112_v27  ;;  %v3090_v47 = vcombine.low %v104_v26, %v112_v27 }
  0x1f   :  { %v137_v57 = vld [vmem:[%s5286_s0 + $0x388] sm:$0xff] }
  0x20   :  { %3292 = vmatpush3.bf16.msra.mxu0 %v3883_v30  ;;  %v113_v30 = vld [vmem:[%s5286_s0 + $0x2c8] sm:$0xff] }
  0x21   :  { %3356 = vmatpush3.bf16.msra.mxu1 %v3884_v31  ;;  %3405 = vmatprep.subr.bf16.mxu0 %v3885_v40  ;;  %v3906_v31 = vld [vmem:[%s5285_s1 + $0x110] sm:$0xff]   ;;  %v3093_v37 = vcombine.high %v105_v29, %v113_v30  ;;  %v3911_v40 = vld [vmem:[%s5285_s1 + $0x1c8] sm:$0xff]  }
  0x22   :  { %3469 = vmatprep.subr.bf16.mxu1 %v3887_v42  ;;  %v128_v42 = vld [vmem:[%s5286_s0 + $0x340] sm:$0xff]  ;;  %v145_v59 = vld [vmem:[%s5286_s0 + $0x3c8] sm:$0xff] }
  0x23   :  { %1849 = vmatmul.mubr.bf16.vlgmr.msra.gmra.mxu0 %v3010_v35  ;;  %v3076_v35 = vcombine.low %v89_v16, %v97_v17  ;;  %v3124_v5 = vcombine.low %v137_v57, %v145_v59  ;;  %v3921_v17 = vld [vmem:[%s5285_s1 + $0x270] sm:$0xff]   ;;  %v3925_v26 = vld [vmem:[%s5285_s1 + $0x268] sm:$0xff]  }
  0x24   :  { %1946 = vmatmul.mubr.bf16.vlgmr.msra.gmra.mxu1 %v3012_v38  ;;  %3406 = vmatpush3.bf16.msra.mxu0 %v3886_v41  ;;  %v3909_v38 = vld [vmem:[%s5285_s1 + $0x148] sm:$0xff]   ;;  %v120_v41 = vld [vmem:[%s5286_s0 + $0x300] sm:$0xff] }
  0x25   :  { %3470 = vmatpush3.bf16.msra.mxu1 %v3888_v43  ;;  %1856 = vmatprep.mubr.bf16.mxu0 %v3027_v46  ;;  %v3912_v43 = vld [vmem:[%s5285_s1 + $0x188] sm:$0xff]   ;;  %v3913_v46 = vld [vmem:[%s5285_s1 + $0x140] sm:$0xff]  }
  0x26   :  { %1953 = vmatprep.mubr.bf16.mxu1 %v3029_v49  ;;  %3407 = vmatprep.subr.bf16.mxu0 %v3889_v50  ;;  %v3092_v49 = vcombine.low %v105_v29, %v113_v30  ;;  %v3107_v50 = vcombine.high %v120_v41, %v128_v42  ;;  %v3927_v27 = vld [vmem:[%s5285_s1 + $0x2e8] sm:$0xff]  }
  0x27   :  { %3471 = vmatprep.subr.bf16.mxu1 %v3891_v54  ;;  %v136_v54 = vld [vmem:[%s5286_s0 + $0x380] sm:$0xff] }
  0x28   :  { %3408 = vmatpush3.bf16.msra.mxu0 %v3890_v52  ;;  %v3109_v52 = vcombine.high %v121_v44, %v129_v45 }
  0x29   :  { %3472 = vmatpush3.bf16.msra.mxu1 %v3892_v55  ;;  %3409 = vmatprep.subr.bf16.mxu0 %v3893_v62  ;;  %v144_v55 = vld [vmem:[%s5286_s0 + $0x3c0] sm:$0xff] }
  0x2a   :  { %3473 = vmatprep.subr.bf16.mxu1 %v3895_v0  ;;  %v3123_v62 = vcombine.high %v136_v54, %v144_v55  ;;  %v26_v0 = vld [vmem:[%s5286_s0 + $0x10] sm:$0xff]  ;;  %v3122_v4 = vcombine.low %v136_v54, %v144_v55  ;;  %v91_v54 = vld [vmem:[%s5286_s0 + $0x218] sm:$0xff] }
  0x2b   :  { %1857 = vmatmul.mubr.bf16.gmra.mxu0 %v3026_v51  ;;  %v3915_v51 = vld [vmem:[%s5285_s1 + $0x1c0] sm:$0xff]   ;;  %v99_v55 = vld [vmem:[%s5286_s0 + $0x258] sm:$0xff] }
  0x2c   :  { %1954 = vmatmul.mubr.bf16.gmra.mxu1 %v3028_v53  ;;  %1864 = vmatprep.mubr.bf16.mxu0 %v3043_v60  ;;  %v3916_v53 = vld [vmem:[%s5285_s1 + $0x180] sm:$0xff]   ;;  %v3106_v60 = vcombine.low %v120_v41, %v128_v42  ;;  %v3933_v42 = vld [vmem:[%s5285_s1 + $0x258] sm:$0xff]  }
  0x2d   :  { %1961 = vmatprep.mubr.bf16.mxu1 %v3045_v61  ;;  %3410 = vmatpush3.bf16.msra.mxu0 %v3894_v63  ;;  %v3108_v61 = vcombine.low %v121_v44, %v129_v45  ;;  %v3125_v63 = vcombine.high %v137_v57, %v145_v59  ;;  %v3932_v41 = vld [vmem:[%s5285_s1 + $0x2a0] sm:$0xff]   ;;  %v3935_v44 = vld [vmem:[%s5285_s1 + $0x2d8] sm:$0xff]   ;;  %v3940_v57 = vld [vmem:[%s5285_s1 + $0x290] sm:$0xff]  }
  0x2e   :  { %3474 = vmatpush3.bf16.msra.mxu1 %v3896_v1  ;;  %3411 = vmatprep.subr.bf16.mxu0 %v3897_v10  ;;  %v34_v1 = vld [vmem:[%s5286_s0 + $0x50] sm:$0xff] }
  0x2f   :  { %3475 = vmatprep.subr.bf16.mxu1 %v3899_v12  ;;  %v3014_v10 = vcombine.low %v26_v0, %v34_v1  ;;  %v43_v12 = vld [vmem:[%s5286_s0 + $0x98] sm:$0xff] }
  0x31   :  { %3412 = vmatpush3.bf16.msra.mxu0 %v3898_v11  ;;  %v3918_v11 = vld [vmem:[%s5285_s1 + $0x238] sm:$0xff]  }
  0x32   :  { %3476 = vmatpush3.bf16.msra.mxu1 %v3900_v13  ;;  %3413 = vmatprep.subr.bf16.mxu0 %v3901_v18  ;;  %v51_v13 = vld [vmem:[%s5286_s0 + $0xd8] sm:$0xff] }
  0x33   :  { %1865 = vmatmul.mubr.bf16.gmra.mxu0 %v3042_v2  ;;  %3477 = vmatprep.subr.bf16.mxu1 %v3903_v23  ;;  %v27_v2 = vld [vmem:[%s5286_s0 + $0x18] sm:$0xff]  ;;  %v3033_v18 = vcombine.high %v43_v12, %v51_v13  ;;  %v66_v23 = vld [vmem:[%s5286_s0 + $0x150] sm:$0xff]  ;;  %v3032_v29 = vcombine.low %v43_v12, %v51_v13  ;;  %v3080_v13 = vcombine.low %v91_v54, %v99_v55 }
  0x34   :  { %1962 = vmatmul.mubr.bf16.gmra.mxu1 %v3044_v6  ;;  %1872 = vmatprep.mubr.bf16.mxu0 %v3059_v7  ;;  %v3015_v6 = vcombine.high %v26_v0, %v34_v1  ;;  %v3017_v7 = vcombine.high %v27_v2, %v35_v3  ;;  %v3016_v14 = vcombine.low %v27_v2, %v35_v3  ;;  %v3942_v0 = vld [vmem:[%s5285_s1 + $0x208] sm:$0xff]   ;;  %v3945_v2 = vld [vmem:[%s5285_s1 + $0x240] sm:$0xff]   ;;  %v106_v3 = vld [vmem:[%s5286_s0 + $0x290] sm:$0xff] }
  0x35   :  { %1969 = vmatprep.mubr.bf16.mxu1 %v3061_v9  ;;  %3414 = vmatpush3.bf16.msra.mxu0 %v3902_v20  ;;  %v50_v9 = vld [vmem:[%s5286_s0 + $0xd0] sm:$0xff]  ;;  %v3944_v1 = vld [vmem:[%s5285_s1 + $0x288] sm:$0xff]   ;;  %v3951_v12 = vld [vmem:[%s5285_s1 + $0x3f8] sm:$0xff]  }
  0x36   :  { %3478 = vmatpush3.bf16.msra.mxu1 %v3904_v25  ;;  %3415 = vmatprep.subr.bf16.mxu0 %v3905_v28  ;;  %v3031_v16 = vcombine.high %v42_v8, %v50_v9  ;;  %v3923_v20 = vld [vmem:[%s5285_s1 + $0x2f0] sm:$0xff]   ;;  %v67_v25 = vld [vmem:[%s5286_s0 + $0x158] sm:$0xff]  ;;  %v3030_v28 = vcombine.low %v42_v8, %v50_v9  ;;  %v3946_v8 = vld [vmem:[%s5285_s1 + $0x200] sm:$0xff]  }
  0x37   :  { %3479 = vmatprep.subr.bf16.mxu1 %v3907_v32  ;;  %v3926_v32 = vld [vmem:[%s5285_s1 + $0x228] sm:$0xff]   ;;  %v3948_v9 = vld [vmem:[%s5285_s1 + $0x280] sm:$0xff]  }
  0x39   :  { %3416 = vmatpush3.bf16.msra.mxu0 %v3906_v31 }
  0x3a   :  { %3480 = vmatpush3.bf16.msra.mxu1 %v3908_v33  ;;  %3417 = vmatprep.subr.bf16.mxu0 %v3909_v38  ;;  %v3928_v33 = vld [vmem:[%s5285_s1 + $0x2a8] sm:$0xff]   ;;  %v75_v38 = vld [vmem:[%s5286_s0 + $0x198] sm:$0xff] }
  0x3b   :  { %1873 = vmatmul.mubr.bf16.gmra.mxu0 %v3058_v19  ;;  %3481 = vmatprep.subr.bf16.mxu1 %v3911_v40  ;;  %v3922_v19 = vld [vmem:[%s5285_s1 + $0x230] sm:$0xff]   ;;  %v3930_v40 = vld [vmem:[%s5285_s1 + $0x220] sm:$0xff]  }
  0x3c   :  { %1970 = vmatmul.mubr.bf16.gmra.mxu1 %v3060_v21  ;;  %1880 = vmatprep.mubr.bf16.mxu0 %v3075_v22  ;;  %v3924_v21 = vld [vmem:[%s5285_s1 + $0x2b0] sm:$0xff]  }
  0x3d   :  { %1977 = vmatprep.mubr.bf16.mxu1 %v3077_v24  ;;  %3418 = vmatpush3.bf16.msra.mxu0 %v3910_v39  ;;  %v58_v22 = vld [vmem:[%s5286_s0 + $0x110] sm:$0xff]  ;;  %v59_v24 = vld [vmem:[%s5286_s0 + $0x118] sm:$0xff] }
  0x3e   :  { %3482 = vmatpush3.bf16.msra.mxu1 %v3912_v43  ;;  %3419 = vmatprep.subr.bf16.mxu0 %v3913_v46  ;;  %v3047_v30 = vcombine.high %v58_v22, %v66_v23  ;;  %v3049_v31 = vcombine.high %v59_v24, %v67_v25  ;;  %v83_v39 = vld [vmem:[%s5286_s0 + $0x1d8] sm:$0xff]  ;;  %v3046_v43 = vcombine.low %v58_v22, %v66_v23 }
  0x3f   :  { %3483 = vmatprep.subr.bf16.mxu1 %v3915_v51  ;;  %v3048_v45 = vcombine.low %v59_v24, %v67_v25  ;;  %v90_v51 = vld [vmem:[%s5286_s0 + $0x210] sm:$0xff] }
  0x40   :  { %v138_v24 = vld [vmem:[%s5286_s0 + $0x390] sm:$0xff] }
  0x41   :  { %3420 = vmatpush3.bf16.msra.mxu0 %v3914_v48  ;;  %v3065_v48 = vcombine.high %v75_v38, %v83_v39  ;;  %v146_v25 = vld [vmem:[%s5286_s0 + $0x3d0] sm:$0xff] }
  0x42   :  { %3484 = vmatpush3.bf16.msra.mxu1 %v3916_v53  ;;  %3533 = vmatprep.subr.bf16.mxu0 %v3917_v56  ;;  %v98_v53 = vld [vmem:[%s5286_s0 + $0x250] sm:$0xff] }
  0x43   :  { %1881 = vmatmul.mubr.bf16.gmra.mxu0 %v3074_v34  ;;  %3597 = vmatprep.subr.bf16.mxu1 %v3919_v58  ;;  %v3929_v34 = vld [vmem:[%s5285_s1 + $0x260] sm:$0xff]   ;;  %v3938_v56 = vld [vmem:[%s5285_s1 + $0x210] sm:$0xff]   ;;  %v3941_v58 = vld [vmem:[%s5285_s1 + $0x248] sm:$0xff]  }
  0x44   :  { %1978 = vmatmul.mubr.bf16.gmra.mxu1 %v3076_v35  ;;  %1888 = vmatprep.mubr.bf16.mxu0 %v3091_v36  ;;  %v74_v35 = vld [vmem:[%s5286_s0 + $0x190] sm:$0xff] }
  0x45   :  { %1985 = vmatprep.mubr.bf16.mxu1 %v3093_v37  ;;  %v82_v36 = vld [vmem:[%s5286_s0 + $0x1d0] sm:$0xff]  ;;  %v3931_v37 = vld [vmem:[%s5285_s1 + $0x2e0] sm:$0xff]  }
  0x46   :  { %v3063_v46 = vcombine.high %v74_v35, %v82_v36  ;;  %v3062_v59 = vcombine.low %v74_v35, %v82_v36  ;;  %v37_v35 = vld [vmem:[%s5286_s0 + $0x68] sm:$0xff]  ;;  %v3126_v36 = vcombine.low %v138_v24, %v146_v25 }
  0x4b   :  { %1889 = vmatmul.mubr.bf16.gmra.mxu0 %v3090_v47  ;;  %v3934_v47 = vld [vmem:[%s5285_s1 + $0x218] sm:$0xff]  }
  0x4c   :  { %1986 = vmatmul.mubr.bf16.gmra.mxu1 %v3092_v49  ;;  %1896 = vmatprep.mubr.bf16.mxu0 %v3107_v50  ;;  %v3936_v49 = vld [vmem:[%s5285_s1 + $0x298] sm:$0xff]   ;;  %v3937_v50 = vld [vmem:[%s5285_s1 + $0x250] sm:$0xff]  }
  0x4d   :  { %1993 = vmatprep.mubr.bf16.mxu1 %v3109_v52  ;;  %v3939_v52 = vld [vmem:[%s5285_s1 + $0x2d0] sm:$0xff]  }
  0x53   :  { %1897 = vmatmul.mubr.bf16.gmra.mxu0 %v3106_v60  ;;  %v3943_v60 = vld [vmem:[%s5285_s1 + $0x2c8] sm:$0xff]  }
  0x54   :  { %1994 = vmatmul.mubr.bf16.gmra.mxu1 %v3108_v61  ;;  %1904 = vmatprep.mubr.bf16.mxu0 %v3123_v62  ;;  %v3064_v61 = vcombine.low %v75_v38, %v83_v39  ;;  %v3079_v62 = vcombine.high %v90_v51, %v98_v53 }
  0x55   :  { %2001 = vmatprep.mubr.bf16.mxu1 %v3125_v63  ;;  %v3081_v63 = vcombine.high %v91_v54, %v99_v55  ;;  %v60_v54 = vld [vmem:[%s5286_s0 + $0x120] sm:$0xff] }
  0x56   :  { %v68_v55 = vld [vmem:[%s5286_s0 + $0x160] sm:$0xff] }
  0x5b   :  { %1905 = vmatmul.mubr.bf16.gmra.mxu0 %v3122_v4  ;;  %v114_v4 = vld [vmem:[%s5286_s0 + $0x2d0] sm:$0xff] }
  0x5c   :  { %2002 = vmatmul.mubr.bf16.gmra.mxu1 %v3124_v5  ;;  %2042 = vmatprep.mubr.bf16.mxu0 %v3015_v6  ;;  %v3947_v5 = vld [vmem:[%s5285_s1 + $0x2c0] sm:$0xff]   ;;  %v107_v6 = vld [vmem:[%s5286_s0 + $0x298] sm:$0xff] }
  0x5d   :  { %2139 = vmatprep.mubr.bf16.mxu1 %v3017_v7  ;;  %v115_v7 = vld [vmem:[%s5286_s0 + $0x2d8] sm:$0xff] }
  0x63   :  { %2043 = vmatmul.mubr.bf16.vlgmr.msra.gmra.mxu0 %v3014_v10  ;;  %v3949_v10 = vld [vmem:[%s5285_s1 + $0x378] sm:$0xff]  }
  0x64   :  { %2140 = vmatmul.mubr.bf16.vlgmr.msra.gmra.mxu1 %v3016_v14  ;;  %3534 = vmatpush3.bf16.msra.mxu0 %v3918_v11  ;;  %v3078_v11 = vcombine.low %v90_v51, %v98_v53  ;;  %v3095_v14 = vcombine.high %v106_v3, %v114_v4  ;;  %v3955_v51 = vld [vmem:[%s5285_s1 + $0x3f0] sm:$0xff]  }
  0x65   :  { %3598 = vmatpush3.bf16.msra.mxu1 %v3920_v15  ;;  %2050 = vmatprep.mubr.bf16.mxu0 %v3031_v16  ;;  %v3097_v15 = vcombine.high %v107_v6, %v115_v7  ;;  %v122_v16 = vld [vmem:[%s5286_s0 + $0x310] sm:$0xff] }
  0x66   :  { %2147 = vmatprep.mubr.bf16.mxu1 %v3033_v18  ;;  %3535 = vmatprep.subr.bf16.mxu0 %v3921_v17  ;;  %v130_v17 = vld [vmem:[%s5286_s0 + $0x350] sm:$0xff]  ;;  %v123_v18 = vld [vmem:[%s5286_s0 + $0x318] sm:$0xff] }
  0x67   :  { %3599 = vmatprep.subr.bf16.mxu1 %v3923_v20  ;;  %v3094_v20 = vcombine.low %v106_v3, %v114_v4  ;;  %v3111_v22 = vcombine.high %v122_v16, %v130_v17  ;;  %v3956_v53 = vld [vmem:[%s5285_s1 + $0x3b0] sm:$0xff]   ;;  %v3963_v3 = vld [vmem:[%s5285_s1 + $0x3e0] sm:$0xff]  }
  0x68   :  { %3536 = vmatpush3.bf16.msra.mxu0 %v3922_v19  ;;  %v131_v19 = vld [vmem:[%s5286_s0 + $0x358] sm:$0xff]  ;;  %v76_v4 = vld [vmem:[%s5286_s0 + $0x1a0] sm:$0xff] }
  0x69   :  { %3600 = vmatpush3.bf16.msra.mxu1 %v3924_v21  ;;  %3537 = vmatprep.subr.bf16.mxu0 %v3925_v26  ;;  %v3096_v21 = vcombine.low %v107_v6, %v115_v7  ;;  %v3113_v23 = vcombine.high %v123_v18, %v131_v19  ;;  %v139_v26 = vld [vmem:[%s5286_s0 + $0x398] sm:$0xff]  ;;  %v77_v6 = vld [vmem:[%s5286_s0 + $0x1a8] sm:$0xff]  ;;  %v3962_v7 = vld [vmem:[%s5285_s1 + $0x320] sm:$0xff]  }
  0x6a   :  { %3601 = vmatprep.subr.bf16.mxu1 %v3927_v27  ;;  %v147_v27 = vld [vmem:[%s5286_s0 + $0x3d8] sm:$0xff] }
  0x6b   :  { %2051 = vmatmul.mubr.bf16.gmra.mxu0 %v3030_v28  ;;  %v3110_v28 = vcombine.low %v122_v16, %v130_v17  ;;  %v3966_v16 = vld [vmem:[%s5285_s1 + $0x318] sm:$0xff]  }
  0x6c   :  { %2148 = vmatmul.mubr.bf16.gmra.mxu1 %v3032_v29  ;;  %2058 = vmatprep.mubr.bf16.mxu0 %v3047_v30  ;;  %v3112_v29 = vcombine.low %v123_v18, %v131_v19  ;;  %v3127_v30 = vcombine.high %v138_v24, %v146_v25  ;;  %v3968_v17 = vld [vmem:[%s5285_s1 + $0x398] sm:$0xff]   ;;  %v3969_v18 = vld [vmem:[%s5285_s1 + $0x350] sm:$0xff]   ;;  %v101_v24 = vld [vmem:[%s5286_s0 + $0x268] sm:$0xff] }
  0x6d   :  { %2155 = vmatprep.mubr.bf16.mxu1 %v3049_v31  ;;  %3538 = vmatpush3.bf16.msra.mxu0 %v3926_v32  ;;  %v3129_v31 = vcombine.high %v139_v26, %v147_v27  ;;  %v28_v32 = vld [vmem:[%s5286_s0 + $0x20] sm:$0xff]  ;;  %v3971_v19 = vld [vmem:[%s5285_s1 + $0x3d0] sm:$0xff]  }
  0x6e   :  { %3602 = vmatpush3.bf16.msra.mxu1 %v3928_v33  ;;  %3539 = vmatprep.subr.bf16.mxu0 %v3929_v34  ;;  %v36_v33 = vld [vmem:[%s5286_s0 + $0x60] sm:$0xff]  ;;  %v29_v34 = vld [vmem:[%s5286_s0 + $0x28] sm:$0xff]  ;;  %v3972_v25 = vld [vmem:[%s5285_s1 + $0x390] sm:$0xff]  }
  0x6f   :  { %3603 = vmatprep.subr.bf16.mxu1 %v3931_v37  ;;  %v3128_v37 = vcombine.low %v139_v26, %v147_v27  ;;  %v3019_v38 = vcombine.high %v28_v32, %v36_v33  ;;  %v3021_v39 = vcombine.high %v29_v34, %v37_v35  ;;  %v3973_v26 = vld [vmem:[%s5285_s1 + $0x348] sm:$0xff]  }
  0x71   :  { %3540 = vmatpush3.bf16.msra.mxu0 %v3930_v40  ;;  %v44_v40 = vld [vmem:[%s5286_s0 + $0xa0] sm:$0xff] }
  0x72   :  { %3604 = vmatpush3.bf16.msra.mxu1 %v3932_v41  ;;  %3541 = vmatprep.subr.bf16.mxu0 %v3933_v42  ;;  %v52_v41 = vld [vmem:[%s5286_s0 + $0xe0] sm:$0xff]  ;;  %v3018_v42 = vcombine.low %v28_v32, %v36_v33  ;;  %v3974_v32 = vld [vmem:[%s5285_s1 + $0x308] sm:$0xff]  }
  0x73   :  { %2059 = vmatmul.mubr.bf16.gmra.mxu0 %v3046_v43  ;;  %3605 = vmatprep.subr.bf16.mxu1 %v3935_v44  ;;  %v45_v43 = vld [vmem:[%s5286_s0 + $0xa8] sm:$0xff] }
  0x74   :  { %2156 = vmatmul.mubr.bf16.gmra.mxu1 %v3048_v45  ;;  %2066 = vmatprep.mubr.bf16.mxu0 %v3063_v46  ;;  %v53_v44 = vld [vmem:[%s5286_s0 + $0xe8] sm:$0xff]  ;;  %v3020_v45 = vcombine.low %v29_v34, %v37_v35  ;;  %v3950_v46 = vld [vmem:[%s5285_s1 + $0x338] sm:$0xff]   ;;  %v3977_v34 = vld [vmem:[%s5285_s1 + $0x340] sm:$0xff]  }
  0x75   :  { %2163 = vmatprep.mubr.bf16.mxu1 %v3065_v48  ;;  %3542 = vmatpush3.bf16.msra.mxu0 %v3934_v47  ;;  %v3952_v47 = vld [vmem:[%s5285_s1 + $0x3b8] sm:$0xff]   ;;  %v3035_v48 = vcombine.high %v44_v40, %v52_v41  ;;  %v3976_v33 = vld [vmem:[%s5285_s1 + $0x388] sm:$0xff]   ;;  %v3979_v35 = vld [vmem:[%s5285_s1 + $0x3c0] sm:$0xff]  }
  0x76   :  { %3606 = vmatpush3.bf16.msra.mxu1 %v3936_v49  ;;  %3543 = vmatprep.subr.bf16.mxu0 %v3937_v50  ;;  %v3037_v49 = vcombine.high %v45_v43, %v53_v44  ;;  %v3953_v50 = vld [vmem:[%s5285_s1 + $0x370] sm:$0xff]  }
  0x77   :  { %3607 = vmatprep.subr.bf16.mxu1 %v3939_v52  ;;  %v3954_v52 = vld [vmem:[%s5285_s1 + $0x330] sm:$0xff]  }
  0x79   :  { %3544 = vmatpush3.bf16.msra.mxu0 %v3938_v56  ;;  %v3957_v56 = vld [vmem:[%s5285_s1 + $0x368] sm:$0xff]  }
  0x7a   :  { %3608 = vmatpush3.bf16.msra.mxu1 %v3940_v57  ;;  %3545 = vmatprep.subr.bf16.mxu0 %v3941_v58  ;;  %v61_v57 = vld [vmem:[%s5286_s0 + $0x128] sm:$0xff] }
  0x7b   :  { %2067 = vmatmul.mubr.bf16.gmra.mxu0 %v3062_v59  ;;  %3609 = vmatprep.subr.bf16.mxu1 %v3943_v60  ;;  %v69_v58 = vld [vmem:[%s5286_s0 + $0x168] sm:$0xff]  ;;  %v3034_v60 = vcombine.low %v44_v40, %v52_v41  ;;  %v3980_v41 = vld [vmem:[%s5285_s1 + $0x380] sm:$0xff]  }
  0x7c   :  { %2164 = vmatmul.mubr.bf16.gmra.mxu1 %v3064_v61  ;;  %2074 = vmatprep.mubr.bf16.mxu0 %v3079_v62  ;;  %v3959_v59 = vld [vmem:[%s5285_s1 + $0x3e8] sm:$0xff]   ;;  %v3036_v61 = vcombine.low %v45_v43, %v53_v44  ;;  %v3051_v62 = vcombine.high %v60_v54, %v68_v55 }
  0x7d   :  { %2171 = vmatprep.mubr.bf16.mxu1 %v3081_v63  ;;  %3546 = vmatpush3.bf16.msra.mxu0 %v3942_v0  ;;  %v3053_v63 = vcombine.high %v61_v57, %v69_v58  ;;  %v3958_v0 = vld [vmem:[%s5285_s1 + $0x328] sm:$0xff]  }
  0x7e   :  { %3610 = vmatpush3.bf16.msra.mxu1 %v3944_v1  ;;  %3547 = vmatprep.subr.bf16.mxu0 %v3945_v2  ;;  %v3960_v1 = vld [vmem:[%s5285_s1 + $0x3a8] sm:$0xff]   ;;  %v3961_v2 = vld [vmem:[%s5285_s1 + $0x360] sm:$0xff]  }
  0x7f   :  { %3611 = vmatprep.subr.bf16.mxu1 %v3947_v5  ;;  %v84_v5 = vld [vmem:[%s5286_s0 + $0x1e0] sm:$0xff]  ;;  %v117_v40 = vld [vmem:[%s5286_s0 + $0x2e8] sm:$0xff] }
  0x80   :  { %v3066_v27 = vcombine.low %v76_v4, %v84_v5 }
  0x81   :  { %3548 = vmatpush3.bf16.msra.mxu0 %v3946_v8  ;;  %v85_v8 = vld [vmem:[%s5286_s0 + $0x1e8] sm:$0xff] }
  0x82   :  { %3612 = vmatpush3.bf16.msra.mxu1 %v3948_v9  ;;  %3661 = vmatprep.subr.bf16.mxu0 %v3949_v10  ;;  %v3964_v9 = vld [vmem:[%s5285_s1 + $0x3a0] sm:$0xff]   ;;  %v3965_v10 = vld [vmem:[%s5285_s1 + $0x358] sm:$0xff]  }
  0x83   :  { %2075 = vmatmul.mubr.bf16.gmra.mxu0 %v3078_v11  ;;  %3725 = vmatprep.subr.bf16.mxu1 %v3951_v12  ;;  %v3050_v11 = vcombine.low %v60_v54, %v68_v55  ;;  %v3967_v12 = vld [vmem:[%s5285_s1 + $0x3d8] sm:$0xff]   ;;  %v140_v54 = vld [vmem:[%s5286_s0 + $0x3a0] sm:$0xff] }
  0x84   :  { %2172 = vmatmul.mubr.bf16.gmra.mxu1 %v3080_v13  ;;  %2082 = vmatprep.mubr.bf16.mxu0 %v3095_v14  ;;  %v3052_v13 = vcombine.low %v61_v57, %v69_v58  ;;  %v3067_v14 = vcombine.high %v76_v4, %v84_v5  ;;  %v148_v55 = vld [vmem:[%s5286_s0 + $0x3e0] sm:$0xff]  ;;  %v149_v57 = vld [vmem:[%s5286_s0 + $0x3e8] sm:$0xff] }
  0x85   :  { %2179 = vmatprep.mubr.bf16.mxu1 %v3097_v15  ;;  %v3069_v15 = vcombine.high %v77_v6, %v85_v8 }
  0x8b   :  { %2083 = vmatmul.mubr.bf16.gmra.mxu0 %v3094_v20  ;;  %v92_v20 = vld [vmem:[%s5286_s0 + $0x220] sm:$0xff] }
  0x8c   :  { %2180 = vmatmul.mubr.bf16.gmra.mxu1 %v3096_v21  ;;  %2090 = vmatprep.mubr.bf16.mxu0 %v3111_v22  ;;  %v100_v21 = vld [vmem:[%s5286_s0 + $0x260] sm:$0xff]  ;;  %v93_v22 = vld [vmem:[%s5286_s0 + $0x228] sm:$0xff] }
  0x8d   :  { %2187 = vmatprep.mubr.bf16.mxu1 %v3113_v23  ;;  %v3970_v23 = vld [vmem:[%s5285_s1 + $0x310] sm:$0xff]   ;;  %v3084_v43 = vcombine.low %v93_v22, %v101_v24 }
  0x93   :  { %2091 = vmatmul.mubr.bf16.gmra.mxu0 %v3110_v28  ;;  %v3975_v28 = vld [vmem:[%s5285_s1 + $0x3c8] sm:$0xff]  }
  0x94   :  { %2188 = vmatmul.mubr.bf16.gmra.mxu1 %v3112_v29  ;;  %2098 = vmatprep.mubr.bf16.mxu0 %v3127_v30  ;;  %v3068_v29 = vcombine.low %v77_v6, %v85_v8  ;;  %v3083_v30 = vcombine.high %v92_v20, %v100_v21  ;;  %v46_v6 = vld [vmem:[%s5286_s0 + $0xb0] sm:$0xff]  ;;  %v47_v8 = vld [vmem:[%s5286_s0 + $0xb8] sm:$0xff] }
  0x95   :  { %2195 = vmatprep.mubr.bf16.mxu1 %v3129_v31  ;;  %v3085_v31 = vcombine.high %v93_v22, %v101_v24  ;;  %v71_v22 = vld [vmem:[%s5286_s0 + $0x178] sm:$0xff] }
  0x9b   :  { %2099 = vmatmul.mubr.bf16.gmra.mxu0 %v3126_v36  ;;  %v108_v36 = vld [vmem:[%s5286_s0 + $0x2a0] sm:$0xff] }
  0x9c   :  { %2196 = vmatmul.mubr.bf16.gmra.mxu1 %v3128_v37  ;;  %2236 = vmatprep.mubr.bf16.mxu0 %v3019_v38  ;;  %v116_v37 = vld [vmem:[%s5286_s0 + $0x2e0] sm:$0xff] }
  0x9d   :  { %2333 = vmatprep.mubr.bf16.mxu1 %v3021_v39  ;;  %v3978_v38 = vld [vmem:[%s5285_s1 + $0x300] sm:$0xff]   ;;  %v109_v39 = vld [vmem:[%s5286_s0 + $0x2a8] sm:$0xff]  ;;  %v3099_v44 = vcombine.high %v108_v36, %v116_v37 }
  0xa3   :  { %2237 = vmatmul.mubr.bf16.vlgmr.msra.gmra.mxu0 %v3018_v42  ;;  %v3082_v42 = vcombine.low %v92_v20, %v100_v21  ;;  %v63_v21 = vld [vmem:[%s5286_s0 + $0x138] sm:$0xff] }
  0xa4   :  { %2334 = vmatmul.mubr.bf16.vlgmr.msra.gmra.mxu1 %v3020_v45  ;;  %3662 = vmatpush3.bf16.msra.mxu0 %v3950_v46  ;;  %v3101_v45 = vcombine.high %v109_v39, %v117_v40  ;;  %v124_v46 = vld [vmem:[%s5286_s0 + $0x320] sm:$0xff] }
  0xa5   :  { %3726 = vmatpush3.bf16.msra.mxu1 %v3952_v47  ;;  %2244 = vmatprep.mubr.bf16.mxu0 %v3035_v48  ;;  %v132_v47 = vld [vmem:[%s5286_s0 + $0x360] sm:$0xff]  ;;  %v125_v48 = vld [vmem:[%s5286_s0 + $0x328] sm:$0xff] }
  0xa6   :  { %2341 = vmatprep.mubr.bf16.mxu1 %v3037_v49  ;;  %3663 = vmatprep.subr.bf16.mxu0 %v3953_v50  ;;  %v133_v49 = vld [vmem:[%s5286_s0 + $0x368] sm:$0xff]  ;;  %v3098_v50 = vcombine.low %v108_v36, %v116_v37  ;;  %v3114_v58 = vcombine.low %v124_v46, %v132_v47 }
  0xa7   :  { %3727 = vmatprep.subr.bf16.mxu1 %v3955_v51  ;;  %v3100_v51 = vcombine.low %v109_v39, %v117_v40  ;;  %v78_v39 = vld [vmem:[%s5286_s0 + $0x1b0] sm:$0xff] }
  0xa8   :  { %3664 = vmatpush3.bf16.msra.mxu0 %v3954_v52  ;;  %v3115_v52 = vcombine.high %v124_v46, %v132_v47  ;;  %v86_v40 = vld [vmem:[%s5286_s0 + $0x1f0] sm:$0xff] }
  0xa9   :  { %3728 = vmatpush3.bf16.msra.mxu1 %v3956_v53  ;;  %3665 = vmatprep.subr.bf16.mxu0 %v3957_v56  ;;  %v3117_v53 = vcombine.high %v125_v48, %v133_v49  ;;  %v141_v56 = vld [vmem:[%s5286_s0 + $0x3a8] sm:$0xff] }
  0xaa   :  { %3729 = vmatprep.subr.bf16.mxu1 %v3959_v59  ;;  %v3116_v59 = vcombine.low %v125_v48, %v133_v49  ;;  %v3056_v49 = vcombine.low %v63_v21, %v71_v22 }
  0xab   :  { %2245 = vmatmul.mubr.bf16.gmra.mxu0 %v3034_v60  ;;  %v3131_v60 = vcombine.high %v140_v54, %v148_v55 }
  0xac   :  { %2342 = vmatmul.mubr.bf16.gmra.mxu1 %v3036_v61  ;;  %2252 = vmatprep.mubr.bf16.mxu0 %v3051_v62  ;;  %v3133_v61 = vcombine.high %v141_v56, %v149_v57  ;;  %v30_v62 = vld [vmem:[%s5286_s0 + $0x30] sm:$0xff] }
  0xad   :  { %2349 = vmatprep.mubr.bf16.mxu1 %v3053_v63  ;;  %3666 = vmatpush3.bf16.msra.mxu0 %v3958_v0  ;;  %v38_v63 = vld [vmem:[%s5286_s0 + $0x70] sm:$0xff]  ;;  %v31_v0 = vld [vmem:[%s5286_s0 + $0x38] sm:$0xff] }
  0xae   :  { %3730 = vmatpush3.bf16.msra.mxu1 %v3960_v1  ;;  %3667 = vmatprep.subr.bf16.mxu0 %v3961_v2  ;;  %v39_v1 = vld [vmem:[%s5286_s0 + $0x78] sm:$0xff]  ;;  %v3130_v2 = vcombine.low %v140_v54, %v148_v55  ;;  %v3023_v4 = vcombine.high %v30_v62, %v38_v63 }
  0xaf   :  { %3731 = vmatprep.subr.bf16.mxu1 %v3963_v3  ;;  %v3132_v3 = vcombine.low %v141_v56, %v149_v57  ;;  %v3025_v5 = vcombine.high %v31_v0, %v39_v1 }
  0xb1   :  { %3668 = vmatpush3.bf16.msra.mxu0 %v3962_v7  ;;  %v54_v7 = vld [vmem:[%s5286_s0 + $0xf0] sm:$0xff] }
  0xb2   :  { %3732 = vmatpush3.bf16.msra.mxu1 %v3964_v9  ;;  %3669 = vmatprep.subr.bf16.mxu0 %v3965_v10  ;;  %v55_v9 = vld [vmem:[%s5286_s0 + $0xf8] sm:$0xff]  ;;  %v3022_v10 = vcombine.low %v30_v62, %v38_v63  ;;  %v102_v62 = vld [vmem:[%s5286_s0 + $0x270] sm:$0xff] }
  0xb3   :  { %2253 = vmatmul.mubr.bf16.gmra.mxu0 %v3050_v11  ;;  %3733 = vmatprep.subr.bf16.mxu1 %v3967_v12  ;;  %v3024_v11 = vcombine.low %v31_v0, %v39_v1  ;;  %v3039_v12 = vcombine.high %v46_v6, %v54_v7  ;;  %v95_v1 = vld [vmem:[%s5286_s0 + $0x238] sm:$0xff] }
  0xb4   :  { %2350 = vmatmul.mubr.bf16.gmra.mxu1 %v3052_v13  ;;  %2260 = vmatprep.mubr.bf16.mxu0 %v3067_v14  ;;  %v3041_v13 = vcombine.high %v47_v8, %v55_v9 }
  0xb5   :  { %2357 = vmatprep.mubr.bf16.mxu1 %v3069_v15  ;;  %3670 = vmatpush3.bf16.msra.mxu0 %v3966_v16 }
  0xb6   :  { %3734 = vmatpush3.bf16.msra.mxu1 %v3968_v17  ;;  %3671 = vmatprep.subr.bf16.mxu0 %v3969_v18  ;;  %v62_v17 = vld [vmem:[%s5286_s0 + $0x130] sm:$0xff] }
  0xb7   :  { %3735 = vmatprep.subr.bf16.mxu1 %v3971_v19  ;;  %v70_v18 = vld [vmem:[%s5286_s0 + $0x170] sm:$0xff] }
  0xb8   :  { %v3054_v47 = vcombine.low %v62_v17, %v70_v18 }
  0xb9   :  { %3672 = vmatpush3.bf16.msra.mxu0 %v3970_v23 }
  0xba   :  { %3736 = vmatpush3.bf16.msra.mxu1 %v3972_v25  ;;  %3673 = vmatprep.subr.bf16.mxu0 %v3973_v26  ;;  %v3038_v25 = vcombine.low %v46_v6, %v54_v7 }
  0xbb   :  { %2261 = vmatmul.mubr.bf16.gmra.mxu0 %v3066_v27  ;;  %3737 = vmatprep.subr.bf16.mxu1 %v3975_v28  ;;  %v3040_v27 = vcombine.low %v47_v8, %v55_v9  ;;  %v3055_v28 = vcombine.high %v62_v17, %v70_v18 }
  0xbc   :  { %2358 = vmatmul.mubr.bf16.gmra.mxu1 %v3068_v29  ;;  %2268 = vmatprep.mubr.bf16.mxu0 %v3083_v30 }
  0xbd   :  { %2365 = vmatprep.mubr.bf16.mxu1 %v3085_v31  ;;  %3674 = vmatpush3.bf16.msra.mxu0 %v3974_v32  ;;  %v3057_v31 = vcombine.high %v63_v21, %v71_v22 }
  0xbe   :  { %3738 = vmatpush3.bf16.msra.mxu1 %v3976_v33  ;;  %3675 = vmatprep.subr.bf16.mxu0 %v3977_v34 }
  0xbf   :  { %3739 = vmatprep.subr.bf16.mxu1 %v3979_v35 }
  0xc1   :  { %3676 = vmatpush3.bf16.msra.mxu0 %v3978_v38 }
  0xc2   :  { %3740 = vmatpush3.bf16.msra.mxu1 %v3980_v41 }
  0xc3   :  { %2269 = vmatmul.mubr.bf16.gmra.mxu0 %v3082_v42 }
  0xc4   :  { %2366 = vmatmul.mubr.bf16.gmra.mxu1 %v3084_v43  ;;  %2276 = vmatprep.mubr.bf16.mxu0 %v3099_v44  ;;  %v79_v43 = vld [vmem:[%s5286_s0 + $0x1b8] sm:$0xff] }
  0xc5   :  { %2373 = vmatprep.mubr.bf16.mxu1 %v3101_v45  ;;  %v87_v44 = vld [vmem:[%s5286_s0 + $0x1f8] sm:$0xff] }
  0xc6   :  { %v3072_v7 = vcombine.low %v79_v43, %v87_v44 }
  0xcb   :  { %2277 = vmatmul.mubr.bf16.gmra.mxu0 %v3098_v50  ;;  %v3071_v50 = vcombine.high %v78_v39, %v86_v40 }
  0xcc   :  { %2374 = vmatmul.mubr.bf16.gmra.mxu1 %v3100_v51  ;;  %2284 = vmatprep.mubr.bf16.mxu0 %v3115_v52 }
  0xcd   :  { %2381 = vmatprep.mubr.bf16.mxu1 %v3117_v53  ;;  %v3073_v53 = vcombine.high %v79_v43, %v87_v44  ;;  %v126_v43 = vld [vmem:[%s5286_s0 + $0x330] sm:$0xff] }
  0xce   :  { %v134_v44 = vld [vmem:[%s5286_s0 + $0x370] sm:$0xff] }
  0xd3   :  { %2285 = vmatmul.mubr.bf16.gmra.mxu0 %v3114_v58 }
  0xd4   :  { %2382 = vmatmul.mubr.bf16.gmra.mxu1 %v3116_v59  ;;  %2292 = vmatprep.mubr.bf16.mxu0 %v3131_v60 }
  0xd5   :  { %2389 = vmatprep.mubr.bf16.mxu1 %v3133_v61  ;;  %v94_v61 = vld [vmem:[%s5286_s0 + $0x230] sm:$0xff] }
  0xd6   :  { %v3087_v8 = vcombine.high %v94_v61, %v102_v62 }
  0xdb   :  { %2293 = vmatmul.mubr.bf16.gmra.mxu0 %v3130_v2  ;;  %v103_v2 = vld [vmem:[%s5286_s0 + $0x278] sm:$0xff] }
  0xdc   :  { %2390 = vmatmul.mubr.bf16.gmra.mxu1 %v3132_v3  ;;  %2430 = vmatprep.mubr.bf16.mxu0 %v3023_v4 }
  0xdd   :  { %2527 = vmatprep.mubr.bf16.mxu1 %v3025_v5  ;;  %v3070_v5 = vcombine.low %v78_v39, %v86_v40 }
  0xe3   :  { %v3293_v14 = vpop.f32.mrf.mxu0  ;;  %2431 = vmatmul.mubr.bf16.vlgmr.msra.gmra.mxu0 %v3022_v10 }
  0xe4   :  { %v3357_v15 = vpop.f32.mrf.mxu1  ;;  %2528 = vmatmul.mubr.bf16.vlgmr.msra.gmra.mxu1 %v3024_v11  ;;  %2438 = vmatprep.mubr.bf16.mxu0 %v3039_v12  ;;  %v3089_v11 = vcombine.high %v95_v1, %v103_v2 }
  0xe5   :  { %v3294_v16 = vpop.f32.mrf.mxu0  ;;  %2535 = vmatprep.mubr.bf16.mxu1 %v3041_v13 }
  0xe6   :  { %v3295_v19 = vadd.f32 %v3294_v16, %v3293_v14  ;;  %v3358_v20 = vpop.f32.mrf.mxu1 }
  0xe7   :  { %v3359_v23 = vadd.f32 %v3358_v20, %v3357_v15  ;;  %v3296_v24 = vpop.f32.mrf.mxu0  ;;  %v118_v20 = vld [vmem:[%s5286_s0 + $0x2f0] sm:$0xff] }
  0xe8   :  { %v3360_v26 = vpop.f32.mrf.mxu1 }
  0xe9   :  { %v4796_v29 = vadd.f32 %v3359_v23, %v3295_v19  ;;  %v3297_v30 = vpop.f32.mrf.mxu0  ;;  %v110_v19 = vld [vmem:[%s5286_s0 + $0x2b0] sm:$0xff]  ;;  %v111_v23 = vld [vmem:[%s5286_s0 + $0x2b8] sm:$0xff] }
  0xea   :  { %v3298_v32 = vadd.f32 %v3297_v30, %v3296_v24  ;;  %v3361_v33 = vpop.f32.mrf.mxu1  ;;  %v119_v24 = vld [vmem:[%s5286_s0 + $0x2f8] sm:$0xff]  ;;  %v3088_v30 = vcombine.low %v95_v1, %v103_v2 }
  0xeb   :  { %v3362_v34 = vadd.f32 %v3361_v33, %v3360_v26  ;;  %v3299_v35 = vpop.f32.mrf.mxu0  ;;  %2439 = vmatmul.mubr.bf16.gmra.mxu0 %v3038_v25 }
  0xec   :  { %v3363_v36 = vpop.f32.mrf.mxu1  ;;  %2536 = vmatmul.mubr.bf16.gmra.mxu1 %v3040_v27  ;;  %2446 = vmatprep.mubr.bf16.mxu0 %v3055_v28  ;;  %v3086_v27 = vcombine.low %v94_v61, %v102_v62 }
  0xed   :  { %v4798_v37 = vadd.f32 %v3362_v34, %v3298_v32  ;;  %v3300_v38 = vpop.f32.mrf.mxu0  ;;  %2543 = vmatprep.mubr.bf16.mxu1 %v3057_v31  ;;  %v3103_v31 = vcombine.high %v110_v19, %v118_v20  ;;  %v3105_v34 = vcombine.high %v111_v23, %v119_v24 }
  0xee   :  { %v3301_v41 = vadd.f32 %v3300_v38, %v3299_v35  ;;  %v3364_v42 = vpop.f32.mrf.mxu1 }
  0xef   :  { %v3365_v45 = vadd.f32 %v3364_v42, %v3363_v36  ;;  %v3302_v46 = vpop.f32.mrf.mxu0 }
  0xf0   :  { %v3366_v48 = vpop.f32.mrf.mxu1 }
  0xf1   :  { %v4812_v51 = vadd.f32 %v3365_v45, %v3301_v41  ;;  %v3303_v52 = vpop.f32.mrf.mxu0 }
  0xf2   :  { %v3304_v54 = vadd.f32 %v3303_v52, %v3302_v46  ;;  %v3367_v55 = vpop.f32.mrf.mxu1  ;;  %v3102_v52 = vcombine.low %v110_v19, %v118_v20 }
  0xf3   :  { %v3368_v56 = vadd.f32 %v3367_v55, %v3366_v48  ;;  %v3305_v57 = vpop.f32.mrf.mxu0  ;;  %2447 = vmatmul.mubr.bf16.gmra.mxu0 %v3054_v47  ;;  %v127_v47 = vld [vmem:[%s5286_s0 + $0x338] sm:$0xff]  ;;  %v3119_v55 = vcombine.high %v126_v43, %v134_v44 }
  0xf4   :  { %v3369_v58 = vpop.f32.mrf.mxu1  ;;  %2544 = vmatmul.mubr.bf16.gmra.mxu1 %v3056_v49  ;;  %2454 = vmatprep.mubr.bf16.mxu0 %v3071_v50  ;;  %v135_v48 = vld [vmem:[%s5286_s0 + $0x378] sm:$0xff] }
  0xf5   :  { %v4814_v59 = vadd.f32 %v3368_v56, %v3304_v54  ;;  %v3306_v60 = vpop.f32.mrf.mxu0  ;;  %2551 = vmatprep.mubr.bf16.mxu1 %v3073_v53  ;;  %v3104_v54 = vcombine.low %v111_v23, %v119_v24 }
  0xf6   :  { %v3307_v63 = vadd.f32 %v3306_v60, %v3305_v57  ;;  %v3370_v0 = vpop.f32.mrf.mxu1 }
  0xf7   :  { %v3371_v3 = vadd.f32 %v3370_v0, %v3369_v58  ;;  %v3308_v4 = vpop.f32.mrf.mxu0  ;;  %v3121_v58 = vcombine.high %v127_v47, %v135_v48 }
  0xf8   :  { %v3372_v6 = vpop.f32.mrf.mxu1 }
  0xf9   :  { %v4828_v9 = vadd.f32 %v3371_v3, %v3307_v63  ;;  %v3309_v10 = vpop.f32.mrf.mxu0  ;;  %v142_v3 = vld [vmem:[%s5286_s0 + $0x3b0] sm:$0xff] }
  0xfa   :  { %v3310_v12 = vadd.f32 %v3309_v10, %v3308_v4  ;;  %v3373_v13 = vpop.f32.mrf.mxu1  ;;  %v150_v4 = vld [vmem:[%s5286_s0 + $0x3f0] sm:$0xff] }
  0xfb   :  { %v3374_v14 = vadd.f32 %v3373_v13, %v3372_v6  ;;  %v3311_v15 = vpop.f32.mrf.mxu0  ;;  %2455 = vmatmul.mubr.bf16.gmra.mxu0 %v3070_v5 }
  0xfc   :  { %v3375_v16 = vpop.f32.mrf.mxu1  ;;  %2552 = vmatmul.mubr.bf16.gmra.mxu1 %v3072_v7  ;;  %2462 = vmatprep.mubr.bf16.mxu0 %v3087_v8  ;;  %v143_v7 = vld [vmem:[%s5286_s0 + $0x3b8] sm:$0xff] }
  0xfd   :  { %v4830_v17 = vadd.f32 %v3374_v14, %v3310_v12  ;;  %v3312_v18 = vpop.f32.mrf.mxu0  ;;  %2559 = vmatprep.mubr.bf16.mxu1 %v3089_v11  ;;  %v151_v8 = vld [vmem:[%s5286_s0 + $0x3f8] sm:$0xff]  ;;  %v3118_v12 = vcombine.low %v126_v43, %v134_v44  ;;  %v3120_v14 = vcombine.low %v127_v47, %v135_v48 }
  0xfe   :  { %v3313_v21 = vadd.f32 %v3312_v18, %v3311_v15  ;;  %v3376_v22 = vpop.f32.mrf.mxu1  ;;  %v3135_v15 = vcombine.high %v142_v3, %v150_v4  ;;  %v3137_v19 = vcombine.high %v143_v7, %v151_v8 }
  0xff   :  { %v3377_v25 = vadd.f32 %v3376_v22, %v3375_v16  ;;  %v3314_v26 = vpop.f32.mrf.mxu0 }
 0x100   :  { %v3378_v28 = vpop.f32.mrf.mxu1 }
 0x101   :  { %v4844_v32 = vadd.f32 %v3377_v25, %v3313_v21  ;;  %v3315_v33 = vpop.f32.mrf.mxu0 }
 0x102   :  { %v3316_v35 = vadd.f32 %v3315_v33, %v3314_v26  ;;  %v3379_v36 = vpop.f32.mrf.mxu1  ;;  %v3134_v33 = vcombine.low %v142_v3, %v150_v4 }
 0x103   :  { %v3380_v38 = vadd.f32 %v3379_v36, %v3378_v28  ;;  %v3317_v39 = vpop.f32.mrf.mxu0  ;;  %2463 = vmatmul.mubr.bf16.gmra.mxu0 %v3086_v27 }
 0x104   :  { %v3381_v40 = vpop.f32.mrf.mxu1  ;;  %2560 = vmatmul.mubr.bf16.gmra.mxu1 %v3088_v30  ;;  %2470 = vmatprep.mubr.bf16.mxu0 %v3103_v31 }
 0x105   :  { %v4846_v41 = vadd.f32 %v3380_v38, %v3316_v35  ;;  %v3318_v42 = vpop.f32.mrf.mxu0  ;;  %2567 = vmatprep.mubr.bf16.mxu1 %v3105_v34  ;;  %v3136_v35 = vcombine.low %v143_v7, %v151_v8  ;;  %v3983_v7 = vld [vmem:[%s5287_s4 + $0x28] sm:$0xff]  }
 0x106   :  { %v3319_v45 = vadd.f32 %v3318_v42, %v3317_v39  ;;  %v3382_v46 = vpop.f32.mrf.mxu1 }
 0x107   :  { %v3383_v49 = vadd.f32 %v3382_v46, %v3381_v40  ;;  %v3320_v50 = vpop.f32.mrf.mxu0 }
 0x108   :  { %v3384_v53 = vpop.f32.mrf.mxu1 }
 0x109   :  { %v4860_v56 = vadd.f32 %v3383_v49, %v3319_v45  ;;  %v3321_v57 = vpop.f32.mrf.mxu0 }
 0x10a   :  { %v3322_v60 = vadd.f32 %v3321_v57, %v3320_v50  ;;  %v3385_v61 = vpop.f32.mrf.mxu1 }
 0x10b   :  { %v3386_v62 = vadd.f32 %v3385_v61, %v3384_v53  ;;  %v3323_v63 = vpop.f32.mrf.mxu0  ;;  %2471 = vmatmul.mubr.bf16.gmra.mxu0 %v3102_v52  ;;  %v3981_v52 = vld [vmem:[%s5287_s4 + $0x38] sm:$0xff]  }
 0x10c   :  { %v3387_v0 = vpop.f32.mrf.mxu1  ;;  %2568 = vmatmul.mubr.bf16.gmra.mxu1 %v3104_v54  ;;  %2478 = vmatprep.mubr.bf16.mxu0 %v3119_v55 }
 0x10d   :  { %v4862_v1 = vadd.f32 %v3386_v62, %v3322_v60  ;;  %v3324_v2 = vpop.f32.mrf.mxu0  ;;  %2575 = vmatprep.mubr.bf16.mxu1 %v3121_v58  ;;  %3805 = vmatprep.subr.bf16.mxu0 %v3981_v52  ;;  %v3982_v62 = vld [vmem:[%s5287_s4 + $0x30] sm:$0xff]  }
 0x10e   :  { %v3325_v5 = vadd.f32 %v3324_v2, %v3323_v63  ;;  %v3388_v6 = vpop.f32.mrf.mxu1  ;;  %3837 = vmatprep.subr.bf16.mxu1 %v3981_v52  ;;  %3806 = vmatpush3.bf16.msra.mxu0 %v3981_v52 }
 0x10f   :  { %v3389_v10 = vadd.f32 %v3388_v6, %v3387_v0  ;;  %v3326_v11 = vpop.f32.mrf.mxu0  ;;  %3845 = vmatpush3.bf16.msra.mxu1 %v3981_v52  ;;  %3807 = vmatprep.subr.bf16.mxu0 %v3982_v62 }
 0x110   :  { %v3390_v13 = vpop.f32.mrf.mxu1  ;;  %3838 = vmatprep.subr.bf16.mxu1 %v3982_v62 }
 0x111   :  { %v4876_v16 = vadd.f32 %v3389_v10, %v3325_v5  ;;  %v3327_v18 = vpop.f32.mrf.mxu0 }
 0x112   :  { %v3328_v20 = vadd.f32 %v3327_v18, %v3326_v11  ;;  %v3391_v21 = vpop.f32.mrf.mxu1  ;;  %3808 = vmatpush3.bf16.msra.mxu0 %v3982_v62 }
 0x113   :  { %v3392_v22 = vadd.f32 %v3391_v21, %v3390_v13  ;;  %v3329_v23 = vpop.f32.mrf.mxu0  ;;  %2479 = vmatmul.mubr.bf16.gmra.mxu0 %v3118_v12  ;;  %3846 = vmatpush3.bf16.msra.mxu1 %v3982_v62  ;;  %v3988_v62 = vld [vmem:[%s5287_s4] sm:$0xff]  }
 0x114   :  { %v3393_v24 = vpop.f32.mrf.mxu1  ;;  %2576 = vmatmul.mubr.bf16.gmra.mxu1 %v3120_v14  ;;  %2486 = vmatprep.mubr.bf16.mxu0 %v3135_v15 }
 0x115   :  { %v4878_v25 = vadd.f32 %v3392_v22, %v3328_v20  ;;  %v3330_v26 = vpop.f32.mrf.mxu0  ;;  %2583 = vmatprep.mubr.bf16.mxu1 %v3137_v19  ;;  %3809 = vmatprep.subr.bf16.mxu0 %v3983_v7  ;;  %v3984_v19 = vld [vmem:[%s5287_s4 + $0x20] sm:$0xff]  }
 0x116   :  { %v3331_v27 = vadd.f32 %v3330_v26, %v3329_v23  ;;  %v3394_v28 = vpop.f32.mrf.mxu1  ;;  %3839 = vmatprep.subr.bf16.mxu1 %v3983_v7  ;;  %3810 = vmatpush3.bf16.msra.mxu0 %v3983_v7 }
 0x117   :  { %v3395_v30 = vadd.f32 %v3394_v28, %v3393_v24  ;;  %v3332_v31 = vpop.f32.mrf.mxu0  ;;  %3847 = vmatpush3.bf16.msra.mxu1 %v3983_v7  ;;  %3811 = vmatprep.subr.bf16.mxu0 %v3984_v19  ;;  %v3985_v28 = vld [vmem:[%s5287_s4 + $0x18] sm:$0xff]  }
 0x118   :  { %v3396_v34 = vpop.f32.mrf.mxu1  ;;  %3840 = vmatprep.subr.bf16.mxu1 %v3984_v19 }
 0x119   :  { %v4880_v36 = vadd.f32 %v3395_v30, %v3331_v27  ;;  %v3333_v38 = vpop.f32.mrf.mxu0 }
 0x11a   :  { %v3334_v39 = vadd.f32 %v3333_v38, %v3332_v31  ;;  %v3397_v40 = vpop.f32.mrf.mxu1  ;;  %3812 = vmatpush3.bf16.msra.mxu0 %v3984_v19 }
 0x11b   :  { %v3398_v42 = vadd.f32 %v3397_v40, %v3396_v34  ;;  %v3335_v43 = vpop.f32.mrf.mxu0  ;;  %2487 = vmatmul.mubr.bf16.gmra.mxu0 %v3134_v33  ;;  %3848 = vmatpush3.bf16.msra.mxu1 %v3984_v19  ;;  %v3986_v40 = vld [vmem:[%s5287_s4 + $0x10] sm:$0xff]  }
 0x11c   :  { %v3399_v44 = vpop.f32.mrf.mxu1  ;;  %2584 = vmatmul.mubr.bf16.gmra.mxu1 %v3136_v35  ;;  %3813 = vmatprep.subr.bf16.mxu0 %v3985_v28 }
 0x11d   :  { %v4882_v45 = vadd.f32 %v3398_v42, %v3334_v39  ;;  %v3336_v46 = vpop.f32.mrf.mxu0  ;;  %3841 = vmatprep.subr.bf16.mxu1 %v3985_v28 }
 0x11e   :  { %v3337_v47 = vadd.f32 %v3336_v46, %v3335_v43  ;;  %v3400_v48 = vpop.f32.mrf.mxu1  ;;  %3814 = vmatpush3.bf16.msra.mxu0 %v3985_v28 }
 0x11f   :  { %v3401_v49 = vadd.f32 %v3400_v48, %v3399_v44  ;;  %v3338_v50 = vpop.f32.mrf.mxu0  ;;  %3849 = vmatpush3.bf16.msra.mxu1 %v3985_v28  ;;  %3815 = vmatprep.subr.bf16.mxu0 %v3986_v40 }
 0x120   :  { %v3402_v53 = vpop.f32.mrf.mxu1  ;;  %3842 = vmatprep.subr.bf16.mxu1 %v3986_v40 }
 0x121   :  { %v4887_v54 = vadd.f32 %v3401_v49, %v3337_v47  ;;  %v3339_v55 = vpop.f32.mrf.mxu0 }
 0x122   :  { %v3340_v57 = vadd.f32 %v3339_v55, %v3338_v50  ;;  %v3403_v58 = vpop.f32.mrf.mxu1  ;;  %3816 = vmatpush3.bf16.msra.mxu0 %v3986_v40  ;;  %v3987_v50 = vld [vmem:[%s5287_s4 + $0x8] sm:$0xff]  }
 0x123   :  { %v3404_v60 = vadd.f32 %v3403_v58, %v3402_v53  ;;  %v3421_v61 = vpop.f32.mrf.mxu0  ;;  %3850 = vmatpush3.bf16.msra.mxu1 %v3986_v40  ;;  %3817 = vmatprep.subr.bf16.mxu0 %v3987_v50 }
 0x124   :  { %v3485_v63 = vpop.f32.mrf.mxu1  ;;  %3843 = vmatprep.subr.bf16.mxu1 %v3987_v50 }
 0x125   :  { %v4892_v0 = vadd.f32 %v3404_v60, %v3340_v57  ;;  %v3422_v2 = vpop.f32.mrf.mxu0 }
 0x126   :  { %v3423_v3 = vadd.f32 %v3422_v2, %v3421_v61  ;;  %v3486_v4 = vpop.f32.mrf.mxu1  ;;  %3818 = vmatpush3.bf16.msra.mxu0 %v3987_v50 }
 0x127   :  { %v3487_v5 = vadd.f32 %v3486_v4, %v3485_v63  ;;  %v3424_v6 = vpop.f32.mrf.mxu0  ;;  %3851 = vmatpush3.bf16.msra.mxu1 %v3987_v50  ;;  %3819 = vmatprep.subr.bf16.mxu0 %v3988_v62 }
 0x128   :  { %v2045_v8 = vadd.f32 %v3423_v3, %v4796_v29  ;;  %v3488_v10 = vpop.f32.mrf.mxu1  ;;  %3844 = vmatprep.subr.bf16.mxu1 %v3988_v62 }
 0x129   :  { %v3425_v11 = vpop.f32.mrf.mxu0 }
 0x12a   :  { %v4898_v12 = vadd.f32 %v3487_v5, %v2045_v8  ;;  %v3426_v13 = vadd.f32 %v3425_v11, %v3424_v6  ;;  %v3489_v14 = vpop.f32.mrf.mxu1  ;;  %3820 = vmatpush3.bf16.msra.mxu0 %v3988_v62 }
 0x12b   :  { %v3490_v15 = vadd.f32 %v3489_v14, %v3488_v10  ;;  %v3427_v18 = vpop.f32.mrf.mxu0  ;;  %3852 = vmatpush3.bf16.msra.mxu1 %v3988_v62 }
 0x12c   :  { %v2048_v20 = vadd.f32 %v3426_v13, %v4798_v37  ;;  %v3491_v21 = vpop.f32.mrf.mxu1 }
 0x12d   :  { %v3428_v29 = vpop.f32.mrf.mxu0 }
 0x12e   :  { %v4904_v22 = vadd.f32 %v3490_v15, %v2048_v20  ;;  %v3429_v23 = vadd.f32 %v3428_v29, %v3427_v18  ;;  %v3492_v24 = vpop.f32.mrf.mxu1 }
 0x12f   :  { %v3493_v26 = vadd.f32 %v3492_v24, %v3491_v21  ;;  %v3430_v27 = vpop.f32.mrf.mxu0 }
 0x130   :  { %v2053_v30 = vadd.f32 %v3429_v23, %v4812_v51  ;;  %v3494_v31 = vpop.f32.mrf.mxu1 }
 0x131   :  { %v3431_v37 = vpop.f32.mrf.mxu0 }
 0x132   :  { %v4910_v33 = vadd.f32 %v3493_v26, %v2053_v30  ;;  %v3432_v34 = vadd.f32 %v3431_v37, %v3430_v27  ;;  %v3495_v35 = vpop.f32.mrf.mxu1 }
 0x133   :  { %v3496_v38 = vadd.f32 %v3495_v35, %v3494_v31  ;;  %v3433_v39 = vpop.f32.mrf.mxu0 }
 0x134   :  { %v2056_v42 = vadd.f32 %v3432_v34, %v4814_v59  ;;  %v3497_v43 = vpop.f32.mrf.mxu1 }
 0x135   :  { %v3434_v51 = vpop.f32.mrf.mxu0 }
 0x136   :  { %v4916_v44 = vadd.f32 %v3496_v38, %v2056_v42  ;;  %v3435_v46 = vadd.f32 %v3434_v51, %v3433_v39  ;;  %v3498_v47 = vpop.f32.mrf.mxu1 }
 0x137   :  { %v3499_v48 = vadd.f32 %v3498_v47, %v3497_v43  ;;  %v3436_v49 = vpop.f32.mrf.mxu0 }
 0x138   :  { %v2061_v52 = vadd.f32 %v3435_v46, %v4828_v9  ;;  %v3500_v53 = vpop.f32.mrf.mxu1 }
 0x139   :  { %v3437_v59 = vpop.f32.mrf.mxu0 }
 0x13a   :  { %v4922_v55 = vadd.f32 %v3499_v48, %v2061_v52  ;;  %v3438_v57 = vadd.f32 %v3437_v59, %v3436_v49  ;;  %v3501_v58 = vpop.f32.mrf.mxu1 }
 0x13b   :  { %v3502_v60 = vadd.f32 %v3501_v58, %v3500_v53  ;;  %v3439_v61 = vpop.f32.mrf.mxu0 }
 0x13c   :  { %v2064_v63 = vadd.f32 %v3438_v57, %v4830_v17  ;;  %v3503_v2 = vpop.f32.mrf.mxu1 }
 0x13d   :  { %v3440_v9 = vpop.f32.mrf.mxu0 }
 0x13e   :  { %v4928_v3 = vadd.f32 %v3502_v60, %v2064_v63  ;;  %v3441_v4 = vadd.f32 %v3440_v9, %v3439_v61  ;;  %v3504_v5 = vpop.f32.mrf.mxu1 }
 0x13f   :  { %v3505_v6 = vadd.f32 %v3504_v5, %v3503_v2  ;;  %v3442_v7 = vpop.f32.mrf.mxu0 }
 0x140   :  { %v2069_v8 = vadd.f32 %v3441_v4, %v4844_v32  ;;  %v3506_v10 = vpop.f32.mrf.mxu1 }
 0x141   :  { %v3443_v11 = vpop.f32.mrf.mxu0 }
 0x142   :  { %v4931_v13 = vadd.f32 %v3505_v6, %v2069_v8  ;;  %v3444_v14 = vadd.f32 %v3443_v11, %v3442_v7  ;;  %v3507_v17 = vpop.f32.mrf.mxu1 }
 0x143   :  { %v3508_v15 = vadd.f32 %v3507_v17, %v3506_v10  ;;  %v3445_v18 = vpop.f32.mrf.mxu0 }
 0x144   :  { %v2072_v19 = vadd.f32 %v3444_v14, %v4846_v41  ;;  %v3509_v20 = vpop.f32.mrf.mxu1 }
 0x145   :  { %v3446_v21 = vpop.f32.mrf.mxu0 }
 0x146   :  { %v4934_v29 = vadd.f32 %v3508_v15, %v2072_v19  ;;  %v3447_v23 = vadd.f32 %v3446_v21, %v3445_v18  ;;  %v3510_v24 = vpop.f32.mrf.mxu1 }
 0x147   :  { %v3511_v26 = vadd.f32 %v3510_v24, %v3509_v20  ;;  %v3448_v27 = vpop.f32.mrf.mxu0 }
 0x148   :  { %v2077_v32 = vadd.f32 %v3447_v23, %v4860_v56  ;;  %v3512_v28 = vpop.f32.mrf.mxu1 }
 0x149   :  { %v3449_v30 = vpop.f32.mrf.mxu0 }
 0x14a   :  { %v4937_v31 = vadd.f32 %v3511_v26, %v2077_v32  ;;  %v3450_v37 = vadd.f32 %v3449_v30, %v3448_v27  ;;  %v3513_v34 = vpop.f32.mrf.mxu1 }
 0x14b   :  { %v3514_v35 = vadd.f32 %v3513_v34, %v3512_v28  ;;  %v3451_v38 = vpop.f32.mrf.mxu0 }
 0x14c   :  { %v2080_v41 = vadd.f32 %v3450_v37, %v4862_v1  ;;  %v3515_v39 = vpop.f32.mrf.mxu1 }
 0x14d   :  { %v3452_v40 = vpop.f32.mrf.mxu0 }
 0x14e   :  { %v4940_v42 = vadd.f32 %v3514_v35, %v2080_v41  ;;  %v3453_v43 = vadd.f32 %v3452_v40, %v3451_v38  ;;  %v3516_v51 = vpop.f32.mrf.mxu1 }
 0x14f   :  { %v3517_v46 = vadd.f32 %v3516_v51, %v3515_v39  ;;  %v3454_v47 = vpop.f32.mrf.mxu0 }
 0x150   :  { %v2085_v56 = vadd.f32 %v3453_v43, %v4876_v16  ;;  %v3518_v48 = vpop.f32.mrf.mxu1 }
 0x151   :  { %v3455_v49 = vpop.f32.mrf.mxu0 }
 0x152   :  { %v4943_v50 = vadd.f32 %v3517_v46, %v2085_v56  ;;  %v3456_v52 = vadd.f32 %v3455_v49, %v3454_v47  ;;  %v3519_v53 = vpop.f32.mrf.mxu1 }
 0x153   :  { %v3520_v59 = vadd.f32 %v3519_v53, %v3518_v48  ;;  %v3457_v57 = vpop.f32.mrf.mxu0 }
 0x154   :  { %v2088_v1 = vadd.f32 %v3456_v52, %v4878_v25  ;;  %v3521_v58 = vpop.f32.mrf.mxu1 }
 0x155   :  { %v3458_v60 = vpop.f32.mrf.mxu0 }
 0x156   :  { %v4946_v61 = vadd.f32 %v3520_v59, %v2088_v1  ;;  %v3459_v62 = vadd.f32 %v3458_v60, %v3457_v57  ;;  %v3522_v63 = vpop.f32.mrf.mxu1 }
 0x157   :  { %v3523_v2 = vadd.f32 %v3522_v63, %v3521_v58  ;;  %v3460_v9 = vpop.f32.mrf.mxu0 }
 0x158   :  { %v2093_v16 = vadd.f32 %v3459_v62, %v4880_v36  ;;  %v3524_v4 = vpop.f32.mrf.mxu1 }
 0x159   :  { %v3461_v5 = vpop.f32.mrf.mxu0 }
 0x15a   :  { %v4949_v6 = vadd.f32 %v3523_v2, %v2093_v16  ;;  %v3462_v7 = vadd.f32 %v3461_v5, %v3460_v9  ;;  %v3525_v8 = vpop.f32.mrf.mxu1 }
 0x15b   :  { %v3526_v10 = vadd.f32 %v3525_v8, %v3524_v4  ;;  %v3463_v11 = vpop.f32.mrf.mxu0 }
 0x15c   :  { %v2096_v25 = vadd.f32 %v3462_v7, %v4882_v45  ;;  %v3527_v14 = vpop.f32.mrf.mxu1 }
 0x15d   :  { %v3464_v17 = vpop.f32.mrf.mxu0 }
 0x15e   :  { %v4952_v15 = vadd.f32 %v3526_v10, %v2096_v25  ;;  %v3465_v18 = vadd.f32 %v3464_v17, %v3463_v11  ;;  %v3528_v19 = vpop.f32.mrf.mxu1 }
 0x15f   :  { %v3529_v20 = vadd.f32 %v3528_v19, %v3527_v14  ;;  %v3466_v21 = vpop.f32.mrf.mxu0 }
 0x160   :  { %v2101_v36 = vadd.f32 %v3465_v18, %v4887_v54  ;;  %v3530_v23 = vpop.f32.mrf.mxu1 }
 0x161   :  { %v3467_v24 = vpop.f32.mrf.mxu0 }
 0x162   :  { %v4955_v26 = vadd.f32 %v3529_v20, %v2101_v36  ;;  %v3468_v27 = vadd.f32 %v3467_v24, %v3466_v21  ;;  %v3531_v32 = vpop.f32.mrf.mxu1 }
 0x163   :  { %v3532_v28 = vadd.f32 %v3531_v32, %v3530_v23  ;;  %v3549_v30 = vpop.f32.mrf.mxu0 }
 0x164   :  { %v2104_v45 = vadd.f32 %v3468_v27, %v4892_v0  ;;  %v3613_v37 = vpop.f32.mrf.mxu1 }
 0x165   :  { %v3550_v34 = vpop.f32.mrf.mxu0 }
 0x166   :  { %v4958_v35 = vadd.f32 %v3532_v28, %v2104_v45  ;;  %v3551_v38 = vadd.f32 %v3550_v34, %v3549_v30  ;;  %v3614_v41 = vpop.f32.mrf.mxu1 }
 0x167   :  { %v3615_v39 = vadd.f32 %v3614_v41, %v3613_v37  ;;  %v4960_v40 = vpop.f32.mrf.mxu0 }
 0x168   :  { %v2239_v54 = vadd.f32 %v3551_v38, %v4898_v12  ;;  %v4963_v43 = vpop.f32.mrf.mxu1 }
 0x169   :  { %v4965_v51 = vpop.f32.mrf.mxu0 }
 0x16a   :  { %v4967_v46 = vadd.f32 %v3615_v39, %v2239_v54  ;;  %v4969_v47 = vpop.f32.mrf.mxu1 }
 0x16b   :  { %v3555_v0 = vpop.f32.mrf.mxu0 }
 0x16c   :  { %v3619_v56 = vpop.f32.mrf.mxu1 }
 0x16d   :  { %v3556_v48 = vpop.f32.mrf.mxu0 }
 0x16e   :  { %v3557_v49 = vadd.f32 %v3556_v48, %v3555_v0  ;;  %v3620_v52 = vpop.f32.mrf.mxu1 }
 0x16f   :  { %v3621_v53 = vadd.f32 %v3620_v52, %v3619_v56  ;;  %v4971_v59 = vpop.f32.mrf.mxu0 }
 0x170   :  { %v2247_v57 = vadd.f32 %v3557_v49, %v4910_v33  ;;  %v4974_v1 = vpop.f32.mrf.mxu1 }
 0x171   :  { %v4976_v12 = vpop.f32.mrf.mxu0 }
 0x172   :  { %v4978_v58 = vadd.f32 %v3621_v53, %v2247_v57  ;;  %v4980_v60 = vpop.f32.mrf.mxu1 }
 0x173   :  { %v3561_v62 = vpop.f32.mrf.mxu0 }
 0x174   :  { %v3625_v63 = vpop.f32.mrf.mxu1 }
 0x175   :  { %v3562_v2 = vpop.f32.mrf.mxu0 }
 0x176   :  { %v3563_v9 = vadd.f32 %v3562_v2, %v3561_v62  ;;  %v3626_v16 = vpop.f32.mrf.mxu1 }
 0x177   :  { %v3627_v4 = vadd.f32 %v3626_v16, %v3625_v63  ;;  %v4982_v5 = vpop.f32.mrf.mxu0 }
 0x178   :  { %v2255_v7 = vadd.f32 %v3563_v9, %v4922_v55  ;;  %v4985_v8 = vpop.f32.mrf.mxu1 }
 0x179   :  { %v4987_v33 = vpop.f32.mrf.mxu0 }
 0x17a   :  { %v4989_v10 = vadd.f32 %v3627_v4, %v2255_v7  ;;  %v4991_v11 = vpop.f32.mrf.mxu1 }
 0x17b   :  { %v3567_v25 = vpop.f32.mrf.mxu0 }
 0x17c   :  { %v3631_v14 = vpop.f32.mrf.mxu1 }
 0x17d   :  { %v3568_v17 = vpop.f32.mrf.mxu0 }
 0x17e   :  { %v3569_v18 = vadd.f32 %v3568_v17, %v3567_v25  ;;  %v3632_v19 = vpop.f32.mrf.mxu1 }
 0x17f   :  { %v3633_v20 = vadd.f32 %v3632_v19, %v3631_v14  ;;  %v4993_v21 = vpop.f32.mrf.mxu0 }
 0x180   :  { %v2263_v36 = vadd.f32 %v3569_v18, %v4931_v13  ;;  %v4996_v23 = vpop.f32.mrf.mxu1 }
 0x181   :  { %v4998_v55 = vpop.f32.mrf.mxu0 }
 0x182   :  { %v5000_v24 = vadd.f32 %v3633_v20, %v2263_v36  ;;  %v5002_v27 = vpop.f32.mrf.mxu1 }
 0x183   :  { %v3573_v32 = vpop.f32.mrf.mxu0 }
 0x184   :  { %v3637_v28 = vpop.f32.mrf.mxu1 }
 0x185   :  { %v3574_v30 = vpop.f32.mrf.mxu0 }
 0x186   :  { %v3575_v45 = vadd.f32 %v3574_v30, %v3573_v32  ;;  %v3638_v37 = vpop.f32.mrf.mxu1 }
 0x187   :  { %v3639_v34 = vadd.f32 %v3638_v37, %v3637_v28  ;;  %v5004_v38 = vpop.f32.mrf.mxu0 }
 0x188   :  { %v2271_v41 = vadd.f32 %v3575_v45, %v4937_v31  ;;  %v5007_v39 = vpop.f32.mrf.mxu1 }
 0x189   :  { %v5009_v13 = vpop.f32.mrf.mxu0 }
 0x18a   :  { %v5011_v54 = vadd.f32 %v3639_v34, %v2271_v41  ;;  %v5013_v0 = vpop.f32.mrf.mxu1 }
 0x18b   :  { %v3579_v56 = vpop.f32.mrf.mxu0 }
 0x18c   :  { %v3643_v48 = vpop.f32.mrf.mxu1 }
 0x18d   :  { %v3580_v49 = vpop.f32.mrf.mxu0 }
 0x18e   :  { %v3581_v52 = vadd.f32 %v3580_v49, %v3579_v56  ;;  %v3644_v53 = vpop.f32.mrf.mxu1 }
 0x18f   :  { %v3645_v57 = vadd.f32 %v3644_v53, %v3643_v48  ;;  %v5015_v62 = vpop.f32.mrf.mxu0  ;;  %v3554_v53 = vadd.f32 %v4965_v51, %v4960_v40  ;;  %v5057_v40 = vld [vmem:[%s5288_s2] ss:$0 sm:$0xff] }
 0x190   :  { %v2279_v63 = vadd.f32 %v3581_v52, %v4943_v50  ;;  %v5018_v2 = vpop.f32.mrf.mxu1 }
 0x191   :  { %v5020_v31 = vpop.f32.mrf.mxu0 }
 0x192   :  { %v5022_v9 = vadd.f32 %v3645_v57, %v2279_v63  ;;  %v5024_v16 = vpop.f32.mrf.mxu1 }
 0x193   :  { %v3585_v4 = vpop.f32.mrf.mxu0 }
 0x194   :  { %v3649_v7 = vpop.f32.mrf.mxu1 }
 0x195   :  { %v3586_v25 = vpop.f32.mrf.mxu0 }
 0x196   :  { %v3587_v14 = vadd.f32 %v3586_v25, %v3585_v4  ;;  %v3650_v17 = vpop.f32.mrf.mxu1 }
 0x197   :  { %v3651_v18 = vadd.f32 %v3650_v17, %v3649_v7  ;;  %v5026_v19 = vpop.f32.mrf.mxu0 }
 0x198   :  { %v2287_v20 = vadd.f32 %v3587_v14, %v4949_v6  ;;  %v5029_v36 = vpop.f32.mrf.mxu1  ;;  %v2242_v14 = vadd.f32 %v3554_v53, %v4904_v22  ;;  %v3560_v22 = vadd.f32 %v4976_v12, %v4971_v59 }
 0x199   :  { %v5031_v50 = vpop.f32.mrf.mxu0 }
 0x19a   :  { %v5033_v32 = vadd.f32 %v3651_v18, %v2287_v20  ;;  %v5035_v28 = vpop.f32.mrf.mxu1 }
 0x19b   :  { %v3591_v30 = vpop.f32.mrf.mxu0 }
 0x19c   :  { %v3655_v45 = vpop.f32.mrf.mxu1 }
 0x19d   :  { %v3592_v37 = vpop.f32.mrf.mxu0 }
 0x19e   :  { %v3593_v34 = vadd.f32 %v3592_v37, %v3591_v30  ;;  %v3656_v41 = vpop.f32.mrf.mxu1 }
 0x19f   :  { %v3657_v56 = vadd.f32 %v3656_v41, %v3655_v45  ;;  %v5037_v48 = vpop.f32.mrf.mxu0 }
 0x1a0   :  { %v2295_v49 = vadd.f32 %v3593_v34, %v4955_v26  ;;  %v5040_v52 = vpop.f32.mrf.mxu1  ;;  %v3618_v26 = vadd.f32 %v4969_v47, %v4963_v43 }
 0x1a1   :  { %v5042_v6 = vpop.f32.mrf.mxu0 }
 0x1a2   :  { %v5046_v57 = vadd.f32 %v3657_v56, %v2295_v49  ;;  %v5048_v63 = vpop.f32.mrf.mxu1  ;;  %v2339_v34 = vadd.f32 %v3618_v26, %v2242_v14  ;;  %v2250_v14 = vadd.f32 %v3560_v22, %v4916_v44  ;;  %v3624_v26 = vadd.f32 %v4980_v60, %v4974_v1 }
 0x1a3   :  { %v3677_v4 = vpop.f32.mrf.mxu0 }
 0x1a4   :  { %v3741_v7 = vpop.f32.mrf.mxu1  ;;  %v2347_v44 = vadd.f32 %v3624_v26, %v2250_v14 }
 0x1a5   :  { %v3678_v25 = vpop.f32.mrf.mxu0 }
 0x1a6   :  { %v3679_v17 = vadd.f32 %v3678_v25, %v3677_v4  ;;  %v3742_v18 = vpop.f32.mrf.mxu1 }
 0x1a7   :  { %v3680_v20 = vpop.f32.mrf.mxu0  ;;  %v3743_v45 = vadd.f32 %v3742_v18, %v3741_v7  ;;  %v5065_v7 = vld [vmem:[%s5289_s3] ss:$0 sm:$0xff] }
 0x1a8   :  { %v2433_v30 = vadd.f32 %v3679_v17, %v4967_v46  ;;  %v3744_v37 = vpop.f32.mrf.mxu1 }
 0x1a9   :  { %v3681_v51 = vpop.f32.mrf.mxu0 }
 0x1aa   :  { %v2530_v41 = vadd.f32 %v3743_v45, %v2433_v30  ;;  %v3682_v56 = vadd.f32 %v3681_v51, %v3680_v20  ;;  %v3745_v49 = vpop.f32.mrf.mxu1 }
 0x1ab   :  { %v3683_v53 = vpop.f32.mrf.mxu0  ;;  %v3746_v46 = vadd.f32 %v3745_v49, %v3744_v37 }
 0x1ac   :  { %v2599_v43 = vmul.f32 %v5057_v40, %v2530_v41  ;;  %v2436_v47 = vadd.f32 %v3682_v56, %v2339_v34  ;;  %v3747_v4 = vpop.f32.mrf.mxu1  ;;  %v3566_v34 = vadd.f32 %v4987_v33, %v4982_v5 }
 0x1ad   :  { %v3684_v25 = vpop.f32.mrf.mxu0 }
 0x1ae   :  { %v2533_v17 = vadd.f32 %v3746_v46, %v2436_v47  ;;  %v3685_v18 = vadd.f32 %v3684_v25, %v3683_v53  ;;  %v3748_v59 = vpop.f32.mrf.mxu1  ;;  %v2622_v20 = vadd.f32 %v5065_v7, %v2599_v43 }
 0x1af   :  { %v3686_v12 = vpop.f32.mrf.mxu0  ;;  %v3749_v37 = vadd.f32 %v3748_v59, %v3747_v4  ;;  %v2258_v4 = vadd.f32 %v3566_v34, %v4928_v3  ;;  %v3630_v59 = vadd.f32 %v4991_v11, %v4985_v8  ;;  %v3572_v34 = vadd.f32 %v4998_v55, %v4993_v21 }
 0x1b0   :  { %v2600_v30 = vmul.f32 %v5057_v40, %v2533_v17  ;;  %v2441_v45 = vadd.f32 %v3685_v18, %v4978_v58  ;;  %v3750_v51 = vpop.f32.mrf.mxu1  ;;  %v2638_v47 = vmax.f32 %v2622_v20, 0.0 }
 0x1b1   :  { %v3687_v41 = vpop.f32.mrf.mxu0 }
 0x1b2   :  { %v2538_v22 = vadd.f32 %v3749_v37, %v2441_v45  ;;  %v3688_v56 = vadd.f32 %v3687_v41, %v3686_v12  ;;  %v3751_v49 = vpop.f32.mrf.mxu1  ;;  %v2623_v53 = vadd.f32 %v5065_v7, %v2600_v30 }
 0x1b3   :  { %v3689_v43 = vpop.f32.mrf.mxu0  ;;  %v3752_v46 = vadd.f32 %v3751_v49, %v3750_v51  ;;  %v2355_v51 = vadd.f32 %v3630_v59, %v2258_v4 }
 0x1b4   :  { %v2601_v1 = vmul.f32 %v5057_v40, %v2538_v22  ;;  %v2444_v60 = vadd.f32 %v3688_v56, %v2347_v44  ;;  %v3753_v25 = vpop.f32.mrf.mxu1  ;;  %v2639_v58 = vmax.f32 %v2623_v53, 0.0 }
 0x1b5   :  { %v3690_v17 = vpop.f32.mrf.mxu0 }
 0x1b6   :  { %v2541_v18 = vadd.f32 %v3752_v46, %v2444_v60  ;;  %v3691_v5 = vadd.f32 %v3690_v17, %v3689_v43  ;;  %v3754_v33 = vpop.f32.mrf.mxu1  ;;  %v2654_v14 = vpack.c.bf16 %v2639_v58, %v2638_v47  ;;  %v2624_v12 = vadd.f32 %v5065_v7, %v2601_v1 }
 0x1b7   :  { %v3692_v26 = vpop.f32.mrf.mxu0  ;;  %v3755_v45 = vadd.f32 %v3754_v33, %v3753_v25  ;;  %v2266_v60 = vadd.f32 %v3572_v34, %v4934_v29  ;;  %v3636_v17 = vadd.f32 %v5002_v27, %v4996_v23  ;;  %v3578_v29 = vadd.f32 %v5009_v13, %v5004_v38 }
 0x1b8   :  { %v2602_v20 = vmul.f32 %v5057_v40, %v2541_v18  ;;  %v2449_v30 = vadd.f32 %v3691_v5, %v4989_v10  ;;  %v3756_v37 = vpop.f32.mrf.mxu1  ;;  %3821 = vmatprep.mubr.bf16.mxu0 %v2654_v14  ;;  %v2640_v11 = vmax.f32 %v2624_v12, 0.0 }
 0x1b9   :  { %v3693_v3 = vpop.f32.mrf.mxu0  ;;  %v2363_v12 = vadd.f32 %v3636_v17, %v2266_v60  ;;  %v3584_v60 = vadd.f32 %v5020_v31, %v5015_v62 }
 0x1ba   :  { %v2625_v41 = vadd.f32 %v5065_v7, %v2602_v20  ;;  %v2546_v44 = vadd.f32 %v3755_v45, %v2449_v30  ;;  %v3694_v22 = vadd.f32 %v3693_v3, %v3692_v26  ;;  %v3757_v8 = vpop.f32.mrf.mxu1 }
 0x1bb   :  { %v3695_v56 = vpop.f32.mrf.mxu0  ;;  %v3758_v10 = vadd.f32 %v3757_v8, %v3756_v37 }
 0x1bc   :  { %v2641_v49 = vmax.f32 %v2625_v41, 0.0  ;;  %v2603_v53 = vmul.f32 %v5057_v40, %v2546_v44  ;;  %v2452_v43 = vadd.f32 %v3694_v22, %v2355_v51  ;;  %v3759_v47 = vpop.f32.mrf.mxu1  ;;  %v2274_v41 = vadd.f32 %v3578_v29, %v4940_v42 }
 0x1bd   :  { %v3696_v1 = vpop.f32.mrf.mxu0 }
 0x1be   :  { %v2655_v46 = vpack.c.bf16 %v2641_v49, %v2640_v11  ;;  %v2549_v25 = vadd.f32 %v3758_v10, %v2452_v43  ;;  %v3697_v58 = vadd.f32 %v3696_v1, %v3695_v56  ;;  %v3760_v21 = vpop.f32.mrf.mxu1  ;;  %v2626_v4 = vadd.f32 %v5065_v7, %v2603_v53 }
 0x1bf   :  { %v3698_v55 = vpop.f32.mrf.mxu0  ;;  %v3761_v33 = vadd.f32 %v3760_v21, %v3759_v47  ;;  %v3642_v11 = vadd.f32 %v5013_v0, %v5007_v39 }
 0x1c0   :  { %v2604_v18 = vmul.f32 %v5057_v40, %v2549_v25  ;;  %v2457_v5 = vadd.f32 %v3697_v58, %v5000_v24  ;;  %v3762_v14 = vpop.f32.mrf.mxu1  ;;  %3822 = vmatmul.mubr.bf16.vlgmr.msra.gmra.mxu0 %v2655_v46  ;;  %v2642_v51 = vmax.f32 %v2626_v4, 0.0 }
 0x1c1   :  { %v3699_v59 = vpop.f32.mrf.mxu0  ;;  %v2371_v1 = vadd.f32 %v3642_v11, %v2274_v41 }
 0x1c2   :  { %v2554_v26 = vadd.f32 %v3761_v33, %v2457_v5  ;;  %v3700_v20 = vadd.f32 %v3699_v59, %v3698_v55  ;;  %v3763_v30 = vpop.f32.mrf.mxu1  ;;  %v2627_v45 = vadd.f32 %v5065_v7, %v2604_v18  ;;  %v2282_v33 = vadd.f32 %v3584_v60, %v4946_v61 }
 0x1c3   :  { %v3701_v37 = vpop.f32.mrf.mxu0  ;;  %v3764_v3 = vadd.f32 %v3763_v30, %v3762_v14  ;;  %v3590_v61 = vadd.f32 %v5031_v50, %v5026_v19 }
 0x1c4   :  { %v2605_v23 = vmul.f32 %v5057_v40, %v2554_v26  ;;  %v2460_v27 = vadd.f32 %v3700_v20, %v2363_v12  ;;  %v3765_v24 = vpop.f32.mrf.mxu1  ;;  %v2643_v34 = vmax.f32 %v2627_v45, 0.0  ;;  %v3648_v26 = vadd.f32 %v5024_v16, %v5018_v2 }
 0x1c5   :  { %v3702_v44 = vpop.f32.mrf.mxu0 }
 0x1c6   :  { %v2557_v22 = vadd.f32 %v3764_v3, %v2460_v27  ;;  %v3703_v38 = vadd.f32 %v3702_v44, %v3701_v37  ;;  %v3766_v13 = vpop.f32.mrf.mxu1  ;;  %v2656_v8 = vpack.c.bf16 %v2643_v34, %v2642_v51  ;;  %v2628_v56 = vadd.f32 %v5065_v7, %v2605_v23 }
 0x1c7   :  { %v3704_v49 = vpop.f32.mrf.mxu0  ;;  %v3767_v10 = vadd.f32 %v3766_v13, %v3765_v24  ;;  %v2379_v23 = vadd.f32 %v3648_v26, %v2282_v33  ;;  %v2290_v13 = vadd.f32 %v3590_v61, %v4952_v15 }
 0x1c8   :  { %v2606_v53 = vmul.f32 %v5057_v40, %v2557_v22  ;;  %v2465_v43 = vadd.f32 %v3703_v38, %v5011_v54  ;;  %v3768_v47 = vpop.f32.mrf.mxu1  ;;  %3825 = vmatprep.mubr.bf16.mxu0 %v2656_v8  ;;  %v2644_v0 = vmax.f32 %v2628_v56, 0.0 }
 0x1c9   :  { %v3705_v42 = vpop.f32.mrf.mxu0 }
 0x1ca   :  { %v2629_v46 = vadd.f32 %v5065_v7, %v2606_v53  ;;  %v2562_v25 = vadd.f32 %v3767_v10, %v2465_v43  ;;  %v3706_v58 = vadd.f32 %v3705_v42, %v3704_v49  ;;  %v3769_v39 = vpop.f32.mrf.mxu1  ;;  %v3654_v49 = vadd.f32 %v5035_v28, %v5029_v36 }
 0x1cb   :  { %v3707_v21 = vpop.f32.mrf.mxu0  ;;  %v3770_v54 = vadd.f32 %v3769_v39, %v3768_v47 }
 0x1cc   :  { %v2645_v55 = vmax.f32 %v2629_v46, 0.0  ;;  %v2607_v4 = vmul.f32 %v5057_v40, %v2562_v25  ;;  %v2468_v17 = vadd.f32 %v3706_v58, %v2371_v1  ;;  %v3771_v18 = vpop.f32.mrf.mxu1  ;;  %v2387_v60 = vadd.f32 %v3654_v49, %v2290_v13 }
 0x1cd   :  { %v3708_v5 = vpop.f32.mrf.mxu0  ;;  %v3596_v46 = vadd.f32 %v5042_v6, %v5037_v48 }
 0x1ce   :  { %v2565_v14 = vadd.f32 %v3770_v54, %v2468_v17  ;;  %v3709_v29 = vadd.f32 %v3708_v5, %v3707_v21  ;;  %v3772_v59 = vpop.f32.mrf.mxu1  ;;  %v2657_v62 = vpack.c.bf16 %v2645_v55, %v2644_v0  ;;  %v2630_v12 = vadd.f32 %v5065_v7, %v2607_v4 }
 0x1cf   :  { %v3710_v31 = vpop.f32.mrf.mxu0  ;;  %v3773_v45 = vadd.f32 %v3772_v59, %v3771_v18  ;;  %v2298_v18 = vadd.f32 %v3596_v46, %v4958_v35  ;;  %v3660_v59 = vadd.f32 %v5048_v63, %v5040_v52 }
 0x1d0   :  { %v2608_v20 = vmul.f32 %v5057_v40, %v2565_v14  ;;  %v2473_v30 = vadd.f32 %v3709_v29, %v5022_v9  ;;  %v3774_v37 = vpop.f32.mrf.mxu1  ;;  %3826 = vmatmul.mubr.bf16.gmra.mxu0 %v2657_v62  ;;  %v2646_v44 = vmax.f32 %v2630_v12, 0.0 }
 0x1d1   :  { %v3711_v51 = vpop.f32.mrf.mxu0 }
 0x1d2   :  { %v2570_v27 = vadd.f32 %v3773_v45, %v2473_v30  ;;  %v3712_v3 = vadd.f32 %v3711_v51, %v3710_v31  ;;  %v3775_v24 = vpop.f32.mrf.mxu1  ;;  %v2631_v34 = vadd.f32 %v5065_v7, %v2608_v20  ;;  %v2395_v30 = vadd.f32 %v3660_v59, %v2298_v18 }
 0x1d3   :  { %v3713_v41 = vpop.f32.mrf.mxu0  ;;  %v3776_v22 = vadd.f32 %v3775_v24, %v3774_v37 }
 0x1d4   :  { %v2609_v2 = vmul.f32 %v5057_v40, %v2570_v27  ;;  %v2476_v16 = vadd.f32 %v3712_v3, %v2379_v23  ;;  %v3777_v9 = vpop.f32.mrf.mxu1  ;;  %v2647_v38 = vmax.f32 %v2631_v34, 0.0 }
 0x1d5   :  { %v3714_v8 = vpop.f32.mrf.mxu0 }
 0x1d6   :  { %v2573_v11 = vadd.f32 %v3776_v22, %v2476_v16  ;;  %v3715_v19 = vadd.f32 %v3714_v8, %v3713_v41  ;;  %v3778_v50 = vpop.f32.mrf.mxu1  ;;  %v2658_v56 = vpack.c.bf16 %v2647_v38, %v2646_v44  ;;  %v2632_v53 = vadd.f32 %v5065_v7, %v2609_v2  ;;  %v3268_v22 = vld [vmem:[%s5290_s5] ss:$0 sm:$0xff] }
 0x1d7   :  { %v3716_v43 = vpop.f32.mrf.mxu0  ;;  %v3779_v1 = vadd.f32 %v3778_v50, %v3777_v9 }
 0x1d8   :  { %v2610_v10 = vmul.f32 %v5057_v40, %v2573_v11  ;;  %v2481_v47 = vadd.f32 %v3715_v19, %v5033_v32  ;;  %v3780_v42 = vpop.f32.mrf.mxu1  ;;  %3829 = vmatprep.mubr.bf16.mxu1 %v2658_v56  ;;  %v2648_v28 = vmax.f32 %v2632_v53, 0.0 }
 0x1d9   :  { %v3717_v15 = vpop.f32.mrf.mxu0 }
 0x1da   :  { %v2633_v25 = vadd.f32 %v5065_v7, %v2610_v10  ;;  %v2578_v58 = vadd.f32 %v3779_v1, %v2481_v47  ;;  %v3718_v39 = vadd.f32 %v3717_v15, %v3716_v43  ;;  %v3781_v36 = vpop.f32.mrf.mxu1 }
 0x1db   :  { %v3719_v0 = vpop.f32.mrf.mxu0  ;;  %v3782_v32 = vadd.f32 %v3781_v36, %v3780_v42 }
 0x1dc   :  { %v2649_v21 = vmax.f32 %v2633_v25, 0.0  ;;  %v2611_v55 = vmul.f32 %v5057_v40, %v2578_v58  ;;  %v2484_v4 = vadd.f32 %v3718_v39, %v2387_v60  ;;  %v3783_v17 = vpop.f32.mrf.mxu1 }
 0x1dd   :  { %v3720_v54 = vpop.f32.mrf.mxu0 }
 0x1de   :  { %v2659_v5 = vpack.c.bf16 %v2649_v21, %v2648_v28  ;;  %v2581_v33 = vadd.f32 %v3782_v32, %v2484_v4  ;;  %v3721_v14 = vadd.f32 %v3720_v54, %v3719_v0  ;;  %v3784_v48 = vpop.f32.mrf.mxu1  ;;  %v2634_v29 = vadd.f32 %v5065_v7, %v2611_v55 }
 0x1df   :  { %v3722_v6 = vpop.f32.mrf.mxu0  ;;  %v3785_v12 = vadd.f32 %v3784_v48, %v3783_v17 }
 0x1e0   :  { %v2612_v62 = vmul.f32 %v5057_v40, %v2581_v33  ;;  %v2489_v31 = vadd.f32 %v3721_v14, %v5046_v57  ;;  %v3786_v26 = vpop.f32.mrf.mxu1  ;;  %3830 = vmatmul.mubr.bf16.vlgmr.msra.gmra.mxu1 %v2659_v5  ;;  %v2650_v51 = vmax.f32 %v2634_v29, 0.0 }
 0x1e1   :  { %v3723_v20 = vpop.f32.mrf.mxu0 }
 0x1e2   :  { %v2586_v35 = vadd.f32 %v3785_v12, %v2489_v31  ;;  %v3724_v45 = vadd.f32 %v3723_v20, %v3722_v6  ;;  %v3787_v37 = vpop.f32.mrf.mxu1  ;;  %v2635_v61 = vadd.f32 %v5065_v7, %v2612_v62 }
 0x1e3   :  { %v3788_v3 = vadd.f32 %v3787_v37, %v3786_v26 }
 0x1e4   :  { %v2613_v23 = vmul.f32 %v5057_v40, %v2586_v35  ;;  %v2492_v27 = vadd.f32 %v3724_v45, %v2395_v30  ;;  %v2651_v52 = vmax.f32 %v2635_v61, 0.0 }
 0x1e6   :  { %v2589_v63 = vadd.f32 %v3788_v3, %v2492_v27  ;;  %v2660_v24 = vpack.c.bf16 %v2651_v52, %v2650_v51  ;;  %v2636_v57 = vadd.f32 %v5065_v7, %v2613_v23 }
 0x1e8   :  { %v2614_v34 = vmul.f32 %v5057_v40, %v2589_v63  ;;  %3833 = vmatprep.mubr.bf16.mxu1 %v2660_v24  ;;  %v2652_v44 = vmax.f32 %v2636_v57, 0.0 }
 0x1ea   :  { %v2637_v41 = vadd.f32 %v5065_v7, %v2614_v34 }
 0x1ec   :  { %v2653_v2 = vmax.f32 %v2637_v41, 0.0 }
 0x1ee   :  { %v2661_v16 = vpack.c.bf16 %v2653_v2, %v2652_v44 }
 0x1f0   :  { %3834 = vmatmul.mubr.bf16.gmra.mxu1 %v2661_v16 }
 0x280   :  { %v3823_v9 = vpop.f32.mrf.mxu0 }
 0x281   :  { %v2776_v38 = vadd.f32 %v3823_v9, %v3268_v22 }
 0x282   :  { %v2767_v13 = vpop.f32.mrf.mxu0 }
 0x283   :  { %v2768_v8 = vadd.f32 %v3268_v22, %v2767_v13  ;;  %2834 = vmax.xlane.f32.xlu1 %v2776_v38 }
 0x284   :  { %v3824_v11 = vpop.f32.mrf.mxu0 }
 0x285   :  { %v2779_v19 = vadd.f32 %v3824_v11, %v3268_v22  ;;  %2830 = vmax.xlane.f32.xlu0 %v2768_v8 }
 0x286   :  { %v2770_v40 = vpop.f32.mrf.mxu0 }
 0x287   :  { %v2771_v50 = vadd.f32 %v3268_v22, %v2770_v40  ;;  %2836 = vmax.xlane.f32.xlu1 %v2779_v19 }
 0x289   :  { %2832 = vmax.xlane.f32.xlu0 %v2771_v50 }
 0x290   :  { %v3827_v7 = vpop.f32.mrf.mxu0 }
 0x291   :  { %v2792_v56 = vadd.f32 %v3827_v7, %v3268_v22 }
 0x292   :  { %v2783_v49 = vpop.f32.mrf.mxu0 }
 0x293   :  { %2842 = vmax.xlane.f32.xlu0 %v2792_v56  ;;  %v2784_v43 = vadd.f32 %v3268_v22, %v2783_v49 }
 0x294   :  { %v3828_v53 = vpop.f32.mrf.mxu0 }
 0x295   :  { %v2795_v10 = vadd.f32 %v3828_v53, %v3268_v22 }
 0x296   :  { %v2786_v47 = vpop.f32.mrf.mxu0 }
 0x297   :  { %2844 = vmax.xlane.f32.xlu1 %v2795_v10  ;;  %2838 = vmax.xlane.f32.xlu0 %v2784_v43  ;;  %v2787_v1 = vadd.f32 %v3268_v22, %v2786_v47 }
 0x29b   :  { %2840 = vmax.xlane.f32.xlu1 %v2787_v1 }
 0x2a0   :  { %v3831_v42 = vpop.f32.mrf.mxu1 }
 0x2a1   :  { %v5141_v60 = vadd.f32 %v3831_v42, %v3268_v22 }
 0x2a2   :  { %v2799_v15 = vpop.f32.mrf.mxu1 }
 0x2a3   :  { %2850 = vmax.xlane.f32.xlu0 %v5141_v60  ;;  %v5144_v25 = vadd.f32 %v3268_v22, %v2799_v15 }
 0x2a4   :  { %v3832_v46 = vpop.f32.mrf.mxu1 }
 0x2a5   :  { %v5146_v58 = vadd.f32 %v3832_v46, %v3268_v22 }
 0x2a6   :  { %v2802_v39 = vpop.f32.mrf.mxu1 }
 0x2a7   :  { %2852 = vmax.xlane.f32.xlu1 %v5146_v58  ;;  %2846 = vmax.xlane.f32.xlu0 %v5144_v25  ;;  %v5150_v36 = vadd.f32 %v3268_v22, %v2802_v39 }
 0x2ab   :  { %2848 = vmax.xlane.f32.xlu1 %v5150_v36 }
 0x2b0   :  { %v3835_v28 = vpop.f32.mrf.mxu1 }
 0x2b1   :  { %v5156_v32 = vadd.f32 %v3835_v28, %v3268_v22 }
 0x2b2   :  { %v2815_v0 = vpop.f32.mrf.mxu1 }
 0x2b3   :  { %v5153_v21 = vadd.f32 %v3268_v22, %v2815_v0 }
 0x2b4   :  { %v3836_v55 = vpop.f32.mrf.mxu1 }
 0x2b5   :  { %2854 = vmax.xlane.f32.xlu0 %v5153_v21  ;;  %v5162_v54 = vadd.f32 %v3836_v55, %v3268_v22 }
 0x2b6   :  { %v2818_v4 = vpop.f32.mrf.mxu1 }
 0x2b7   :  { %v5158_v17 = vadd.f32 %v3268_v22, %v2818_v4 }
 0x2b9   :  { %2856 = vmax.xlane.f32.xlu1 %v5158_v17  ;;  %2858 = vmax.xlane.f32.xlu0 %v5156_v32 }
 0x2bd   :  { %2860 = vmax.xlane.f32.xlu1 %v5162_v54 }
 0x30c   :  { %v2835_v18 = vpop.xlane.xlu1 %2834 }
 0x30d   :  { %v5165_v5 = vsub.f32 %v2776_v38, %v2835_v18 }
 0x30e   :  { %v2831_v33 = vpop.xlane.xlu0 %2830 }
 0x30f   :  { %v2882_v14 = vmul.f32 1.442695, %v5165_v5  ;;  %v5168_v48 = vsub.f32 %v2768_v8, %v2831_v33 }
 0x310   :  { %v2837_v6 = vpop.xlane.xlu1 %2836 }
 0x311   :  { %3989 = vpow2.f32 %v2882_v14  ;;  %v2878_v29 = vmul.f32 1.442695, %v5168_v48  ;;  %v5171_v59 = vsub.f32 %v2779_v19, %v2837_v6 }
 0x312   :  { %v2833_v62 = vpop.xlane.xlu0 %2832 }
 0x313   :  { %v2884_v31 = vmul.f32 1.442695, %v5171_v59  ;;  %v5174_v12 = vsub.f32 %v2771_v50, %v2833_v62  ;;  %3991 = vpow2.f32 %v2878_v29 }
 0x315   :  { %3993 = vpow2.f32 %v2884_v31  ;;  %v2880_v26 = vmul.f32 1.442695, %v5174_v12 }
 0x317   :  { %3995 = vpow2.f32 %v2880_v26 }
 0x31c   :  { %v2843_v20 = vpop.xlane.xlu0 %2842 }
 0x31d   :  { %v5177_v30 = vsub.f32 %v2792_v56, %v2843_v20 }
 0x31e   :  { %v3990_v35 = vpop.eup %3989 }
 0x31f   :  { %v2890_v45 = vmul.f32 1.442695, %v5177_v30  ;;  %2914 = vadd.xlane.f32.xlu0 %v3990_v35 }
 0x320   :  { %v2845_v37 = vpop.xlane.xlu1 %2844  ;;  %v2839_v61 = vpop.xlane.xlu0 %2838 }
 0x321   :  { %v3992_v51 = vpop.eup %3991  ;;  %3997 = vpow2.f32 %v2890_v45  ;;  %v5180_v23 = vsub.f32 %v2795_v10, %v2845_v37  ;;  %v5182_v27 = vsub.f32 %v2784_v43, %v2839_v61 }
 0x322   :  { %v3994_v3 = vpop.eup %3993 }
 0x323   :  { %v2892_v52 = vmul.f32 1.442695, %v5180_v23  ;;  %v2886_v63 = vmul.f32 1.442695, %v5182_v27  ;;  %2916 = vadd.xlane.f32.xlu1 %v3994_v3  ;;  %2910 = vadd.xlane.f32.xlu0 %v3992_v51 }
 0x324   :  { %v2841_v24 = vpop.xlane.xlu1 %2840  ;;  %v3996_v34 = vpop.eup %3995 }
 0x325   :  { %3999 = vpow2.f32 %v2892_v52  ;;  %v5186_v57 = vsub.f32 %v2787_v1, %v2841_v24 }
 0x326   :  { %4001 = vpow2.f32 %v2886_v63 }
 0x327   :  { %v2888_v41 = vmul.f32 1.442695, %v5186_v57  ;;  %2912 = vadd.xlane.f32.xlu1 %v3996_v34 }
 0x329   :  { %4003 = vpow2.f32 %v2888_v41 }
 0x32c   :  { %v2851_v44 = vpop.xlane.xlu0 %2850 }
 0x32d   :  { %v5190_v2 = vsub.f32 %v5141_v60, %v2851_v44 }
 0x32e   :  { %v3998_v16 = vpop.eup %3997 }
 0x32f   :  { %v2898_v22 = vmul.f32 1.442695, %v5190_v2  ;;  %2922 = vadd.xlane.f32.xlu0 %v3998_v16 }
 0x330   :  { %v2853_v9 = vpop.xlane.xlu1 %2852  ;;  %v2847_v38 = vpop.xlane.xlu0 %2846 }
 0x331   :  { %4005 = vpow2.f32 %v2898_v22  ;;  %v5194_v13 = vsub.f32 %v5146_v58, %v2853_v9  ;;  %v5197_v8 = vsub.f32 %v5144_v25, %v2847_v38 }
 0x332   :  { %v4000_v11 = vpop.eup %3999 }
 0x333   :  { %v4002_v19 = vpop.eup %4001  ;;  %v2900_v40 = vmul.f32 1.442695, %v5194_v13  ;;  %v2894_v50 = vmul.f32 1.442695, %v5197_v8  ;;  %2924 = vadd.xlane.f32.xlu1 %v4000_v11 }
 0x334   :  { %2918 = vadd.xlane.f32.xlu0 %v4002_v19  ;;  %v2849_v7 = vpop.xlane.xlu1 %2848 }
 0x335   :  { %4007 = vpow2.f32 %v2900_v40  ;;  %v5202_v56 = vsub.f32 %v5150_v36, %v2849_v7 }
 0x336   :  { %v4004_v49 = vpop.eup %4003  ;;  %4009 = vpow2.f32 %v2894_v50 }
 0x337   :  { %v2896_v53 = vmul.f32 1.442695, %v5202_v56  ;;  %2920 = vadd.xlane.f32.xlu1 %v4004_v49 }
 0x339   :  { %4011 = vpow2.f32 %v2896_v53 }
 0x33e   :  { %v4006_v43 = vpop.eup %4005  ;;  %v2855_v10 = vpop.xlane.xlu0 %2854 }
 0x33f   :  { %v5206_v47 = vsub.f32 %v5153_v21, %v2855_v10  ;;  %2930 = vadd.xlane.f32.xlu0 %v4006_v43 }
 0x341   :  { %v2902_v1 = vmul.f32 1.442695, %v5206_v47 }
 0x342   :  { %v4008_v42 = vpop.eup %4007  ;;  %v2857_v60 = vpop.xlane.xlu1 %2856 }
 0x343   :  { %v2859_v15 = vpop.xlane.xlu0 %2858  ;;  %v4010_v46 = vpop.eup %4009  ;;  %4013 = vpow2.f32 %v2902_v1  ;;  %v5210_v25 = vsub.f32 %v5158_v17, %v2857_v60  ;;  %2932 = vadd.xlane.f32.xlu1 %v4008_v42 }
 0x344   :  { %v5213_v58 = vsub.f32 %v5156_v32, %v2859_v15  ;;  %2926 = vadd.xlane.f32.xlu0 %v4010_v46 }
 0x345   :  { %v2904_v39 = vmul.f32 1.442695, %v5210_v25 }
 0x346   :  { %v2906_v36 = vmul.f32 1.442695, %v5213_v58  ;;  %v4012_v28 = vpop.eup %4011  ;;  %v2861_v0 = vpop.xlane.xlu1 %2860 }
 0x347   :  { %4015 = vpow2.f32 %v2904_v39  ;;  %v5218_v21 = vsub.f32 %v5162_v54, %v2861_v0  ;;  %2928 = vadd.xlane.f32.xlu1 %v4012_v28 }
 0x348   :  { %4017 = vpow2.f32 %v2906_v36 }
 0x349   :  { %v2908_v55 = vmul.f32 1.442695, %v5218_v21 }
 0x34b   :  { %4019 = vpow2.f32 %v2908_v55 }
 0x350   :  { %v4014_v4 = vpop.eup %4013 }
 0x351   :  { %2934 = vadd.xlane.f32.xlu0 %v4014_v4 }
 0x354   :  { %v4016_v32 = vpop.eup %4015 }
 0x355   :  { %v4018_v17 = vpop.eup %4017  ;;  %2936 = vadd.xlane.f32.xlu1 %v4016_v32 }
 0x356   :  { %2938 = vadd.xlane.f32.xlu0 %v4018_v17 }
 0x358   :  { %v4020_v18 = vpop.eup %4019 }
 0x359   :  { %2940 = vadd.xlane.f32.xlu1 %v4020_v18 }
 0x3a8   :  { %v2915_v33 = vpop.xlane.xlu0 %2914 }
 0x3a9   :  { %4021 = vlog2.f32 %v2915_v33 }
 0x3ac   :  { %v2917_v14 = vpop.xlane.xlu1 %2916  ;;  %v2911_v6 = vpop.xlane.xlu0 %2910 }
 0x3ad   :  { %4023 = vlog2.f32 %v2917_v14 }
 0x3ae   :  { %4025 = vlog2.f32 %v2911_v6 }
 0x3b0   :  { %v2913_v54 = vpop.xlane.xlu1 %2912 }
 0x3b1   :  { %4027 = vlog2.f32 %v2913_v54 }
 0x3b6   :  { %v4022_v29 = vpop.eup %4021 }
 0x3b7   :  { %v2947_v62 = vmul.f32 0.6931472, %v4022_v29 }
 0x3b8   :  { %v2923_v31 = vpop.xlane.xlu0 %2922 }
 0x3b9   :  { %v2976_v26 = vsub.f32 %v5165_v5, %v2947_v62  ;;  %4029 = vlog2.f32 %v2923_v31 }
 0x3ba   :  { %v4024_v20 = vpop.eup %4023 }
 0x3bb   :  { %v4026_v35 = vpop.eup %4025  ;;  %2992 = vst [vmem:[%s5291_s6 + $0x10] sm:$0xff] %v2976_v26  ;;  %v2949_v45 = vmul.f32 0.6931472, %v4024_v20 }
 0x3bc   :  { %v2943_v37 = vmul.f32 0.6931472, %v4026_v35  ;;  %v2925_v61 = vpop.xlane.xlu1 %2924 }
 0x3bd   :  { %v2977_v51 = vsub.f32 %v5171_v59, %v2949_v45  ;;  %4031 = vlog2.f32 %v2925_v61  ;;  %v2919_v3 = vpop.xlane.xlu0 %2918 }
 0x3be   :  { %v4028_v52 = vpop.eup %4027  ;;  %v2974_v63 = vsub.f32 %v5168_v48, %v2943_v37  ;;  %4033 = vlog2.f32 %v2919_v3 }
 0x3bf   :  { %2993 = vst [vmem:[%s5291_s6 + $0x18] sm:$0xff] %v2977_v51  ;;  %v2945_v5 = vmul.f32 0.6931472, %v4028_v52 }
 0x3c0   :  { %2990 = vst [vmem:[%s5291_s6] sm:$0xff] %v2974_v63  ;;  %v2921_v24 = vpop.xlane.xlu1 %2920 }
 0x3c1   :  { %v2975_v34 = vsub.f32 %v5174_v12, %v2945_v5  ;;  %4035 = vlog2.f32 %v2921_v24 }
 0x3c3   :  { %2991 = vst [vmem:[%s5291_s6 + $0x8] sm:$0xff] %v2975_v34 }
 0x3c6   :  { %v4030_v59 = vpop.eup %4029 }
 0x3c7   :  { %v2955_v48 = vmul.f32 0.6931472, %v4030_v59 }
 0x3c8   :  { %v2931_v41 = vpop.xlane.xlu0 %2930 }
 0x3c9   :  { %v2980_v44 = vsub.f32 %v5177_v30, %v2955_v48  ;;  %4037 = vlog2.f32 %v2931_v41 }
 0x3ca   :  { %v4032_v16 = vpop.eup %4031 }
 0x3cb   :  { %v4034_v22 = vpop.eup %4033  ;;  %2996 = vst [vmem:[%s5291_s6 + $0x30] sm:$0xff] %v2980_v44  ;;  %v2957_v9 = vmul.f32 0.6931472, %v4032_v16 }
 0x3cc   :  { %v2951_v38 = vmul.f32 0.6931472, %v4034_v22  ;;  %v2933_v12 = vpop.xlane.xlu1 %2932 }
 0x3cd   :  { %v2981_v11 = vsub.f32 %v5180_v23, %v2957_v9  ;;  %4039 = vlog2.f32 %v2933_v12  ;;  %v2927_v19 = vpop.xlane.xlu0 %2926 }
 0x3ce   :  { %v4036_v40 = vpop.eup %4035  ;;  %v2978_v50 = vsub.f32 %v5182_v27, %v2951_v38  ;;  %4041 = vlog2.f32 %v2927_v19 }
 0x3cf   :  { %2997 = vst [vmem:[%s5291_s6 + $0x38] sm:$0xff] %v2981_v11  ;;  %v2953_v30 = vmul.f32 0.6931472, %v4036_v40 }
 0x3d0   :  { %2994 = vst [vmem:[%s5291_s6 + $0x20] sm:$0xff] %v2978_v50  ;;  %v2929_v7 = vpop.xlane.xlu1 %2928 }
 0x3d1   :  { %v2979_v49 = vsub.f32 %v5186_v57, %v2953_v30  ;;  %4043 = vlog2.f32 %v2929_v7 }
 0x3d3   :  { %2995 = vst [vmem:[%s5291_s6 + $0x28] sm:$0xff] %v2979_v49 }
 0x3d6   :  { %v4038_v23 = vpop.eup %4037 }
 0x3d7   :  { %v2963_v27 = vmul.f32 0.6931472, %v4038_v23 }
 0x3d9   :  { %v2984_v53 = vsub.f32 %v5190_v2, %v2963_v27 }
 0x3da   :  { %v4040_v43 = vpop.eup %4039  ;;  %v2935_v10 = vpop.xlane.xlu0 %2934 }
 0x3db   :  { %v4042_v1 = vpop.eup %4041  ;;  %3000 = vst [vmem:[%s5291_s6 + $0x50] sm:$0xff] %v2984_v53  ;;  %v2965_v42 = vmul.f32 0.6931472, %v4040_v43  ;;  %4045 = vlog2.f32 %v2935_v10 }
 0x3dc   :  { %v2959_v60 = vmul.f32 0.6931472, %v4042_v1 }
 0x3dd   :  { %v2985_v57 = vsub.f32 %v5194_v13, %v2965_v42 }
 0x3de   :  { %v4044_v15 = vpop.eup %4043  ;;  %v2982_v46 = vsub.f32 %v5197_v8, %v2959_v60  ;;  %v2937_v39 = vpop.xlane.xlu1 %2936 }
 0x3df   :  { %3001 = vst [vmem:[%s5291_s6 + $0x58] sm:$0xff] %v2985_v57  ;;  %v2961_v2 = vmul.f32 0.6931472, %v4044_v15  ;;  %4047 = vlog2.f32 %v2937_v39  ;;  %v2939_v36 = vpop.xlane.xlu0 %2938 }
 0x3e0   :  { %2998 = vst [vmem:[%s5291_s6 + $0x40] sm:$0xff] %v2982_v46  ;;  %4049 = vlog2.f32 %v2939_v36 }
 0x3e1   :  { %v2983_v28 = vsub.f32 %v5202_v56, %v2961_v2 }
 0x3e2   :  { %v2941_v0 = vpop.xlane.xlu1 %2940 }
 0x3e3   :  { %2999 = vst [vmem:[%s5291_s6 + $0x48] sm:$0xff] %v2983_v28  ;;  %4051 = vlog2.f32 %v2941_v0 }
 0x3e8   :  { %v4046_v13 = vpop.eup %4045 }
 0x3e9   :  { %v2967_v8 = vmul.f32 0.6931472, %v4046_v13 }
 0x3eb   :  { %v2986_v55 = vsub.f32 %v5206_v47, %v2967_v8 }
 0x3ec   :  { %v4048_v4 = vpop.eup %4047 }
 0x3ed   :  { %v4050_v32 = vpop.eup %4049  ;;  %3002 = vst [vmem:[%s5291_s6 + $0x60] sm:$0xff] %v2986_v55  ;;  %v2969_v17 = vmul.f32 0.6931472, %v4048_v4 }
 0x3ee   :  { %v2971_v18 = vmul.f32 0.6931472, %v4050_v32 }
 0x3ef   :  { %v2987_v56 = vsub.f32 %v5210_v25, %v2969_v17 }
 0x3f0   :  { %v4052_v33 = vpop.eup %4051  ;;  %v2988_v14 = vsub.f32 %v5213_v58, %v2971_v18 }
 0x3f1   :  { %3003 = vst [vmem:[%s5291_s6 + $0x68] sm:$0xff] %v2987_v56  ;;  %v2973_v6 = vmul.f32 0.6931472, %v4052_v33 }
 0x3f2   :  { %3004 = vst [vmem:[%s5291_s6 + $0x70] sm:$0xff] %v2988_v14 }
 0x3f3   :  { %v2989_v47 = vsub.f32 %v5218_v21, %v2973_v6 }
 0x3f5   :  { %3005 = vst [vmem:[%s5291_s6 + $0x78] sm:$0xff] %v2989_v47 }

// kernel: dann_forward.6
= control target key start
LH: loop header
LB: loop body
LE: loop exit
PB: predicated region body
PF: predicated region fallthrough
CT: control target
= control target key end

     0   :  { %s5656_s1 = inlined_call_operand.vmem [shape: bf16[2048,128], index: 1, kind: input, shape index: {}]   ;;  %s5657_s0 = inlined_call_operand.vmem [shape: bf16[128,2048], index: 0, kind: input, shape index: {}]   ;;  %s5658_s4 = inlined_call_operand.vmem [shape: bf16[128,128], index: 4, kind: input, shape index: {}]   ;;  %s5659_s7 = inlined_call_operand.vmem [shape: bf16[128,128], index: 7, kind: input, shape index: {}]   ;;  %s5660_s2 = inlined_call_operand.vmem [shape: f32[1,128], index: 2, kind: input, shape index: {}]   ;;  %s5661_s3 = inlined_call_operand.vmem [shape: f32[1,128], index: 3, kind: input, shape index: {}]   ;;  %s5662_s5 = inlined_call_operand.vmem [shape: f32[1,128], index: 5, kind: input, shape index: {}]   ;;  %s5663_s6 = inlined_call_operand.vmem [shape: f32[1,128], index: 6, kind: input, shape index: {}]   ;;  %s5664_s8 = inlined_call_operand.vmem [shape: f32[1,128], index: 8, kind: input, shape index: {}]   ;;  %s5665_s9 = inlined_call_operand.vmem [shape: f32[128,128], index: 9, kind: output, shape index: {}]  }
   0x1   :  { %v4135_v0 = vld [vmem:[%s5656_s1 + $0x78] sm:$0xff]   ;;  %v4139_v4 = vld [vmem:[%s5656_s1 + $0x70] sm:$0xff]   ;;  %v4143_v8 = vld [vmem:[%s5656_s1 + $0x68] sm:$0xff]  }
   0x2   :  { %v4136_v1 = vld [vmem:[%s5656_s1 + $0xf8] sm:$0xff]   ;;  %3527 = vmatprep.subr.bf16.mxu0 %v4135_v0  ;;  %v4140_v5 = vld [vmem:[%s5656_s1 + $0xf0] sm:$0xff]   ;;  %v4144_v9 = vld [vmem:[%s5656_s1 + $0xe8] sm:$0xff]  }
   0x3   :  { %v4137_v2 = vld [vmem:[%s5656_s1 + $0x38] sm:$0xff]   ;;  %3591 = vmatprep.subr.bf16.mxu1 %v4136_v1  ;;  %v4141_v6 = vld [vmem:[%s5656_s1 + $0x30] sm:$0xff]   ;;  %v4145_v10 = vld [vmem:[%s5656_s1 + $0x28] sm:$0xff]  }
   0x4   :  { %v4138_v3 = vld [vmem:[%s5656_s1 + $0xb8] sm:$0xff]   ;;  %3528 = vmatpush3.bf16.msra.mxu0 %v4137_v2  ;;  %v4142_v7 = vld [vmem:[%s5656_s1 + $0xb0] sm:$0xff]   ;;  %v4146_v11 = vld [vmem:[%s5656_s1 + $0xa8] sm:$0xff]  }
   0x5   :  { %3592 = vmatpush3.bf16.msra.mxu1 %v4138_v3  ;;  %3529 = vmatprep.subr.bf16.mxu0 %v4139_v4  ;;  %v4147_v12 = vld [vmem:[%s5656_s1 + $0x60] sm:$0xff]   ;;  %v4151_v16 = vld [vmem:[%s5656_s1 + $0x58] sm:$0xff]   ;;  %v4155_v20 = vld [vmem:[%s5656_s1 + $0x50] sm:$0xff]  }
   0x6   :  { %3593 = vmatprep.subr.bf16.mxu1 %v4140_v5  ;;  %v4148_v13 = vld [vmem:[%s5656_s1 + $0xe0] sm:$0xff]   ;;  %v4152_v17 = vld [vmem:[%s5656_s1 + $0xd8] sm:$0xff]   ;;  %v4156_v21 = vld [vmem:[%s5656_s1 + $0xd0] sm:$0xff]  }
   0x7   :  { %v4149_v14 = vld [vmem:[%s5656_s1 + $0x20] sm:$0xff]   ;;  %v4153_v18 = vld [vmem:[%s5656_s1 + $0x18] sm:$0xff]   ;;  %v4157_v22 = vld [vmem:[%s5656_s1 + $0x10] sm:$0xff]  }
   0x8   :  { %3530 = vmatpush3.bf16.msra.mxu0 %v4141_v6  ;;  %v4150_v15 = vld [vmem:[%s5656_s1 + $0xa0] sm:$0xff]   ;;  %v4154_v19 = vld [vmem:[%s5656_s1 + $0x98] sm:$0xff]   ;;  %v4158_v23 = vld [vmem:[%s5656_s1 + $0x90] sm:$0xff]  }
   0x9   :  { %3594 = vmatpush3.bf16.msra.mxu1 %v4142_v7  ;;  %3531 = vmatprep.subr.bf16.mxu0 %v4143_v8  ;;  %v4159_v24 = vld [vmem:[%s5656_s1 + $0x48] sm:$0xff]   ;;  %v4163_v28 = vld [vmem:[%s5656_s1 + $0x40] sm:$0xff]   ;;  %v4167_v40 = vld [vmem:[%s5656_s1 + $0x178] sm:$0xff]  }
   0xa   :  { %3595 = vmatprep.subr.bf16.mxu1 %v4144_v9  ;;  %v4160_v25 = vld [vmem:[%s5656_s1 + $0xc8] sm:$0xff]   ;;  %v4164_v29 = vld [vmem:[%s5656_s1 + $0xc0] sm:$0xff]   ;;  %v4168_v41 = vld [vmem:[%s5656_s1 + $0x138] sm:$0xff]  }
   0xb   :  { %v4161_v26 = vld [vmem:[%s5656_s1 + $0x8] sm:$0xff]   ;;  %v4165_v30 = vld [vmem:[%s5656_s1] sm:$0xff]   ;;  %v4169_v42 = vld [vmem:[%s5656_s1 + $0x1f8] sm:$0xff]  }
   0xc   :  { %3532 = vmatpush3.bf16.msra.mxu0 %v4145_v10  ;;  %v4162_v27 = vld [vmem:[%s5656_s1 + $0x88] sm:$0xff]   ;;  %v4166_v31 = vld [vmem:[%s5656_s1 + $0x80] sm:$0xff]   ;;  %v4170_v43 = vld [vmem:[%s5656_s1 + $0x1b8] sm:$0xff]  }
   0xd   :  { %3596 = vmatpush3.bf16.msra.mxu1 %v4146_v11  ;;  %3533 = vmatprep.subr.bf16.mxu0 %v4147_v12  ;;  %v33_v32 = vld [vmem:[%s5657_s0] sm:$0xff]  ;;  %v34_v34 = vld [vmem:[%s5657_s0 + $0x8] sm:$0xff]  ;;  %v4171_v50 = vld [vmem:[%s5656_s1 + $0x170] sm:$0xff]  }
   0xe   :  { %3597 = vmatprep.subr.bf16.mxu1 %v4148_v13  ;;  %v41_v33 = vld [vmem:[%s5657_s0 + $0x40] sm:$0xff]  ;;  %v42_v37 = vld [vmem:[%s5657_s0 + $0x48] sm:$0xff]  ;;  %v4172_v52 = vld [vmem:[%s5656_s1 + $0x130] sm:$0xff]  }
   0xf   :  { %v3250_v35 = vcombine.low %v33_v32, %v41_v33  ;;  %v3251_v36 = vcombine.high %v33_v32, %v41_v33  ;;  %v3252_v38 = vcombine.low %v34_v34, %v42_v37  ;;  %v3253_v39 = vcombine.high %v34_v34, %v42_v37  ;;  %v49_v44 = vld [vmem:[%s5657_s0 + $0x80] sm:$0xff]  ;;  %v50_v47 = vld [vmem:[%s5657_s0 + $0x88] sm:$0xff]  ;;  %v4173_v54 = vld [vmem:[%s5656_s1 + $0x1f0] sm:$0xff]  }
  0x10   :  { %3534 = vmatpush3.bf16.msra.mxu0 %v4149_v14  ;;  %v57_v45 = vld [vmem:[%s5657_s0 + $0xc0] sm:$0xff]  ;;  %v58_v48 = vld [vmem:[%s5657_s0 + $0xc8] sm:$0xff]  ;;  %v4174_v55 = vld [vmem:[%s5656_s1 + $0x1b0] sm:$0xff]  }
  0x11   :  { %3598 = vmatpush3.bf16.msra.mxu1 %v4150_v15  ;;  %3535 = vmatprep.subr.bf16.mxu0 %v4151_v16  ;;  %v3267_v46 = vcombine.high %v49_v44, %v57_v45  ;;  %v3269_v49 = vcombine.high %v50_v47, %v58_v48  ;;  %v3266_v51 = vcombine.low %v49_v44, %v57_v45  ;;  %v65_v56 = vld [vmem:[%s5657_s0 + $0x100] sm:$0xff]  ;;  %v66_v58 = vld [vmem:[%s5657_s0 + $0x108] sm:$0xff]  ;;  %v4189_v32 = vld [vmem:[%s5656_s1 + $0x1d0] sm:$0xff]  }
  0x12   :  { %3599 = vmatprep.subr.bf16.mxu1 %v4152_v17  ;;  %1857 = vmatprep.mubr.bf16.mxu0 %v3251_v36  ;;  %v3268_v53 = vcombine.low %v50_v47, %v58_v48  ;;  %v73_v57 = vld [vmem:[%s5657_s0 + $0x140] sm:$0xff]  ;;  %v74_v59 = vld [vmem:[%s5657_s0 + $0x148] sm:$0xff]  ;;  %v4190_v33 = vld [vmem:[%s5656_s1 + $0x190] sm:$0xff]  }
  0x13   :  { %1954 = vmatprep.mubr.bf16.mxu1 %v3253_v39  ;;  %v3283_v60 = vcombine.high %v65_v56, %v73_v57  ;;  %v3285_v61 = vcombine.high %v66_v58, %v74_v59  ;;  %v4175_v62 = vld [vmem:[%s5656_s1 + $0x168] sm:$0xff]   ;;  %v3282_v2 = vcombine.low %v65_v56, %v73_v57  ;;  %v81_v3 = vld [vmem:[%s5657_s0 + $0x180] sm:$0xff]  ;;  %v3284_v6 = vcombine.low %v66_v58, %v74_v59  ;;  %v4199_v56 = vld [vmem:[%s5656_s1 + $0x278] sm:$0xff]  }
  0x14   :  { %3536 = vmatpush3.bf16.msra.mxu0 %v4153_v18  ;;  %v4176_v63 = vld [vmem:[%s5656_s1 + $0x128] sm:$0xff]   ;;  %v89_v4 = vld [vmem:[%s5657_s0 + $0x1c0] sm:$0xff]  ;;  %v4183_v18 = vld [vmem:[%s5656_s1 + $0x158] sm:$0xff]  }
  0x15   :  { %3600 = vmatpush3.bf16.msra.mxu1 %v4154_v19  ;;  %3537 = vmatprep.subr.bf16.mxu0 %v4155_v20  ;;  %v4177_v0 = vld [vmem:[%s5656_s1 + $0x1e8] sm:$0xff]   ;;  %v3299_v7 = vcombine.high %v81_v3, %v89_v4  ;;  %v4179_v10 = vld [vmem:[%s5656_s1 + $0x160] sm:$0xff]   ;;  %v3298_v19 = vcombine.low %v81_v3, %v89_v4  ;;  %v4184_v20 = vld [vmem:[%s5656_s1 + $0x118] sm:$0xff]  }
  0x16   :  { %3601 = vmatprep.subr.bf16.mxu1 %v4156_v21  ;;  %v4178_v1 = vld [vmem:[%s5656_s1 + $0x1a8] sm:$0xff]   ;;  %v4180_v11 = vld [vmem:[%s5656_s1 + $0x120] sm:$0xff]   ;;  %v4201_v58 = vld [vmem:[%s5656_s1 + $0x2f8] sm:$0xff]  }
  0x17   :  { %v82_v5 = vld [vmem:[%s5657_s0 + $0x188] sm:$0xff]  ;;  %v4181_v12 = vld [vmem:[%s5656_s1 + $0x1e0] sm:$0xff]   ;;  %v44_v3 = vld [vmem:[%s5657_s0 + $0x58] sm:$0xff] }
  0x18   :  { %3538 = vmatpush3.bf16.msra.mxu0 %v4157_v22  ;;  %v90_v8 = vld [vmem:[%s5657_s0 + $0x1c8] sm:$0xff]  ;;  %v4182_v13 = vld [vmem:[%s5656_s1 + $0x1a0] sm:$0xff]  }
  0x19   :  { %3602 = vmatpush3.bf16.msra.mxu1 %v4158_v23  ;;  %3539 = vmatprep.subr.bf16.mxu0 %v4159_v24  ;;  %v3301_v9 = vcombine.high %v82_v5, %v90_v8  ;;  %v97_v14 = vld [vmem:[%s5657_s0 + $0x200] sm:$0xff]  ;;  %v98_v16 = vld [vmem:[%s5657_s0 + $0x208] sm:$0xff]  ;;  %v3300_v21 = vcombine.low %v82_v5, %v90_v8  ;;  %v4185_v23 = vld [vmem:[%s5656_s1 + $0x1d8] sm:$0xff]  }
  0x1a   :  { %3603 = vmatprep.subr.bf16.mxu1 %v4160_v25  ;;  %v105_v15 = vld [vmem:[%s5657_s0 + $0x240] sm:$0xff]  ;;  %v106_v17 = vld [vmem:[%s5657_s0 + $0x248] sm:$0xff]  ;;  %v4186_v25 = vld [vmem:[%s5656_s1 + $0x198] sm:$0xff]  }
  0x1b   :  { %v3315_v22 = vcombine.high %v97_v14, %v105_v15  ;;  %v3317_v24 = vcombine.high %v98_v16, %v106_v17  ;;  %v3314_v34 = vcombine.low %v97_v14, %v105_v15  ;;  %v4192_v39 = vld [vmem:[%s5656_s1 + $0x108] sm:$0xff]   ;;  %v4196_v48 = vld [vmem:[%s5656_s1 + $0x100] sm:$0xff]   ;;  %v51_v8 = vld [vmem:[%s5657_s0 + $0x90] sm:$0xff] }
  0x1c   :  { %3540 = vmatpush3.bf16.msra.mxu0 %v4161_v26  ;;  %v113_v26 = vld [vmem:[%s5657_s0 + $0x280] sm:$0xff]  ;;  %v130_v44 = vld [vmem:[%s5657_s0 + $0x308] sm:$0xff]  ;;  %v4202_v15 = vld [vmem:[%s5656_s1 + $0x2b8] sm:$0xff]  }
  0x1d   :  { %3604 = vmatpush3.bf16.msra.mxu1 %v4162_v27  ;;  %3541 = vmatprep.subr.bf16.mxu0 %v4163_v28  ;;  %v121_v27 = vld [vmem:[%s5657_s0 + $0x2c0] sm:$0xff]  ;;  %v4187_v28 = vld [vmem:[%s5656_s1 + $0x150] sm:$0xff]   ;;  %v138_v45 = vld [vmem:[%s5657_s0 + $0x348] sm:$0xff] }
  0x1e   :  { %3605 = vmatprep.subr.bf16.mxu1 %v4164_v29  ;;  %v114_v29 = vld [vmem:[%s5657_s0 + $0x288] sm:$0xff]  ;;  %v3331_v36 = vcombine.high %v113_v26, %v121_v27  ;;  %v3330_v47 = vcombine.low %v113_v26, %v121_v27 }
  0x1f   :  { %v146_v57 = vld [vmem:[%s5657_s0 + $0x388] sm:$0xff] }
  0x20   :  { %3542 = vmatpush3.bf16.msra.mxu0 %v4165_v30  ;;  %v122_v30 = vld [vmem:[%s5657_s0 + $0x2c8] sm:$0xff] }
  0x21   :  { %3606 = vmatpush3.bf16.msra.mxu1 %v4166_v31  ;;  %3655 = vmatprep.subr.bf16.mxu0 %v4167_v40  ;;  %v4188_v31 = vld [vmem:[%s5656_s1 + $0x110] sm:$0xff]   ;;  %v3333_v37 = vcombine.high %v114_v29, %v122_v30  ;;  %v4193_v40 = vld [vmem:[%s5656_s1 + $0x1c8] sm:$0xff]  }
  0x22   :  { %3719 = vmatprep.subr.bf16.mxu1 %v4169_v42  ;;  %v137_v42 = vld [vmem:[%s5657_s0 + $0x340] sm:$0xff]  ;;  %v154_v59 = vld [vmem:[%s5657_s0 + $0x3c8] sm:$0xff] }
  0x23   :  { %1858 = vmatmul.mubr.bf16.vlgmr.msra.gmra.mxu0 %v3250_v35  ;;  %v3316_v35 = vcombine.low %v98_v16, %v106_v17  ;;  %v3364_v5 = vcombine.low %v146_v57, %v154_v59  ;;  %v4203_v17 = vld [vmem:[%s5656_s1 + $0x270] sm:$0xff]   ;;  %v4207_v26 = vld [vmem:[%s5656_s1 + $0x268] sm:$0xff]  }
  0x24   :  { %1955 = vmatmul.mubr.bf16.vlgmr.msra.gmra.mxu1 %v3252_v38  ;;  %3656 = vmatpush3.bf16.msra.mxu0 %v4168_v41  ;;  %v4191_v38 = vld [vmem:[%s5656_s1 + $0x148] sm:$0xff]   ;;  %v129_v41 = vld [vmem:[%s5657_s0 + $0x300] sm:$0xff] }
  0x25   :  { %3720 = vmatpush3.bf16.msra.mxu1 %v4170_v43  ;;  %1865 = vmatprep.mubr.bf16.mxu0 %v3267_v46  ;;  %v4194_v43 = vld [vmem:[%s5656_s1 + $0x188] sm:$0xff]   ;;  %v4195_v46 = vld [vmem:[%s5656_s1 + $0x140] sm:$0xff]  }
  0x26   :  { %1962 = vmatprep.mubr.bf16.mxu1 %v3269_v49  ;;  %3657 = vmatprep.subr.bf16.mxu0 %v4171_v50  ;;  %v3332_v49 = vcombine.low %v114_v29, %v122_v30  ;;  %v3347_v50 = vcombine.high %v129_v41, %v137_v42  ;;  %v4209_v27 = vld [vmem:[%s5656_s1 + $0x2e8] sm:$0xff]  }
  0x27   :  { %3721 = vmatprep.subr.bf16.mxu1 %v4173_v54  ;;  %v145_v54 = vld [vmem:[%s5657_s0 + $0x380] sm:$0xff] }
  0x28   :  { %3658 = vmatpush3.bf16.msra.mxu0 %v4172_v52  ;;  %v3349_v52 = vcombine.high %v130_v44, %v138_v45 }
  0x29   :  { %3722 = vmatpush3.bf16.msra.mxu1 %v4174_v55  ;;  %3659 = vmatprep.subr.bf16.mxu0 %v4175_v62  ;;  %v153_v55 = vld [vmem:[%s5657_s0 + $0x3c0] sm:$0xff] }
  0x2a   :  { %3723 = vmatprep.subr.bf16.mxu1 %v4177_v0  ;;  %v3363_v62 = vcombine.high %v145_v54, %v153_v55  ;;  %v35_v0 = vld [vmem:[%s5657_s0 + $0x10] sm:$0xff]  ;;  %v3362_v4 = vcombine.low %v145_v54, %v153_v55  ;;  %v100_v54 = vld [vmem:[%s5657_s0 + $0x218] sm:$0xff] }
  0x2b   :  { %1866 = vmatmul.mubr.bf16.gmra.mxu0 %v3266_v51  ;;  %v4197_v51 = vld [vmem:[%s5656_s1 + $0x1c0] sm:$0xff]   ;;  %v108_v55 = vld [vmem:[%s5657_s0 + $0x258] sm:$0xff] }
  0x2c   :  { %1963 = vmatmul.mubr.bf16.gmra.mxu1 %v3268_v53  ;;  %1873 = vmatprep.mubr.bf16.mxu0 %v3283_v60  ;;  %v4198_v53 = vld [vmem:[%s5656_s1 + $0x180] sm:$0xff]   ;;  %v3346_v60 = vcombine.low %v129_v41, %v137_v42  ;;  %v4215_v42 = vld [vmem:[%s5656_s1 + $0x258] sm:$0xff]  }
  0x2d   :  { %1970 = vmatprep.mubr.bf16.mxu1 %v3285_v61  ;;  %3660 = vmatpush3.bf16.msra.mxu0 %v4176_v63  ;;  %v3348_v61 = vcombine.low %v130_v44, %v138_v45  ;;  %v3365_v63 = vcombine.high %v146_v57, %v154_v59  ;;  %v4214_v41 = vld [vmem:[%s5656_s1 + $0x2a0] sm:$0xff]   ;;  %v4217_v44 = vld [vmem:[%s5656_s1 + $0x2d8] sm:$0xff]   ;;  %v4222_v57 = vld [vmem:[%s5656_s1 + $0x290] sm:$0xff]  }
  0x2e   :  { %3724 = vmatpush3.bf16.msra.mxu1 %v4178_v1  ;;  %3661 = vmatprep.subr.bf16.mxu0 %v4179_v10  ;;  %v43_v1 = vld [vmem:[%s5657_s0 + $0x50] sm:$0xff] }
  0x2f   :  { %3725 = vmatprep.subr.bf16.mxu1 %v4181_v12  ;;  %v3254_v10 = vcombine.low %v35_v0, %v43_v1  ;;  %v52_v12 = vld [vmem:[%s5657_s0 + $0x98] sm:$0xff] }
  0x31   :  { %3662 = vmatpush3.bf16.msra.mxu0 %v4180_v11  ;;  %v4200_v11 = vld [vmem:[%s5656_s1 + $0x238] sm:$0xff]  }
  0x32   :  { %3726 = vmatpush3.bf16.msra.mxu1 %v4182_v13  ;;  %3663 = vmatprep.subr.bf16.mxu0 %v4183_v18  ;;  %v60_v13 = vld [vmem:[%s5657_s0 + $0xd8] sm:$0xff] }
  0x33   :  { %1874 = vmatmul.mubr.bf16.gmra.mxu0 %v3282_v2  ;;  %3727 = vmatprep.subr.bf16.mxu1 %v4185_v23  ;;  %v36_v2 = vld [vmem:[%s5657_s0 + $0x18] sm:$0xff]  ;;  %v3273_v18 = vcombine.high %v52_v12, %v60_v13  ;;  %v75_v23 = vld [vmem:[%s5657_s0 + $0x150] sm:$0xff]  ;;  %v3272_v29 = vcombine.low %v52_v12, %v60_v13  ;;  %v3320_v13 = vcombine.low %v100_v54, %v108_v55 }
  0x34   :  { %1971 = vmatmul.mubr.bf16.gmra.mxu1 %v3284_v6  ;;  %1881 = vmatprep.mubr.bf16.mxu0 %v3299_v7  ;;  %v3255_v6 = vcombine.high %v35_v0, %v43_v1  ;;  %v3257_v7 = vcombine.high %v36_v2, %v44_v3  ;;  %v3256_v14 = vcombine.low %v36_v2, %v44_v3  ;;  %v4224_v0 = vld [vmem:[%s5656_s1 + $0x208] sm:$0xff]   ;;  %v4227_v2 = vld [vmem:[%s5656_s1 + $0x240] sm:$0xff]   ;;  %v115_v3 = vld [vmem:[%s5657_s0 + $0x290] sm:$0xff] }
  0x35   :  { %1978 = vmatprep.mubr.bf16.mxu1 %v3301_v9  ;;  %3664 = vmatpush3.bf16.msra.mxu0 %v4184_v20  ;;  %v59_v9 = vld [vmem:[%s5657_s0 + $0xd0] sm:$0xff]  ;;  %v4226_v1 = vld [vmem:[%s5656_s1 + $0x288] sm:$0xff]   ;;  %v4233_v12 = vld [vmem:[%s5656_s1 + $0x3f8] sm:$0xff]  }
  0x36   :  { %3728 = vmatpush3.bf16.msra.mxu1 %v4186_v25  ;;  %3665 = vmatprep.subr.bf16.mxu0 %v4187_v28  ;;  %v3271_v16 = vcombine.high %v51_v8, %v59_v9  ;;  %v4205_v20 = vld [vmem:[%s5656_s1 + $0x2f0] sm:$0xff]   ;;  %v76_v25 = vld [vmem:[%s5657_s0 + $0x158] sm:$0xff]  ;;  %v3270_v28 = vcombine.low %v51_v8, %v59_v9  ;;  %v4228_v8 = vld [vmem:[%s5656_s1 + $0x200] sm:$0xff]  }
  0x37   :  { %3729 = vmatprep.subr.bf16.mxu1 %v4189_v32  ;;  %v4208_v32 = vld [vmem:[%s5656_s1 + $0x228] sm:$0xff]   ;;  %v4230_v9 = vld [vmem:[%s5656_s1 + $0x280] sm:$0xff]  }
  0x39   :  { %3666 = vmatpush3.bf16.msra.mxu0 %v4188_v31 }
  0x3a   :  { %3730 = vmatpush3.bf16.msra.mxu1 %v4190_v33  ;;  %3667 = vmatprep.subr.bf16.mxu0 %v4191_v38  ;;  %v4210_v33 = vld [vmem:[%s5656_s1 + $0x2a8] sm:$0xff]   ;;  %v84_v38 = vld [vmem:[%s5657_s0 + $0x198] sm:$0xff] }
  0x3b   :  { %1882 = vmatmul.mubr.bf16.gmra.mxu0 %v3298_v19  ;;  %3731 = vmatprep.subr.bf16.mxu1 %v4193_v40  ;;  %v4204_v19 = vld [vmem:[%s5656_s1 + $0x230] sm:$0xff]   ;;  %v4212_v40 = vld [vmem:[%s5656_s1 + $0x220] sm:$0xff]  }
  0x3c   :  { %1979 = vmatmul.mubr.bf16.gmra.mxu1 %v3300_v21  ;;  %1889 = vmatprep.mubr.bf16.mxu0 %v3315_v22  ;;  %v4206_v21 = vld [vmem:[%s5656_s1 + $0x2b0] sm:$0xff]  }
  0x3d   :  { %1986 = vmatprep.mubr.bf16.mxu1 %v3317_v24  ;;  %3668 = vmatpush3.bf16.msra.mxu0 %v4192_v39  ;;  %v67_v22 = vld [vmem:[%s5657_s0 + $0x110] sm:$0xff]  ;;  %v68_v24 = vld [vmem:[%s5657_s0 + $0x118] sm:$0xff] }
  0x3e   :  { %3732 = vmatpush3.bf16.msra.mxu1 %v4194_v43  ;;  %3669 = vmatprep.subr.bf16.mxu0 %v4195_v46  ;;  %v3287_v30 = vcombine.high %v67_v22, %v75_v23  ;;  %v3289_v31 = vcombine.high %v68_v24, %v76_v25  ;;  %v92_v39 = vld [vmem:[%s5657_s0 + $0x1d8] sm:$0xff]  ;;  %v3286_v43 = vcombine.low %v67_v22, %v75_v23 }
  0x3f   :  { %3733 = vmatprep.subr.bf16.mxu1 %v4197_v51  ;;  %v3288_v45 = vcombine.low %v68_v24, %v76_v25  ;;  %v99_v51 = vld [vmem:[%s5657_s0 + $0x210] sm:$0xff] }
  0x40   :  { %v147_v24 = vld [vmem:[%s5657_s0 + $0x390] sm:$0xff] }
  0x41   :  { %3670 = vmatpush3.bf16.msra.mxu0 %v4196_v48  ;;  %v3305_v48 = vcombine.high %v84_v38, %v92_v39  ;;  %v155_v25 = vld [vmem:[%s5657_s0 + $0x3d0] sm:$0xff] }
  0x42   :  { %3734 = vmatpush3.bf16.msra.mxu1 %v4198_v53  ;;  %3783 = vmatprep.subr.bf16.mxu0 %v4199_v56  ;;  %v107_v53 = vld [vmem:[%s5657_s0 + $0x250] sm:$0xff] }
  0x43   :  { %1890 = vmatmul.mubr.bf16.gmra.mxu0 %v3314_v34  ;;  %3847 = vmatprep.subr.bf16.mxu1 %v4201_v58  ;;  %v4211_v34 = vld [vmem:[%s5656_s1 + $0x260] sm:$0xff]   ;;  %v4220_v56 = vld [vmem:[%s5656_s1 + $0x210] sm:$0xff]   ;;  %v4223_v58 = vld [vmem:[%s5656_s1 + $0x248] sm:$0xff]  }
  0x44   :  { %1987 = vmatmul.mubr.bf16.gmra.mxu1 %v3316_v35  ;;  %1897 = vmatprep.mubr.bf16.mxu0 %v3331_v36  ;;  %v83_v35 = vld [vmem:[%s5657_s0 + $0x190] sm:$0xff] }
  0x45   :  { %1994 = vmatprep.mubr.bf16.mxu1 %v3333_v37  ;;  %v91_v36 = vld [vmem:[%s5657_s0 + $0x1d0] sm:$0xff]  ;;  %v4213_v37 = vld [vmem:[%s5656_s1 + $0x2e0] sm:$0xff]  }
  0x46   :  { %v3303_v46 = vcombine.high %v83_v35, %v91_v36  ;;  %v3302_v59 = vcombine.low %v83_v35, %v91_v36  ;;  %v46_v35 = vld [vmem:[%s5657_s0 + $0x68] sm:$0xff]  ;;  %v3366_v36 = vcombine.low %v147_v24, %v155_v25 }
  0x4b   :  { %1898 = vmatmul.mubr.bf16.gmra.mxu0 %v3330_v47  ;;  %v4216_v47 = vld [vmem:[%s5656_s1 + $0x218] sm:$0xff]  }
  0x4c   :  { %1995 = vmatmul.mubr.bf16.gmra.mxu1 %v3332_v49  ;;  %1905 = vmatprep.mubr.bf16.mxu0 %v3347_v50  ;;  %v4218_v49 = vld [vmem:[%s5656_s1 + $0x298] sm:$0xff]   ;;  %v4219_v50 = vld [vmem:[%s5656_s1 + $0x250] sm:$0xff]  }
  0x4d   :  { %2002 = vmatprep.mubr.bf16.mxu1 %v3349_v52  ;;  %v4221_v52 = vld [vmem:[%s5656_s1 + $0x2d0] sm:$0xff]  }
  0x53   :  { %1906 = vmatmul.mubr.bf16.gmra.mxu0 %v3346_v60  ;;  %v4225_v60 = vld [vmem:[%s5656_s1 + $0x2c8] sm:$0xff]  }
  0x54   :  { %2003 = vmatmul.mubr.bf16.gmra.mxu1 %v3348_v61  ;;  %1913 = vmatprep.mubr.bf16.mxu0 %v3363_v62  ;;  %v3304_v61 = vcombine.low %v84_v38, %v92_v39  ;;  %v3319_v62 = vcombine.high %v99_v51, %v107_v53 }
  0x55   :  { %2010 = vmatprep.mubr.bf16.mxu1 %v3365_v63  ;;  %v3321_v63 = vcombine.high %v100_v54, %v108_v55  ;;  %v69_v54 = vld [vmem:[%s5657_s0 + $0x120] sm:$0xff] }
  0x56   :  { %v77_v55 = vld [vmem:[%s5657_s0 + $0x160] sm:$0xff] }
  0x5b   :  { %1914 = vmatmul.mubr.bf16.gmra.mxu0 %v3362_v4  ;;  %v123_v4 = vld [vmem:[%s5657_s0 + $0x2d0] sm:$0xff] }
  0x5c   :  { %2011 = vmatmul.mubr.bf16.gmra.mxu1 %v3364_v5  ;;  %2051 = vmatprep.mubr.bf16.mxu0 %v3255_v6  ;;  %v4229_v5 = vld [vmem:[%s5656_s1 + $0x2c0] sm:$0xff]   ;;  %v116_v6 = vld [vmem:[%s5657_s0 + $0x298] sm:$0xff] }
  0x5d   :  { %2148 = vmatprep.mubr.bf16.mxu1 %v3257_v7  ;;  %v124_v7 = vld [vmem:[%s5657_s0 + $0x2d8] sm:$0xff] }
  0x63   :  { %2052 = vmatmul.mubr.bf16.vlgmr.msra.gmra.mxu0 %v3254_v10  ;;  %v4231_v10 = vld [vmem:[%s5656_s1 + $0x378] sm:$0xff]  }
  0x64   :  { %2149 = vmatmul.mubr.bf16.vlgmr.msra.gmra.mxu1 %v3256_v14  ;;  %3784 = vmatpush3.bf16.msra.mxu0 %v4200_v11  ;;  %v3318_v11 = vcombine.low %v99_v51, %v107_v53  ;;  %v3335_v14 = vcombine.high %v115_v3, %v123_v4  ;;  %v4237_v51 = vld [vmem:[%s5656_s1 + $0x3f0] sm:$0xff]  }
  0x65   :  { %3848 = vmatpush3.bf16.msra.mxu1 %v4202_v15  ;;  %2059 = vmatprep.mubr.bf16.mxu0 %v3271_v16  ;;  %v3337_v15 = vcombine.high %v116_v6, %v124_v7  ;;  %v131_v16 = vld [vmem:[%s5657_s0 + $0x310] sm:$0xff] }
  0x66   :  { %2156 = vmatprep.mubr.bf16.mxu1 %v3273_v18  ;;  %3785 = vmatprep.subr.bf16.mxu0 %v4203_v17  ;;  %v139_v17 = vld [vmem:[%s5657_s0 + $0x350] sm:$0xff]  ;;  %v132_v18 = vld [vmem:[%s5657_s0 + $0x318] sm:$0xff] }
  0x67   :  { %3849 = vmatprep.subr.bf16.mxu1 %v4205_v20  ;;  %v3334_v20 = vcombine.low %v115_v3, %v123_v4  ;;  %v3351_v22 = vcombine.high %v131_v16, %v139_v17  ;;  %v4238_v53 = vld [vmem:[%s5656_s1 + $0x3b0] sm:$0xff]   ;;  %v4245_v3 = vld [vmem:[%s5656_s1 + $0x3e0] sm:$0xff]  }
  0x68   :  { %3786 = vmatpush3.bf16.msra.mxu0 %v4204_v19  ;;  %v140_v19 = vld [vmem:[%s5657_s0 + $0x358] sm:$0xff]  ;;  %v85_v4 = vld [vmem:[%s5657_s0 + $0x1a0] sm:$0xff] }
  0x69   :  { %3850 = vmatpush3.bf16.msra.mxu1 %v4206_v21  ;;  %3787 = vmatprep.subr.bf16.mxu0 %v4207_v26  ;;  %v3336_v21 = vcombine.low %v116_v6, %v124_v7  ;;  %v3353_v23 = vcombine.high %v132_v18, %v140_v19  ;;  %v148_v26 = vld [vmem:[%s5657_s0 + $0x398] sm:$0xff]  ;;  %v86_v6 = vld [vmem:[%s5657_s0 + $0x1a8] sm:$0xff]  ;;  %v4244_v7 = vld [vmem:[%s5656_s1 + $0x320] sm:$0xff]  }
  0x6a   :  { %3851 = vmatprep.subr.bf16.mxu1 %v4209_v27  ;;  %v156_v27 = vld [vmem:[%s5657_s0 + $0x3d8] sm:$0xff] }
  0x6b   :  { %2060 = vmatmul.mubr.bf16.gmra.mxu0 %v3270_v28  ;;  %v3350_v28 = vcombine.low %v131_v16, %v139_v17  ;;  %v4248_v16 = vld [vmem:[%s5656_s1 + $0x318] sm:$0xff]  }
  0x6c   :  { %2157 = vmatmul.mubr.bf16.gmra.mxu1 %v3272_v29  ;;  %2067 = vmatprep.mubr.bf16.mxu0 %v3287_v30  ;;  %v3352_v29 = vcombine.low %v132_v18, %v140_v19  ;;  %v3367_v30 = vcombine.high %v147_v24, %v155_v25  ;;  %v4250_v17 = vld [vmem:[%s5656_s1 + $0x398] sm:$0xff]   ;;  %v4251_v18 = vld [vmem:[%s5656_s1 + $0x350] sm:$0xff]   ;;  %v110_v24 = vld [vmem:[%s5657_s0 + $0x268] sm:$0xff] }
  0x6d   :  { %2164 = vmatprep.mubr.bf16.mxu1 %v3289_v31  ;;  %3788 = vmatpush3.bf16.msra.mxu0 %v4208_v32  ;;  %v3369_v31 = vcombine.high %v148_v26, %v156_v27  ;;  %v37_v32 = vld [vmem:[%s5657_s0 + $0x20] sm:$0xff]  ;;  %v4253_v19 = vld [vmem:[%s5656_s1 + $0x3d0] sm:$0xff]  }
  0x6e   :  { %3852 = vmatpush3.bf16.msra.mxu1 %v4210_v33  ;;  %3789 = vmatprep.subr.bf16.mxu0 %v4211_v34  ;;  %v45_v33 = vld [vmem:[%s5657_s0 + $0x60] sm:$0xff]  ;;  %v38_v34 = vld [vmem:[%s5657_s0 + $0x28] sm:$0xff]  ;;  %v4254_v25 = vld [vmem:[%s5656_s1 + $0x390] sm:$0xff]  }
  0x6f   :  { %3853 = vmatprep.subr.bf16.mxu1 %v4213_v37  ;;  %v3368_v37 = vcombine.low %v148_v26, %v156_v27  ;;  %v3259_v38 = vcombine.high %v37_v32, %v45_v33  ;;  %v3261_v39 = vcombine.high %v38_v34, %v46_v35  ;;  %v4255_v26 = vld [vmem:[%s5656_s1 + $0x348] sm:$0xff]  }
  0x71   :  { %3790 = vmatpush3.bf16.msra.mxu0 %v4212_v40  ;;  %v53_v40 = vld [vmem:[%s5657_s0 + $0xa0] sm:$0xff] }
  0x72   :  { %3854 = vmatpush3.bf16.msra.mxu1 %v4214_v41  ;;  %3791 = vmatprep.subr.bf16.mxu0 %v4215_v42  ;;  %v61_v41 = vld [vmem:[%s5657_s0 + $0xe0] sm:$0xff]  ;;  %v3258_v42 = vcombine.low %v37_v32, %v45_v33  ;;  %v4256_v32 = vld [vmem:[%s5656_s1 + $0x308] sm:$0xff]  }
  0x73   :  { %2068 = vmatmul.mubr.bf16.gmra.mxu0 %v3286_v43  ;;  %3855 = vmatprep.subr.bf16.mxu1 %v4217_v44  ;;  %v54_v43 = vld [vmem:[%s5657_s0 + $0xa8] sm:$0xff] }
  0x74   :  { %2165 = vmatmul.mubr.bf16.gmra.mxu1 %v3288_v45  ;;  %2075 = vmatprep.mubr.bf16.mxu0 %v3303_v46  ;;  %v62_v44 = vld [vmem:[%s5657_s0 + $0xe8] sm:$0xff]  ;;  %v3260_v45 = vcombine.low %v38_v34, %v46_v35  ;;  %v4232_v46 = vld [vmem:[%s5656_s1 + $0x338] sm:$0xff]   ;;  %v4259_v34 = vld [vmem:[%s5656_s1 + $0x340] sm:$0xff]  }
  0x75   :  { %2172 = vmatprep.mubr.bf16.mxu1 %v3305_v48  ;;  %3792 = vmatpush3.bf16.msra.mxu0 %v4216_v47  ;;  %v4234_v47 = vld [vmem:[%s5656_s1 + $0x3b8] sm:$0xff]   ;;  %v3275_v48 = vcombine.high %v53_v40, %v61_v41  ;;  %v4258_v33 = vld [vmem:[%s5656_s1 + $0x388] sm:$0xff]   ;;  %v4261_v35 = vld [vmem:[%s5656_s1 + $0x3c0] sm:$0xff]  }
  0x76   :  { %3856 = vmatpush3.bf16.msra.mxu1 %v4218_v49  ;;  %3793 = vmatprep.subr.bf16.mxu0 %v4219_v50  ;;  %v3277_v49 = vcombine.high %v54_v43, %v62_v44  ;;  %v4235_v50 = vld [vmem:[%s5656_s1 + $0x370] sm:$0xff]  }
  0x77   :  { %3857 = vmatprep.subr.bf16.mxu1 %v4221_v52  ;;  %v4236_v52 = vld [vmem:[%s5656_s1 + $0x330] sm:$0xff]  }
  0x79   :  { %3794 = vmatpush3.bf16.msra.mxu0 %v4220_v56  ;;  %v4239_v56 = vld [vmem:[%s5656_s1 + $0x368] sm:$0xff]  }
  0x7a   :  { %3858 = vmatpush3.bf16.msra.mxu1 %v4222_v57  ;;  %3795 = vmatprep.subr.bf16.mxu0 %v4223_v58  ;;  %v70_v57 = vld [vmem:[%s5657_s0 + $0x128] sm:$0xff] }
  0x7b   :  { %2076 = vmatmul.mubr.bf16.gmra.mxu0 %v3302_v59  ;;  %3859 = vmatprep.subr.bf16.mxu1 %v4225_v60  ;;  %v78_v58 = vld [vmem:[%s5657_s0 + $0x168] sm:$0xff]  ;;  %v3274_v60 = vcombine.low %v53_v40, %v61_v41  ;;  %v4262_v41 = vld [vmem:[%s5656_s1 + $0x380] sm:$0xff]  }
  0x7c   :  { %2173 = vmatmul.mubr.bf16.gmra.mxu1 %v3304_v61  ;;  %2083 = vmatprep.mubr.bf16.mxu0 %v3319_v62  ;;  %v4241_v59 = vld [vmem:[%s5656_s1 + $0x3e8] sm:$0xff]   ;;  %v3276_v61 = vcombine.low %v54_v43, %v62_v44  ;;  %v3291_v62 = vcombine.high %v69_v54, %v77_v55 }
  0x7d   :  { %2180 = vmatprep.mubr.bf16.mxu1 %v3321_v63  ;;  %3796 = vmatpush3.bf16.msra.mxu0 %v4224_v0  ;;  %v3293_v63 = vcombine.high %v70_v57, %v78_v58  ;;  %v4240_v0 = vld [vmem:[%s5656_s1 + $0x328] sm:$0xff]  }
  0x7e   :  { %3860 = vmatpush3.bf16.msra.mxu1 %v4226_v1  ;;  %3797 = vmatprep.subr.bf16.mxu0 %v4227_v2  ;;  %v4242_v1 = vld [vmem:[%s5656_s1 + $0x3a8] sm:$0xff]   ;;  %v4243_v2 = vld [vmem:[%s5656_s1 + $0x360] sm:$0xff]  }
  0x7f   :  { %3861 = vmatprep.subr.bf16.mxu1 %v4229_v5  ;;  %v93_v5 = vld [vmem:[%s5657_s0 + $0x1e0] sm:$0xff]  ;;  %v126_v40 = vld [vmem:[%s5657_s0 + $0x2e8] sm:$0xff] }
  0x80   :  { %v3306_v27 = vcombine.low %v85_v4, %v93_v5 }
  0x81   :  { %3798 = vmatpush3.bf16.msra.mxu0 %v4228_v8  ;;  %v94_v8 = vld [vmem:[%s5657_s0 + $0x1e8] sm:$0xff] }
  0x82   :  { %3862 = vmatpush3.bf16.msra.mxu1 %v4230_v9  ;;  %3911 = vmatprep.subr.bf16.mxu0 %v4231_v10  ;;  %v4246_v9 = vld [vmem:[%s5656_s1 + $0x3a0] sm:$0xff]   ;;  %v4247_v10 = vld [vmem:[%s5656_s1 + $0x358] sm:$0xff]  }
  0x83   :  { %2084 = vmatmul.mubr.bf16.gmra.mxu0 %v3318_v11  ;;  %3975 = vmatprep.subr.bf16.mxu1 %v4233_v12  ;;  %v3290_v11 = vcombine.low %v69_v54, %v77_v55  ;;  %v4249_v12 = vld [vmem:[%s5656_s1 + $0x3d8] sm:$0xff]   ;;  %v149_v54 = vld [vmem:[%s5657_s0 + $0x3a0] sm:$0xff] }
  0x84   :  { %2181 = vmatmul.mubr.bf16.gmra.mxu1 %v3320_v13  ;;  %2091 = vmatprep.mubr.bf16.mxu0 %v3335_v14  ;;  %v3292_v13 = vcombine.low %v70_v57, %v78_v58  ;;  %v3307_v14 = vcombine.high %v85_v4, %v93_v5  ;;  %v157_v55 = vld [vmem:[%s5657_s0 + $0x3e0] sm:$0xff]  ;;  %v158_v57 = vld [vmem:[%s5657_s0 + $0x3e8] sm:$0xff] }
  0x85   :  { %2188 = vmatprep.mubr.bf16.mxu1 %v3337_v15  ;;  %v3309_v15 = vcombine.high %v86_v6, %v94_v8 }
  0x8b   :  { %2092 = vmatmul.mubr.bf16.gmra.mxu0 %v3334_v20  ;;  %v101_v20 = vld [vmem:[%s5657_s0 + $0x220] sm:$0xff] }
  0x8c   :  { %2189 = vmatmul.mubr.bf16.gmra.mxu1 %v3336_v21  ;;  %2099 = vmatprep.mubr.bf16.mxu0 %v3351_v22  ;;  %v109_v21 = vld [vmem:[%s5657_s0 + $0x260] sm:$0xff]  ;;  %v102_v22 = vld [vmem:[%s5657_s0 + $0x228] sm:$0xff] }
  0x8d   :  { %2196 = vmatprep.mubr.bf16.mxu1 %v3353_v23  ;;  %v4252_v23 = vld [vmem:[%s5656_s1 + $0x310] sm:$0xff]   ;;  %v3324_v43 = vcombine.low %v102_v22, %v110_v24 }
  0x93   :  { %2100 = vmatmul.mubr.bf16.gmra.mxu0 %v3350_v28  ;;  %v4257_v28 = vld [vmem:[%s5656_s1 + $0x3c8] sm:$0xff]  }
  0x94   :  { %2197 = vmatmul.mubr.bf16.gmra.mxu1 %v3352_v29  ;;  %2107 = vmatprep.mubr.bf16.mxu0 %v3367_v30  ;;  %v3308_v29 = vcombine.low %v86_v6, %v94_v8  ;;  %v3323_v30 = vcombine.high %v101_v20, %v109_v21  ;;  %v55_v6 = vld [vmem:[%s5657_s0 + $0xb0] sm:$0xff]  ;;  %v56_v8 = vld [vmem:[%s5657_s0 + $0xb8] sm:$0xff] }
  0x95   :  { %2204 = vmatprep.mubr.bf16.mxu1 %v3369_v31  ;;  %v3325_v31 = vcombine.high %v102_v22, %v110_v24  ;;  %v80_v22 = vld [vmem:[%s5657_s0 + $0x178] sm:$0xff] }
  0x9b   :  { %2108 = vmatmul.mubr.bf16.gmra.mxu0 %v3366_v36  ;;  %v117_v36 = vld [vmem:[%s5657_s0 + $0x2a0] sm:$0xff] }
  0x9c   :  { %2205 = vmatmul.mubr.bf16.gmra.mxu1 %v3368_v37  ;;  %2245 = vmatprep.mubr.bf16.mxu0 %v3259_v38  ;;  %v125_v37 = vld [vmem:[%s5657_s0 + $0x2e0] sm:$0xff] }
  0x9d   :  { %2342 = vmatprep.mubr.bf16.mxu1 %v3261_v39  ;;  %v4260_v38 = vld [vmem:[%s5656_s1 + $0x300] sm:$0xff]   ;;  %v118_v39 = vld [vmem:[%s5657_s0 + $0x2a8] sm:$0xff]  ;;  %v3339_v44 = vcombine.high %v117_v36, %v125_v37 }
  0xa3   :  { %2246 = vmatmul.mubr.bf16.vlgmr.msra.gmra.mxu0 %v3258_v42  ;;  %v3322_v42 = vcombine.low %v101_v20, %v109_v21  ;;  %v72_v21 = vld [vmem:[%s5657_s0 + $0x138] sm:$0xff] }
  0xa4   :  { %2343 = vmatmul.mubr.bf16.vlgmr.msra.gmra.mxu1 %v3260_v45  ;;  %3912 = vmatpush3.bf16.msra.mxu0 %v4232_v46  ;;  %v3341_v45 = vcombine.high %v118_v39, %v126_v40  ;;  %v133_v46 = vld [vmem:[%s5657_s0 + $0x320] sm:$0xff] }
  0xa5   :  { %3976 = vmatpush3.bf16.msra.mxu1 %v4234_v47  ;;  %2253 = vmatprep.mubr.bf16.mxu0 %v3275_v48  ;;  %v141_v47 = vld [vmem:[%s5657_s0 + $0x360] sm:$0xff]  ;;  %v134_v48 = vld [vmem:[%s5657_s0 + $0x328] sm:$0xff] }
  0xa6   :  { %2350 = vmatprep.mubr.bf16.mxu1 %v3277_v49  ;;  %3913 = vmatprep.subr.bf16.mxu0 %v4235_v50  ;;  %v142_v49 = vld [vmem:[%s5657_s0 + $0x368] sm:$0xff]  ;;  %v3338_v50 = vcombine.low %v117_v36, %v125_v37  ;;  %v3354_v58 = vcombine.low %v133_v46, %v141_v47 }
  0xa7   :  { %3977 = vmatprep.subr.bf16.mxu1 %v4237_v51  ;;  %v3340_v51 = vcombine.low %v118_v39, %v126_v40  ;;  %v87_v39 = vld [vmem:[%s5657_s0 + $0x1b0] sm:$0xff] }
  0xa8   :  { %3914 = vmatpush3.bf16.msra.mxu0 %v4236_v52  ;;  %v3355_v52 = vcombine.high %v133_v46, %v141_v47  ;;  %v95_v40 = vld [vmem:[%s5657_s0 + $0x1f0] sm:$0xff] }
  0xa9   :  { %3978 = vmatpush3.bf16.msra.mxu1 %v4238_v53  ;;  %3915 = vmatprep.subr.bf16.mxu0 %v4239_v56  ;;  %v3357_v53 = vcombine.high %v134_v48, %v142_v49  ;;  %v150_v56 = vld [vmem:[%s5657_s0 + $0x3a8] sm:$0xff] }
  0xaa   :  { %3979 = vmatprep.subr.bf16.mxu1 %v4241_v59  ;;  %v3356_v59 = vcombine.low %v134_v48, %v142_v49  ;;  %v3296_v49 = vcombine.low %v72_v21, %v80_v22 }
  0xab   :  { %2254 = vmatmul.mubr.bf16.gmra.mxu0 %v3274_v60  ;;  %v3371_v60 = vcombine.high %v149_v54, %v157_v55 }
  0xac   :  { %2351 = vmatmul.mubr.bf16.gmra.mxu1 %v3276_v61  ;;  %2261 = vmatprep.mubr.bf16.mxu0 %v3291_v62  ;;  %v3373_v61 = vcombine.high %v150_v56, %v158_v57  ;;  %v39_v62 = vld [vmem:[%s5657_s0 + $0x30] sm:$0xff] }
  0xad   :  { %2358 = vmatprep.mubr.bf16.mxu1 %v3293_v63  ;;  %3916 = vmatpush3.bf16.msra.mxu0 %v4240_v0  ;;  %v47_v63 = vld [vmem:[%s5657_s0 + $0x70] sm:$0xff]  ;;  %v40_v0 = vld [vmem:[%s5657_s0 + $0x38] sm:$0xff] }
  0xae   :  { %3980 = vmatpush3.bf16.msra.mxu1 %v4242_v1  ;;  %3917 = vmatprep.subr.bf16.mxu0 %v4243_v2  ;;  %v48_v1 = vld [vmem:[%s5657_s0 + $0x78] sm:$0xff]  ;;  %v3370_v2 = vcombine.low %v149_v54, %v157_v55  ;;  %v3263_v4 = vcombine.high %v39_v62, %v47_v63 }
  0xaf   :  { %3981 = vmatprep.subr.bf16.mxu1 %v4245_v3  ;;  %v3372_v3 = vcombine.low %v150_v56, %v158_v57  ;;  %v3265_v5 = vcombine.high %v40_v0, %v48_v1 }
  0xb1   :  { %3918 = vmatpush3.bf16.msra.mxu0 %v4244_v7  ;;  %v63_v7 = vld [vmem:[%s5657_s0 + $0xf0] sm:$0xff] }
  0xb2   :  { %3982 = vmatpush3.bf16.msra.mxu1 %v4246_v9  ;;  %3919 = vmatprep.subr.bf16.mxu0 %v4247_v10  ;;  %v64_v9 = vld [vmem:[%s5657_s0 + $0xf8] sm:$0xff]  ;;  %v3262_v10 = vcombine.low %v39_v62, %v47_v63  ;;  %v111_v62 = vld [vmem:[%s5657_s0 + $0x270] sm:$0xff] }
  0xb3   :  { %2262 = vmatmul.mubr.bf16.gmra.mxu0 %v3290_v11  ;;  %3983 = vmatprep.subr.bf16.mxu1 %v4249_v12  ;;  %v3264_v11 = vcombine.low %v40_v0, %v48_v1  ;;  %v3279_v12 = vcombine.high %v55_v6, %v63_v7  ;;  %v104_v1 = vld [vmem:[%s5657_s0 + $0x238] sm:$0xff] }
  0xb4   :  { %2359 = vmatmul.mubr.bf16.gmra.mxu1 %v3292_v13  ;;  %2269 = vmatprep.mubr.bf16.mxu0 %v3307_v14  ;;  %v3281_v13 = vcombine.high %v56_v8, %v64_v9 }
  0xb5   :  { %2366 = vmatprep.mubr.bf16.mxu1 %v3309_v15  ;;  %3920 = vmatpush3.bf16.msra.mxu0 %v4248_v16 }
  0xb6   :  { %3984 = vmatpush3.bf16.msra.mxu1 %v4250_v17  ;;  %3921 = vmatprep.subr.bf16.mxu0 %v4251_v18  ;;  %v71_v17 = vld [vmem:[%s5657_s0 + $0x130] sm:$0xff] }
  0xb7   :  { %3985 = vmatprep.subr.bf16.mxu1 %v4253_v19  ;;  %v79_v18 = vld [vmem:[%s5657_s0 + $0x170] sm:$0xff] }
  0xb8   :  { %v3294_v47 = vcombine.low %v71_v17, %v79_v18 }
  0xb9   :  { %3922 = vmatpush3.bf16.msra.mxu0 %v4252_v23 }
  0xba   :  { %3986 = vmatpush3.bf16.msra.mxu1 %v4254_v25  ;;  %3923 = vmatprep.subr.bf16.mxu0 %v4255_v26  ;;  %v3278_v25 = vcombine.low %v55_v6, %v63_v7 }
  0xbb   :  { %2270 = vmatmul.mubr.bf16.gmra.mxu0 %v3306_v27  ;;  %3987 = vmatprep.subr.bf16.mxu1 %v4257_v28  ;;  %v3280_v27 = vcombine.low %v56_v8, %v64_v9  ;;  %v3295_v28 = vcombine.high %v71_v17, %v79_v18 }
  0xbc   :  { %2367 = vmatmul.mubr.bf16.gmra.mxu1 %v3308_v29  ;;  %2277 = vmatprep.mubr.bf16.mxu0 %v3323_v30 }
  0xbd   :  { %2374 = vmatprep.mubr.bf16.mxu1 %v3325_v31  ;;  %3924 = vmatpush3.bf16.msra.mxu0 %v4256_v32  ;;  %v3297_v31 = vcombine.high %v72_v21, %v80_v22 }
  0xbe   :  { %3988 = vmatpush3.bf16.msra.mxu1 %v4258_v33  ;;  %3925 = vmatprep.subr.bf16.mxu0 %v4259_v34 }
  0xbf   :  { %3989 = vmatprep.subr.bf16.mxu1 %v4261_v35 }
  0xc1   :  { %3926 = vmatpush3.bf16.msra.mxu0 %v4260_v38 }
  0xc2   :  { %3990 = vmatpush3.bf16.msra.mxu1 %v4262_v41 }
  0xc3   :  { %2278 = vmatmul.mubr.bf16.gmra.mxu0 %v3322_v42 }
  0xc4   :  { %2375 = vmatmul.mubr.bf16.gmra.mxu1 %v3324_v43  ;;  %2285 = vmatprep.mubr.bf16.mxu0 %v3339_v44  ;;  %v88_v43 = vld [vmem:[%s5657_s0 + $0x1b8] sm:$0xff] }
  0xc5   :  { %2382 = vmatprep.mubr.bf16.mxu1 %v3341_v45  ;;  %v96_v44 = vld [vmem:[%s5657_s0 + $0x1f8] sm:$0xff] }
  0xc6   :  { %v3312_v7 = vcombine.low %v88_v43, %v96_v44 }
  0xcb   :  { %2286 = vmatmul.mubr.bf16.gmra.mxu0 %v3338_v50  ;;  %v3311_v50 = vcombine.high %v87_v39, %v95_v40 }
  0xcc   :  { %2383 = vmatmul.mubr.bf16.gmra.mxu1 %v3340_v51  ;;  %2293 = vmatprep.mubr.bf16.mxu0 %v3355_v52 }
  0xcd   :  { %2390 = vmatprep.mubr.bf16.mxu1 %v3357_v53  ;;  %v3313_v53 = vcombine.high %v88_v43, %v96_v44  ;;  %v135_v43 = vld [vmem:[%s5657_s0 + $0x330] sm:$0xff] }
  0xce   :  { %v143_v44 = vld [vmem:[%s5657_s0 + $0x370] sm:$0xff] }
  0xd3   :  { %2294 = vmatmul.mubr.bf16.gmra.mxu0 %v3354_v58 }
  0xd4   :  { %2391 = vmatmul.mubr.bf16.gmra.mxu1 %v3356_v59  ;;  %2301 = vmatprep.mubr.bf16.mxu0 %v3371_v60 }
  0xd5   :  { %2398 = vmatprep.mubr.bf16.mxu1 %v3373_v61  ;;  %v103_v61 = vld [vmem:[%s5657_s0 + $0x230] sm:$0xff] }
  0xd6   :  { %v3327_v8 = vcombine.high %v103_v61, %v111_v62 }
  0xdb   :  { %2302 = vmatmul.mubr.bf16.gmra.mxu0 %v3370_v2  ;;  %v112_v2 = vld [vmem:[%s5657_s0 + $0x278] sm:$0xff] }
  0xdc   :  { %2399 = vmatmul.mubr.bf16.gmra.mxu1 %v3372_v3  ;;  %2439 = vmatprep.mubr.bf16.mxu0 %v3263_v4 }
  0xdd   :  { %2536 = vmatprep.mubr.bf16.mxu1 %v3265_v5  ;;  %v3310_v5 = vcombine.low %v87_v39, %v95_v40 }
  0xe3   :  { %v3543_v14 = vpop.f32.mrf.mxu0  ;;  %2440 = vmatmul.mubr.bf16.vlgmr.msra.gmra.mxu0 %v3262_v10 }
  0xe4   :  { %v3607_v15 = vpop.f32.mrf.mxu1  ;;  %2537 = vmatmul.mubr.bf16.vlgmr.msra.gmra.mxu1 %v3264_v11  ;;  %2447 = vmatprep.mubr.bf16.mxu0 %v3279_v12  ;;  %v3329_v11 = vcombine.high %v104_v1, %v112_v2 }
  0xe5   :  { %v3544_v16 = vpop.f32.mrf.mxu0  ;;  %2544 = vmatprep.mubr.bf16.mxu1 %v3281_v13 }
  0xe6   :  { %v3545_v19 = vadd.f32 %v3544_v16, %v3543_v14  ;;  %v3608_v20 = vpop.f32.mrf.mxu1 }
  0xe7   :  { %v3609_v23 = vadd.f32 %v3608_v20, %v3607_v15  ;;  %v3546_v24 = vpop.f32.mrf.mxu0  ;;  %v127_v20 = vld [vmem:[%s5657_s0 + $0x2f0] sm:$0xff] }
  0xe8   :  { %v3610_v26 = vpop.f32.mrf.mxu1 }
  0xe9   :  { %v5101_v29 = vadd.f32 %v3609_v23, %v3545_v19  ;;  %v3547_v30 = vpop.f32.mrf.mxu0  ;;  %v119_v19 = vld [vmem:[%s5657_s0 + $0x2b0] sm:$0xff]  ;;  %v120_v23 = vld [vmem:[%s5657_s0 + $0x2b8] sm:$0xff] }
  0xea   :  { %v3548_v32 = vadd.f32 %v3547_v30, %v3546_v24  ;;  %v3611_v33 = vpop.f32.mrf.mxu1  ;;  %v128_v24 = vld [vmem:[%s5657_s0 + $0x2f8] sm:$0xff]  ;;  %v3328_v30 = vcombine.low %v104_v1, %v112_v2 }
  0xeb   :  { %v3612_v34 = vadd.f32 %v3611_v33, %v3610_v26  ;;  %v3549_v35 = vpop.f32.mrf.mxu0  ;;  %2448 = vmatmul.mubr.bf16.gmra.mxu0 %v3278_v25 }
  0xec   :  { %v3613_v36 = vpop.f32.mrf.mxu1  ;;  %2545 = vmatmul.mubr.bf16.gmra.mxu1 %v3280_v27  ;;  %2455 = vmatprep.mubr.bf16.mxu0 %v3295_v28  ;;  %v3326_v27 = vcombine.low %v103_v61, %v111_v62 }
  0xed   :  { %v5103_v37 = vadd.f32 %v3612_v34, %v3548_v32  ;;  %v3550_v38 = vpop.f32.mrf.mxu0  ;;  %2552 = vmatprep.mubr.bf16.mxu1 %v3297_v31  ;;  %v3343_v31 = vcombine.high %v119_v19, %v127_v20  ;;  %v3345_v34 = vcombine.high %v120_v23, %v128_v24 }
  0xee   :  { %v3551_v41 = vadd.f32 %v3550_v38, %v3549_v35  ;;  %v3614_v42 = vpop.f32.mrf.mxu1 }
  0xef   :  { %v3615_v45 = vadd.f32 %v3614_v42, %v3613_v36  ;;  %v3552_v46 = vpop.f32.mrf.mxu0 }
  0xf0   :  { %v3616_v48 = vpop.f32.mrf.mxu1 }
  0xf1   :  { %v5117_v51 = vadd.f32 %v3615_v45, %v3551_v41  ;;  %v3553_v52 = vpop.f32.mrf.mxu0 }
  0xf2   :  { %v3554_v54 = vadd.f32 %v3553_v52, %v3552_v46  ;;  %v3617_v55 = vpop.f32.mrf.mxu1  ;;  %v3342_v52 = vcombine.low %v119_v19, %v127_v20 }
  0xf3   :  { %v3618_v56 = vadd.f32 %v3617_v55, %v3616_v48  ;;  %v3555_v57 = vpop.f32.mrf.mxu0  ;;  %2456 = vmatmul.mubr.bf16.gmra.mxu0 %v3294_v47  ;;  %v136_v47 = vld [vmem:[%s5657_s0 + $0x338] sm:$0xff]  ;;  %v3359_v55 = vcombine.high %v135_v43, %v143_v44 }
  0xf4   :  { %v3619_v58 = vpop.f32.mrf.mxu1  ;;  %2553 = vmatmul.mubr.bf16.gmra.mxu1 %v3296_v49  ;;  %2463 = vmatprep.mubr.bf16.mxu0 %v3311_v50  ;;  %v144_v48 = vld [vmem:[%s5657_s0 + $0x378] sm:$0xff] }
  0xf5   :  { %v5119_v59 = vadd.f32 %v3618_v56, %v3554_v54  ;;  %v3556_v60 = vpop.f32.mrf.mxu0  ;;  %2560 = vmatprep.mubr.bf16.mxu1 %v3313_v53  ;;  %v3344_v54 = vcombine.low %v120_v23, %v128_v24 }
  0xf6   :  { %v3557_v63 = vadd.f32 %v3556_v60, %v3555_v57  ;;  %v3620_v0 = vpop.f32.mrf.mxu1 }
  0xf7   :  { %v3621_v3 = vadd.f32 %v3620_v0, %v3619_v58  ;;  %v3558_v4 = vpop.f32.mrf.mxu0  ;;  %v3361_v58 = vcombine.high %v136_v47, %v144_v48 }
  0xf8   :  { %v3622_v6 = vpop.f32.mrf.mxu1 }
  0xf9   :  { %v5133_v9 = vadd.f32 %v3621_v3, %v3557_v63  ;;  %v3559_v10 = vpop.f32.mrf.mxu0  ;;  %v151_v3 = vld [vmem:[%s5657_s0 + $0x3b0] sm:$0xff] }
  0xfa   :  { %v3560_v12 = vadd.f32 %v3559_v10, %v3558_v4  ;;  %v3623_v13 = vpop.f32.mrf.mxu1  ;;  %v159_v4 = vld [vmem:[%s5657_s0 + $0x3f0] sm:$0xff] }
  0xfb   :  { %v3624_v14 = vadd.f32 %v3623_v13, %v3622_v6  ;;  %v3561_v15 = vpop.f32.mrf.mxu0  ;;  %2464 = vmatmul.mubr.bf16.gmra.mxu0 %v3310_v5 }
  0xfc   :  { %v3625_v16 = vpop.f32.mrf.mxu1  ;;  %2561 = vmatmul.mubr.bf16.gmra.mxu1 %v3312_v7  ;;  %2471 = vmatprep.mubr.bf16.mxu0 %v3327_v8  ;;  %v152_v7 = vld [vmem:[%s5657_s0 + $0x3b8] sm:$0xff] }
  0xfd   :  { %v5135_v17 = vadd.f32 %v3624_v14, %v3560_v12  ;;  %v3562_v18 = vpop.f32.mrf.mxu0  ;;  %2568 = vmatprep.mubr.bf16.mxu1 %v3329_v11  ;;  %v160_v8 = vld [vmem:[%s5657_s0 + $0x3f8] sm:$0xff]  ;;  %v3358_v12 = vcombine.low %v135_v43, %v143_v44  ;;  %v3360_v14 = vcombine.low %v136_v47, %v144_v48 }
  0xfe   :  { %v3563_v21 = vadd.f32 %v3562_v18, %v3561_v15  ;;  %v3626_v22 = vpop.f32.mrf.mxu1  ;;  %v3375_v15 = vcombine.high %v151_v3, %v159_v4  ;;  %v3377_v19 = vcombine.high %v152_v7, %v160_v8  ;;  %v4263_v44 = vld [vmem:[%s5658_s4 + $0x38] sm:$0xff]  }
  0xff   :  { %v3627_v25 = vadd.f32 %v3626_v22, %v3625_v16  ;;  %v3564_v26 = vpop.f32.mrf.mxu0  ;;  %4071 = vmatprep.subr.bf16.mxu0 %v4263_v44 }
 0x100   :  { %v3628_v28 = vpop.f32.mrf.mxu1  ;;  %4072 = vmatpush3.bf16.msra.mxu0 %v4263_v44 }
 0x101   :  { %v5149_v32 = vadd.f32 %v3627_v25, %v3563_v21  ;;  %v3565_v33 = vpop.f32.mrf.mxu0 }
 0x102   :  { %v3566_v35 = vadd.f32 %v3565_v33, %v3564_v26  ;;  %v3629_v36 = vpop.f32.mrf.mxu1  ;;  %v3374_v33 = vcombine.low %v151_v3, %v159_v4 }
 0x103   :  { %v3630_v38 = vadd.f32 %v3629_v36, %v3628_v28  ;;  %v3567_v39 = vpop.f32.mrf.mxu0  ;;  %2472 = vmatmul.mubr.bf16.gmra.mxu0 %v3326_v27 }
 0x104   :  { %v3631_v40 = vpop.f32.mrf.mxu1  ;;  %2569 = vmatmul.mubr.bf16.gmra.mxu1 %v3328_v30  ;;  %2479 = vmatprep.mubr.bf16.mxu0 %v3343_v31 }
 0x105   :  { %v5151_v41 = vadd.f32 %v3630_v38, %v3566_v35  ;;  %v3568_v42 = vpop.f32.mrf.mxu0  ;;  %2576 = vmatprep.mubr.bf16.mxu1 %v3345_v34  ;;  %v3376_v35 = vcombine.low %v152_v7, %v160_v8  ;;  %v4265_v7 = vld [vmem:[%s5658_s4 + $0x28] sm:$0xff]  }
 0x106   :  { %v3569_v45 = vadd.f32 %v3568_v42, %v3567_v39  ;;  %v3632_v46 = vpop.f32.mrf.mxu1 }
 0x107   :  { %v3633_v49 = vadd.f32 %v3632_v46, %v3631_v40  ;;  %v3570_v50 = vpop.f32.mrf.mxu0 }
 0x108   :  { %v3634_v53 = vpop.f32.mrf.mxu1 }
 0x109   :  { %v5165_v56 = vadd.f32 %v3633_v49, %v3569_v45  ;;  %v3571_v57 = vpop.f32.mrf.mxu0 }
 0x10a   :  { %v3572_v60 = vadd.f32 %v3571_v57, %v3570_v50  ;;  %v3635_v61 = vpop.f32.mrf.mxu1 }
 0x10b   :  { %v3636_v62 = vadd.f32 %v3635_v61, %v3634_v53  ;;  %v3573_v63 = vpop.f32.mrf.mxu0  ;;  %2480 = vmatmul.mubr.bf16.gmra.mxu0 %v3342_v52 }
 0x10c   :  { %v3637_v0 = vpop.f32.mrf.mxu1  ;;  %2577 = vmatmul.mubr.bf16.gmra.mxu1 %v3344_v54  ;;  %2487 = vmatprep.mubr.bf16.mxu0 %v3359_v55 }
 0x10d   :  { %v5167_v1 = vadd.f32 %v3636_v62, %v3572_v60  ;;  %v3574_v2 = vpop.f32.mrf.mxu0  ;;  %2584 = vmatprep.mubr.bf16.mxu1 %v3361_v58  ;;  %v4264_v60 = vld [vmem:[%s5658_s4 + $0x30] sm:$0xff]  }
 0x10e   :  { %v3575_v5 = vadd.f32 %v3574_v2, %v3573_v63  ;;  %v3638_v6 = vpop.f32.mrf.mxu1  ;;  %4073 = vmatprep.subr.bf16.mxu0 %v4264_v60 }
 0x10f   :  { %v3639_v10 = vadd.f32 %v3638_v6, %v3637_v0  ;;  %v3576_v11 = vpop.f32.mrf.mxu0  ;;  %4074 = vmatpush3.bf16.msra.mxu0 %v4264_v60 }
 0x110   :  { %v3640_v13 = vpop.f32.mrf.mxu1  ;;  %4075 = vmatprep.subr.bf16.mxu0 %v4265_v7 }
 0x111   :  { %v5181_v16 = vadd.f32 %v3639_v10, %v3575_v5  ;;  %v3577_v18 = vpop.f32.mrf.mxu0 }
 0x112   :  { %v3578_v20 = vadd.f32 %v3577_v18, %v3576_v11  ;;  %v3641_v21 = vpop.f32.mrf.mxu1 }
 0x113   :  { %v3642_v22 = vadd.f32 %v3641_v21, %v3640_v13  ;;  %v3579_v23 = vpop.f32.mrf.mxu0  ;;  %2488 = vmatmul.mubr.bf16.gmra.mxu0 %v3358_v12 }
 0x114   :  { %v3643_v24 = vpop.f32.mrf.mxu1  ;;  %2585 = vmatmul.mubr.bf16.gmra.mxu1 %v3360_v14  ;;  %2495 = vmatprep.mubr.bf16.mxu0 %v3375_v15 }
 0x115   :  { %v5183_v25 = vadd.f32 %v3642_v22, %v3578_v20  ;;  %v3580_v26 = vpop.f32.mrf.mxu0  ;;  %2592 = vmatprep.mubr.bf16.mxu1 %v3377_v19  ;;  %4076 = vmatpush3.bf16.msra.mxu0 %v4265_v7  ;;  %v4266_v19 = vld [vmem:[%s5658_s4 + $0x20] sm:$0xff]  }
 0x116   :  { %v3581_v27 = vadd.f32 %v3580_v26, %v3579_v23  ;;  %v3644_v28 = vpop.f32.mrf.mxu1  ;;  %4077 = vmatprep.subr.bf16.mxu0 %v4266_v19 }
 0x117   :  { %v3645_v30 = vadd.f32 %v3644_v28, %v3643_v24  ;;  %v3582_v31 = vpop.f32.mrf.mxu0  ;;  %v4267_v28 = vld [vmem:[%s5658_s4 + $0x18] sm:$0xff]  }
 0x118   :  { %v3646_v34 = vpop.f32.mrf.mxu1 }
 0x119   :  { %v5185_v36 = vadd.f32 %v3645_v30, %v3581_v27  ;;  %v3583_v38 = vpop.f32.mrf.mxu0  ;;  %4078 = vmatpush3.bf16.msra.mxu0 %v4266_v19 }
 0x11a   :  { %v3584_v39 = vadd.f32 %v3583_v38, %v3582_v31  ;;  %v3647_v40 = vpop.f32.mrf.mxu1  ;;  %4079 = vmatprep.subr.bf16.mxu0 %v4267_v28 }
 0x11b   :  { %v3648_v42 = vadd.f32 %v3647_v40, %v3646_v34  ;;  %v3585_v43 = vpop.f32.mrf.mxu0  ;;  %2496 = vmatmul.mubr.bf16.gmra.mxu0 %v3374_v33  ;;  %v4268_v40 = vld [vmem:[%s5658_s4 + $0x10] sm:$0xff]  }
 0x11c   :  { %v3649_v45 = vpop.f32.mrf.mxu1  ;;  %2593 = vmatmul.mubr.bf16.gmra.mxu1 %v3376_v35 }
 0x11d   :  { %v5190_v46 = vadd.f32 %v3648_v42, %v3584_v39  ;;  %v3586_v47 = vpop.f32.mrf.mxu0  ;;  %4080 = vmatpush3.bf16.msra.mxu0 %v4267_v28 }
 0x11e   :  { %v3587_v48 = vadd.f32 %v3586_v47, %v3585_v43  ;;  %v3650_v49 = vpop.f32.mrf.mxu1  ;;  %4081 = vmatprep.subr.bf16.mxu0 %v4268_v40 }
 0x11f   :  { %v3651_v50 = vadd.f32 %v3650_v49, %v3649_v45  ;;  %v3588_v52 = vpop.f32.mrf.mxu0 }
 0x120   :  { %v3652_v53 = vpop.f32.mrf.mxu1 }
 0x121   :  { %v5192_v54 = vadd.f32 %v3651_v50, %v3587_v48  ;;  %v3589_v55 = vpop.f32.mrf.mxu0  ;;  %4082 = vmatpush3.bf16.msra.mxu0 %v4268_v40  ;;  %v4269_v50 = vld [vmem:[%s5658_s4 + $0x8] sm:$0xff]  }
 0x122   :  { %v3590_v57 = vadd.f32 %v3589_v55, %v3588_v52  ;;  %v3653_v58 = vpop.f32.mrf.mxu1  ;;  %4083 = vmatprep.subr.bf16.mxu0 %v4269_v50 }
 0x123   :  { %v3654_v61 = vadd.f32 %v3653_v58, %v3652_v53  ;;  %v3671_v62 = vpop.f32.mrf.mxu0 }
 0x124   :  { %v3735_v63 = vpop.f32.mrf.mxu1 }
 0x125   :  { %v5197_v0 = vadd.f32 %v3654_v61, %v3590_v57  ;;  %v3672_v2 = vpop.f32.mrf.mxu0  ;;  %4084 = vmatpush3.bf16.msra.mxu0 %v4269_v50 }
 0x126   :  { %v3673_v3 = vadd.f32 %v3672_v2, %v3671_v62  ;;  %v3736_v4 = vpop.f32.mrf.mxu1  ;;  %v4270_v62 = vld [vmem:[%s5658_s4] sm:$0xff]  }
 0x127   :  { %v3737_v5 = vadd.f32 %v3736_v4, %v3735_v63  ;;  %v3674_v6 = vpop.f32.mrf.mxu0  ;;  %4085 = vmatprep.subr.bf16.mxu0 %v4270_v62 }
 0x128   :  { %v2054_v8 = vadd.f32 %v3673_v3, %v5101_v29  ;;  %v3738_v10 = vpop.f32.mrf.mxu1 }
 0x129   :  { %v3675_v11 = vpop.f32.mrf.mxu0  ;;  %4086 = vmatpush3.bf16.msra.mxu0 %v4270_v62 }
 0x12a   :  { %v5203_v12 = vadd.f32 %v3737_v5, %v2054_v8  ;;  %v3676_v13 = vadd.f32 %v3675_v11, %v3674_v6  ;;  %v3739_v14 = vpop.f32.mrf.mxu1 }
 0x12b   :  { %v3740_v15 = vadd.f32 %v3739_v14, %v3738_v10  ;;  %v3677_v18 = vpop.f32.mrf.mxu0 }
 0x12c   :  { %v2057_v20 = vadd.f32 %v3676_v13, %v5103_v37  ;;  %v3741_v21 = vpop.f32.mrf.mxu1 }
 0x12d   :  { %v3678_v22 = vpop.f32.mrf.mxu0 }
 0x12e   :  { %v5209_v29 = vadd.f32 %v3740_v15, %v2057_v20  ;;  %v3679_v23 = vadd.f32 %v3678_v22, %v3677_v18  ;;  %v3742_v24 = vpop.f32.mrf.mxu1 }
 0x12f   :  { %v3743_v26 = vadd.f32 %v3742_v24, %v3741_v21  ;;  %v3680_v27 = vpop.f32.mrf.mxu0 }
 0x130   :  { %v2062_v30 = vadd.f32 %v3679_v23, %v5117_v51  ;;  %v3744_v31 = vpop.f32.mrf.mxu1 }
 0x131   :  { %v3681_v33 = vpop.f32.mrf.mxu0 }
 0x132   :  { %v5215_v37 = vadd.f32 %v3743_v26, %v2062_v30  ;;  %v3682_v34 = vadd.f32 %v3681_v33, %v3680_v27  ;;  %v3745_v35 = vpop.f32.mrf.mxu1 }
 0x133   :  { %v3746_v38 = vadd.f32 %v3745_v35, %v3744_v31  ;;  %v3683_v39 = vpop.f32.mrf.mxu0 }
 0x134   :  { %v2065_v42 = vadd.f32 %v3682_v34, %v5119_v59  ;;  %v3747_v43 = vpop.f32.mrf.mxu1 }
 0x135   :  { %v3684_v44 = vpop.f32.mrf.mxu0 }
 0x136   :  { %v5221_v51 = vadd.f32 %v3746_v38, %v2065_v42  ;;  %v3685_v45 = vadd.f32 %v3684_v44, %v3683_v39  ;;  %v3748_v47 = vpop.f32.mrf.mxu1 }
 0x137   :  { %v3749_v48 = vadd.f32 %v3748_v47, %v3747_v43  ;;  %v3686_v49 = vpop.f32.mrf.mxu0 }
 0x138   :  { %v2070_v52 = vadd.f32 %v3685_v45, %v5133_v9  ;;  %v3750_v53 = vpop.f32.mrf.mxu1 }
 0x139   :  { %v3687_v55 = vpop.f32.mrf.mxu0 }
 0x13a   :  { %v5227_v59 = vadd.f32 %v3749_v48, %v2070_v52  ;;  %v3688_v57 = vadd.f32 %v3687_v55, %v3686_v49  ;;  %v3751_v58 = vpop.f32.mrf.mxu1 }
 0x13b   :  { %v3752_v60 = vadd.f32 %v3751_v58, %v3750_v53  ;;  %v3689_v61 = vpop.f32.mrf.mxu0 }
 0x13c   :  { %v2073_v63 = vadd.f32 %v3688_v57, %v5135_v17  ;;  %v3753_v2 = vpop.f32.mrf.mxu1 }
 0x13d   :  { %v3690_v3 = vpop.f32.mrf.mxu0 }
 0x13e   :  { %v5233_v9 = vadd.f32 %v3752_v60, %v2073_v63  ;;  %v3691_v4 = vadd.f32 %v3690_v3, %v3689_v61  ;;  %v3754_v5 = vpop.f32.mrf.mxu1 }
 0x13f   :  { %v3755_v6 = vadd.f32 %v3754_v5, %v3753_v2  ;;  %v3692_v7 = vpop.f32.mrf.mxu0 }
 0x140   :  { %v2078_v8 = vadd.f32 %v3691_v4, %v5149_v32  ;;  %v3756_v10 = vpop.f32.mrf.mxu1 }
 0x141   :  { %v3693_v11 = vpop.f32.mrf.mxu0 }
 0x142   :  { %v5236_v13 = vadd.f32 %v3755_v6, %v2078_v8  ;;  %v3694_v14 = vadd.f32 %v3693_v11, %v3692_v7  ;;  %v3757_v15 = vpop.f32.mrf.mxu1 }
 0x143   :  { %v3758_v18 = vadd.f32 %v3757_v15, %v3756_v10  ;;  %v3695_v17 = vpop.f32.mrf.mxu0 }
 0x144   :  { %v2081_v19 = vadd.f32 %v3694_v14, %v5151_v41  ;;  %v3759_v20 = vpop.f32.mrf.mxu1 }
 0x145   :  { %v3696_v21 = vpop.f32.mrf.mxu0 }
 0x146   :  { %v5239_v22 = vadd.f32 %v3758_v18, %v2081_v19  ;;  %v3697_v23 = vadd.f32 %v3696_v21, %v3695_v17  ;;  %v3760_v24 = vpop.f32.mrf.mxu1 }
 0x147   :  { %v3761_v26 = vadd.f32 %v3760_v24, %v3759_v20  ;;  %v3698_v27 = vpop.f32.mrf.mxu0 }
 0x148   :  { %v2086_v32 = vadd.f32 %v3697_v23, %v5165_v56  ;;  %v3762_v28 = vpop.f32.mrf.mxu1 }
 0x149   :  { %v3699_v30 = vpop.f32.mrf.mxu0 }
 0x14a   :  { %v5242_v31 = vadd.f32 %v3761_v26, %v2086_v32  ;;  %v3700_v33 = vadd.f32 %v3699_v30, %v3698_v27  ;;  %v3763_v34 = vpop.f32.mrf.mxu1 }
 0x14b   :  { %v3764_v35 = vadd.f32 %v3763_v34, %v3762_v28  ;;  %v3701_v38 = vpop.f32.mrf.mxu0 }
 0x14c   :  { %v2089_v41 = vadd.f32 %v3700_v33, %v5167_v1  ;;  %v3765_v39 = vpop.f32.mrf.mxu1 }
 0x14d   :  { %v3702_v40 = vpop.f32.mrf.mxu0 }
 0x14e   :  { %v5245_v42 = vadd.f32 %v3764_v35, %v2089_v41  ;;  %v3703_v43 = vadd.f32 %v3702_v40, %v3701_v38  ;;  %v3766_v44 = vpop.f32.mrf.mxu1 }
 0x14f   :  { %v3767_v45 = vadd.f32 %v3766_v44, %v3765_v39  ;;  %v3704_v47 = vpop.f32.mrf.mxu0 }
 0x150   :  { %v2094_v56 = vadd.f32 %v3703_v43, %v5181_v16  ;;  %v3768_v48 = vpop.f32.mrf.mxu1 }
 0x151   :  { %v3705_v49 = vpop.f32.mrf.mxu0 }
 0x152   :  { %v5248_v50 = vadd.f32 %v3767_v45, %v2094_v56  ;;  %v3706_v52 = vadd.f32 %v3705_v49, %v3704_v47  ;;  %v3769_v53 = vpop.f32.mrf.mxu1 }
 0x153   :  { %v3770_v55 = vadd.f32 %v3769_v53, %v3768_v48  ;;  %v3707_v57 = vpop.f32.mrf.mxu0 }
 0x154   :  { %v2097_v1 = vadd.f32 %v3706_v52, %v5183_v25  ;;  %v3771_v58 = vpop.f32.mrf.mxu1 }
 0x155   :  { %v3708_v60 = vpop.f32.mrf.mxu0 }
 0x156   :  { %v5251_v61 = vadd.f32 %v3770_v55, %v2097_v1  ;;  %v3709_v62 = vadd.f32 %v3708_v60, %v3707_v57  ;;  %v3772_v63 = vpop.f32.mrf.mxu1 }
 0x157   :  { %v3773_v2 = vadd.f32 %v3772_v63, %v3771_v58  ;;  %v3710_v3 = vpop.f32.mrf.mxu0  ;;  %v4271_v58 = vld [vmem:[%s5659_s7 + $0x38] sm:$0xff]   ;;  %v4272_v63 = vld [vmem:[%s5659_s7 + $0x30] sm:$0xff]  }
 0x158   :  { %v2102_v16 = vadd.f32 %v3709_v62, %v5185_v36  ;;  %v3774_v4 = vpop.f32.mrf.mxu1  ;;  %4103 = vmatprep.subr.bf16.mxu1 %v4271_v58 }
 0x159   :  { %v3711_v5 = vpop.f32.mrf.mxu0  ;;  %4104 = vmatpush3.bf16.msra.mxu1 %v4271_v58 }
 0x15a   :  { %v5254_v6 = vadd.f32 %v3773_v2, %v2102_v16  ;;  %v3712_v7 = vadd.f32 %v3711_v5, %v3710_v3  ;;  %v3775_v8 = vpop.f32.mrf.mxu1  ;;  %4105 = vmatprep.subr.bf16.mxu1 %v4272_v63 }
 0x15b   :  { %v3776_v10 = vadd.f32 %v3775_v8, %v3774_v4  ;;  %v3713_v11 = vpop.f32.mrf.mxu0 }
 0x15c   :  { %v2105_v25 = vadd.f32 %v3712_v7, %v5190_v46  ;;  %v3777_v14 = vpop.f32.mrf.mxu1 }
 0x15d   :  { %v3714_v15 = vpop.f32.mrf.mxu0  ;;  %4106 = vmatpush3.bf16.msra.mxu1 %v4272_v63 }
 0x15e   :  { %v5257_v18 = vadd.f32 %v3776_v10, %v2105_v25  ;;  %v3715_v17 = vadd.f32 %v3714_v15, %v3713_v11  ;;  %v3778_v19 = vpop.f32.mrf.mxu1 }
 0x15f   :  { %v3779_v20 = vadd.f32 %v3778_v19, %v3777_v14  ;;  %v3716_v21 = vpop.f32.mrf.mxu0  ;;  %v4274_v14 = vld [vmem:[%s5659_s7 + $0x20] sm:$0xff]  }
 0x160   :  { %v2110_v36 = vadd.f32 %v3715_v17, %v5192_v54  ;;  %v3780_v23 = vpop.f32.mrf.mxu1 }
 0x161   :  { %v3717_v24 = vpop.f32.mrf.mxu0 }
 0x162   :  { %v5260_v26 = vadd.f32 %v3779_v20, %v2110_v36  ;;  %v3718_v27 = vadd.f32 %v3717_v24, %v3716_v21  ;;  %v3781_v32 = vpop.f32.mrf.mxu1 }
 0x163   :  { %v3782_v28 = vadd.f32 %v3781_v32, %v3780_v23  ;;  %v3799_v30 = vpop.f32.mrf.mxu0 }
 0x164   :  { %v2113_v46 = vadd.f32 %v3718_v27, %v5197_v0  ;;  %v3863_v33 = vpop.f32.mrf.mxu1 }
 0x165   :  { %v3800_v34 = vpop.f32.mrf.mxu0 }
 0x166   :  { %v5263_v35 = vadd.f32 %v3782_v28, %v2113_v46  ;;  %v3801_v38 = vadd.f32 %v3800_v34, %v3799_v30  ;;  %v3864_v41 = vpop.f32.mrf.mxu1 }
 0x167   :  { %v3865_v39 = vadd.f32 %v3864_v41, %v3863_v33  ;;  %v5265_v40 = vpop.f32.mrf.mxu0 }
 0x168   :  { %v2248_v54 = vadd.f32 %v3801_v38, %v5203_v12  ;;  %v5268_v43 = vpop.f32.mrf.mxu1 }
 0x169   :  { %v5270_v44 = vpop.f32.mrf.mxu0 }
 0x16a   :  { %v5272_v45 = vadd.f32 %v3865_v39, %v2248_v54  ;;  %v5274_v47 = vpop.f32.mrf.mxu1 }
 0x16b   :  { %v3805_v0 = vpop.f32.mrf.mxu0 }
 0x16c   :  { %v3869_v56 = vpop.f32.mrf.mxu1 }
 0x16d   :  { %v3806_v48 = vpop.f32.mrf.mxu0 }
 0x16e   :  { %v3807_v49 = vadd.f32 %v3806_v48, %v3805_v0  ;;  %v3870_v52 = vpop.f32.mrf.mxu1 }
 0x16f   :  { %v3871_v53 = vadd.f32 %v3870_v52, %v3869_v56  ;;  %v5276_v55 = vpop.f32.mrf.mxu0 }
 0x170   :  { %v2256_v57 = vadd.f32 %v3807_v49, %v5215_v37  ;;  %v5279_v1 = vpop.f32.mrf.mxu1  ;;  %v4273_v37 = vld [vmem:[%s5659_s7 + $0x28] sm:$0xff]  }
 0x171   :  { %v5281_v12 = vpop.f32.mrf.mxu0  ;;  %4107 = vmatprep.subr.bf16.mxu1 %v4273_v37 }
 0x172   :  { %v5286_v60 = vadd.f32 %v3871_v53, %v2256_v57  ;;  %v5288_v62 = vpop.f32.mrf.mxu1  ;;  %4108 = vmatpush3.bf16.msra.mxu1 %v4273_v37 }
 0x173   :  { %v3811_v2 = vpop.f32.mrf.mxu0  ;;  %4109 = vmatprep.subr.bf16.mxu1 %v4274_v14 }
 0x174   :  { %v3875_v3 = vpop.f32.mrf.mxu1 }
 0x175   :  { %v3812_v16 = vpop.f32.mrf.mxu0 }
 0x176   :  { %v3813_v4 = vadd.f32 %v3812_v16, %v3811_v2  ;;  %v3876_v5 = vpop.f32.mrf.mxu1  ;;  %4110 = vmatpush3.bf16.msra.mxu1 %v4274_v14 }
 0x177   :  { %v3877_v7 = vadd.f32 %v3876_v5, %v3875_v3  ;;  %v5296_v8 = vpop.f32.mrf.mxu0 }
 0x178   :  { %v2264_v10 = vadd.f32 %v3813_v4, %v5227_v59  ;;  %v5299_v11 = vpop.f32.mrf.mxu1 }
 0x179   :  { %v5301_v25 = vpop.f32.mrf.mxu0 }
 0x17a   :  { %v5306_v15 = vadd.f32 %v3877_v7, %v2264_v10  ;;  %v5308_v17 = vpop.f32.mrf.mxu1 }
 0x17b   :  { %v3817_v19 = vpop.f32.mrf.mxu0 }
 0x17c   :  { %v3881_v20 = vpop.f32.mrf.mxu1 }
 0x17d   :  { %v3818_v21 = vpop.f32.mrf.mxu0 }
 0x17e   :  { %v3819_v59 = vadd.f32 %v3818_v21, %v3817_v19  ;;  %v3882_v36 = vpop.f32.mrf.mxu1 }
 0x17f   :  { %v3883_v23 = vadd.f32 %v3882_v36, %v3881_v20  ;;  %v5310_v24 = vpop.f32.mrf.mxu0 }
 0x180   :  { %v2272_v27 = vadd.f32 %v3819_v59, %v5236_v13  ;;  %v5313_v32 = vpop.f32.mrf.mxu1 }
 0x181   :  { %v5315_v28 = vpop.f32.mrf.mxu0 }
 0x182   :  { %v5317_v30 = vadd.f32 %v3883_v23, %v2272_v27  ;;  %v5319_v46 = vpop.f32.mrf.mxu1 }
 0x183   :  { %v3823_v33 = vpop.f32.mrf.mxu0 }
 0x184   :  { %v3887_v34 = vpop.f32.mrf.mxu1 }
 0x185   :  { %v3824_v38 = vpop.f32.mrf.mxu0 }
 0x186   :  { %v3825_v41 = vadd.f32 %v3824_v38, %v3823_v33  ;;  %v3888_v39 = vpop.f32.mrf.mxu1 }
 0x187   :  { %v3889_v54 = vadd.f32 %v3888_v39, %v3887_v34  ;;  %v5321_v0 = vpop.f32.mrf.mxu0 }
 0x188   :  { %v2280_v56 = vadd.f32 %v3825_v41, %v5242_v31  ;;  %v5324_v13 = vpop.f32.mrf.mxu1 }
 0x189   :  { %v5326_v48 = vpop.f32.mrf.mxu0 }
 0x18a   :  { %v5328_v49 = vadd.f32 %v3889_v54, %v2280_v56  ;;  %v5330_v52 = vpop.f32.mrf.mxu1 }
 0x18b   :  { %v3829_v53 = vpop.f32.mrf.mxu0 }
 0x18c   :  { %v3893_v57 = vpop.f32.mrf.mxu1 }
 0x18d   :  { %v3830_v58 = vpop.f32.mrf.mxu0 }
 0x18e   :  { %v3831_v63 = vadd.f32 %v3830_v58, %v3829_v53  ;;  %v3894_v2 = vpop.f32.mrf.mxu1 }
 0x18f   :  { %v3895_v3 = vadd.f32 %v3894_v2, %v3893_v57  ;;  %v5332_v37 = vpop.f32.mrf.mxu0  ;;  %v3804_v2 = vadd.f32 %v5270_v44, %v5265_v40  ;;  %v5374_v40 = vld [vmem:[%s5660_s2] ss:$0 sm:$0xff] }
 0x190   :  { %v2288_v16 = vadd.f32 %v3831_v63, %v5248_v50  ;;  %v5335_v4 = vpop.f32.mrf.mxu1 }
 0x191   :  { %v5337_v31 = vpop.f32.mrf.mxu0 }
 0x192   :  { %v5339_v5 = vadd.f32 %v3895_v3, %v2288_v16  ;;  %v5341_v7 = vpop.f32.mrf.mxu1 }
 0x193   :  { %v3835_v10 = vpop.f32.mrf.mxu0 }
 0x194   :  { %v3899_v14 = vpop.f32.mrf.mxu1 }
 0x195   :  { %v3836_v19 = vpop.f32.mrf.mxu0 }
 0x196   :  { %v3837_v20 = vadd.f32 %v3836_v19, %v3835_v10  ;;  %v3900_v21 = vpop.f32.mrf.mxu1 }
 0x197   :  { %v3901_v59 = vadd.f32 %v3900_v21, %v3899_v14  ;;  %v5343_v36 = vpop.f32.mrf.mxu0 }
 0x198   :  { %v2296_v23 = vadd.f32 %v3837_v20, %v5254_v6  ;;  %v5346_v27 = vpop.f32.mrf.mxu1  ;;  %v2251_v20 = vadd.f32 %v3804_v2, %v5209_v29  ;;  %v3810_v29 = vadd.f32 %v5281_v12, %v5276_v55 }
 0x199   :  { %v5348_v50 = vpop.f32.mrf.mxu0 }
 0x19a   :  { %v5350_v33 = vadd.f32 %v3901_v59, %v2296_v23  ;;  %v5352_v34 = vpop.f32.mrf.mxu1 }
 0x19b   :  { %v3841_v38 = vpop.f32.mrf.mxu0 }
 0x19c   :  { %v3905_v41 = vpop.f32.mrf.mxu1 }
 0x19d   :  { %v3842_v39 = vpop.f32.mrf.mxu0 }
 0x19e   :  { %v3843_v54 = vadd.f32 %v3842_v39, %v3841_v38  ;;  %v3906_v56 = vpop.f32.mrf.mxu1 }
 0x19f   :  { %v3907_v53 = vadd.f32 %v3906_v56, %v3905_v41  ;;  %v5354_v57 = vpop.f32.mrf.mxu0 }
 0x1a0   :  { %v2304_v58 = vadd.f32 %v3843_v54, %v5260_v26  ;;  %v5357_v63 = vpop.f32.mrf.mxu1  ;;  %v3868_v26 = vadd.f32 %v5274_v47, %v5268_v43 }
 0x1a1   :  { %v5359_v6 = vpop.f32.mrf.mxu0 }
 0x1a2   :  { %v5363_v3 = vadd.f32 %v3907_v53, %v2304_v58  ;;  %v5365_v16 = vpop.f32.mrf.mxu1  ;;  %v2348_v54 = vadd.f32 %v3868_v26, %v2251_v20  ;;  %v2259_v20 = vadd.f32 %v3810_v29, %v5221_v51  ;;  %v3874_v26 = vadd.f32 %v5288_v62, %v5279_v1 }
 0x1a3   :  { %v3927_v10 = vpop.f32.mrf.mxu0 }
 0x1a4   :  { %v3991_v14 = vpop.f32.mrf.mxu1  ;;  %v2356_v51 = vadd.f32 %v3874_v26, %v2259_v20 }
 0x1a5   :  { %v3928_v19 = vpop.f32.mrf.mxu0 }
 0x1a6   :  { %v3929_v21 = vadd.f32 %v3928_v19, %v3927_v10  ;;  %v3992_v59 = vpop.f32.mrf.mxu1 }
 0x1a7   :  { %v3930_v23 = vpop.f32.mrf.mxu0  ;;  %v3993_v41 = vadd.f32 %v3992_v59, %v3991_v14  ;;  %v5382_v14 = vld [vmem:[%s5661_s3] ss:$0 sm:$0xff] }
 0x1a8   :  { %v2442_v38 = vadd.f32 %v3929_v21, %v5272_v45  ;;  %v3994_v39 = vpop.f32.mrf.mxu1 }
 0x1a9   :  { %v3931_v44 = vpop.f32.mrf.mxu0 }
 0x1aa   :  { %v2539_v56 = vadd.f32 %v3993_v41, %v2442_v38  ;;  %v3932_v53 = vadd.f32 %v3931_v44, %v3930_v23  ;;  %v3995_v58 = vpop.f32.mrf.mxu1 }
 0x1ab   :  { %v3933_v2 = vpop.f32.mrf.mxu0  ;;  %v3996_v45 = vadd.f32 %v3995_v58, %v3994_v39 }
 0x1ac   :  { %v2608_v43 = vmul.f32 %v5374_v40, %v2539_v56  ;;  %v2445_v47 = vadd.f32 %v3932_v53, %v2348_v54  ;;  %v3997_v10 = vpop.f32.mrf.mxu1  ;;  %v3816_v54 = vadd.f32 %v5301_v25, %v5296_v8 }
 0x1ad   :  { %v3934_v19 = vpop.f32.mrf.mxu0 }
 0x1ae   :  { %v2542_v21 = vadd.f32 %v3996_v45, %v2445_v47  ;;  %v3935_v59 = vadd.f32 %v3934_v19, %v3933_v2  ;;  %v3998_v55 = vpop.f32.mrf.mxu1  ;;  %v2631_v23 = vadd.f32 %v5382_v14, %v2608_v43 }
 0x1af   :  { %v3936_v12 = vpop.f32.mrf.mxu0  ;;  %v3999_v39 = vadd.f32 %v3998_v55, %v3997_v10  ;;  %v2267_v10 = vadd.f32 %v3816_v54, %v5233_v9  ;;  %v3880_v55 = vadd.f32 %v5308_v17, %v5299_v11  ;;  %v3822_v54 = vadd.f32 %v5315_v28, %v5310_v24 }
 0x1b0   :  { %v2609_v38 = vmul.f32 %v5374_v40, %v2542_v21  ;;  %v2450_v41 = vadd.f32 %v3935_v59, %v5286_v60  ;;  %v4000_v44 = vpop.f32.mrf.mxu1  ;;  %v2647_v47 = vmax.f32 %v2631_v23, 0.0 }
 0x1b1   :  { %v3937_v56 = vpop.f32.mrf.mxu0 }
 0x1b2   :  { %v2547_v29 = vadd.f32 %v3999_v39, %v2450_v41  ;;  %v3938_v53 = vadd.f32 %v3937_v56, %v3936_v12  ;;  %v4001_v58 = vpop.f32.mrf.mxu1  ;;  %v2632_v2 = vadd.f32 %v5382_v14, %v2609_v38 }
 0x1b3   :  { %v3939_v43 = vpop.f32.mrf.mxu0  ;;  %v4002_v45 = vadd.f32 %v4001_v58, %v4000_v44  ;;  %v2364_v44 = vadd.f32 %v3880_v55, %v2267_v10 }
 0x1b4   :  { %v2610_v1 = vmul.f32 %v5374_v40, %v2547_v29  ;;  %v2453_v62 = vadd.f32 %v3938_v53, %v2356_v51  ;;  %v4003_v19 = vpop.f32.mrf.mxu1  ;;  %v2648_v60 = vmax.f32 %v2632_v2, 0.0 }
 0x1b5   :  { %v3940_v21 = vpop.f32.mrf.mxu0 }
 0x1b6   :  { %v2550_v59 = vadd.f32 %v4002_v45, %v2453_v62  ;;  %v3941_v8 = vadd.f32 %v3940_v21, %v3939_v43  ;;  %v4004_v25 = vpop.f32.mrf.mxu1  ;;  %v2663_v20 = vpack.c.bf16 %v2648_v60, %v2647_v47  ;;  %v2633_v12 = vadd.f32 %v5382_v14, %v2610_v1 }
 0x1b7   :  { %v3942_v26 = vpop.f32.mrf.mxu0  ;;  %v4005_v41 = vadd.f32 %v4004_v25, %v4003_v19  ;;  %v2275_v62 = vadd.f32 %v3822_v54, %v5239_v22  ;;  %v3886_v21 = vadd.f32 %v5319_v46, %v5313_v32  ;;  %v3828_v22 = vadd.f32 %v5326_v48, %v5321_v0 }
 0x1b8   :  { %v2611_v23 = vmul.f32 %v5374_v40, %v2550_v59  ;;  %v2458_v38 = vadd.f32 %v3941_v8, %v5306_v15  ;;  %v4006_v39 = vpop.f32.mrf.mxu1  ;;  %4087 = vmatprep.mubr.bf16.mxu0 %v2663_v20  ;;  %v2649_v17 = vmax.f32 %v2633_v12, 0.0 }
 0x1b9   :  { %v3943_v9 = vpop.f32.mrf.mxu0  ;;  %v2372_v12 = vadd.f32 %v3886_v21, %v2275_v62  ;;  %v3834_v62 = vadd.f32 %v5337_v31, %v5332_v37 }
 0x1ba   :  { %v2634_v56 = vadd.f32 %v5382_v14, %v2611_v23  ;;  %v2555_v51 = vadd.f32 %v4005_v41, %v2458_v38  ;;  %v3944_v29 = vadd.f32 %v3943_v9, %v3942_v26  ;;  %v4007_v11 = vpop.f32.mrf.mxu1 }
 0x1bb   :  { %v3945_v53 = vpop.f32.mrf.mxu0  ;;  %v4008_v15 = vadd.f32 %v4007_v11, %v4006_v39 }
 0x1bc   :  { %v2650_v58 = vmax.f32 %v2634_v56, 0.0  ;;  %v2612_v2 = vmul.f32 %v5374_v40, %v2555_v51  ;;  %v2461_v43 = vadd.f32 %v3944_v29, %v2364_v44  ;;  %v4009_v47 = vpop.f32.mrf.mxu1  ;;  %v2283_v56 = vadd.f32 %v3828_v22, %v5245_v42 }
 0x1bd   :  { %v3946_v1 = vpop.f32.mrf.mxu0 }
 0x1be   :  { %v2664_v45 = vpack.c.bf16 %v2650_v58, %v2649_v17  ;;  %v2558_v19 = vadd.f32 %v4008_v15, %v2461_v43  ;;  %v3947_v60 = vadd.f32 %v3946_v1, %v3945_v53  ;;  %v4010_v24 = vpop.f32.mrf.mxu1  ;;  %v2635_v10 = vadd.f32 %v5382_v14, %v2612_v2 }
 0x1bf   :  { %v3948_v28 = vpop.f32.mrf.mxu0  ;;  %v4011_v25 = vadd.f32 %v4010_v24, %v4009_v47  ;;  %v3892_v17 = vadd.f32 %v5330_v52, %v5324_v13 }
 0x1c0   :  { %v2613_v59 = vmul.f32 %v5374_v40, %v2558_v19  ;;  %v2466_v8 = vadd.f32 %v3947_v60, %v5317_v30  ;;  %v4012_v20 = vpop.f32.mrf.mxu1  ;;  %4088 = vmatmul.mubr.bf16.vlgmr.msra.gmra.mxu0 %v2664_v45  ;;  %v2651_v44 = vmax.f32 %v2635_v10, 0.0 }
 0x1c1   :  { %v3949_v55 = vpop.f32.mrf.mxu0  ;;  %v2380_v1 = vadd.f32 %v3892_v17, %v2283_v56 }
 0x1c2   :  { %v2563_v26 = vadd.f32 %v4011_v25, %v2466_v8  ;;  %v3950_v23 = vadd.f32 %v3949_v55, %v3948_v28  ;;  %v4013_v38 = vpop.f32.mrf.mxu1  ;;  %v2636_v41 = vadd.f32 %v5382_v14, %v2613_v59  ;;  %v2291_v25 = vadd.f32 %v3834_v62, %v5251_v61 }
 0x1c3   :  { %v3951_v39 = vpop.f32.mrf.mxu0  ;;  %v4014_v9 = vadd.f32 %v4013_v38, %v4012_v20  ;;  %v3840_v61 = vadd.f32 %v5348_v50, %v5343_v36 }
 0x1c4   :  { %v2614_v32 = vmul.f32 %v5374_v40, %v2563_v26  ;;  %v2469_v46 = vadd.f32 %v3950_v23, %v2372_v12  ;;  %v4015_v30 = vpop.f32.mrf.mxu1  ;;  %v2652_v54 = vmax.f32 %v2636_v41, 0.0  ;;  %v3898_v26 = vadd.f32 %v5341_v7, %v5335_v4 }
 0x1c5   :  { %v3952_v51 = vpop.f32.mrf.mxu0 }
 0x1c6   :  { %v2566_v29 = vadd.f32 %v4014_v9, %v2469_v46  ;;  %v3953_v0 = vadd.f32 %v3952_v51, %v3951_v39  ;;  %v4016_v48 = vpop.f32.mrf.mxu1  ;;  %v2665_v11 = vpack.c.bf16 %v2652_v54, %v2651_v44  ;;  %v2637_v53 = vadd.f32 %v5382_v14, %v2614_v32 }
 0x1c7   :  { %v3954_v58 = vpop.f32.mrf.mxu0  ;;  %v4017_v15 = vadd.f32 %v4016_v48, %v4015_v30  ;;  %v2388_v32 = vadd.f32 %v3898_v26, %v2291_v25  ;;  %v2299_v48 = vadd.f32 %v3840_v61, %v5257_v18 }
 0x1c8   :  { %v2615_v2 = vmul.f32 %v5374_v40, %v2566_v29  ;;  %v2474_v43 = vadd.f32 %v3953_v0, %v5328_v49  ;;  %v4018_v47 = vpop.f32.mrf.mxu1  ;;  %4091 = vmatprep.mubr.bf16.mxu0 %v2665_v11  ;;  %v2653_v52 = vmax.f32 %v2637_v53, 0.0 }
 0x1c9   :  { %v3955_v42 = vpop.f32.mrf.mxu0 }
 0x1ca   :  { %v2638_v45 = vadd.f32 %v5382_v14, %v2615_v2  ;;  %v2571_v19 = vadd.f32 %v4017_v15, %v2474_v43  ;;  %v3956_v60 = vadd.f32 %v3955_v42, %v3954_v58  ;;  %v4019_v13 = vpop.f32.mrf.mxu1  ;;  %v3904_v58 = vadd.f32 %v5352_v34, %v5346_v27 }
 0x1cb   :  { %v3957_v24 = vpop.f32.mrf.mxu0  ;;  %v4020_v49 = vadd.f32 %v4019_v13, %v4018_v47 }
 0x1cc   :  { %v2654_v28 = vmax.f32 %v2638_v45, 0.0  ;;  %v2616_v10 = vmul.f32 %v5374_v40, %v2571_v19  ;;  %v2477_v21 = vadd.f32 %v3956_v60, %v2380_v1  ;;  %v4021_v59 = vpop.f32.mrf.mxu1  ;;  %v2396_v62 = vadd.f32 %v3904_v58, %v2299_v48  ;;  %v5470_v48 = vld [vmem:[%s5662_s5] ss:$0 sm:$0xff] }
 0x1cd   :  { %v3958_v8 = vpop.f32.mrf.mxu0  ;;  %v3846_v45 = vadd.f32 %v5359_v6, %v5354_v57 }
 0x1ce   :  { %v2574_v20 = vadd.f32 %v4020_v49, %v2477_v21  ;;  %v3959_v22 = vadd.f32 %v3958_v8, %v3957_v24  ;;  %v4022_v55 = vpop.f32.mrf.mxu1  ;;  %v2666_v37 = vpack.c.bf16 %v2654_v28, %v2653_v52  ;;  %v2639_v12 = vadd.f32 %v5382_v14, %v2616_v10 }
 0x1cf   :  { %v3960_v31 = vpop.f32.mrf.mxu0  ;;  %v4023_v41 = vadd.f32 %v4022_v55, %v4021_v59  ;;  %v2307_v59 = vadd.f32 %v3846_v45, %v5263_v35  ;;  %v3910_v55 = vadd.f32 %v5365_v16, %v5357_v63 }
 0x1d0   :  { %v2617_v23 = vmul.f32 %v5374_v40, %v2574_v20  ;;  %v2482_v38 = vadd.f32 %v3959_v22, %v5339_v5  ;;  %v4024_v39 = vpop.f32.mrf.mxu1  ;;  %4092 = vmatmul.mubr.bf16.gmra.mxu0 %v2666_v37  ;;  %v2655_v51 = vmax.f32 %v2639_v12, 0.0 }
 0x1d1   :  { %v3961_v44 = vpop.f32.mrf.mxu0 }
 0x1d2   :  { %v2579_v46 = vadd.f32 %v4023_v41, %v2482_v38  ;;  %v3962_v9 = vadd.f32 %v3961_v44, %v3960_v31  ;;  %v4025_v30 = vpop.f32.mrf.mxu1  ;;  %v2640_v54 = vadd.f32 %v5382_v14, %v2617_v23  ;;  %v2404_v38 = vadd.f32 %v3910_v55, %v2307_v59 }
 0x1d3   :  { %v3963_v56 = vpop.f32.mrf.mxu0  ;;  %v4026_v29 = vadd.f32 %v4025_v30, %v4024_v39 }
 0x1d4   :  { %v2618_v4 = vmul.f32 %v5374_v40, %v2579_v46  ;;  %v2485_v7 = vadd.f32 %v3962_v9, %v2388_v32  ;;  %v4027_v5 = vpop.f32.mrf.mxu1  ;;  %v2656_v0 = vmax.f32 %v2640_v54, 0.0 }
 0x1d5   :  { %v3964_v11 = vpop.f32.mrf.mxu0 }
 0x1d6   :  { %v2582_v17 = vadd.f32 %v4026_v29, %v2485_v7  ;;  %v3965_v36 = vadd.f32 %v3964_v11, %v3963_v56  ;;  %v4028_v50 = vpop.f32.mrf.mxu1  ;;  %v2667_v53 = vpack.c.bf16 %v2656_v0, %v2655_v51  ;;  %v2641_v2 = vadd.f32 %v5382_v14, %v2618_v4  ;;  %v4275_v29 = vld [vmem:[%s5659_s7 + $0x18] sm:$0xff]  }
 0x1d7   :  { %v3966_v43 = vpop.f32.mrf.mxu0  ;;  %v4029_v1 = vadd.f32 %v4028_v50, %v4027_v5  ;;  %4111 = vmatprep.subr.bf16.mxu1 %v4275_v29  ;;  %v4276_v5 = vld [vmem:[%s5659_s7 + $0x10] sm:$0xff]  }
 0x1d8   :  { %v2619_v15 = vmul.f32 %v5374_v40, %v2582_v17  ;;  %v2490_v47 = vadd.f32 %v3965_v36, %v5350_v33  ;;  %v4030_v42 = vpop.f32.mrf.mxu1  ;;  %4095 = vmatprep.mubr.bf16.mxu0 %v2667_v53  ;;  %v2657_v34 = vmax.f32 %v2641_v2, 0.0  ;;  %4112 = vmatpush3.bf16.msra.mxu1 %v4275_v29  ;;  %v5477_v53 = vld [vmem:[%s5663_s6] ss:$0 sm:$0xff] }
 0x1d9   :  { %v3967_v18 = vpop.f32.mrf.mxu0  ;;  %4113 = vmatprep.subr.bf16.mxu1 %v4276_v5 }
 0x1da   :  { %v2642_v19 = vadd.f32 %v5382_v14, %v2619_v15  ;;  %v2587_v60 = vadd.f32 %v4029_v1, %v2490_v47  ;;  %v3968_v13 = vadd.f32 %v3967_v18, %v3966_v43  ;;  %v4031_v27 = vpop.f32.mrf.mxu1 }
 0x1db   :  { %v3969_v52 = vpop.f32.mrf.mxu0  ;;  %v4032_v33 = vadd.f32 %v4031_v27, %v4030_v42 }
 0x1dc   :  { %v2658_v24 = vmax.f32 %v2642_v19, 0.0  ;;  %v2620_v28 = vmul.f32 %v5374_v40, %v2587_v60  ;;  %v2493_v10 = vadd.f32 %v3968_v13, %v2396_v62  ;;  %v4033_v21 = vpop.f32.mrf.mxu1  ;;  %4114 = vmatpush3.bf16.msra.mxu1 %v4276_v5 }
 0x1dd   :  { %v3970_v49 = vpop.f32.mrf.mxu0 }
 0x1de   :  { %v2590_v8 = vadd.f32 %v4032_v33, %v2493_v10  ;;  %v3971_v25 = vadd.f32 %v3970_v49, %v3969_v52  ;;  %v4034_v20 = vpop.f32.mrf.mxu1  ;;  %v2668_v57 = vpack.c.bf16 %v2658_v24, %v2657_v34  ;;  %v2643_v22 = vadd.f32 %v5382_v14, %v2620_v28 }
 0x1df   :  { %v3972_v6 = vpop.f32.mrf.mxu0  ;;  %v4035_v12 = vadd.f32 %v4034_v20, %v4033_v21 }
 0x1e0   :  { %v2621_v37 = vmul.f32 %v5374_v40, %v2590_v8  ;;  %v2498_v31 = vadd.f32 %v3971_v25, %v5363_v3  ;;  %v4036_v26 = vpop.f32.mrf.mxu1  ;;  %4096 = vmatmul.mubr.bf16.gmra.mxu0 %v2668_v57  ;;  %v2659_v44 = vmax.f32 %v2643_v22, 0.0 }
 0x1e1   :  { %v3973_v23 = vpop.f32.mrf.mxu0 }
 0x1e2   :  { %v2595_v35 = vadd.f32 %v4035_v12, %v2498_v31  ;;  %v3974_v41 = vadd.f32 %v3973_v23, %v3972_v6  ;;  %v4037_v39 = vpop.f32.mrf.mxu1  ;;  %v2644_v61 = vadd.f32 %v5382_v14, %v2621_v37 }
 0x1e3   :  { %v4038_v9 = vadd.f32 %v4037_v39, %v4036_v26 }
 0x1e4   :  { %v2622_v32 = vmul.f32 %v5374_v40, %v2595_v35  ;;  %v2501_v46 = vadd.f32 %v3974_v41, %v2404_v38  ;;  %v2660_v63 = vmax.f32 %v2644_v61, 0.0 }
 0x1e6   :  { %v2598_v16 = vadd.f32 %v4038_v9, %v2501_v46  ;;  %v2669_v30 = vpack.c.bf16 %v2660_v63, %v2659_v44  ;;  %v2645_v3 = vadd.f32 %v5382_v14, %v2622_v32 }
 0x1e8   :  { %v2623_v54 = vmul.f32 %v5374_v40, %v2598_v16  ;;  %4099 = vmatprep.mubr.bf16.mxu0 %v2669_v30  ;;  %v2661_v51 = vmax.f32 %v2645_v3, 0.0  ;;  %v4277_v40 = vld [vmem:[%s5659_s7 + $0x8] sm:$0xff]  }
 0x1e9   :  { %4115 = vmatprep.subr.bf16.mxu1 %v4277_v40 }
 0x1ea   :  { %v2646_v56 = vadd.f32 %v5382_v14, %v2623_v54  ;;  %4116 = vmatpush3.bf16.msra.mxu1 %v4277_v40  ;;  %v4278_v14 = vld [vmem:[%s5659_s7] sm:$0xff]  }
 0x1eb   :  { %4117 = vmatprep.subr.bf16.mxu1 %v4278_v14 }
 0x1ec   :  { %v2662_v4 = vmax.f32 %v2646_v56, 0.0 }
 0x1ee   :  { %v2670_v7 = vpack.c.bf16 %v2662_v4, %v2661_v51  ;;  %4118 = vmatpush3.bf16.msra.mxu1 %v4278_v14 }
 0x1f0   :  { %4100 = vmatmul.mubr.bf16.gmra.mxu0 %v2670_v7 }
 0x280   :  { %v4089_v0 = vpop.f32.mrf.mxu0 }
 0x281   :  { %v2841_v36 = vmul.f32 %v4089_v0, %v5470_v48 }
 0x282   :  { %v2769_v11 = vpop.f32.mrf.mxu0 }
 0x283   :  { %v2839_v17 = vmul.f32 %v5470_v48, %v2769_v11  ;;  %v2864_v1 = vadd.f32 %v5477_v53, %v2841_v36 }
 0x284   :  { %v4090_v50 = vpop.f32.mrf.mxu0 }
 0x285   :  { %v2842_v58 = vmul.f32 %v4090_v50, %v5470_v48  ;;  %v2862_v43 = vadd.f32 %v5477_v53, %v2839_v17  ;;  %v2880_v19 = vmax.f32 %v2864_v1, 0.0  ;;  %v3518_v1 = vld [vmem:[%s5664_s8] ss:$0 sm:$0xff] }
 0x286   :  { %v2772_v2 = vpop.f32.mrf.mxu0 }
 0x287   :  { %v2865_v15 = vadd.f32 %v5477_v53, %v2842_v58  ;;  %v2840_v47 = vmul.f32 %v5470_v48, %v2772_v2  ;;  %v2878_v18 = vmax.f32 %v2862_v43, 0.0 }
 0x289   :  { %v2863_v42 = vadd.f32 %v5477_v53, %v2840_v47  ;;  %v2881_v62 = vmax.f32 %v2865_v15, 0.0 }
 0x28b   :  { %v2879_v45 = vmax.f32 %v2863_v42, 0.0  ;;  %v2895_v13 = vpack.c.bf16 %v2881_v62, %v2880_v19 }
 0x28d   :  { %v2894_v60 = vpack.c.bf16 %v2879_v45, %v2878_v18 }
 0x28f   :  { %4119 = vmatprep.mubr.bf16.mxu1 %v2894_v60 }
 0x290   :  { %v4093_v27 = vpop.f32.mrf.mxu0  ;;  %4120 = vmatmul.mubr.bf16.vlgmr.msra.gmra.mxu1 %v2895_v13 }
 0x291   :  { %v2845_v24 = vmul.f32 %v4093_v27, %v5470_v48 }
 0x292   :  { %v2785_v34 = vpop.f32.mrf.mxu0 }
 0x293   :  { %v2843_v52 = vmul.f32 %v5470_v48, %v2785_v34  ;;  %v2868_v8 = vadd.f32 %v5477_v53, %v2845_v24 }
 0x294   :  { %v4094_v28 = vpop.f32.mrf.mxu0 }
 0x295   :  { %v2846_v10 = vmul.f32 %v4094_v28, %v5470_v48  ;;  %v2866_v21 = vadd.f32 %v5477_v53, %v2843_v52  ;;  %v2884_v22 = vmax.f32 %v2868_v8, 0.0 }
 0x296   :  { %v2788_v33 = vpop.f32.mrf.mxu0 }
 0x297   :  { %v2869_v49 = vadd.f32 %v5477_v53, %v2846_v10  ;;  %v2844_v59 = vmul.f32 %v5470_v48, %v2788_v33  ;;  %v2882_v57 = vmax.f32 %v2866_v21, 0.0 }
 0x299   :  { %v2867_v25 = vadd.f32 %v5477_v53, %v2844_v59  ;;  %v2885_v20 = vmax.f32 %v2869_v49, 0.0 }
 0x29b   :  { %v2883_v6 = vmax.f32 %v2867_v25, 0.0  ;;  %v2897_v37 = vpack.c.bf16 %v2885_v20, %v2884_v22 }
 0x29d   :  { %v2896_v55 = vpack.c.bf16 %v2883_v6, %v2882_v57 }
 0x29f   :  { %4123 = vmatprep.mubr.bf16.mxu1 %v2896_v55 }
 0x2a0   :  { %v4097_v31 = vpop.f32.mrf.mxu0  ;;  %4124 = vmatmul.mubr.bf16.gmra.mxu1 %v2897_v37 }
 0x2a1   :  { %v2849_v23 = vmul.f32 %v4097_v31, %v5470_v48 }
 0x2a2   :  { %v2801_v12 = vpop.f32.mrf.mxu0 }
 0x2a3   :  { %v2847_v26 = vmul.f32 %v5470_v48, %v2801_v12  ;;  %v2872_v32 = vadd.f32 %v5477_v53, %v2849_v23 }
 0x2a4   :  { %v4098_v38 = vpop.f32.mrf.mxu0 }
 0x2a5   :  { %v2850_v35 = vmul.f32 %v4098_v38, %v5470_v48  ;;  %v2870_v39 = vadd.f32 %v5477_v53, %v2847_v26  ;;  %v2888_v30 = vmax.f32 %v2872_v32, 0.0 }
 0x2a6   :  { %v2804_v41 = vpop.f32.mrf.mxu0 }
 0x2a7   :  { %v2873_v61 = vadd.f32 %v5477_v53, %v2850_v35  ;;  %v2848_v44 = vmul.f32 %v5470_v48, %v2804_v41  ;;  %v2886_v63 = vmax.f32 %v2870_v39, 0.0 }
 0x2a9   :  { %v2871_v46 = vadd.f32 %v5477_v53, %v2848_v44  ;;  %v2889_v9 = vmax.f32 %v2873_v61, 0.0 }
 0x2ab   :  { %v2887_v16 = vmax.f32 %v2871_v46, 0.0  ;;  %v2899_v54 = vpack.c.bf16 %v2889_v9, %v2888_v30 }
 0x2ad   :  { %v2898_v3 = vpack.c.bf16 %v2887_v16, %v2886_v63 }
 0x2af   :  { %4127 = vmatprep.mubr.bf16.mxu1 %v2898_v3 }
 0x2b0   :  { %v4101_v56 = vpop.f32.mrf.mxu0  ;;  %4128 = vmatmul.mubr.bf16.gmra.mxu1 %v2899_v54 }
 0x2b1   :  { %v2853_v7 = vmul.f32 %v4101_v56, %v5470_v48 }
 0x2b2   :  { %v2817_v51 = vpop.f32.mrf.mxu0 }
 0x2b3   :  { %v2851_v4 = vmul.f32 %v5470_v48, %v2817_v51  ;;  %v2876_v17 = vadd.f32 %v5477_v53, %v2853_v7 }
 0x2b4   :  { %v4102_v29 = vpop.f32.mrf.mxu0 }
 0x2b5   :  { %v2854_v5 = vmul.f32 %v4102_v29, %v5470_v48  ;;  %v2874_v14 = vadd.f32 %v5477_v53, %v2851_v4  ;;  %v2892_v43 = vmax.f32 %v2876_v17, 0.0 }
 0x2b6   :  { %v2820_v40 = vpop.f32.mrf.mxu0 }
 0x2b7   :  { %v2877_v0 = vadd.f32 %v5477_v53, %v2854_v5  ;;  %v2852_v11 = vmul.f32 %v5470_v48, %v2820_v40  ;;  %v2890_v58 = vmax.f32 %v2874_v14, 0.0 }
 0x2b9   :  { %v2875_v36 = vadd.f32 %v5477_v53, %v2852_v11  ;;  %v2893_v50 = vmax.f32 %v2877_v0, 0.0 }
 0x2bb   :  { %v2891_v2 = vmax.f32 %v2875_v36, 0.0  ;;  %v2901_v47 = vpack.c.bf16 %v2893_v50, %v2892_v43 }
 0x2bd   :  { %v2900_v15 = vpack.c.bf16 %v2891_v2, %v2890_v58 }
 0x2bf   :  { %4131 = vmatprep.mubr.bf16.mxu1 %v2900_v15 }
 0x2c0   :  { %4132 = vmatmul.mubr.bf16.gmra.mxu1 %v2901_v47 }
 0x350   :  { %v4121_v42 = vpop.f32.mrf.mxu1 }
 0x351   :  { %v3016_v62 = vadd.f32 %v4121_v42, %v3518_v1 }
 0x352   :  { %v3007_v18 = vpop.f32.mrf.mxu1 }
 0x353   :  { %v3008_v48 = vadd.f32 %v3518_v1, %v3007_v18  ;;  %3074 = vmax.xlane.f32.xlu1 %v3016_v62 }
 0x354   :  { %v4122_v45 = vpop.f32.mrf.mxu1 }
 0x355   :  { %v3019_v19 = vadd.f32 %v4122_v45, %v3518_v1  ;;  %3070 = vmax.xlane.f32.xlu0 %v3008_v48 }
 0x356   :  { %v3010_v53 = vpop.f32.mrf.mxu1 }
 0x357   :  { %v3011_v60 = vadd.f32 %v3518_v1, %v3010_v53  ;;  %3076 = vmax.xlane.f32.xlu1 %v3019_v19 }
 0x359   :  { %3072 = vmax.xlane.f32.xlu0 %v3011_v60 }
 0x360   :  { %v4125_v13 = vpop.f32.mrf.mxu1 }
 0x361   :  { %v3032_v27 = vadd.f32 %v4125_v13, %v3518_v1 }
 0x362   :  { %v3023_v34 = vpop.f32.mrf.mxu1 }
 0x363   :  { %3082 = vmax.xlane.f32.xlu0 %v3032_v27  ;;  %v3024_v24 = vadd.f32 %v3518_v1, %v3023_v34 }
 0x364   :  { %v4126_v52 = vpop.f32.mrf.mxu1 }
 0x365   :  { %v3035_v28 = vadd.f32 %v4126_v52, %v3518_v1 }
 0x366   :  { %v3026_v10 = vpop.f32.mrf.mxu1 }
 0x367   :  { %3084 = vmax.xlane.f32.xlu1 %v3035_v28  ;;  %3078 = vmax.xlane.f32.xlu0 %v3024_v24  ;;  %v3027_v33 = vadd.f32 %v3518_v1, %v3026_v10 }
 0x36b   :  { %3080 = vmax.xlane.f32.xlu1 %v3027_v33 }
 0x370   :  { %v4129_v21 = vpop.f32.mrf.mxu1 }
 0x371   :  { %v5512_v49 = vadd.f32 %v4129_v21, %v3518_v1 }
 0x372   :  { %v3039_v59 = vpop.f32.mrf.mxu1 }
 0x373   :  { %3090 = vmax.xlane.f32.xlu0 %v5512_v49  ;;  %v5515_v25 = vadd.f32 %v3518_v1, %v3039_v59 }
 0x374   :  { %v4130_v8 = vpop.f32.mrf.mxu1 }
 0x375   :  { %v5517_v20 = vadd.f32 %v4130_v8, %v3518_v1 }
 0x376   :  { %v3042_v57 = vpop.f32.mrf.mxu1 }
 0x377   :  { %3092 = vmax.xlane.f32.xlu1 %v5517_v20  ;;  %3086 = vmax.xlane.f32.xlu0 %v5515_v25  ;;  %v5521_v6 = vadd.f32 %v3518_v1, %v3042_v57 }
 0x37b   :  { %3088 = vmax.xlane.f32.xlu1 %v5521_v6 }
 0x380   :  { %v4133_v22 = vpop.f32.mrf.mxu1 }
 0x381   :  { %v5527_v26 = vadd.f32 %v4133_v22, %v3518_v1 }
 0x382   :  { %v3055_v55 = vpop.f32.mrf.mxu1 }
 0x383   :  { %v5524_v37 = vadd.f32 %v3518_v1, %v3055_v55 }
 0x384   :  { %v4134_v31 = vpop.f32.mrf.mxu1 }
 0x385   :  { %3094 = vmax.xlane.f32.xlu0 %v5524_v37  ;;  %v5533_v38 = vadd.f32 %v4134_v31, %v3518_v1 }
 0x386   :  { %v3058_v12 = vpop.f32.mrf.mxu1 }
 0x387   :  { %v5529_v23 = vadd.f32 %v3518_v1, %v3058_v12 }
 0x389   :  { %3096 = vmax.xlane.f32.xlu1 %v5529_v23  ;;  %3098 = vmax.xlane.f32.xlu0 %v5527_v26 }
 0x38d   :  { %3100 = vmax.xlane.f32.xlu1 %v5533_v38 }
 0x3dc   :  { %v3075_v35 = vpop.xlane.xlu1 %3074 }
 0x3dd   :  { %v5536_v41 = vsub.f32 %v3016_v62, %v3075_v35 }
 0x3de   :  { %v3071_v39 = vpop.xlane.xlu0 %3070 }
 0x3df   :  { %v3122_v61 = vmul.f32 1.442695, %v5536_v41  ;;  %v5539_v44 = vsub.f32 %v3008_v48, %v3071_v39 }
 0x3e0   :  { %v3077_v32 = vpop.xlane.xlu1 %3076 }
 0x3e1   :  { %4279 = vpow2.f32 %v3122_v61  ;;  %v3118_v46 = vmul.f32 1.442695, %v5539_v44  ;;  %v5542_v9 = vsub.f32 %v3019_v19, %v3077_v32 }
 0x3e2   :  { %v3073_v63 = vpop.xlane.xlu0 %3072 }
 0x3e3   :  { %v3124_v16 = vmul.f32 1.442695, %v5542_v9  ;;  %v5545_v30 = vsub.f32 %v3011_v60, %v3073_v63  ;;  %4281 = vpow2.f32 %v3118_v46 }
 0x3e5   :  { %4283 = vpow2.f32 %v3124_v16  ;;  %v3120_v3 = vmul.f32 1.442695, %v5545_v30 }
 0x3e7   :  { %4285 = vpow2.f32 %v3120_v3 }
 0x3ec   :  { %v3083_v54 = vpop.xlane.xlu0 %3082 }
 0x3ed   :  { %v5548_v56 = vsub.f32 %v3032_v27, %v3083_v54 }
 0x3ee   :  { %v4280_v51 = vpop.eup %4279 }
 0x3ef   :  { %v3130_v4 = vmul.f32 1.442695, %v5548_v56  ;;  %3154 = vadd.xlane.f32.xlu0 %v4280_v51 }
 0x3f0   :  { %v3085_v7 = vpop.xlane.xlu1 %3084  ;;  %v3079_v29 = vpop.xlane.xlu0 %3078 }
 0x3f1   :  { %v4282_v5 = vpop.eup %4281  ;;  %4287 = vpow2.f32 %v3130_v4  ;;  %v5551_v40 = vsub.f32 %v3035_v28, %v3085_v7  ;;  %v5553_v14 = vsub.f32 %v3024_v24, %v3079_v29 }
 0x3f2   :  { %v4284_v0 = vpop.eup %4283 }
 0x3f3   :  { %v3132_v11 = vmul.f32 1.442695, %v5551_v40  ;;  %v3126_v17 = vmul.f32 1.442695, %v5553_v14  ;;  %3156 = vadd.xlane.f32.xlu1 %v4284_v0  ;;  %3150 = vadd.xlane.f32.xlu0 %v4282_v5 }
 0x3f4   :  { %v3081_v36 = vpop.xlane.xlu1 %3080  ;;  %v4286_v58 = vpop.eup %4285 }
 0x3f5   :  { %4289 = vpow2.f32 %v3132_v11  ;;  %v5557_v50 = vsub.f32 %v3027_v33, %v3081_v36 }
 0x3f6   :  { %4291 = vpow2.f32 %v3126_v17 }
 0x3f7   :  { %v3128_v2 = vmul.f32 1.442695, %v5557_v50  ;;  %3152 = vadd.xlane.f32.xlu1 %v4286_v58 }
 0x3f9   :  { %4293 = vpow2.f32 %v3128_v2 }
 0x3fc   :  { %v3091_v43 = vpop.xlane.xlu0 %3090 }
 0x3fd   :  { %v5561_v15 = vsub.f32 %v5512_v49, %v3091_v43 }
 0x3fe   :  { %v4288_v47 = vpop.eup %4287 }
 0x3ff   :  { %v3138_v1 = vmul.f32 1.442695, %v5561_v15  ;;  %3162 = vadd.xlane.f32.xlu0 %v4288_v47 }
 0x400   :  { %v3093_v42 = vpop.xlane.xlu1 %3092  ;;  %v3087_v62 = vpop.xlane.xlu0 %3086 }
 0x401   :  { %4295 = vpow2.f32 %v3138_v1  ;;  %v5565_v18 = vsub.f32 %v5517_v20, %v3093_v42  ;;  %v5568_v48 = vsub.f32 %v5515_v25, %v3087_v62 }
 0x402   :  { %v4290_v45 = vpop.eup %4289 }
 0x403   :  { %v4292_v19 = vpop.eup %4291  ;;  %v3140_v53 = vmul.f32 1.442695, %v5565_v18  ;;  %v3134_v60 = vmul.f32 1.442695, %v5568_v48  ;;  %3164 = vadd.xlane.f32.xlu1 %v4290_v45 }
 0x404   :  { %3158 = vadd.xlane.f32.xlu0 %v4292_v19  ;;  %v3089_v13 = vpop.xlane.xlu1 %3088 }
 0x405   :  { %4297 = vpow2.f32 %v3140_v53  ;;  %v5573_v27 = vsub.f32 %v5521_v6, %v3089_v13 }
 0x406   :  { %v4294_v34 = vpop.eup %4293  ;;  %4299 = vpow2.f32 %v3134_v60 }
 0x407   :  { %v3136_v52 = vmul.f32 1.442695, %v5573_v27  ;;  %3160 = vadd.xlane.f32.xlu1 %v4294_v34 }
 0x409   :  { %4301 = vpow2.f32 %v3136_v52 }
 0x40e   :  { %v4296_v24 = vpop.eup %4295  ;;  %v3095_v28 = vpop.xlane.xlu0 %3094 }
 0x40f   :  { %v5577_v10 = vsub.f32 %v5524_v37, %v3095_v28  ;;  %3170 = vadd.xlane.f32.xlu0 %v4296_v24 }
 0x411   :  { %v3142_v33 = vmul.f32 1.442695, %v5577_v10 }
 0x412   :  { %v4298_v21 = vpop.eup %4297  ;;  %v3097_v49 = vpop.xlane.xlu1 %3096 }
 0x413   :  { %v3099_v59 = vpop.xlane.xlu0 %3098  ;;  %v4300_v8 = vpop.eup %4299  ;;  %4303 = vpow2.f32 %v3142_v33  ;;  %v5581_v25 = vsub.f32 %v5529_v23, %v3097_v49  ;;  %3172 = vadd.xlane.f32.xlu1 %v4298_v21 }
 0x414   :  { %v5584_v20 = vsub.f32 %v5527_v26, %v3099_v59  ;;  %3166 = vadd.xlane.f32.xlu0 %v4300_v8 }
 0x415   :  { %v3144_v57 = vmul.f32 1.442695, %v5581_v25 }
 0x416   :  { %v3146_v6 = vmul.f32 1.442695, %v5584_v20  ;;  %v4302_v22 = vpop.eup %4301  ;;  %v3101_v55 = vpop.xlane.xlu1 %3100 }
 0x417   :  { %4305 = vpow2.f32 %v3144_v57  ;;  %v5589_v37 = vsub.f32 %v5533_v38, %v3101_v55  ;;  %3168 = vadd.xlane.f32.xlu1 %v4302_v22 }
 0x418   :  { %4307 = vpow2.f32 %v3146_v6 }
 0x419   :  { %v3148_v31 = vmul.f32 1.442695, %v5589_v37 }
 0x41b   :  { %4309 = vpow2.f32 %v3148_v31 }
 0x420   :  { %v4304_v12 = vpop.eup %4303 }
 0x421   :  { %3174 = vadd.xlane.f32.xlu0 %v4304_v12 }
 0x424   :  { %v4306_v26 = vpop.eup %4305 }
 0x425   :  { %v4308_v23 = vpop.eup %4307  ;;  %3176 = vadd.xlane.f32.xlu1 %v4306_v26 }
 0x426   :  { %3178 = vadd.xlane.f32.xlu0 %v4308_v23 }
 0x428   :  { %v4310_v35 = vpop.eup %4309 }
 0x429   :  { %3180 = vadd.xlane.f32.xlu1 %v4310_v35 }
 0x478   :  { %v3155_v39 = vpop.xlane.xlu0 %3154 }
 0x479   :  { %4311 = vlog2.f32 %v3155_v39 }
 0x47c   :  { %v3157_v61 = vpop.xlane.xlu1 %3156  ;;  %v3151_v32 = vpop.xlane.xlu0 %3150 }
 0x47d   :  { %4313 = vlog2.f32 %v3157_v61 }
 0x47e   :  { %4315 = vlog2.f32 %v3151_v32 }
 0x480   :  { %v3153_v38 = vpop.xlane.xlu1 %3152 }
 0x481   :  { %4317 = vlog2.f32 %v3153_v38 }
 0x486   :  { %v4312_v46 = vpop.eup %4311 }
 0x487   :  { %v3187_v63 = vmul.f32 0.6931472, %v4312_v46 }
 0x488   :  { %v3163_v16 = vpop.xlane.xlu0 %3162 }
 0x489   :  { %v3216_v3 = vsub.f32 %v5536_v41, %v3187_v63  ;;  %4319 = vlog2.f32 %v3163_v16 }
 0x48a   :  { %v4314_v54 = vpop.eup %4313 }
 0x48b   :  { %v4316_v51 = vpop.eup %4315  ;;  %3232 = vst [vmem:[%s5665_s9 + $0x10] sm:$0xff] %v3216_v3  ;;  %v3189_v4 = vmul.f32 0.6931472, %v4314_v54 }
 0x48c   :  { %v3183_v7 = vmul.f32 0.6931472, %v4316_v51  ;;  %v3165_v29 = vpop.xlane.xlu1 %3164 }
 0x48d   :  { %v3217_v5 = vsub.f32 %v5542_v9, %v3189_v4  ;;  %4321 = vlog2.f32 %v3165_v29  ;;  %v3159_v0 = vpop.xlane.xlu0 %3158 }
 0x48e   :  { %v4318_v11 = vpop.eup %4317  ;;  %v3214_v17 = vsub.f32 %v5539_v44, %v3183_v7  ;;  %4323 = vlog2.f32 %v3159_v0 }
 0x48f   :  { %3233 = vst [vmem:[%s5665_s9 + $0x18] sm:$0xff] %v3217_v5  ;;  %v3185_v41 = vmul.f32 0.6931472, %v4318_v11 }
 0x490   :  { %3230 = vst [vmem:[%s5665_s9] sm:$0xff] %v3214_v17  ;;  %v3161_v36 = vpop.xlane.xlu1 %3160 }
 0x491   :  { %v3215_v58 = vsub.f32 %v5545_v30, %v3185_v41  ;;  %4325 = vlog2.f32 %v3161_v36 }
 0x493   :  { %3231 = vst [vmem:[%s5665_s9 + $0x8] sm:$0xff] %v3215_v58 }
 0x496   :  { %v4320_v9 = vpop.eup %4319 }
 0x497   :  { %v3195_v44 = vmul.f32 0.6931472, %v4320_v9 }
 0x498   :  { %v3171_v2 = vpop.xlane.xlu0 %3170 }
 0x499   :  { %v3220_v43 = vsub.f32 %v5548_v56, %v3195_v44  ;;  %4327 = vlog2.f32 %v3171_v2 }
 0x49a   :  { %v4322_v47 = vpop.eup %4321 }
 0x49b   :  { %v4324_v1 = vpop.eup %4323  ;;  %3236 = vst [vmem:[%s5665_s9 + $0x30] sm:$0xff] %v3220_v43  ;;  %v3197_v42 = vmul.f32 0.6931472, %v4322_v47 }
 0x49c   :  { %v3191_v62 = vmul.f32 0.6931472, %v4324_v1  ;;  %v3173_v30 = vpop.xlane.xlu1 %3172 }
 0x49d   :  { %v3221_v45 = vsub.f32 %v5551_v40, %v3197_v42  ;;  %4329 = vlog2.f32 %v3173_v30  ;;  %v3167_v19 = vpop.xlane.xlu0 %3166 }
 0x49e   :  { %v4326_v53 = vpop.eup %4325  ;;  %v3218_v60 = vsub.f32 %v5553_v14, %v3191_v62  ;;  %4331 = vlog2.f32 %v3167_v19 }
 0x49f   :  { %3237 = vst [vmem:[%s5665_s9 + $0x38] sm:$0xff] %v3221_v45  ;;  %v3193_v56 = vmul.f32 0.6931472, %v4326_v53 }
 0x4a0   :  { %3234 = vst [vmem:[%s5665_s9 + $0x20] sm:$0xff] %v3218_v60  ;;  %v3169_v13 = vpop.xlane.xlu1 %3168 }
 0x4a1   :  { %v3219_v34 = vsub.f32 %v5557_v50, %v3193_v56  ;;  %4333 = vlog2.f32 %v3169_v13 }
 0x4a3   :  { %3235 = vst [vmem:[%s5665_s9 + $0x28] sm:$0xff] %v3219_v34 }
 0x4a6   :  { %v4328_v40 = vpop.eup %4327 }
 0x4a7   :  { %v3203_v14 = vmul.f32 0.6931472, %v4328_v40 }
 0x4a9   :  { %v3224_v52 = vsub.f32 %v5561_v15, %v3203_v14 }
 0x4aa   :  { %v4330_v24 = vpop.eup %4329  ;;  %v3175_v28 = vpop.xlane.xlu0 %3174 }
 0x4ab   :  { %v4332_v33 = vpop.eup %4331  ;;  %3240 = vst [vmem:[%s5665_s9 + $0x50] sm:$0xff] %v3224_v52  ;;  %v3205_v21 = vmul.f32 0.6931472, %v4330_v24  ;;  %4335 = vlog2.f32 %v3175_v28 }
 0x4ac   :  { %v3199_v49 = vmul.f32 0.6931472, %v4332_v33 }
 0x4ad   :  { %v3225_v50 = vsub.f32 %v5565_v18, %v3205_v21 }
 0x4ae   :  { %v4334_v59 = vpop.eup %4333  ;;  %v3222_v8 = vsub.f32 %v5568_v48, %v3199_v49  ;;  %v3177_v57 = vpop.xlane.xlu1 %3176 }
 0x4af   :  { %3241 = vst [vmem:[%s5665_s9 + $0x58] sm:$0xff] %v3225_v50  ;;  %v3201_v15 = vmul.f32 0.6931472, %v4334_v59  ;;  %4337 = vlog2.f32 %v3177_v57  ;;  %v3179_v6 = vpop.xlane.xlu0 %3178 }
 0x4b0   :  { %3238 = vst [vmem:[%s5665_s9 + $0x40] sm:$0xff] %v3222_v8  ;;  %4339 = vlog2.f32 %v3179_v6 }
 0x4b1   :  { %v3223_v22 = vsub.f32 %v5573_v27, %v3201_v15 }
 0x4b2   :  { %v3181_v55 = vpop.xlane.xlu1 %3180 }
 0x4b3   :  { %3239 = vst [vmem:[%s5665_s9 + $0x48] sm:$0xff] %v3223_v22  ;;  %4341 = vlog2.f32 %v3181_v55 }
 0x4b8   :  { %v4336_v18 = vpop.eup %4335 }
 0x4b9   :  { %v3207_v48 = vmul.f32 0.6931472, %v4336_v18 }
 0x4bb   :  { %v3226_v31 = vsub.f32 %v5577_v10, %v3207_v48 }
 0x4bc   :  { %v4338_v12 = vpop.eup %4337 }
 0x4bd   :  { %v4340_v26 = vpop.eup %4339  ;;  %3242 = vst [vmem:[%s5665_s9 + $0x60] sm:$0xff] %v3226_v31  ;;  %v3209_v23 = vmul.f32 0.6931472, %v4338_v12 }
 0x4be   :  { %v3211_v35 = vmul.f32 0.6931472, %v4340_v26 }
 0x4bf   :  { %v3227_v27 = vsub.f32 %v5581_v25, %v3209_v23 }
 0x4c0   :  { %v4342_v39 = vpop.eup %4341  ;;  %v3228_v61 = vsub.f32 %v5584_v20, %v3211_v35 }
 0x4c1   :  { %3243 = vst [vmem:[%s5665_s9 + $0x68] sm:$0xff] %v3227_v27  ;;  %v3213_v32 = vmul.f32 0.6931472, %v4342_v39 }
 0x4c2   :  { %3244 = vst [vmem:[%s5665_s9 + $0x70] sm:$0xff] %v3228_v61 }
 0x4c3   :  { %v3229_v10 = vsub.f32 %v5589_v37, %v3213_v32 }
 0x4c5   :  { %3245 = vst [vmem:[%s5665_s9 + $0x78] sm:$0xff] %v3229_v10 }

// kernel: dann_forward.5
= control target key start
LH: loop header
LB: loop body
LE: loop exit
PB: predicated region body
PF: predicated region fallthrough
CT: control target
= control target key end

     0   :  { %s6287_s15 = smov 0   ;;  %s7289_s0 = inlined_call_operand.vmem [shape: bf16[2,5,96,128], index: 0, kind: input, shape index: {}]   ;;  %s7290_s1 = inlined_call_operand.vmem [shape: bf16[3200,128], index: 1, kind: input, shape index: {}]   ;;  %s7291_s2 = inlined_call_operand.vmem [shape: f32[1,128], index: 2, kind: input, shape index: {}]   ;;  %s7292_s3 = inlined_call_operand.vmem [shape: f32[1,128], index: 3, kind: input, shape index: {}]   ;;  %s7293_s4 = inlined_call_operand.vmem [shape: bf16[2,4,4,128], index: 4, kind: output, shape index: {}]  }
   0x1 LB: > { %s4553_s16 = sadd.s32 4294967295, %s6260_s15   ;;  %p4557_p0 = scmp.ge.s32.totalorder %s6260_s15, 1  ;;  %s6260_s15 = sphi %s6287_s15, %s14_s15  }
   0x2   : > { %p162_p1 = scmp.lt.s32.totalorder %s6260_s15, 3 }
   0x4   : > { %p163_p2 = pnand %p4557_p0, %p162_p1 }
   0x6   : > { %166 = sbr.rel (%p163_p2) target bundleno = 674 (0x2a2), region = 36 }
   0xb   : > { %v5954_v0 = vld [vmem:[%s7290_s1 + $0x78] sm:$0xff]   ;;  %p188_p3 = scmp.lt.s32.totalorder %s4553_s16, 1  ;;  %v5956_v2 = vld [vmem:[%s7290_s1 + $0x70] sm:$0xff]   ;;  %v5958_v4 = vld [vmem:[%s7290_s1 + $0x68] sm:$0xff]  }
   0xc   : > { %v5955_v1 = vld [vmem:[%s7290_s1 + $0x38] sm:$0xff]   ;;  %5329 = vmatprep.subr.bf16.mxu0 %v5954_v0  ;;  %v5957_v3 = vld [vmem:[%s7290_s1 + $0x30] sm:$0xff]   ;;  %v5959_v5 = vld [vmem:[%s7290_s1 + $0x28] sm:$0xff]  }
   0xd   : > { %5353 = vmatprep.subr.bf16.mxu1 %v5955_v1  ;;  %5330 = vmatpush3.bf16.msra.mxu0 %v5954_v0  ;;  %s7317_s16 = smov (!%p188_p3, %s4553_s16), 1  ;;  %v5960_v6 = vld [vmem:[%s7290_s1 + $0x60] sm:$0xff]   ;;  %v5962_v8 = vld [vmem:[%s7290_s1 + $0x58] sm:$0xff]   ;;  %v5964_v10 = vld [vmem:[%s7290_s1 + $0x50] sm:$0xff]  }
   0xe   : > { %5354 = vmatpush3.bf16.msra.mxu1 %v5955_v1  ;;  %5331 = vmatprep.subr.bf16.mxu0 %v5956_v2  ;;  %v5961_v7 = vld [vmem:[%s7290_s1 + $0x20] sm:$0xff]   ;;  %s5945_s7 = smul.u32 240, %s7317_s16  ;;  %v5963_v9 = vld [vmem:[%s7290_s1 + $0x18] sm:$0xff]   ;;  %v5965_v11 = vld [vmem:[%s7290_s1 + $0x10] sm:$0xff]   ;;  %s5028_s6 = sshll.u32 %s7317_s16, 3 }
   0xf   : > { %5355 = vmatprep.subr.bf16.mxu1 %v5957_v3  ;;  %v5966_v14 = vld [vmem:[%s7290_s1 + $0x48] sm:$0xff]   ;;  %v5968_v16 = vld [vmem:[%s7290_s1 + $0x40] sm:$0xff]   ;;  %v5974_v19 = vld [vmem:[%s7290_s1 + $0xb8] sm:$0xff]   ;;  %s197_s9 = scalar_lea.vmem %s7293_s4, %s5028_s6 }
  0x10   : > { %s6331_s14 = scalar_lea.vmem %s7289_s0, %s5945_s7  ;;  %v5967_v15 = vld [vmem:[%s7290_s1 + $0x8] sm:$0xff]   ;;  %v5969_v17 = vld [vmem:[%s7290_s1] sm:$0xff]   ;;  %v5975_v20 = vld [vmem:[%s7290_s1 + $0xf8] sm:$0xff]  }
  0x11   : > { %5332 = vmatpush3.bf16.msra.mxu0 %v5956_v2  ;;  %v5970_v12 = vld [vmem:[%s6331_s14 + $0x30] sm:$0xff]   ;;  %v5971_v13 = vld [vmem:[%s6331_s14] sm:$0xff]   ;;  %v5972_v18 = vld [vmem:[%s6331_s14 + $0x38] sm:$0xff]  }
  0x12   : > { %5356 = vmatpush3.bf16.msra.mxu1 %v5957_v3  ;;  %5333 = vmatprep.subr.bf16.mxu0 %v5958_v4  ;;  %v5973_v21 = vld [vmem:[%s6331_s14 + $0x8] sm:$0xff]   ;;  %v5976_v22 = vld [vmem:[%s7290_s1 + $0xb0] sm:$0xff]   ;;  %v5984_v24 = vld [vmem:[%s6331_s14 + $0x40] sm:$0xff]  }
  0x13   : > { %5357 = vmatprep.subr.bf16.mxu1 %v5959_v5  ;;  %5345 = vmatprep.mubr.bf16.mxu0 %v5970_v12  ;;  %v5977_v23 = vld [vmem:[%s7290_s1 + $0xf0] sm:$0xff]   ;;  %v5978_v26 = vld [vmem:[%s7290_s1 + $0xa8] sm:$0xff]   ;;  %v5980_v28 = vld [vmem:[%s7290_s1 + $0xa0] sm:$0xff]  }
  0x14   : > { %5369 = vmatprep.mubr.bf16.mxu1 %v5971_v13  ;;  %v5985_v25 = vld [vmem:[%s6331_s14 + $0x10] sm:$0xff]   ;;  %v5979_v27 = vld [vmem:[%s7290_s1 + $0xe8] sm:$0xff]   ;;  %v5987_v30 = vld [vmem:[%s6331_s14 + $0x18] sm:$0xff]  }
  0x15   : > { %5334 = vmatpush3.bf16.msra.mxu0 %v5958_v4  ;;  %v5986_v29 = vld [vmem:[%s6331_s14 + $0x48] sm:$0xff]   ;;  %v5981_v31 = vld [vmem:[%s7290_s1 + $0xe0] sm:$0xff]   ;;  %v5996_v33 = vld [vmem:[%s6331_s14 + $0x90] sm:$0xff]  }
  0x16   : > { %5358 = vmatpush3.bf16.msra.mxu1 %v5959_v5  ;;  %5335 = vmatprep.subr.bf16.mxu0 %v5960_v6  ;;  %v5994_v32 = vld [vmem:[%s6331_s14 + $0x60] sm:$0xff]   ;;  %v5982_v34 = vld [vmem:[%s7290_s1 + $0x98] sm:$0xff]   ;;  %v5988_v36 = vld [vmem:[%s7290_s1 + $0x90] sm:$0xff]  }
  0x17   : > { %5359 = vmatprep.subr.bf16.mxu1 %v5961_v7  ;;  %v5983_v35 = vld [vmem:[%s7290_s1 + $0xd8] sm:$0xff]   ;;  %v5989_v37 = vld [vmem:[%s7290_s1 + $0xd0] sm:$0xff]   ;;  %v5990_v38 = vld [vmem:[%s7290_s1 + $0x88] sm:$0xff]  }
  0x18   : > { %v5991_v39 = vld [vmem:[%s7290_s1 + $0xc8] sm:$0xff]   ;;  %v5992_v40 = vld [vmem:[%s7290_s1 + $0x80] sm:$0xff]   ;;  %v5997_v43 = vld [vmem:[%s7290_s1 + $0x138] sm:$0xff]  }
  0x19   : > { %5336 = vmatpush3.bf16.msra.mxu0 %v5960_v6  ;;  %v5993_v41 = vld [vmem:[%s7290_s1 + $0xc0] sm:$0xff]   ;;  %v5995_v42 = vld [vmem:[%s6331_s14 + $0x68] sm:$0xff]   ;;  %v5998_v44 = vld [vmem:[%s7290_s1 + $0x178] sm:$0xff]  }
  0x1a   : > { %5360 = vmatpush3.bf16.msra.mxu1 %v5961_v7  ;;  %5337 = vmatprep.subr.bf16.mxu0 %v5962_v8  ;;  %v5999_v45 = vld [vmem:[%s6331_s14 + $0x98] sm:$0xff]   ;;  %v6000_v46 = vld [vmem:[%s7290_s1 + $0x130] sm:$0xff]   ;;  %v6006_v49 = vld [vmem:[%s6331_s14 + $0xa0] sm:$0xff]  }
  0x1b   : > { %5361 = vmatprep.subr.bf16.mxu1 %v5963_v9  ;;  %v6001_v47 = vld [vmem:[%s7290_s1 + $0x170] sm:$0xff]   ;;  %v6003_v50 = vld [vmem:[%s6331_s14 + $0x78] sm:$0xff]   ;;  %v6004_v51 = vld [vmem:[%s7290_s1 + $0x128] sm:$0xff]  }
  0x1c   : > { %v6002_v48 = vld [vmem:[%s6331_s14 + $0x70] sm:$0xff]   ;;  %v6005_v52 = vld [vmem:[%s7290_s1 + $0x168] sm:$0xff]   ;;  %v6008_v54 = vld [vmem:[%s7290_s1 + $0x120] sm:$0xff]  }
  0x1d   : > { %5338 = vmatpush3.bf16.msra.mxu0 %v5962_v8  ;;  %v6007_v53 = vld [vmem:[%s6331_s14 + $0xa8] sm:$0xff]   ;;  %v6009_v55 = vld [vmem:[%s7290_s1 + $0x160] sm:$0xff]   ;;  %v6010_v58 = vld [vmem:[%s7290_s1 + $0x118] sm:$0xff]  }
  0x1e   : > { %5362 = vmatpush3.bf16.msra.mxu1 %v5963_v9  ;;  %5339 = vmatprep.subr.bf16.mxu0 %v5964_v10  ;;  %v6018_v56 = vld [vmem:[%s6331_s14 + $0xc0] sm:$0xff]   ;;  %v6011_v59 = vld [vmem:[%s7290_s1 + $0x158] sm:$0xff]   ;;  %v6012_v60 = vld [vmem:[%s7290_s1 + $0x110] sm:$0xff]  }
  0x1f   : > { %5363 = vmatprep.subr.bf16.mxu1 %v5965_v11  ;;  %v6020_v57 = vld [vmem:[%s6331_s14 + $0x4] sm:$0xff]   ;;  %v6013_v61 = vld [vmem:[%s7290_s1 + $0x150] sm:$0xff]   ;;  %v6021_v3 = vld [vmem:[%s7290_s1 + $0x1b8] sm:$0xff]  }
  0x20   : > { %v6014_v62 = vld [vmem:[%s7290_s1 + $0x108] sm:$0xff]   ;;  %v6016_v0 = vld [vmem:[%s7290_s1 + $0x100] sm:$0xff]   ;;  %v6022_v4 = vld [vmem:[%s7290_s1 + $0x1f8] sm:$0xff]  }
  0x21   : > { %5340 = vmatpush3.bf16.msra.mxu0 %v5964_v10  ;;  %v6015_v63 = vld [vmem:[%s7290_s1 + $0x148] sm:$0xff]   ;;  %v6017_v1 = vld [vmem:[%s7290_s1 + $0x140] sm:$0xff]   ;;  %v6024_v6 = vld [vmem:[%s7290_s1 + $0x1b0] sm:$0xff]  }
  0x22   : > { %5364 = vmatpush3.bf16.msra.mxu1 %v5965_v11  ;;  %5341 = vmatprep.subr.bf16.mxu0 %v5966_v14  ;;  %v6019_v2 = vld [vmem:[%s6331_s14 + $0xc8] sm:$0xff]   ;;  %v6025_v7 = vld [vmem:[%s7290_s1 + $0x1f0] sm:$0xff]   ;;  %v6027_v10 = vld [vmem:[%s6331_s14 + $0xd8] sm:$0xff]  }
  0x23   : > { %5365 = vmatprep.subr.bf16.mxu1 %v5967_v15  ;;  %v6023_v5 = vld [vmem:[%s6331_s14 + $0xc] sm:$0xff]   ;;  %v6030_v9 = vld [vmem:[%s6331_s14 + $0x14] sm:$0xff]   ;;  %v6031_v13 = vld [vmem:[%s6331_s14 + $0x1c] sm:$0xff]  }
  0x24   : > { %v6026_v8 = vld [vmem:[%s6331_s14 + $0xd0] sm:$0xff]   ;;  %v6028_v11 = vld [vmem:[%s7290_s1 + $0x1a8] sm:$0xff]  }
  0x25   : > { %5342 = vmatpush3.bf16.msra.mxu0 %v5966_v14  ;;  %v6029_v12 = vld [vmem:[%s7290_s1 + $0x1e8] sm:$0xff]   ;;  %v6032_v14 = vld [vmem:[%s7290_s1 + $0x1a0] sm:$0xff]  }
  0x26   : > { %5366 = vmatpush3.bf16.msra.mxu1 %v5967_v15  ;;  %5343 = vmatprep.subr.bf16.mxu0 %v5968_v16  ;;  %v6033_v15 = vld [vmem:[%s7290_s1 + $0x1e0] sm:$0xff]  }
  0x27   : > { %5367 = vmatprep.subr.bf16.mxu1 %v5969_v17 }
  0x29   : > { %5344 = vmatpush3.bf16.msra.mxu0 %v5968_v16  ;;  %v6042_v16 = vld [vmem:[%s6331_s14 + $0x34] sm:$0xff]  }
  0x2a   : > { %5368 = vmatpush3.bf16.msra.mxu1 %v5969_v17  ;;  %5377 = vmatprep.subr.bf16.mxu0 %v5974_v19  ;;  %v6044_v17 = vld [vmem:[%s6331_s14 + $0x64] sm:$0xff]  }
  0x2b   : > { %5401 = vmatprep.subr.bf16.mxu1 %v5975_v20 }
  0x2c   : > { %5346 = vmatmul.mubr.bf16.vlgmr.msra.gmra.mxu0 %v5972_v18  ;;  %v6034_v18 = vld [vmem:[%s7290_s1 + $0x198] sm:$0xff]  }
  0x2d   : > { %5370 = vmatmul.mubr.bf16.vlgmr.msra.gmra.mxu1 %v5973_v21  ;;  %5378 = vmatpush3.bf16.msra.mxu0 %v5974_v19  ;;  %v6035_v19 = vld [vmem:[%s7290_s1 + $0x1d8] sm:$0xff]   ;;  %v6037_v21 = vld [vmem:[%s7290_s1 + $0x1d0] sm:$0xff]  }
  0x2e   : > { %5402 = vmatpush3.bf16.msra.mxu1 %v5975_v20  ;;  %5379 = vmatprep.subr.bf16.mxu0 %v5976_v22  ;;  %v6036_v20 = vld [vmem:[%s7290_s1 + $0x190] sm:$0xff]  }
  0x2f   : > { %5403 = vmatprep.subr.bf16.mxu1 %v5977_v23  ;;  %5349 = vmatprep.mubr.bf16.mxu0 %v5984_v24  ;;  %v6040_v24 = vld [vmem:[%s7290_s1 + $0x180] sm:$0xff]  }
  0x30   : > { %5373 = vmatprep.mubr.bf16.mxu1 %v5985_v25  ;;  %v6041_v25 = vld [vmem:[%s7290_s1 + $0x1c0] sm:$0xff]  }
  0x31   : > { %5380 = vmatpush3.bf16.msra.mxu0 %v5976_v22  ;;  %v6038_v22 = vld [vmem:[%s7290_s1 + $0x188] sm:$0xff]  }
  0x32   : > { %5404 = vmatpush3.bf16.msra.mxu1 %v5977_v23  ;;  %5381 = vmatprep.subr.bf16.mxu0 %v5978_v26  ;;  %v6039_v23 = vld [vmem:[%s7290_s1 + $0x1c8] sm:$0xff]  }
  0x33   : > { %5405 = vmatprep.subr.bf16.mxu1 %v5979_v27 }
  0x34   : > { %5350 = vmatmul.mubr.bf16.gmra.mxu0 %v5986_v29  ;;  %v6047_v29 = vld [vmem:[%s6331_s14 + $0x6c] sm:$0xff]  }
  0x35   : > { %5382 = vmatpush3.bf16.msra.mxu0 %v5978_v26  ;;  %5374 = vmatmul.mubr.bf16.gmra.mxu1 %v5987_v30  ;;  %v6043_v26 = vld [vmem:[%s6331_s14 + $0x3c] sm:$0xff]   ;;  %v6048_v30 = vld [vmem:[%s7290_s1 + $0x230] sm:$0xff]  }
  0x36   : > { %5406 = vmatpush3.bf16.msra.mxu1 %v5979_v27  ;;  %5383 = vmatprep.subr.bf16.mxu0 %v5980_v28  ;;  %v6045_v27 = vld [vmem:[%s7290_s1 + $0x238] sm:$0xff]  }
  0x37   : > { %5407 = vmatprep.subr.bf16.mxu1 %v5981_v31  ;;  %5393 = vmatprep.mubr.bf16.mxu0 %v5994_v32  ;;  %v6050_v32 = vld [vmem:[%s6331_s14 + $0x44] sm:$0xff]  }
  0x38   : > { %5417 = vmatprep.mubr.bf16.mxu1 %v5996_v33  ;;  %v6054_v33 = vld [vmem:[%s6331_s14 + $0x74] sm:$0xff]  }
  0x39   : > { %5384 = vmatpush3.bf16.msra.mxu0 %v5980_v28  ;;  %v6046_v28 = vld [vmem:[%s7290_s1 + $0x278] sm:$0xff]  }
  0x3a   : > { %5408 = vmatpush3.bf16.msra.mxu1 %v5981_v31  ;;  %5385 = vmatprep.subr.bf16.mxu0 %v5982_v34  ;;  %v6049_v31 = vld [vmem:[%s7290_s1 + $0x270] sm:$0xff]  }
  0x3b   : > { %5409 = vmatprep.subr.bf16.mxu1 %v5983_v35 }
  0x3d   : > { %5386 = vmatpush3.bf16.msra.mxu0 %v5982_v34  ;;  %v6051_v34 = vld [vmem:[%s6331_s14 + $0x4c] sm:$0xff]  }
  0x3e   : > { %5410 = vmatpush3.bf16.msra.mxu1 %v5983_v35  ;;  %5387 = vmatprep.subr.bf16.mxu0 %v5988_v36  ;;  %v6052_v35 = vld [vmem:[%s7290_s1 + $0x228] sm:$0xff]  }
  0x3f   : > { %5411 = vmatprep.subr.bf16.mxu1 %v5989_v37 }
  0x41   : > { %5388 = vmatpush3.bf16.msra.mxu0 %v5988_v36  ;;  %v6053_v36 = vld [vmem:[%s7290_s1 + $0x268] sm:$0xff]  }
  0x42   : > { %5412 = vmatpush3.bf16.msra.mxu1 %v5989_v37  ;;  %5389 = vmatprep.subr.bf16.mxu0 %v5990_v38  ;;  %v6055_v37 = vld [vmem:[%s6331_s14 + $0x7c] sm:$0xff]  }
  0x43   : > { %5413 = vmatprep.subr.bf16.mxu1 %v5991_v39 }
  0x45   : > { %5390 = vmatpush3.bf16.msra.mxu0 %v5990_v38  ;;  %v6056_v38 = vld [vmem:[%s7290_s1 + $0x220] sm:$0xff]  }
  0x46   : > { %5414 = vmatpush3.bf16.msra.mxu1 %v5991_v39  ;;  %5391 = vmatprep.subr.bf16.mxu0 %v5992_v40  ;;  %v6057_v39 = vld [vmem:[%s7290_s1 + $0x260] sm:$0xff]  }
  0x47   : > { %5415 = vmatprep.subr.bf16.mxu1 %v5993_v41 }
  0x49   : > { %5392 = vmatpush3.bf16.msra.mxu0 %v5992_v40  ;;  %v6066_v40 = vld [vmem:[%s6331_s14 + $0x94] sm:$0xff]  }
  0x4a   : > { %5416 = vmatpush3.bf16.msra.mxu1 %v5993_v41  ;;  %5425 = vmatprep.subr.bf16.mxu0 %v5997_v43  ;;  %v6068_v41 = vld [vmem:[%s6331_s14 + $0xc4] sm:$0xff]  }
  0x4b   : > { %5449 = vmatprep.subr.bf16.mxu1 %v5998_v44 }
  0x4c   : > { %5394 = vmatmul.mubr.bf16.vlgmr.msra.gmra.mxu0 %v5995_v42  ;;  %v6058_v42 = vld [vmem:[%s7290_s1 + $0x218] sm:$0xff]  }
  0x4d   : > { %5418 = vmatmul.mubr.bf16.vlgmr.msra.gmra.mxu1 %v5999_v45  ;;  %5426 = vmatpush3.bf16.msra.mxu0 %v5997_v43  ;;  %v6059_v43 = vld [vmem:[%s7290_s1 + $0x258] sm:$0xff]   ;;  %v6061_v45 = vld [vmem:[%s7290_s1 + $0x250] sm:$0xff]  }
  0x4e   : > { %5450 = vmatpush3.bf16.msra.mxu1 %v5998_v44  ;;  %5427 = vmatprep.subr.bf16.mxu0 %v6000_v46  ;;  %v6060_v44 = vld [vmem:[%s7290_s1 + $0x210] sm:$0xff]  }
  0x4f   : > { %5451 = vmatprep.subr.bf16.mxu1 %v6001_v47  ;;  %5397 = vmatprep.mubr.bf16.mxu0 %v6002_v48  ;;  %v6064_v48 = vld [vmem:[%s7290_s1 + $0x200] sm:$0xff]  }
  0x50   : > { %5421 = vmatprep.mubr.bf16.mxu1 %v6006_v49  ;;  %v6065_v49 = vld [vmem:[%s7290_s1 + $0x240] sm:$0xff]  }
  0x51   : > { %5428 = vmatpush3.bf16.msra.mxu0 %v6000_v46  ;;  %v6062_v46 = vld [vmem:[%s7290_s1 + $0x208] sm:$0xff]  }
  0x52   : > { %5452 = vmatpush3.bf16.msra.mxu1 %v6001_v47  ;;  %5429 = vmatprep.subr.bf16.mxu0 %v6004_v51  ;;  %v6063_v47 = vld [vmem:[%s7290_s1 + $0x248] sm:$0xff]  }
  0x53   : > { %5453 = vmatprep.subr.bf16.mxu1 %v6005_v52 }
  0x54   : > { %5398 = vmatmul.mubr.bf16.gmra.mxu0 %v6003_v50  ;;  %v6067_v50 = vld [vmem:[%s6331_s14 + $0x9c] sm:$0xff]  }
  0x55   : > { %5430 = vmatpush3.bf16.msra.mxu0 %v6004_v51  ;;  %5422 = vmatmul.mubr.bf16.gmra.mxu1 %v6007_v53  ;;  %v6069_v51 = vld [vmem:[%s7290_s1 + $0x2b8] sm:$0xff]   ;;  %v6071_v53 = vld [vmem:[%s6331_s14 + $0xcc] sm:$0xff]  }
  0x56   : > { %5454 = vmatpush3.bf16.msra.mxu1 %v6005_v52  ;;  %5431 = vmatprep.subr.bf16.mxu0 %v6008_v54  ;;  %v6070_v52 = vld [vmem:[%s7290_s1 + $0x2f8] sm:$0xff]  }
  0x57   : > { %5455 = vmatprep.subr.bf16.mxu1 %v6009_v55  ;;  %5441 = vmatprep.mubr.bf16.mxu0 %v6018_v56  ;;  %v6074_v56 = vld [vmem:[%s6331_s14 + $0xa4] sm:$0xff]  }
  0x58   : > { %5465 = vmatprep.mubr.bf16.mxu1 %v6020_v57  ;;  %v6078_v57 = vld [vmem:[%s6331_s14 + $0xd4] sm:$0xff]  }
  0x59   : > { %5432 = vmatpush3.bf16.msra.mxu0 %v6008_v54  ;;  %v6072_v54 = vld [vmem:[%s7290_s1 + $0x2b0] sm:$0xff]  }
  0x5a   : > { %5456 = vmatpush3.bf16.msra.mxu1 %v6009_v55  ;;  %5433 = vmatprep.subr.bf16.mxu0 %v6010_v58  ;;  %v6073_v55 = vld [vmem:[%s7290_s1 + $0x2f0] sm:$0xff]  }
  0x5b   : > { %5457 = vmatprep.subr.bf16.mxu1 %v6011_v59 }
  0x5d   : > { %5434 = vmatpush3.bf16.msra.mxu0 %v6010_v58  ;;  %v6075_v58 = vld [vmem:[%s6331_s14 + $0xac] sm:$0xff]  }
  0x5e   : > { %5458 = vmatpush3.bf16.msra.mxu1 %v6011_v59  ;;  %5435 = vmatprep.subr.bf16.mxu0 %v6012_v60  ;;  %v6076_v59 = vld [vmem:[%s7290_s1 + $0x2a8] sm:$0xff]  }
  0x5f   : > { %5459 = vmatprep.subr.bf16.mxu1 %v6013_v61 }
  0x61   : > { %5436 = vmatpush3.bf16.msra.mxu0 %v6012_v60  ;;  %v6077_v60 = vld [vmem:[%s7290_s1 + $0x2e8] sm:$0xff]  }
  0x62   : > { %5460 = vmatpush3.bf16.msra.mxu1 %v6013_v61  ;;  %5437 = vmatprep.subr.bf16.mxu0 %v6014_v62  ;;  %v6079_v61 = vld [vmem:[%s6331_s14 + $0xdc] sm:$0xff]  }
  0x63   : > { %5461 = vmatprep.subr.bf16.mxu1 %v6015_v63 }
  0x65   : > { %5438 = vmatpush3.bf16.msra.mxu0 %v6014_v62  ;;  %v6080_v62 = vld [vmem:[%s7290_s1 + $0x2a0] sm:$0xff]  }
  0x66   : > { %5462 = vmatpush3.bf16.msra.mxu1 %v6015_v63  ;;  %5439 = vmatprep.subr.bf16.mxu0 %v6016_v0  ;;  %v6081_v63 = vld [vmem:[%s7290_s1 + $0x2e0] sm:$0xff]  }
  0x67   : > { %5463 = vmatprep.subr.bf16.mxu1 %v6017_v1 }
  0x69   : > { %5440 = vmatpush3.bf16.msra.mxu0 %v6016_v0  ;;  %v6090_v0 = vld [vmem:[%s6331_s14 + $0x8] sm:$0xff]  }
  0x6a   : > { %5464 = vmatpush3.bf16.msra.mxu1 %v6017_v1  ;;  %5473 = vmatprep.subr.bf16.mxu0 %v6021_v3  ;;  %v6092_v1 = vld [vmem:[%s6331_s14 + $0x38] sm:$0xff]  }
  0x6b   : > { %5497 = vmatprep.subr.bf16.mxu1 %v6022_v4 }
  0x6c   : > { %5442 = vmatmul.mubr.bf16.vlgmr.msra.gmra.mxu0 %v6019_v2  ;;  %v6082_v2 = vld [vmem:[%s7290_s1 + $0x298] sm:$0xff]  }
  0x6d   : > { %5466 = vmatmul.mubr.bf16.vlgmr.msra.gmra.mxu1 %v6023_v5  ;;  %5474 = vmatpush3.bf16.msra.mxu0 %v6021_v3  ;;  %v6083_v3 = vld [vmem:[%s7290_s1 + $0x2d8] sm:$0xff]   ;;  %v6085_v5 = vld [vmem:[%s7290_s1 + $0x2d0] sm:$0xff]  }
  0x6e   : > { %5498 = vmatpush3.bf16.msra.mxu1 %v6022_v4  ;;  %5475 = vmatprep.subr.bf16.mxu0 %v6024_v6  ;;  %v6084_v4 = vld [vmem:[%s7290_s1 + $0x290] sm:$0xff]  }
  0x6f   : > { %5499 = vmatprep.subr.bf16.mxu1 %v6025_v7  ;;  %5445 = vmatprep.mubr.bf16.mxu0 %v6026_v8  ;;  %v6088_v8 = vld [vmem:[%s7290_s1 + $0x280] sm:$0xff]  }
  0x70   : > { %5469 = vmatprep.mubr.bf16.mxu1 %v6030_v9  ;;  %v6089_v9 = vld [vmem:[%s7290_s1 + $0x2c0] sm:$0xff]  }
  0x71   : > { %5476 = vmatpush3.bf16.msra.mxu0 %v6024_v6  ;;  %v6086_v6 = vld [vmem:[%s7290_s1 + $0x288] sm:$0xff]  }
  0x72   : > { %5500 = vmatpush3.bf16.msra.mxu1 %v6025_v7  ;;  %5477 = vmatprep.subr.bf16.mxu0 %v6028_v11  ;;  %v6087_v7 = vld [vmem:[%s7290_s1 + $0x2c8] sm:$0xff]  }
  0x73   : > { %5501 = vmatprep.subr.bf16.mxu1 %v6029_v12 }
  0x74   : > { %5446 = vmatmul.mubr.bf16.gmra.mxu0 %v6027_v10  ;;  %v6091_v10 = vld [vmem:[%s6331_s14 + $0x10] sm:$0xff]  }
  0x75   : > { %5478 = vmatpush3.bf16.msra.mxu0 %v6028_v11  ;;  %5470 = vmatmul.mubr.bf16.gmra.mxu1 %v6031_v13  ;;  %v6093_v11 = vld [vmem:[%s7290_s1 + $0x338] sm:$0xff]   ;;  %v6095_v13 = vld [vmem:[%s6331_s14 + $0x40] sm:$0xff]  }
  0x76   : > { %5502 = vmatpush3.bf16.msra.mxu1 %v6029_v12  ;;  %5479 = vmatprep.subr.bf16.mxu0 %v6032_v14  ;;  %v6094_v12 = vld [vmem:[%s7290_s1 + $0x378] sm:$0xff]  }
  0x77   : > { %5503 = vmatprep.subr.bf16.mxu1 %v6033_v15  ;;  %5489 = vmatprep.mubr.bf16.mxu0 %v6042_v16  ;;  %v6098_v16 = vld [vmem:[%s6331_s14 + $0x18] sm:$0xff]  }
  0x78   : > { %5513 = vmatprep.mubr.bf16.mxu1 %v6044_v17  ;;  %v6102_v17 = vld [vmem:[%s6331_s14 + $0x48] sm:$0xff]  }
  0x79   : > { %5480 = vmatpush3.bf16.msra.mxu0 %v6032_v14  ;;  %v6096_v14 = vld [vmem:[%s7290_s1 + $0x330] sm:$0xff]  }
  0x7a   : > { %5504 = vmatpush3.bf16.msra.mxu1 %v6033_v15  ;;  %5481 = vmatprep.subr.bf16.mxu0 %v6034_v18  ;;  %v6097_v15 = vld [vmem:[%s7290_s1 + $0x370] sm:$0xff]  }
  0x7b   : > { %5505 = vmatprep.subr.bf16.mxu1 %v6035_v19 }
  0x7d   : > { %5482 = vmatpush3.bf16.msra.mxu0 %v6034_v18  ;;  %v6099_v18 = vld [vmem:[%s6331_s14 + $0x20] sm:$0xff]  }
  0x7e   : > { %5506 = vmatpush3.bf16.msra.mxu1 %v6035_v19  ;;  %5483 = vmatprep.subr.bf16.mxu0 %v6036_v20  ;;  %v6100_v19 = vld [vmem:[%s7290_s1 + $0x328] sm:$0xff]  }
  0x7f   : > { %5507 = vmatprep.subr.bf16.mxu1 %v6037_v21 }
  0x81   : > { %5484 = vmatpush3.bf16.msra.mxu0 %v6036_v20  ;;  %v6101_v20 = vld [vmem:[%s7290_s1 + $0x368] sm:$0xff]  }
  0x82   : > { %5508 = vmatpush3.bf16.msra.mxu1 %v6037_v21  ;;  %5485 = vmatprep.subr.bf16.mxu0 %v6038_v22  ;;  %v6103_v21 = vld [vmem:[%s6331_s14 + $0x50] sm:$0xff]  }
  0x83   : > { %5509 = vmatprep.subr.bf16.mxu1 %v6039_v23 }
  0x85   : > { %5486 = vmatpush3.bf16.msra.mxu0 %v6038_v22  ;;  %v6104_v22 = vld [vmem:[%s7290_s1 + $0x320] sm:$0xff]  }
  0x86   : > { %5510 = vmatpush3.bf16.msra.mxu1 %v6039_v23  ;;  %5487 = vmatprep.subr.bf16.mxu0 %v6040_v24  ;;  %v6105_v23 = vld [vmem:[%s7290_s1 + $0x360] sm:$0xff]  }
  0x87   : > { %5511 = vmatprep.subr.bf16.mxu1 %v6041_v25 }
  0x89   : > { %5488 = vmatpush3.bf16.msra.mxu0 %v6040_v24  ;;  %v6114_v24 = vld [vmem:[%s6331_s14 + $0x68] sm:$0xff]  }
  0x8a   : > { %5512 = vmatpush3.bf16.msra.mxu1 %v6041_v25  ;;  %5521 = vmatprep.subr.bf16.mxu0 %v6045_v27  ;;  %v6116_v25 = vld [vmem:[%s6331_s14 + $0x98] sm:$0xff]  }
  0x8b   : > { %5545 = vmatprep.subr.bf16.mxu1 %v6046_v28 }
  0x8c   : > { %5490 = vmatmul.mubr.bf16.vlgmr.msra.gmra.mxu0 %v6043_v26  ;;  %v6106_v26 = vld [vmem:[%s7290_s1 + $0x318] sm:$0xff]  }
  0x8d   : > { %5514 = vmatmul.mubr.bf16.vlgmr.msra.gmra.mxu1 %v6047_v29  ;;  %5522 = vmatpush3.bf16.msra.mxu0 %v6045_v27  ;;  %v6107_v27 = vld [vmem:[%s7290_s1 + $0x358] sm:$0xff]   ;;  %v6109_v29 = vld [vmem:[%s7290_s1 + $0x350] sm:$0xff]  }
  0x8e   : > { %5546 = vmatpush3.bf16.msra.mxu1 %v6046_v28  ;;  %5523 = vmatprep.subr.bf16.mxu0 %v6048_v30  ;;  %v6108_v28 = vld [vmem:[%s7290_s1 + $0x310] sm:$0xff]  }
  0x8f   : > { %5547 = vmatprep.subr.bf16.mxu1 %v6049_v31  ;;  %5493 = vmatprep.mubr.bf16.mxu0 %v6050_v32  ;;  %v6112_v32 = vld [vmem:[%s7290_s1 + $0x300] sm:$0xff]  }
  0x90   : > { %5517 = vmatprep.mubr.bf16.mxu1 %v6054_v33  ;;  %v6113_v33 = vld [vmem:[%s7290_s1 + $0x340] sm:$0xff]  }
  0x91   : > { %5524 = vmatpush3.bf16.msra.mxu0 %v6048_v30  ;;  %v6110_v30 = vld [vmem:[%s7290_s1 + $0x308] sm:$0xff]  }
  0x92   : > { %5548 = vmatpush3.bf16.msra.mxu1 %v6049_v31  ;;  %5525 = vmatprep.subr.bf16.mxu0 %v6052_v35  ;;  %v6111_v31 = vld [vmem:[%s7290_s1 + $0x348] sm:$0xff]  }
  0x93   : > { %5549 = vmatprep.subr.bf16.mxu1 %v6053_v36 }
  0x94   : > { %5494 = vmatmul.mubr.bf16.gmra.mxu0 %v6051_v34  ;;  %v6115_v34 = vld [vmem:[%s6331_s14 + $0x70] sm:$0xff]  }
  0x95   : > { %5526 = vmatpush3.bf16.msra.mxu0 %v6052_v35  ;;  %5518 = vmatmul.mubr.bf16.gmra.mxu1 %v6055_v37  ;;  %v6117_v35 = vld [vmem:[%s7290_s1 + $0x3b8] sm:$0xff]   ;;  %v6119_v37 = vld [vmem:[%s6331_s14 + $0xa0] sm:$0xff]  }
  0x96   : > { %5550 = vmatpush3.bf16.msra.mxu1 %v6053_v36  ;;  %5527 = vmatprep.subr.bf16.mxu0 %v6056_v38  ;;  %v6118_v36 = vld [vmem:[%s7290_s1 + $0x3f8] sm:$0xff]  }
  0x97   : > { %5551 = vmatprep.subr.bf16.mxu1 %v6057_v39  ;;  %5537 = vmatprep.mubr.bf16.mxu0 %v6066_v40  ;;  %v6122_v40 = vld [vmem:[%s6331_s14 + $0x78] sm:$0xff]  }
  0x98   : > { %5561 = vmatprep.mubr.bf16.mxu1 %v6068_v41 }
  0x99   : > { %5528 = vmatpush3.bf16.msra.mxu0 %v6056_v38  ;;  %v6120_v38 = vld [vmem:[%s7290_s1 + $0x3b0] sm:$0xff]  }
  0x9a   : > { %5552 = vmatpush3.bf16.msra.mxu1 %v6057_v39  ;;  %5529 = vmatprep.subr.bf16.mxu0 %v6058_v42  ;;  %v6121_v39 = vld [vmem:[%s7290_s1 + $0x3f0] sm:$0xff]  }
  0x9b   : > { %5553 = vmatprep.subr.bf16.mxu1 %v6059_v43 }
  0x9d   : > { %5530 = vmatpush3.bf16.msra.mxu0 %v6058_v42  ;;  %v6126_v42 = vld [vmem:[%s6331_s14 + $0xa8] sm:$0xff]  }
  0x9e   : > { %5554 = vmatpush3.bf16.msra.mxu1 %v6059_v43  ;;  %5531 = vmatprep.subr.bf16.mxu0 %v6060_v44 }
  0x9f   : > { %5555 = vmatprep.subr.bf16.mxu1 %v6061_v45 }
  0xa1   : > { %5532 = vmatpush3.bf16.msra.mxu0 %v6060_v44 }
  0xa2   : > { %5556 = vmatpush3.bf16.msra.mxu1 %v6061_v45  ;;  %5533 = vmatprep.subr.bf16.mxu0 %v6062_v46 }
  0xa3   : > { %5557 = vmatprep.subr.bf16.mxu1 %v6063_v47 }
  0xa5   : > { %5534 = vmatpush3.bf16.msra.mxu0 %v6062_v46  ;;  %v6123_v46 = vld [vmem:[%s6331_s14 + $0x80] sm:$0xff]  }
  0xa6   : > { %5558 = vmatpush3.bf16.msra.mxu1 %v6063_v47  ;;  %5535 = vmatprep.subr.bf16.mxu0 %v6064_v48  ;;  %v6124_v47 = vld [vmem:[%s7290_s1 + $0x3a8] sm:$0xff]  }
  0xa7   : > { %5559 = vmatprep.subr.bf16.mxu1 %v6065_v49 }
  0xa9   : > { %5536 = vmatpush3.bf16.msra.mxu0 %v6064_v48 }
  0xaa   : > { %5560 = vmatpush3.bf16.msra.mxu1 %v6065_v49  ;;  %5569 = vmatprep.subr.bf16.mxu0 %v6069_v51  ;;  %v6125_v49 = vld [vmem:[%s7290_s1 + $0x3e8] sm:$0xff]  }
  0xab   : > { %5593 = vmatprep.subr.bf16.mxu1 %v6070_v52 }
  0xac   : > { %5538 = vmatmul.mubr.bf16.vlgmr.msra.gmra.mxu0 %v6067_v50 }
  0xad   : > { %5562 = vmatmul.mubr.bf16.vlgmr.msra.gmra.mxu1 %v6071_v53  ;;  %5570 = vmatpush3.bf16.msra.mxu0 %v6069_v51 }
  0xae   : > { %5594 = vmatpush3.bf16.msra.mxu1 %v6070_v52  ;;  %5571 = vmatprep.subr.bf16.mxu0 %v6072_v54  ;;  %v6127_v52 = vld [vmem:[%s6331_s14 + $0xb0] sm:$0xff]  }
  0xaf   : > { %5595 = vmatprep.subr.bf16.mxu1 %v6073_v55  ;;  %5541 = vmatprep.mubr.bf16.mxu0 %v6074_v56 }
  0xb0   : > { %5565 = vmatprep.mubr.bf16.mxu1 %v6078_v57  ;;  %v6129_v57 = vld [vmem:[%s7290_s1 + $0x3e0] sm:$0xff]  }
  0xb1   : > { %5572 = vmatpush3.bf16.msra.mxu0 %v6072_v54  ;;  %v6128_v54 = vld [vmem:[%s7290_s1 + $0x3a0] sm:$0xff]  }
  0xb2   : > { %5596 = vmatpush3.bf16.msra.mxu1 %v6073_v55  ;;  %5573 = vmatprep.subr.bf16.mxu0 %v6076_v59 }
  0xb3   : > { %5597 = vmatprep.subr.bf16.mxu1 %v6077_v60 }
  0xb4   : > { %5542 = vmatmul.mubr.bf16.gmra.mxu0 %v6075_v58 }
  0xb5   : > { %5574 = vmatpush3.bf16.msra.mxu0 %v6076_v59  ;;  %5566 = vmatmul.mubr.bf16.gmra.mxu1 %v6079_v61  ;;  %v6138_v59 = vld [vmem:[%s6331_s14 + $0xc8] sm:$0xff]  }
  0xb6   : > { %5598 = vmatpush3.bf16.msra.mxu1 %v6077_v60  ;;  %5575 = vmatprep.subr.bf16.mxu0 %v6080_v62 }
  0xb7   : > { %5599 = vmatprep.subr.bf16.mxu1 %v6081_v63  ;;  %5585 = vmatprep.mubr.bf16.mxu0 %v6090_v0  ;;  %v6130_v0 = vld [vmem:[%s7290_s1 + $0x398] sm:$0xff]  }
  0xb8   : > { %5609 = vmatprep.mubr.bf16.mxu1 %v6092_v1 }
  0xb9   : > { %5576 = vmatpush3.bf16.msra.mxu0 %v6080_v62  ;;  %v6140_v62 = vld [vmem:[%s6331_s14 + $0xc] sm:$0xff]  }
  0xba   : > { %5600 = vmatpush3.bf16.msra.mxu1 %v6081_v63  ;;  %5577 = vmatprep.subr.bf16.mxu0 %v6082_v2 }
  0xbb   : > { %5601 = vmatprep.subr.bf16.mxu1 %v6083_v3 }
  0xbd   : > { %5578 = vmatpush3.bf16.msra.mxu0 %v6082_v2 }
  0xbe   : > { %5602 = vmatpush3.bf16.msra.mxu1 %v6083_v3  ;;  %5579 = vmatprep.subr.bf16.mxu0 %v6084_v4  ;;  %v6131_v3 = vld [vmem:[%s7290_s1 + $0x3d8] sm:$0xff]  }
  0xbf   : > { %5603 = vmatprep.subr.bf16.mxu1 %v6085_v5 }
  0xc1   : > { %5580 = vmatpush3.bf16.msra.mxu0 %v6084_v4 }
  0xc2   : > { %5604 = vmatpush3.bf16.msra.mxu1 %v6085_v5  ;;  %5581 = vmatprep.subr.bf16.mxu0 %v6086_v6 }
  0xc3   : > { %5605 = vmatprep.subr.bf16.mxu1 %v6087_v7 }
  0xc5   : > { %5582 = vmatpush3.bf16.msra.mxu0 %v6086_v6 }
  0xc6   : > { %5606 = vmatpush3.bf16.msra.mxu1 %v6087_v7  ;;  %5583 = vmatprep.subr.bf16.mxu0 %v6088_v8 }
  0xc7   : > { %5607 = vmatprep.subr.bf16.mxu1 %v6089_v9 }
  0xc9   : > { %5584 = vmatpush3.bf16.msra.mxu0 %v6088_v8  ;;  %v6132_v8 = vld [vmem:[%s7290_s1 + $0x390] sm:$0xff]  }
  0xca   : > { %5608 = vmatpush3.bf16.msra.mxu1 %v6089_v9  ;;  %5617 = vmatprep.subr.bf16.mxu0 %v6093_v11 }
  0xcb   : > { %5641 = vmatprep.subr.bf16.mxu1 %v6094_v12 }
  0xcc   : > { %5586 = vmatmul.mubr.bf16.vlgmr.msra.gmra.mxu0 %v6091_v10 }
  0xcd   : > { %5610 = vmatmul.mubr.bf16.vlgmr.msra.gmra.mxu1 %v6095_v13  ;;  %5618 = vmatpush3.bf16.msra.mxu0 %v6093_v11  ;;  %v6133_v11 = vld [vmem:[%s7290_s1 + $0x3d0] sm:$0xff]  }
  0xce   : > { %5642 = vmatpush3.bf16.msra.mxu1 %v6094_v12  ;;  %5619 = vmatprep.subr.bf16.mxu0 %v6096_v14 }
  0xcf   : > { %5643 = vmatprep.subr.bf16.mxu1 %v6097_v15  ;;  %5589 = vmatprep.mubr.bf16.mxu0 %v6098_v16  ;;  %v6136_v16 = vld [vmem:[%s7290_s1 + $0x380] sm:$0xff]  }
  0xd0   : > { %5613 = vmatprep.mubr.bf16.mxu1 %v6102_v17  ;;  %v6137_v17 = vld [vmem:[%s7290_s1 + $0x3c0] sm:$0xff]  }
  0xd1   : > { %5620 = vmatpush3.bf16.msra.mxu0 %v6096_v14  ;;  %v6134_v14 = vld [vmem:[%s7290_s1 + $0x388] sm:$0xff]  }
  0xd2   : > { %5644 = vmatpush3.bf16.msra.mxu1 %v6097_v15  ;;  %5621 = vmatprep.subr.bf16.mxu0 %v6100_v19  ;;  %v6135_v15 = vld [vmem:[%s7290_s1 + $0x3c8] sm:$0xff]  }
  0xd3   : > { %5645 = vmatprep.subr.bf16.mxu1 %v6101_v20 }
  0xd4   : > { %5590 = vmatmul.mubr.bf16.gmra.mxu0 %v6099_v18  ;;  %v6139_v18 = vld [vmem:[%s6331_s14 + $0xd0] sm:$0xff]  }
  0xd5   : > { %5622 = vmatpush3.bf16.msra.mxu0 %v6100_v19  ;;  %5614 = vmatmul.mubr.bf16.gmra.mxu1 %v6103_v21  ;;  %v6141_v19 = vld [vmem:[%s7290_s1 + $0x438] sm:$0xff]  }
  0xd6   : > { %5646 = vmatpush3.bf16.msra.mxu1 %v6101_v20  ;;  %5623 = vmatprep.subr.bf16.mxu0 %v6104_v22  ;;  %v6142_v20 = vld [vmem:[%s7290_s1 + $0x478] sm:$0xff]  }
  0xd7   : > { %5647 = vmatprep.subr.bf16.mxu1 %v6105_v23  ;;  %5633 = vmatprep.mubr.bf16.mxu0 %v6114_v24  ;;  %v6143_v21 = vld [vmem:[%s6331_s14 + $0x14] sm:$0xff]  }
  0xd8   : > { %5657 = vmatprep.mubr.bf16.mxu1 %v6116_v25  ;;  %v6146_v24 = vld [vmem:[%s6331_s14 + $0xd8] sm:$0xff]  }
  0xd9   : > { %5624 = vmatpush3.bf16.msra.mxu0 %v6104_v22  ;;  %v6144_v22 = vld [vmem:[%s7290_s1 + $0x430] sm:$0xff]  }
  0xda   : > { %5648 = vmatpush3.bf16.msra.mxu1 %v6105_v23  ;;  %5625 = vmatprep.subr.bf16.mxu0 %v6106_v26  ;;  %v6145_v23 = vld [vmem:[%s7290_s1 + $0x470] sm:$0xff]  }
  0xdb   : > { %5649 = vmatprep.subr.bf16.mxu1 %v6107_v27 }
  0xdd   : > { %5626 = vmatpush3.bf16.msra.mxu0 %v6106_v26  ;;  %v6150_v26 = vld [vmem:[%s6331_s14 + $0x1c] sm:$0xff]  }
  0xde   : > { %5650 = vmatpush3.bf16.msra.mxu1 %v6107_v27  ;;  %5627 = vmatprep.subr.bf16.mxu0 %v6108_v28 }
  0xdf   : > { %5651 = vmatprep.subr.bf16.mxu1 %v6109_v29 }
  0xe1   : > { %5628 = vmatpush3.bf16.msra.mxu0 %v6108_v28 }
  0xe2   : > { %5652 = vmatpush3.bf16.msra.mxu1 %v6109_v29  ;;  %5629 = vmatprep.subr.bf16.mxu0 %v6110_v30 }
  0xe3   : > { %5653 = vmatprep.subr.bf16.mxu1 %v6111_v31 }
  0xe5   : > { %5630 = vmatpush3.bf16.msra.mxu0 %v6110_v30  ;;  %v6147_v30 = vld [vmem:[%s6331_s14 + $0xe0] sm:$0xff]  }
  0xe6   : > { %5654 = vmatpush3.bf16.msra.mxu1 %v6111_v31  ;;  %5631 = vmatprep.subr.bf16.mxu0 %v6112_v32  ;;  %v6148_v31 = vld [vmem:[%s7290_s1 + $0x428] sm:$0xff]  }
  0xe7   : > { %5655 = vmatprep.subr.bf16.mxu1 %v6113_v33 }
  0xe9   : > { %5632 = vmatpush3.bf16.msra.mxu0 %v6112_v32 }
  0xea   : > { %5656 = vmatpush3.bf16.msra.mxu1 %v6113_v33  ;;  %5665 = vmatprep.subr.bf16.mxu0 %v6117_v35 }
  0xeb   : > { %5689 = vmatprep.subr.bf16.mxu1 %v6118_v36 }
  0xec   : > { %v5347_v41 = vpop.f32.mrf.mxu0  ;;  %5634 = vmatmul.mubr.bf16.vlgmr.msra.gmra.mxu0 %v6115_v34 }
  0xed   : > { %v5371_v43 = vpop.f32.mrf.mxu1  ;;  %5658 = vmatmul.mubr.bf16.vlgmr.msra.gmra.mxu1 %v6119_v37  ;;  %5666 = vmatpush3.bf16.msra.mxu0 %v6117_v35  ;;  %v6149_v35 = vld [vmem:[%s7290_s1 + $0x468] sm:$0xff]  }
  0xee   : > { %v6705_v44 = vadd.f32 %v5371_v43, %v5347_v41  ;;  %5690 = vmatpush3.bf16.msra.mxu1 %v6118_v36  ;;  %v354_v45 = vpop.f32.mrf.mxu0  ;;  %5667 = vmatprep.subr.bf16.mxu0 %v6120_v38  ;;  %v6151_v37 = vld [vmem:[%s6331_s14 + $0x24] sm:$0xff]  }
  0xef   : > { %v491_v48 = vpop.f32.mrf.mxu1  ;;  %5691 = vmatprep.subr.bf16.mxu1 %v6121_v39  ;;  %5637 = vmatprep.mubr.bf16.mxu0 %v6122_v40  ;;  %v6152_v41 = vld [vmem:[%s7290_s1 + $0x420] sm:$0xff]  }
  0xf0   : > { %v6714_v50 = vadd.f32 %v491_v48, %v354_v45  ;;  %v5348_v51 = vpop.f32.mrf.mxu0  ;;  %5661 = vmatprep.mubr.bf16.mxu1 %v6126_v42  ;;  %v6153_v43 = vld [vmem:[%s7290_s1 + $0x460] sm:$0xff]  }
  0xf1   : > { %v5372_v53 = vpop.f32.mrf.mxu1  ;;  %5668 = vmatpush3.bf16.msra.mxu0 %v6120_v38 }
  0xf2   : > { %v6720_v55 = vadd.f32 %v5372_v53, %v5348_v51  ;;  %5692 = vmatpush3.bf16.msra.mxu1 %v6121_v39  ;;  %v357_v56 = vpop.f32.mrf.mxu0  ;;  %5669 = vmatprep.subr.bf16.mxu0 %v6124_v47 }
  0xf3   : > { %v494_v58 = vpop.f32.mrf.mxu1  ;;  %5693 = vmatprep.subr.bf16.mxu1 %v6125_v49 }
  0xf4   : > { %v6726_v60 = vadd.f32 %v494_v58, %v357_v56  ;;  %5638 = vmatmul.mubr.bf16.gmra.mxu0 %v6123_v46  ;;  %v5351_v61 = vpop.f32.mrf.mxu0  ;;  %v6155_v58 = vld [vmem:[%s7290_s1 + $0x458] sm:$0xff]  }
  0xf5   : > { %5670 = vmatpush3.bf16.msra.mxu0 %v6124_v47  ;;  %5662 = vmatmul.mubr.bf16.gmra.mxu1 %v6127_v52  ;;  %v5375_v63 = vpop.f32.mrf.mxu1  ;;  %v6162_v47 = vld [vmem:[%s6331_s14 + $0x3c] sm:$0xff]  }
  0xf6   : > { %5694 = vmatpush3.bf16.msra.mxu1 %v6125_v49  ;;  %5671 = vmatprep.subr.bf16.mxu0 %v6128_v54  ;;  %v6732_v1 = vadd.f32 %v5375_v63, %v5351_v61  ;;  %v370_v2 = vpop.f32.mrf.mxu0  ;;  %v6164_v49 = vld [vmem:[%s6331_s14 + $0x6c] sm:$0xff]  }
  0xf7   : > { %5695 = vmatprep.subr.bf16.mxu1 %v6129_v57  ;;  %v507_v4 = vpop.f32.mrf.mxu1  ;;  %5681 = vmatprep.mubr.bf16.mxu0 %v6138_v59 }
  0xf8   : > { %v6737_v5 = vadd.f32 %v507_v4, %v370_v2  ;;  %v5352_v6 = vpop.f32.mrf.mxu0  ;;  %5705 = vmatprep.mubr.bf16.mxu1 %v6140_v62  ;;  %v6157_v4 = vld [vmem:[%s7290_s1 + $0x450] sm:$0xff]  }
  0xf9   : > { %5672 = vmatpush3.bf16.msra.mxu0 %v6128_v54  ;;  %v5376_v7 = vpop.f32.mrf.mxu1  ;;  %v6154_v54 = vld [vmem:[%s7290_s1 + $0x418] sm:$0xff]  }
  0xfa   : > { %5696 = vmatpush3.bf16.msra.mxu1 %v6129_v57  ;;  %5673 = vmatprep.subr.bf16.mxu0 %v6130_v0  ;;  %v6742_v9 = vadd.f32 %v5376_v7, %v5352_v6  ;;  %v373_v10 = vpop.f32.mrf.mxu0  ;;  %v6158_v6 = vld [vmem:[%s7290_s1 + $0x408] sm:$0xff]  }
  0xfb   : > { %5697 = vmatprep.subr.bf16.mxu1 %v6131_v3  ;;  %v510_v12 = vpop.f32.mrf.mxu1  ;;  %v6159_v7 = vld [vmem:[%s7290_s1 + $0x448] sm:$0xff]  }
  0xfc   : > { %v6747_v13 = vadd.f32 %v510_v12, %v373_v10  ;;  %v6163_v10 = vld [vmem:[%s6331_s14 + $0x44] sm:$0xff]   ;;  %v6166_v12 = vld [vmem:[%s7290_s1 + $0x4f8] sm:$0xff]  }
  0xfd   : > { %5674 = vmatpush3.bf16.msra.mxu0 %v6130_v0  ;;  %v6156_v0 = vld [vmem:[%s7290_s1 + $0x410] sm:$0xff]  }
  0xfe   : > { %5698 = vmatpush3.bf16.msra.mxu1 %v6131_v3  ;;  %5675 = vmatprep.subr.bf16.mxu0 %v6132_v8 }
  0xff   : > { %5699 = vmatprep.subr.bf16.mxu1 %v6133_v11 }
 0x101   : > { %5676 = vmatpush3.bf16.msra.mxu0 %v6132_v8  ;;  %v6160_v8 = vld [vmem:[%s7290_s1 + $0x400] sm:$0xff]  }
 0x102   : > { %5700 = vmatpush3.bf16.msra.mxu1 %v6133_v11  ;;  %5677 = vmatprep.subr.bf16.mxu0 %v6134_v14  ;;  %v6165_v11 = vld [vmem:[%s7290_s1 + $0x4b8] sm:$0xff]  }
 0x103   : > { %5701 = vmatprep.subr.bf16.mxu1 %v6135_v15 }
 0x105   : > { %5678 = vmatpush3.bf16.msra.mxu0 %v6134_v14  ;;  %v6168_v14 = vld [vmem:[%s7290_s1 + $0x4b0] sm:$0xff]  }
 0x106   : > { %5702 = vmatpush3.bf16.msra.mxu1 %v6135_v15  ;;  %5679 = vmatprep.subr.bf16.mxu0 %v6136_v16  ;;  %v6169_v15 = vld [vmem:[%s7290_s1 + $0x4f0] sm:$0xff]  }
 0x107   : > { %5703 = vmatprep.subr.bf16.mxu1 %v6137_v17 }
 0x109   : > { %5680 = vmatpush3.bf16.msra.mxu0 %v6136_v16  ;;  %v6170_v16 = vld [vmem:[%s6331_s14 + $0x4c] sm:$0xff]  }
 0x10a   : > { %5704 = vmatpush3.bf16.msra.mxu1 %v6137_v17  ;;  %5713 = vmatprep.subr.bf16.mxu0 %v6141_v19 }
 0x10b   : > { %5737 = vmatprep.subr.bf16.mxu1 %v6142_v20 }
 0x10c   : > { %v5395_v25 = vpop.f32.mrf.mxu0  ;;  %5682 = vmatmul.mubr.bf16.vlgmr.msra.gmra.mxu0 %v6139_v18  ;;  %v6174_v18 = vld [vmem:[%s6331_s14 + $0x7c] sm:$0xff]  }
 0x10d   : > { %v686_v27 = vadd.f32 %v5395_v25, %v6705_v44  ;;  %5706 = vmatmul.mubr.bf16.vlgmr.msra.gmra.mxu1 %v6143_v21  ;;  %5714 = vmatpush3.bf16.msra.mxu0 %v6141_v19  ;;  %v5419_v28 = vpop.f32.mrf.mxu1 }
 0x10e   : > { %5738 = vmatpush3.bf16.msra.mxu1 %v6142_v20  ;;  %v653_v29 = vpop.f32.mrf.mxu0  ;;  %5715 = vmatprep.subr.bf16.mxu0 %v6144_v22 }
 0x10f   : > { %v684_v32 = vadd.f32 %v653_v29, %v6714_v50  ;;  %v6783_v33 = vadd.f32 %v5419_v28, %v686_v27  ;;  %v823_v34 = vpop.f32.mrf.mxu1  ;;  %5739 = vmatprep.subr.bf16.mxu1 %v6145_v23  ;;  %5685 = vmatprep.mubr.bf16.mxu0 %v6146_v24  ;;  %v6173_v27 = vld [vmem:[%s7290_s1 + $0x4e8] sm:$0xff]  }
 0x110   : > { %v5396_v36 = vpop.f32.mrf.mxu0  ;;  %5709 = vmatprep.mubr.bf16.mxu1 %v6150_v26  ;;  %v6175_v29 = vld [vmem:[%s6331_s14 + $0x84] sm:$0xff]  }
 0x111   : > { %v687_v38 = vadd.f32 %v5396_v36, %v6720_v55  ;;  %v6790_v39 = vadd.f32 %v823_v34, %v684_v32  ;;  %5716 = vmatpush3.bf16.msra.mxu0 %v6144_v22  ;;  %v5420_v40 = vpop.f32.mrf.mxu1  ;;  %v6171_v22 = vld [vmem:[%s6331_s14 + $0x54] sm:$0xff]  }
 0x112   : > { %5740 = vmatpush3.bf16.msra.mxu1 %v6145_v23  ;;  %v656_v42 = vpop.f32.mrf.mxu0  ;;  %5717 = vmatprep.subr.bf16.mxu0 %v6148_v31  ;;  %v6172_v23 = vld [vmem:[%s7290_s1 + $0x4a8] sm:$0xff]  }
 0x113   : > { %v685_v44 = vadd.f32 %v656_v42, %v6726_v60  ;;  %v6799_v45 = vadd.f32 %v5420_v40, %v687_v38  ;;  %v826_v46 = vpop.f32.mrf.mxu1  ;;  %5741 = vmatprep.subr.bf16.mxu1 %v6149_v35 }
 0x114   : > { %v5399_v48 = vpop.f32.mrf.mxu0  ;;  %5686 = vmatmul.mubr.bf16.gmra.mxu0 %v6147_v30 }
 0x115   : > { %v690_v50 = vadd.f32 %v5399_v48, %v6732_v1  ;;  %v6804_v51 = vadd.f32 %v826_v46, %v685_v44  ;;  %5718 = vmatpush3.bf16.msra.mxu0 %v6148_v31  ;;  %v5423_v52 = vpop.f32.mrf.mxu1  ;;  %5710 = vmatmul.mubr.bf16.gmra.mxu1 %v6151_v37  ;;  %v6178_v46 = vld [vmem:[%s7290_s1 + $0x498] sm:$0xff]  }
 0x116   : > { %5742 = vmatpush3.bf16.msra.mxu1 %v6149_v35  ;;  %v669_v53 = vpop.f32.mrf.mxu0  ;;  %5719 = vmatprep.subr.bf16.mxu0 %v6152_v41  ;;  %v6177_v35 = vld [vmem:[%s7290_s1 + $0x4e0] sm:$0xff]  }
 0x117   : > { %v688_v55 = vadd.f32 %v669_v53, %v6737_v5  ;;  %v6810_v56 = vadd.f32 %v5423_v52, %v690_v50  ;;  %v839_v57 = vpop.f32.mrf.mxu1  ;;  %5743 = vmatprep.subr.bf16.mxu1 %v6153_v43  ;;  %5729 = vmatprep.mubr.bf16.mxu0 %v6162_v47  ;;  %v6179_v50 = vld [vmem:[%s7290_s1 + $0x4d8] sm:$0xff]  }
 0x118   : > { %v5400_v59 = vpop.f32.mrf.mxu0  ;;  %5753 = vmatprep.mubr.bf16.mxu1 %v6164_v49 }
 0x119   : > { %v691_v60 = vadd.f32 %v5400_v59, %v6742_v9  ;;  %v6816_v61 = vadd.f32 %v839_v57, %v688_v55  ;;  %5720 = vmatpush3.bf16.msra.mxu0 %v6152_v41  ;;  %v5424_v62 = vpop.f32.mrf.mxu1  ;;  %v6161_v9 = vld [vmem:[%s7290_s1 + $0x440] sm:$0xff]   ;;  %v6188_v41 = vld [vmem:[%s6331_s14 + $0xcc] sm:$0xff]  }
 0x11a   : > { %5744 = vmatpush3.bf16.msra.mxu1 %v6153_v43  ;;  %v672_v63 = vpop.f32.mrf.mxu0  ;;  %5721 = vmatprep.subr.bf16.mxu0 %v6154_v54 }
 0x11b   : > { %v689_v1 = vadd.f32 %v672_v63, %v6747_v13  ;;  %v6822_v2 = vadd.f32 %v5424_v62, %v691_v60  ;;  %v842_v3 = vpop.f32.mrf.mxu1  ;;  %5745 = vmatprep.subr.bf16.mxu1 %v6155_v58  ;;  %v6167_v13 = vld [vmem:[%s6331_s14 + $0x74] sm:$0xff]   ;;  %v6182_v62 = vld [vmem:[%s7290_s1 + $0x488] sm:$0xff]  }
 0x11c   : > { %v6181_v60 = vld [vmem:[%s7290_s1 + $0x4d0] sm:$0xff]   ;;  %v6183_v63 = vld [vmem:[%s7290_s1 + $0x4c8] sm:$0xff]  }
 0x11d   : > { %v6827_v5 = vadd.f32 %v842_v3, %v689_v1  ;;  %5722 = vmatpush3.bf16.msra.mxu0 %v6154_v54  ;;  %v6185_v1 = vld [vmem:[%s7290_s1 + $0x4c0] sm:$0xff]   ;;  %v6190_v3 = vld [vmem:[%s7290_s1 + $0x578] sm:$0xff]  }
 0x11e   : > { %5746 = vmatpush3.bf16.msra.mxu1 %v6155_v58  ;;  %5723 = vmatprep.subr.bf16.mxu0 %v6156_v0 }
 0x11f   : > { %5747 = vmatprep.subr.bf16.mxu1 %v6157_v4 }
 0x121   : > { %5724 = vmatpush3.bf16.msra.mxu0 %v6156_v0  ;;  %v6184_v0 = vld [vmem:[%s7290_s1 + $0x480] sm:$0xff]  }
 0x122   : > { %5748 = vmatpush3.bf16.msra.mxu1 %v6157_v4  ;;  %5725 = vmatprep.subr.bf16.mxu0 %v6158_v6  ;;  %v6187_v4 = vld [vmem:[%s6331_s14 + $0xa4] sm:$0xff]  }
 0x123   : > { %5749 = vmatprep.subr.bf16.mxu1 %v6159_v7 }
 0x125   : > { %5726 = vmatpush3.bf16.msra.mxu0 %v6158_v6  ;;  %v6192_v6 = vld [vmem:[%s7290_s1 + $0x530] sm:$0xff]  }
 0x126   : > { %5750 = vmatpush3.bf16.msra.mxu1 %v6159_v7  ;;  %5727 = vmatprep.subr.bf16.mxu0 %v6160_v8  ;;  %v6193_v7 = vld [vmem:[%s7290_s1 + $0x570] sm:$0xff]  }
 0x127   : > { %5751 = vmatprep.subr.bf16.mxu1 %v6161_v9 }
 0x129   : > { %5728 = vmatpush3.bf16.msra.mxu0 %v6160_v8  ;;  %v6194_v8 = vld [vmem:[%s6331_s14 + $0xac] sm:$0xff]  }
 0x12a   : > { %5752 = vmatpush3.bf16.msra.mxu1 %v6161_v9  ;;  %5761 = vmatprep.subr.bf16.mxu0 %v6165_v11 }
 0x12b   : > { %5785 = vmatprep.subr.bf16.mxu1 %v6166_v12 }
 0x12c   : > { %v5443_v17 = vpop.f32.mrf.mxu0  ;;  %5730 = vmatmul.mubr.bf16.vlgmr.msra.gmra.mxu0 %v6163_v10  ;;  %v6198_v10 = vld [vmem:[%s6331_s14 + $0xdc] sm:$0xff]  }
 0x12d   : > { %v1026_v19 = vadd.f32 %v5443_v17, %v6783_v33  ;;  %5754 = vmatmul.mubr.bf16.vlgmr.msra.gmra.mxu1 %v6167_v13  ;;  %5762 = vmatpush3.bf16.msra.mxu0 %v6165_v11  ;;  %v5467_v20 = vpop.f32.mrf.mxu1  ;;  %v6176_v33 = vld [vmem:[%s7290_s1 + $0x4a0] sm:$0xff]  }
 0x12e   : > { %5786 = vmatpush3.bf16.msra.mxu1 %v6166_v12  ;;  %v993_v21 = vpop.f32.mrf.mxu0  ;;  %5763 = vmatprep.subr.bf16.mxu0 %v6168_v14 }
 0x12f   : > { %v1024_v24 = vadd.f32 %v993_v21, %v6790_v39  ;;  %v6863_v25 = vadd.f32 %v5467_v20, %v1026_v19  ;;  %v1162_v26 = vpop.f32.mrf.mxu1  ;;  %5787 = vmatprep.subr.bf16.mxu1 %v6169_v15  ;;  %5733 = vmatprep.mubr.bf16.mxu0 %v6170_v16  ;;  %v6186_v39 = vld [vmem:[%s6331_s14 + $0x9c] sm:$0xff]   ;;  %v6195_v20 = vld [vmem:[%s6331_s14 + $0xb4] sm:$0xff]  }
 0x130   : > { %v5444_v28 = vpop.f32.mrf.mxu0  ;;  %5757 = vmatprep.mubr.bf16.mxu1 %v6174_v18  ;;  %v6197_v18 = vld [vmem:[%s7290_s1 + $0x568] sm:$0xff]  }
 0x131   : > { %v1027_v30 = vadd.f32 %v5444_v28, %v6799_v45  ;;  %v6870_v31 = vadd.f32 %v1162_v26, %v1024_v24  ;;  %5764 = vmatpush3.bf16.msra.mxu0 %v6168_v14  ;;  %v5468_v32 = vpop.f32.mrf.mxu1  ;;  %v6196_v14 = vld [vmem:[%s7290_s1 + $0x528] sm:$0xff]   ;;  %v6200_v26 = vld [vmem:[%s7290_s1 + $0x520] sm:$0xff]  }
 0x132   : > { %5788 = vmatpush3.bf16.msra.mxu1 %v6169_v15  ;;  %v996_v34 = vpop.f32.mrf.mxu0  ;;  %5765 = vmatprep.subr.bf16.mxu0 %v6172_v23  ;;  %v6199_v24 = vld [vmem:[%s6331_s14 + $0xe4] sm:$0xff]  }
 0x133   : > { %v1025_v36 = vadd.f32 %v996_v34, %v6804_v51  ;;  %v6879_v37 = vadd.f32 %v5468_v32, %v1027_v30  ;;  %v1165_v38 = vpop.f32.mrf.mxu1  ;;  %5789 = vmatprep.subr.bf16.mxu1 %v6173_v27  ;;  %v6201_v30 = vld [vmem:[%s7290_s1 + $0x560] sm:$0xff]  }
 0x134   : > { %v5447_v40 = vpop.f32.mrf.mxu0  ;;  %5734 = vmatmul.mubr.bf16.gmra.mxu0 %v6171_v22 }
 0x135   : > { %v1030_v42 = vadd.f32 %v5447_v40, %v6810_v56  ;;  %v6884_v43 = vadd.f32 %v1165_v38, %v1025_v36  ;;  %5766 = vmatpush3.bf16.msra.mxu0 %v6172_v23  ;;  %v5471_v44 = vpop.f32.mrf.mxu1  ;;  %5758 = vmatmul.mubr.bf16.gmra.mxu1 %v6175_v29  ;;  %v6180_v56 = vld [vmem:[%s7290_s1 + $0x490] sm:$0xff]   ;;  %v6202_v38 = vld [vmem:[%s7290_s1 + $0x518] sm:$0xff]  }
 0x136   : > { %5790 = vmatpush3.bf16.msra.mxu1 %v6173_v27  ;;  %v1009_v45 = vpop.f32.mrf.mxu0  ;;  %5767 = vmatprep.subr.bf16.mxu0 %v6176_v33 }
 0x137   : > { %v1028_v47 = vadd.f32 %v1009_v45, %v6816_v61  ;;  %v6890_v48 = vadd.f32 %v5471_v44, %v1030_v42  ;;  %v1178_v49 = vpop.f32.mrf.mxu1  ;;  %5791 = vmatprep.subr.bf16.mxu1 %v6177_v35  ;;  %5777 = vmatprep.mubr.bf16.mxu0 %v6186_v39  ;;  %v6203_v42 = vld [vmem:[%s7290_s1 + $0x558] sm:$0xff]  }
 0x138   : > { %v5448_v51 = vpop.f32.mrf.mxu0  ;;  %5801 = vmatprep.mubr.bf16.mxu1 %v6188_v41 }
 0x139   : > { %v1031_v52 = vadd.f32 %v5448_v51, %v6822_v2  ;;  %v6896_v53 = vadd.f32 %v1178_v49, %v1028_v47  ;;  %5768 = vmatpush3.bf16.msra.mxu0 %v6176_v33  ;;  %v5472_v54 = vpop.f32.mrf.mxu1  ;;  %v6189_v2 = vld [vmem:[%s7290_s1 + $0x538] sm:$0xff]   ;;  %v6212_v33 = vld [vmem:[%s6331_s14 + $0x40] sm:$0xff]  }
 0x13a   : > { %5792 = vmatpush3.bf16.msra.mxu1 %v6177_v35  ;;  %v1012_v55 = vpop.f32.mrf.mxu0  ;;  %5769 = vmatprep.subr.bf16.mxu0 %v6178_v46 }
 0x13b   : > { %v1029_v57 = vadd.f32 %v1012_v55, %v6827_v5  ;;  %v6902_v58 = vadd.f32 %v5472_v54, %v1031_v52  ;;  %v1181_v59 = vpop.f32.mrf.mxu1  ;;  %5793 = vmatprep.subr.bf16.mxu1 %v6179_v50  ;;  %v6191_v5 = vld [vmem:[%s6331_s14 + $0xd4] sm:$0xff]   ;;  %v6206_v54 = vld [vmem:[%s7290_s1 + $0x508] sm:$0xff]  }
 0x13c   : > { %v6205_v52 = vld [vmem:[%s7290_s1 + $0x550] sm:$0xff]   ;;  %v6207_v55 = vld [vmem:[%s7290_s1 + $0x548] sm:$0xff]  }
 0x13d   : > { %v6907_v61 = vadd.f32 %v1181_v59, %v1029_v57  ;;  %5770 = vmatpush3.bf16.msra.mxu0 %v6178_v46  ;;  %v6209_v57 = vld [vmem:[%s7290_s1 + $0x540] sm:$0xff]   ;;  %v6214_v59 = vld [vmem:[%s7290_s1 + $0x5f8] sm:$0xff]  }
 0x13e   : > { %5794 = vmatpush3.bf16.msra.mxu1 %v6179_v50  ;;  %5771 = vmatprep.subr.bf16.mxu0 %v6180_v56 }
 0x13f   : > { %5795 = vmatprep.subr.bf16.mxu1 %v6181_v60 }
 0x141   : > { %5772 = vmatpush3.bf16.msra.mxu0 %v6180_v56  ;;  %v6208_v56 = vld [vmem:[%s7290_s1 + $0x500] sm:$0xff]  }
 0x142   : > { %5796 = vmatpush3.bf16.msra.mxu1 %v6181_v60  ;;  %5773 = vmatprep.subr.bf16.mxu0 %v6182_v62  ;;  %v6211_v60 = vld [vmem:[%s6331_s14 + $0x18] sm:$0xff]  }
 0x143   : > { %5797 = vmatprep.subr.bf16.mxu1 %v6183_v63 }
 0x145   : > { %5774 = vmatpush3.bf16.msra.mxu0 %v6182_v62  ;;  %v6216_v62 = vld [vmem:[%s7290_s1 + $0x5b0] sm:$0xff]  }
 0x146   : > { %5798 = vmatpush3.bf16.msra.mxu1 %v6183_v63  ;;  %5775 = vmatprep.subr.bf16.mxu0 %v6184_v0  ;;  %v6217_v63 = vld [vmem:[%s7290_s1 + $0x5f0] sm:$0xff]  }
 0x147   : > { %5799 = vmatprep.subr.bf16.mxu1 %v6185_v1 }
 0x149   : > { %5776 = vmatpush3.bf16.msra.mxu0 %v6184_v0  ;;  %v6218_v0 = vld [vmem:[%s6331_s14 + $0x20] sm:$0xff]  }
 0x14a   : > { %5800 = vmatpush3.bf16.msra.mxu1 %v6185_v1  ;;  %5809 = vmatprep.subr.bf16.mxu0 %v6189_v2 }
 0x14b   : > { %5833 = vmatprep.subr.bf16.mxu1 %v6190_v3 }
 0x14c   : > { %v5491_v9 = vpop.f32.mrf.mxu0  ;;  %5778 = vmatmul.mubr.bf16.vlgmr.msra.gmra.mxu0 %v6187_v4 }
 0x14d   : > { %v1364_v11 = vadd.f32 %v5491_v9, %v6863_v25  ;;  %5802 = vmatmul.mubr.bf16.vlgmr.msra.gmra.mxu1 %v6191_v5  ;;  %5810 = vmatpush3.bf16.msra.mxu0 %v6189_v2  ;;  %v5515_v12 = vpop.f32.mrf.mxu1  ;;  %v6222_v2 = vld [vmem:[%s6331_s14 + $0x50] sm:$0xff]  }
 0x14e   : > { %5834 = vmatpush3.bf16.msra.mxu1 %v6190_v3  ;;  %v1331_v13 = vpop.f32.mrf.mxu0  ;;  %5811 = vmatprep.subr.bf16.mxu0 %v6192_v6 }
 0x14f   : > { %v1362_v15 = vadd.f32 %v1331_v13, %v6870_v31  ;;  %v6942_v16 = vadd.f32 %v5515_v12, %v1364_v11  ;;  %v1500_v17 = vpop.f32.mrf.mxu1  ;;  %5835 = vmatprep.subr.bf16.mxu1 %v6193_v7  ;;  %5781 = vmatprep.mubr.bf16.mxu0 %v6194_v8  ;;  %v6210_v31 = vld [vmem:[%s6331_s14 + $0x10] sm:$0xff]   ;;  %v6219_v12 = vld [vmem:[%s6331_s14 + $0x28] sm:$0xff]  }
 0x150   : > { %v5492_v19 = vpop.f32.mrf.mxu0  ;;  %5805 = vmatprep.mubr.bf16.mxu1 %v6198_v10  ;;  %v6221_v10 = vld [vmem:[%s7290_s1 + $0x5e8] sm:$0xff]  }
 0x151   : > { %v1365_v21 = vadd.f32 %v5492_v19, %v6879_v37  ;;  %v6949_v22 = vadd.f32 %v1500_v17, %v1362_v15  ;;  %5812 = vmatpush3.bf16.msra.mxu0 %v6192_v6  ;;  %v5516_v23 = vpop.f32.mrf.mxu1  ;;  %v6220_v6 = vld [vmem:[%s7290_s1 + $0x5a8] sm:$0xff]  }
 0x152   : > { %5836 = vmatpush3.bf16.msra.mxu1 %v6193_v7  ;;  %v1334_v25 = vpop.f32.mrf.mxu0  ;;  %5813 = vmatprep.subr.bf16.mxu0 %v6196_v14 }
 0x153   : > { %v1363_v27 = vadd.f32 %v1334_v25, %v6884_v43  ;;  %v6956_v28 = vadd.f32 %v5516_v23, %v1365_v21  ;;  %v1503_v29 = vpop.f32.mrf.mxu1  ;;  %5837 = vmatprep.subr.bf16.mxu1 %v6197_v18  ;;  %v6234_v23 = vld [vmem:[%s6331_s14 + $0x70] sm:$0xff]   ;;  %v6236_v25 = vld [vmem:[%s6331_s14 + $0xa0] sm:$0xff]  }
 0x154   : > { %v5495_v32 = vpop.f32.mrf.mxu0  ;;  %5782 = vmatmul.mubr.bf16.gmra.mxu0 %v6195_v20 }
 0x155   : > { %v1368_v34 = vadd.f32 %v5495_v32, %v6890_v48  ;;  %v6964_v35 = vadd.f32 %v1503_v29, %v1363_v27  ;;  %5814 = vmatpush3.bf16.msra.mxu0 %v6196_v14  ;;  %v5519_v36 = vpop.f32.mrf.mxu1  ;;  %5806 = vmatmul.mubr.bf16.gmra.mxu1 %v6199_v24  ;;  %v6204_v48 = vld [vmem:[%s7290_s1 + $0x510] sm:$0xff]  }
 0x156   : > { %5838 = vmatpush3.bf16.msra.mxu1 %v6197_v18  ;;  %v1347_v37 = vpop.f32.mrf.mxu0  ;;  %5815 = vmatprep.subr.bf16.mxu0 %v6200_v26  ;;  %v6224_v18 = vld [vmem:[%s7290_s1 + $0x5a0] sm:$0xff]  }
 0x157   : > { %v1366_v39 = vadd.f32 %v1347_v37, %v6896_v53  ;;  %v6970_v40 = vadd.f32 %v5519_v36, %v1368_v34  ;;  %v1516_v41 = vpop.f32.mrf.mxu1  ;;  %5839 = vmatprep.subr.bf16.mxu1 %v6201_v30  ;;  %5825 = vmatprep.mubr.bf16.mxu0 %v6210_v31  ;;  %v6227_v34 = vld [vmem:[%s7290_s1 + $0x5d8] sm:$0xff]  }
 0x158   : > { %v5496_v43 = vpop.f32.mrf.mxu0  ;;  %5849 = vmatprep.mubr.bf16.mxu1 %v6212_v33 }
 0x159   : > { %v1369_v44 = vadd.f32 %v5496_v43, %v6902_v58  ;;  %v6976_v45 = vadd.f32 %v1516_v41, %v1366_v39  ;;  %5816 = vmatpush3.bf16.msra.mxu0 %v6200_v26  ;;  %v5520_v46 = vpop.f32.mrf.mxu1  ;;  %v6213_v58 = vld [vmem:[%s7290_s1 + $0x5b8] sm:$0xff]  }
 0x15a   : > { %5840 = vmatpush3.bf16.msra.mxu1 %v6201_v30  ;;  %v1350_v47 = vpop.f32.mrf.mxu0  ;;  %5817 = vmatprep.subr.bf16.mxu0 %v6202_v38  ;;  %v6226_v30 = vld [vmem:[%s7290_s1 + $0x598] sm:$0xff]  }
 0x15b   : > { %v1367_v49 = vadd.f32 %v1350_v47, %v6907_v61  ;;  %v6982_v50 = vadd.f32 %v5520_v46, %v1369_v44  ;;  %v1519_v51 = vpop.f32.mrf.mxu1  ;;  %5841 = vmatprep.subr.bf16.mxu1 %v6203_v42  ;;  %v6215_v61 = vld [vmem:[%s6331_s14 + $0x48] sm:$0xff]   ;;  %v6229_v44 = vld [vmem:[%s7290_s1 + $0x5d0] sm:$0xff]  }
 0x15c   : > { %v6230_v46 = vld [vmem:[%s7290_s1 + $0x588] sm:$0xff]  }
 0x15d   : > { %v6987_v53 = vadd.f32 %v1519_v51, %v1367_v49  ;;  %5818 = vmatpush3.bf16.msra.mxu0 %v6202_v38  ;;  %v6231_v47 = vld [vmem:[%s7290_s1 + $0x5c8] sm:$0xff]   ;;  %v6233_v49 = vld [vmem:[%s7290_s1 + $0x5c0] sm:$0xff]   ;;  %v6235_v51 = vld [vmem:[%s6331_s14 + $0x78] sm:$0xff]  }
 0x15e   : > { %5842 = vmatpush3.bf16.msra.mxu1 %v6203_v42  ;;  %5819 = vmatprep.subr.bf16.mxu0 %v6204_v48 }
 0x15f   : > { %5843 = vmatprep.subr.bf16.mxu1 %v6205_v52 }
 0x161   : > { %5820 = vmatpush3.bf16.msra.mxu0 %v6204_v48  ;;  %v6232_v48 = vld [vmem:[%s7290_s1 + $0x580] sm:$0xff]  }
 0x162   : > { %5844 = vmatpush3.bf16.msra.mxu1 %v6205_v52  ;;  %5821 = vmatprep.subr.bf16.mxu0 %v6206_v54  ;;  %v6238_v52 = vld [vmem:[%s6331_s14 + $0xa8] sm:$0xff]  }
 0x163   : > { %5845 = vmatprep.subr.bf16.mxu1 %v6207_v55 }
 0x165   : > { %5822 = vmatpush3.bf16.msra.mxu0 %v6206_v54  ;;  %v6240_v54 = vld [vmem:[%s6331_s14 + $0x80] sm:$0xff]  }
 0x166   : > { %5846 = vmatpush3.bf16.msra.mxu1 %v6207_v55  ;;  %5823 = vmatprep.subr.bf16.mxu0 %v6208_v56 }
 0x167   : > { %5847 = vmatprep.subr.bf16.mxu1 %v6209_v57 }
 0x169   : > { %5824 = vmatpush3.bf16.msra.mxu0 %v6208_v56  ;;  %v6243_v56 = vld [vmem:[%s6331_s14 + $0xb0] sm:$0xff]  }
 0x16a   : > { %5848 = vmatpush3.bf16.msra.mxu1 %v6209_v57  ;;  %5857 = vmatprep.subr.bf16.mxu0 %v6213_v58 }
 0x16b   : > { %5881 = vmatprep.subr.bf16.mxu1 %v6214_v59 }
 0x16c   : > { %v5539_v1 = vpop.f32.mrf.mxu0  ;;  %5826 = vmatmul.mubr.bf16.vlgmr.msra.gmra.mxu0 %v6211_v60  ;;  %v6242_v60 = vld [vmem:[%s7290_s1 + $0x628] sm:$0xff]  }
 0x16d   : > { %v1702_v3 = vadd.f32 %v5539_v1, %v6942_v16  ;;  %5850 = vmatmul.mubr.bf16.vlgmr.msra.gmra.mxu1 %v6215_v61  ;;  %5858 = vmatpush3.bf16.msra.mxu0 %v6213_v58  ;;  %v5563_v4 = vpop.f32.mrf.mxu1  ;;  %v6223_v16 = vld [vmem:[%s6331_s14 + $0x58] sm:$0xff]   ;;  %v6241_v1 = vld [vmem:[%s6331_s14 + $0x88] sm:$0xff]  }
 0x16e   : > { %5882 = vmatpush3.bf16.msra.mxu1 %v6214_v59  ;;  %v1669_v5 = vpop.f32.mrf.mxu0  ;;  %5859 = vmatprep.subr.bf16.mxu0 %v6216_v62 }
 0x16f   : > { %v1700_v7 = vadd.f32 %v1669_v5, %v6949_v22  ;;  %v7022_v8 = vadd.f32 %v5563_v4, %v1702_v3  ;;  %v1838_v9 = vpop.f32.mrf.mxu1  ;;  %5883 = vmatprep.subr.bf16.mxu1 %v6217_v63  ;;  %5829 = vmatprep.mubr.bf16.mxu0 %v6218_v0  ;;  %v6225_v22 = vld [vmem:[%s7290_s1 + $0x5e0] sm:$0xff]   ;;  %v6244_v5 = vld [vmem:[%s6331_s14 + $0xb8] sm:$0xff]  }
 0x170   : > { %v5540_v11 = vpop.f32.mrf.mxu0  ;;  %5853 = vmatprep.mubr.bf16.mxu1 %v6222_v2 }
 0x171   : > { %v1703_v13 = vadd.f32 %v5540_v11, %v6956_v28  ;;  %v7029_v14 = vadd.f32 %v1838_v9, %v1700_v7  ;;  %5860 = vmatpush3.bf16.msra.mxu0 %v6216_v62  ;;  %v5564_v15 = vpop.f32.mrf.mxu1  ;;  %v6245_v7 = vld [vmem:[%s7290_s1 + $0x620] sm:$0xff]   ;;  %v6250_v11 = vld [vmem:[%s6331_s14 + $0xd0] sm:$0xff]  }
 0x172   : > { %5884 = vmatpush3.bf16.msra.mxu1 %v6217_v63  ;;  %v1672_v17 = vpop.f32.mrf.mxu0  ;;  %5861 = vmatprep.subr.bf16.mxu0 %v6220_v6 }
 0x173   : > { %v1701_v19 = vadd.f32 %v1672_v17, %v6964_v35  ;;  %v7036_v20 = vadd.f32 %v5564_v15, %v1703_v13  ;;  %v1841_v21 = vpop.f32.mrf.mxu1  ;;  %5885 = vmatprep.subr.bf16.mxu1 %v6221_v10  ;;  %v6251_v13 = vld [vmem:[%s6331_s14 + $0xe0] sm:$0xff]  }
 0x174   : > { %v5543_v24 = vpop.f32.mrf.mxu0  ;;  %5830 = vmatmul.mubr.bf16.gmra.mxu0 %v6219_v12 }
 0x175   : > { %v1706_v26 = vadd.f32 %v5543_v24, %v6970_v40  ;;  %v7044_v27 = vadd.f32 %v1841_v21, %v1701_v19  ;;  %5862 = vmatpush3.bf16.msra.mxu0 %v6220_v6  ;;  %v5567_v28 = vpop.f32.mrf.mxu1  ;;  %5854 = vmatmul.mubr.bf16.gmra.mxu1 %v6223_v16  ;;  %v6228_v40 = vld [vmem:[%s7290_s1 + $0x590] sm:$0xff]  }
 0x176   : > { %5886 = vmatpush3.bf16.msra.mxu1 %v6221_v10  ;;  %v1685_v29 = vpop.f32.mrf.mxu0  ;;  %5863 = vmatprep.subr.bf16.mxu0 %v6224_v18 }
 0x177   : > { %v1704_v31 = vadd.f32 %v1685_v29, %v6976_v45  ;;  %v7050_v32 = vadd.f32 %v5567_v28, %v1706_v26  ;;  %v1854_v33 = vpop.f32.mrf.mxu1  ;;  %5887 = vmatprep.subr.bf16.mxu1 %v6225_v22  ;;  %5873 = vmatprep.mubr.bf16.mxu0 %v6234_v23 }
 0x178   : > { %v5544_v35 = vpop.f32.mrf.mxu0  ;;  %5897 = vmatprep.mubr.bf16.mxu1 %v6236_v25 }
 0x179   : > { %v1707_v36 = vadd.f32 %v5544_v35, %v6982_v50  ;;  %v7056_v37 = vadd.f32 %v1854_v33, %v1704_v31  ;;  %5864 = vmatpush3.bf16.msra.mxu0 %v6224_v18  ;;  %v5568_v38 = vpop.f32.mrf.mxu1  ;;  %v6237_v50 = vld [vmem:[%s7290_s1 + $0x638] sm:$0xff]   ;;  %v6249_v33 = vld [vmem:[%s7290_s1 + $0x600] sm:$0xff]   ;;  %v6253_v35 = vld [vmem:[%s6331_s14 + $0xe8] sm:$0xff]  }
 0x17a   : > { %5888 = vmatpush3.bf16.msra.mxu1 %v6225_v22  ;;  %v1688_v39 = vpop.f32.mrf.mxu0  ;;  %5865 = vmatprep.subr.bf16.mxu0 %v6226_v30  ;;  %v6246_v18 = vld [vmem:[%s7290_s1 + $0x618] sm:$0xff]  }
 0x17b   : > { %v1705_v41 = vadd.f32 %v1688_v39, %v6987_v53  ;;  %v7062_v42 = vadd.f32 %v5568_v38, %v1707_v36  ;;  %v1857_v43 = vpop.f32.mrf.mxu1  ;;  %5889 = vmatprep.subr.bf16.mxu1 %v6227_v34  ;;  %v6239_v53 = vld [vmem:[%s7290_s1 + $0x630] sm:$0xff]  }
 0x17d   : > { %v7067_v45 = vadd.f32 %v1857_v43, %v1705_v41  ;;  %5866 = vmatpush3.bf16.msra.mxu0 %v6226_v30 }
 0x17e   : > { %5890 = vmatpush3.bf16.msra.mxu1 %v6227_v34  ;;  %5867 = vmatprep.subr.bf16.mxu0 %v6228_v40  ;;  %v6252_v34 = vld [vmem:[%s6331_s14 + $0xd8] sm:$0xff]  }
 0x17f   : > { %5891 = vmatprep.subr.bf16.mxu1 %v6229_v44 }
 0x181   : > { %5868 = vmatpush3.bf16.msra.mxu0 %v6228_v40 }
 0x182   : > { %5892 = vmatpush3.bf16.msra.mxu1 %v6229_v44  ;;  %5869 = vmatprep.subr.bf16.mxu0 %v6230_v46 }
 0x183   : > { %5893 = vmatprep.subr.bf16.mxu1 %v6231_v47 }
 0x185   : > { %5870 = vmatpush3.bf16.msra.mxu0 %v6230_v46 }
 0x186   : > { %5894 = vmatpush3.bf16.msra.mxu1 %v6231_v47  ;;  %5871 = vmatprep.subr.bf16.mxu0 %v6232_v48 }
 0x187   : > { %5895 = vmatprep.subr.bf16.mxu1 %v6233_v49 }
 0x189   : > { %5872 = vmatpush3.bf16.msra.mxu0 %v6232_v48 }
 0x18a   : > { %5896 = vmatpush3.bf16.msra.mxu1 %v6233_v49  ;;  %5905 = vmatprep.subr.bf16.mxu0 %v6237_v50 }
 0x18b   : > { %5929 = vmatprep.subr.bf16.mxu1 %v6237_v50 }
 0x18c   : > { %v5587_v55 = vpop.f32.mrf.mxu0  ;;  %5874 = vmatmul.mubr.bf16.vlgmr.msra.gmra.mxu0 %v6235_v51 }
 0x18d   : > { %v2040_v57 = vadd.f32 %v5587_v55, %v7022_v8  ;;  %5898 = vmatmul.mubr.bf16.vlgmr.msra.gmra.mxu1 %v6238_v52  ;;  %5906 = vmatpush3.bf16.msra.mxu0 %v6237_v50  ;;  %v5611_v58 = vpop.f32.mrf.mxu1 }
 0x18e   : > { %5937 = vmatpush3.bf16.msra.mxu1 %v6237_v50  ;;  %v2007_v59 = vpop.f32.mrf.mxu0  ;;  %5907 = vmatprep.subr.bf16.mxu0 %v6239_v53 }
 0x18f   : > { %v2038_v61 = vadd.f32 %v2007_v59, %v7029_v14  ;;  %v7096_v62 = vadd.f32 %v5611_v58, %v2040_v57  ;;  %v2176_v63 = vpop.f32.mrf.mxu1  ;;  %5930 = vmatprep.subr.bf16.mxu1 %v6239_v53  ;;  %5877 = vmatprep.mubr.bf16.mxu0 %v6240_v54 }
 0x190   : > { %v5588_v0 = vpop.f32.mrf.mxu0  ;;  %5901 = vmatprep.mubr.bf16.mxu1 %v6243_v56 }
 0x191   : > { %v2041_v2 = vadd.f32 %v5588_v0, %v7036_v20  ;;  %v7100_v3 = vadd.f32 %v2176_v63, %v2038_v61  ;;  %5908 = vmatpush3.bf16.msra.mxu0 %v6239_v53  ;;  %v5612_v4 = vpop.f32.mrf.mxu1 }
 0x192   : > { %5938 = vmatpush3.bf16.msra.mxu1 %v6239_v53  ;;  %v2010_v6 = vpop.f32.mrf.mxu0  ;;  %5909 = vmatprep.subr.bf16.mxu0 %v6242_v60 }
 0x193   : > { %v2039_v8 = vadd.f32 %v2010_v6, %v7044_v27  ;;  %v7107_v9 = vadd.f32 %v5612_v4, %v2041_v2  ;;  %v2179_v10 = vpop.f32.mrf.mxu1  ;;  %5931 = vmatprep.subr.bf16.mxu1 %v6242_v60  ;;  %v6247_v27 = vld [vmem:[%s7290_s1 + $0x610] sm:$0xff]  }
 0x194   : > { %v5591_v12 = vpop.f32.mrf.mxu0  ;;  %5878 = vmatmul.mubr.bf16.gmra.mxu0 %v6241_v1 }
 0x195   : > { %v2044_v14 = vadd.f32 %v5591_v12, %v7050_v32  ;;  %v2208_v15 = vadd.f32 %v2179_v10, %v2039_v8  ;;  %5910 = vmatpush3.bf16.msra.mxu0 %v6242_v60  ;;  %v5615_v16 = vpop.f32.mrf.mxu1  ;;  %5902 = vmatmul.mubr.bf16.gmra.mxu1 %v6244_v5  ;;  %v6248_v32 = vld [vmem:[%s7290_s1 + $0x608] sm:$0xff]  }
 0x196   : > { %5939 = vmatpush3.bf16.msra.mxu1 %v6242_v60  ;;  %v2023_v17 = vpop.f32.mrf.mxu0  ;;  %5911 = vmatprep.subr.bf16.mxu0 %v6245_v7 }
 0x197   : > { %v2042_v19 = vadd.f32 %v2023_v17, %v7056_v37  ;;  %v2213_v20 = vadd.f32 %v5615_v16, %v2044_v14  ;;  %v2192_v21 = vpop.f32.mrf.mxu1  ;;  %5932 = vmatprep.subr.bf16.mxu1 %v6245_v7  ;;  %5921 = vmatprep.mubr.bf16.mxu0 %v6250_v11 }
 0x198   : > { %v5592_v22 = vpop.f32.mrf.mxu0  ;;  %5925 = vmatprep.mubr.bf16.mxu1 %v6251_v13 }
 0x199   : > { %v2045_v23 = vadd.f32 %v5592_v22, %v7062_v42  ;;  %v2211_v24 = vadd.f32 %v2192_v21, %v2042_v19  ;;  %5912 = vmatpush3.bf16.msra.mxu0 %v6245_v7  ;;  %v5616_v25 = vpop.f32.mrf.mxu1 }
 0x19a   : > { %5940 = vmatpush3.bf16.msra.mxu1 %v6245_v7  ;;  %v2026_v26 = vpop.f32.mrf.mxu0  ;;  %5913 = vmatprep.subr.bf16.mxu0 %v6246_v18 }
 0x19b   : > { %v2043_v28 = vadd.f32 %v2026_v26, %v7067_v45  ;;  %v2214_v29 = vadd.f32 %v5616_v25, %v2045_v23  ;;  %v2195_v30 = vpop.f32.mrf.mxu1  ;;  %5933 = vmatprep.subr.bf16.mxu1 %v6246_v18 }
 0x19d   : > { %v2212_v31 = vadd.f32 %v2195_v30, %v2043_v28  ;;  %5914 = vmatpush3.bf16.msra.mxu0 %v6246_v18 }
 0x19e   : > { %5941 = vmatpush3.bf16.msra.mxu1 %v6246_v18  ;;  %5915 = vmatprep.subr.bf16.mxu0 %v6247_v27 }
 0x19f   : > { %5934 = vmatprep.subr.bf16.mxu1 %v6247_v27 }
 0x1a1   : > { %5916 = vmatpush3.bf16.msra.mxu0 %v6247_v27 }
 0x1a2   : > { %5942 = vmatpush3.bf16.msra.mxu1 %v6247_v27  ;;  %5917 = vmatprep.subr.bf16.mxu0 %v6248_v32 }
 0x1a3   : > { %5935 = vmatprep.subr.bf16.mxu1 %v6248_v32 }
 0x1a5   : > { %5918 = vmatpush3.bf16.msra.mxu0 %v6248_v32 }
 0x1a6   : > { %5943 = vmatpush3.bf16.msra.mxu1 %v6248_v32  ;;  %5919 = vmatprep.subr.bf16.mxu0 %v6249_v33 }
 0x1a7   : > { %5936 = vmatprep.subr.bf16.mxu1 %v6249_v33 }
 0x1a9   : > { %5920 = vmatpush3.bf16.msra.mxu0 %v6249_v33 }
 0x1aa   : > { %5944 = vmatpush3.bf16.msra.mxu1 %v6249_v33 }
 0x1ac   : > { %v5635_v36 = vpop.f32.mrf.mxu0  ;;  %5922 = vmatmul.mubr.bf16.vlgmr.msra.gmra.mxu0 %v6252_v34 }
 0x1ad   : > { %v2378_v37 = vadd.f32 %v5635_v36, %v7096_v62  ;;  %5926 = vmatmul.mubr.bf16.vlgmr.msra.gmra.mxu1 %v6253_v35  ;;  %v5659_v38 = vpop.f32.mrf.mxu1 }
 0x1ae   : > { %v2345_v39 = vpop.f32.mrf.mxu0 }
 0x1af   : > { %v2376_v40 = vadd.f32 %v2345_v39, %v7100_v3  ;;  %v2547_v41 = vadd.f32 %v5659_v38, %v2378_v37  ;;  %v2514_v42 = vpop.f32.mrf.mxu1 }
 0x1b0   : > { %v5636_v43 = vpop.f32.mrf.mxu0 }
 0x1b1   : > { %v2379_v44 = vadd.f32 %v5636_v43, %v7107_v9  ;;  %v2545_v45 = vadd.f32 %v2514_v42, %v2376_v40  ;;  %v5660_v46 = vpop.f32.mrf.mxu1 }
 0x1b2   : > { %v2348_v47 = vpop.f32.mrf.mxu0 }
 0x1b3   : > { %v7132_v48 = vadd.f32 %v2348_v47, %v2208_v15  ;;  %v2548_v49 = vadd.f32 %v5660_v46, %v2379_v44  ;;  %v7134_v50 = vpop.f32.mrf.mxu1 }
 0x1b4   : > { %v5639_v51 = vpop.f32.mrf.mxu0 }
 0x1b5   : > { %v2382_v52 = vadd.f32 %v5639_v51, %v2213_v20  ;;  %v5663_v53 = vpop.f32.mrf.mxu1 }
 0x1b6   : > { %v2361_v54 = vpop.f32.mrf.mxu0 }
 0x1b7   : > { %v2380_v55 = vadd.f32 %v2361_v54, %v2211_v24  ;;  %v2551_v56 = vadd.f32 %v5663_v53, %v2382_v52  ;;  %v2530_v57 = vpop.f32.mrf.mxu1 }
 0x1b8   : > { %v5640_v58 = vpop.f32.mrf.mxu0 }
 0x1b9   : > { %v2383_v59 = vadd.f32 %v5640_v58, %v2214_v29  ;;  %v2549_v60 = vadd.f32 %v2530_v57, %v2380_v55  ;;  %v5664_v61 = vpop.f32.mrf.mxu1 }
 0x1ba   : > { %v2364_v62 = vpop.f32.mrf.mxu0 }
 0x1bb   : > { %v2381_v63 = vadd.f32 %v2364_v62, %v2212_v31  ;;  %v2552_v0 = vadd.f32 %v5664_v61, %v2383_v59  ;;  %v2533_v1 = vpop.f32.mrf.mxu1 }
 0x1bd   : > { %v2550_v2 = vadd.f32 %v2533_v1, %v2381_v63 }
 0x1cc   : > { %v5683_v3 = vpop.f32.mrf.mxu0 }
 0x1cd   : > { %v7136_v4 = vadd.f32 %v5683_v3, %v2547_v41  ;;  %v7138_v5 = vpop.f32.mrf.mxu1 }
 0x1ce   : > { %v2683_v6 = vpop.f32.mrf.mxu0 }
 0x1cf   : > { %v7140_v7 = vadd.f32 %v2683_v6, %v2545_v45  ;;  %v7142_v8 = vpop.f32.mrf.mxu1 }
 0x1d0   : > { %v5684_v9 = vpop.f32.mrf.mxu0 }
 0x1d1   : > { %v7144_v10 = vadd.f32 %v5684_v9, %v2548_v49  ;;  %v7146_v11 = vpop.f32.mrf.mxu1 }
 0x1d2   : > { %v7148_v12 = vpop.f32.mrf.mxu0 }
 0x1d3   : > { %v7150_v13 = vpop.f32.mrf.mxu1 }
 0x1d4   : > { %v5687_v14 = vpop.f32.mrf.mxu0 }
 0x1d5   : > { %v2720_v15 = vadd.f32 %v5687_v14, %v2551_v56  ;;  %v5711_v16 = vpop.f32.mrf.mxu1 }
 0x1d6   : > { %v2699_v17 = vpop.f32.mrf.mxu0 }
 0x1d7   : > { %v7152_v18 = vadd.f32 %v2699_v17, %v2549_v60  ;;  %v2889_v19 = vadd.f32 %v5711_v16, %v2720_v15  ;;  %v7154_v20 = vpop.f32.mrf.mxu1 }
 0x1d8   : > { %v5688_v21 = vpop.f32.mrf.mxu0 }
 0x1d9   : > { %v2721_v22 = vadd.f32 %v5688_v21, %v2552_v0  ;;  %v5712_v23 = vpop.f32.mrf.mxu1 }
 0x1da   : > { %v2702_v24 = vpop.f32.mrf.mxu0 }
 0x1db   : > { %v7156_v25 = vadd.f32 %v2702_v24, %v2550_v2  ;;  %v2890_v26 = vadd.f32 %v5712_v23, %v2721_v22  ;;  %v7162_v31 = vpop.f32.mrf.mxu1 }
 0x1ec   : > { %v5731_v27 = vpop.f32.mrf.mxu0 }
 0x1ed   : > { %v5755_v33 = vpop.f32.mrf.mxu1 }
 0x1ee   : > { %v3021_v28 = vpop.f32.mrf.mxu0 }
 0x1ef   : > { %v3190_v37 = vpop.f32.mrf.mxu1 }
 0x1f0   : > { %v7158_v29 = vpop.f32.mrf.mxu0 }
 0x1f1   : > { %v7168_v39 = vpop.f32.mrf.mxu1 }
 0x1f2   : > { %v7160_v30 = vpop.f32.mrf.mxu0 }
 0x1f3   : > { %v7170_v40 = vpop.f32.mrf.mxu1 }
 0x1f4   : > { %v5735_v32 = vpop.f32.mrf.mxu0 }
 0x1f5   : > { %v7164_v34 = vadd.f32 %v5735_v32, %v2889_v19  ;;  %v5759_v41 = vpop.f32.mrf.mxu1 }
 0x1f6   : > { %v3037_v35 = vpop.f32.mrf.mxu0 }
 0x1f7   : > { %v3206_v42 = vpop.f32.mrf.mxu1 }
 0x1f8   : > { %v5736_v36 = vpop.f32.mrf.mxu0 }
 0x1f9   : > { %v7166_v38 = vadd.f32 %v5736_v36, %v2890_v26  ;;  %v7172_v43 = vpop.f32.mrf.mxu1 }
 0x1fa   : > { %v3040_v44 = vpop.f32.mrf.mxu0 }
 0x1fb   : > { %v7174_v45 = vpop.f32.mrf.mxu1 }
 0x20c   : > { %v5779_v46 = vpop.f32.mrf.mxu0 }
 0x20d   : > { %v7176_v47 = vpop.f32.mrf.mxu1 }
 0x20e   : > { %v3359_v49 = vpop.f32.mrf.mxu0 }
 0x20f   : > { %v7178_v51 = vpop.f32.mrf.mxu1 }
 0x210   : > { %v7180_v52 = vpop.f32.mrf.mxu0 }
 0x211   : > { %v7182_v53 = vpop.f32.mrf.mxu1 }
 0x212   : > { %v7184_v54 = vpop.f32.mrf.mxu0 }
 0x213   : > { %v7186_v55 = vpop.f32.mrf.mxu1 }
 0x214   : > { %v5783_v56 = vpop.f32.mrf.mxu0 }
 0x215   : > { %v5807_v57 = vpop.f32.mrf.mxu1 }
 0x216   : > { %v3375_v58 = vpop.f32.mrf.mxu0 }
 0x217   : > { %v7188_v59 = vpop.f32.mrf.mxu1 }
 0x218   : > { %v5784_v60 = vpop.f32.mrf.mxu0 }
 0x219   : > { %v7190_v61 = vpop.f32.mrf.mxu1 }
 0x21a   : > { %v3378_v62 = vpop.f32.mrf.mxu0 }
 0x21b   : > { %v7192_v63 = vpop.f32.mrf.mxu1 }
 0x22c   : > { %v5827_v0 = vpop.f32.mrf.mxu0 }
 0x22d   : > { %v7194_v1 = vpop.f32.mrf.mxu1 }
 0x22e   : > { %v3697_v2 = vpop.f32.mrf.mxu0 }
 0x22f   : > { %v7196_v3 = vpop.f32.mrf.mxu1 }
 0x230   : > { %7294 = vst [vmem:[#allocation4_spill] sm:$0xff] %v7196_v3  ;;  %v7198_v6 = vpop.f32.mrf.mxu0 }
 0x231   : > { %v7200_v9 = vpop.f32.mrf.mxu1 }
 0x232   : > { %7295 = vst [vmem:[#allocation5_spill] sm:$0xff] %v7200_v9  ;;  %v7202_v14 = vpop.f32.mrf.mxu0 }
 0x233   : > { %7296 = vst [vmem:[#allocation6_spill] sm:$0xff] %v7202_v14  ;;  %v7204_v15 = vpop.f32.mrf.mxu1  ;;  %v2885_v14 = vadd.f32 %v7138_v5, %v7136_v4 }
 0x234   : > { %7297 = vst [vmem:[#allocation7_spill] sm:$0xff] %v7204_v15  ;;  %v5831_v16 = vpop.f32.mrf.mxu0  ;;  %v2546_v15 = vadd.f32 %v7134_v50, %v7132_v48 }
 0x235   : > { %v7206_v17 = vpop.f32.mrf.mxu1 }
 0x236   : > { %v3713_v19 = vpop.f32.mrf.mxu0 }
 0x237   : > { %v7208_v21 = vpop.f32.mrf.mxu1 }
 0x238   : > { %7298 = vst [vmem:[#allocation8_spill] sm:$0xff] %v7208_v21  ;;  %v5832_v22 = vpop.f32.mrf.mxu0  ;;  %v3054_v21 = vadd.f32 %v5731_v27, %v2885_v14 }
 0x239   : > { %v7210_v23 = vpop.f32.mrf.mxu1 }
 0x23a   : > { %7299 = vst [vmem:[#allocation9_spill] sm:$0xff] %v7210_v23  ;;  %v7212_v24 = vpop.f32.mrf.mxu0  ;;  %v2883_v23 = vadd.f32 %v7142_v8, %v7140_v7  ;;  %v2888_v8 = vadd.f32 %v7162_v31, %v7156_v25 }
 0x23b   : > { %7300 = vst [vmem:[#allocation10_spill] sm:$0xff] %v7212_v24  ;;  %v7214_v26 = vpop.f32.mrf.mxu1  ;;  %v2715_v24 = vadd.f32 %v7148_v12, %v2546_v15  ;;  %v3227_v12 = vadd.f32 %v5759_v41, %v7164_v34 }
 0x23c   : > { %7301 = vst [vmem:[#allocation11_spill] sm:$0xff] %v7214_v26  ;;  %v2887_v26 = vadd.f32 %v7154_v20, %v7152_v18  ;;  %v3052_v48 = vadd.f32 %v3021_v28, %v2883_v23  ;;  %v3057_v28 = vadd.f32 %v3040_v44, %v2888_v8 }
 0x23d   : > { %v2884_v5 = vadd.f32 %v7150_v13, %v2715_v24 }
 0x23e   : > { %v3056_v4 = vadd.f32 %v3037_v35, %v2887_v26  ;;  %v3221_v20 = vadd.f32 %v3190_v37, %v3052_v48  ;;  %v3396_v35 = vadd.f32 %v5783_v56, %v3227_v12  ;;  %v3226_v41 = vadd.f32 %v7174_v45, %v3057_v28 }
 0x23f   : > { %v3053_v27 = vadd.f32 %v7160_v30, %v2884_v5 }
 0x241   : > { %v3222_v31 = vadd.f32 %v7170_v40, %v3053_v27 }
 0x242   : > { %v7308_v24 = vld [vmem:[#allocation10_spill] sm:$0xff] }
 0x24c   : > { %v5875_v32 = vpop.f32.mrf.mxu0 }
 0x24d   : > { %v7216_v36 = vpop.f32.mrf.mxu1 }
 0x24e   : > { %7302 = vst [vmem:[#allocation12_spill] sm:$0xff] %v7216_v36  ;;  %v7218_v9 = vpop.f32.mrf.mxu0 }
 0x24f   : > { %7303 = vst [vmem:[#allocation13_spill] sm:$0xff] %v7218_v9  ;;  %v7224_v3 = vpop.f32.mrf.mxu1  ;;  %v2886_v9 = vadd.f32 %v7146_v11, %v7144_v10  ;;  %v3225_v11 = vadd.f32 %v3206_v42, %v3056_v4  ;;  %v3565_v42 = vadd.f32 %v5807_v57, %v3396_v35 }
 0x250   : > { %7304 = vst [vmem:[#allocation14_spill] sm:$0xff] %v7224_v3  ;;  %v7231_v36 = vpop.f32.mrf.mxu0  ;;  %v3223_v3 = vadd.f32 %v5755_v33, %v3054_v21  ;;  %v3390_v33 = vadd.f32 %v3359_v49, %v3221_v20 }
 0x251   : > { %v7235_v50 = vpop.f32.mrf.mxu1  ;;  %v3055_v7 = vadd.f32 %v7158_v29, %v2886_v9  ;;  %v3228_v29 = vadd.f32 %v7172_v43, %v7166_v38  ;;  %v3394_v9 = vadd.f32 %v3375_v58, %v3225_v11  ;;  %v3395_v43 = vadd.f32 %v3378_v62, %v3226_v41 }
 0x252   : > { %v4038_v18 = vpop.f32.mrf.mxu0  ;;  %v3392_v14 = vadd.f32 %v5779_v46, %v3223_v3  ;;  %v3559_v46 = vadd.f32 %v7178_v51, %v3390_v33  ;;  %v3734_v56 = vadd.f32 %v5831_v16, %v3565_v42  ;;  %v5021_v33 = vld [vmem:[%s7291_s2] ss:$0 sm:$0xff] }
 0x253   : > { %v7243_v10 = vpop.f32.mrf.mxu1  ;;  %v3224_v13 = vadd.f32 %v7168_v39, %v3055_v7  ;;  %v3397_v44 = vadd.f32 %v5784_v60, %v3228_v29  ;;  %v3391_v39 = vadd.f32 %v7184_v54, %v3222_v31  ;;  %v3563_v38 = vadd.f32 %v7188_v59, %v3394_v9  ;;  %v7312_v7 = vld [vmem:[#allocation7_spill] sm:$0xff] }
 0x254   : > { %v5879_v25 = vpop.f32.mrf.mxu0  ;;  %v3561_v34 = vadd.f32 %v7176_v47, %v3392_v14  ;;  %v3728_v47 = vadd.f32 %v3697_v2, %v3559_v46  ;;  %v3564_v54 = vadd.f32 %v7192_v63, %v3395_v43  ;;  %v3903_v59 = vadd.f32 %v7206_v17, %v3734_v56  ;;  %v7311_v63 = vld [vmem:[#allocation9_spill] sm:$0xff]  ;;  %v7314_v14 = vld [vmem:[#allocation11_spill] sm:$0xff] }
 0x255   : > { %v3393_v30 = vadd.f32 %v7180_v52, %v3224_v13  ;;  %v5903_v37 = vpop.f32.mrf.mxu1  ;;  %v3566_v52 = vadd.f32 %v7190_v61, %v3397_v44  ;;  %v3732_v15 = vadd.f32 %v3713_v19, %v3563_v38  ;;  %v3560_v45 = vadd.f32 %v7186_v55, %v3391_v39  ;;  %v7307_v61 = vld [vmem:[#allocation8_spill] sm:$0xff]  ;;  %v5022_v38 = vld [vmem:[%s7292_s3] ss:$0 sm:$0xff] }
 0x256   : > { %v3730_v49 = vadd.f32 %v5827_v0, %v3561_v34  ;;  %v4051_v58 = vpop.f32.mrf.mxu0  ;;  %v7305_v0 = vld [vmem:[#allocation4_spill] sm:$0xff]  ;;  %v3733_v55 = vadd.f32 %v7308_v24, %v3564_v54  ;;  %v4072_v26 = vadd.f32 %v5879_v25, %v3903_v59 }
 0x257   : > { %v3562_v40 = vadd.f32 %v7182_v53, %v3393_v30  ;;  %v4220_v3 = vpop.f32.mrf.mxu1  ;;  %v3735_v60 = vadd.f32 %v5832_v22, %v3566_v52  ;;  %v3897_v16 = vadd.f32 %v7305_v0, %v3728_v47  ;;  %v7306_v53 = vld [vmem:[#allocation6_spill] sm:$0xff]  ;;  %v3901_v19 = vadd.f32 %v7307_v61, %v3732_v15  ;;  %v7313_v12 = vld [vmem:[#allocation12_spill] sm:$0xff] }
 0x258   : > { %v3899_v57 = vadd.f32 %v7194_v1, %v3730_v49  ;;  %v5880_v62 = vpop.f32.mrf.mxu0  ;;  %v3729_v2 = vadd.f32 %v7306_v53, %v3560_v45  ;;  %v7309_v1 = vld [vmem:[#allocation5_spill] sm:$0xff]  ;;  %v3902_v11 = vadd.f32 %v7314_v14, %v3733_v55  ;;  %v4241_v28 = vadd.f32 %v5903_v37, %v4072_v26  ;;  %v7315_v29 = vld [vmem:[#allocation14_spill] sm:$0xff] }
 0x259   : > { %v3731_v51 = vadd.f32 %v7198_v6, %v3562_v40  ;;  %v5904_v23 = vpop.f32.mrf.mxu1  ;;  %v7310_v6 = vld [vmem:[#allocation13_spill] sm:$0xff]  ;;  %v3904_v5 = vadd.f32 %v7311_v63, %v3735_v60  ;;  %v4070_v17 = vadd.f32 %v4051_v58, %v3901_v19 }
 0x25a   : > { %v4068_v21 = vadd.f32 %v5875_v32, %v3899_v57  ;;  %v4066_v4 = vadd.f32 %v7310_v6, %v3897_v16  ;;  %v4054_v22 = vpop.f32.mrf.mxu0  ;;  %v3898_v8 = vadd.f32 %v7312_v7, %v3729_v2 }
 0x25b   : > { %v3900_v48 = vadd.f32 %v7309_v1, %v3731_v51  ;;  %v4223_v27 = vpop.f32.mrf.mxu1  ;;  %v4073_v35 = vadd.f32 %v5880_v62, %v3904_v5  ;;  %v4239_v30 = vadd.f32 %v4220_v3, %v4070_v17  ;;  %v4071_v41 = vadd.f32 %v4054_v22, %v3902_v11 }
 0x25c   : > { %v4237_v20 = vadd.f32 %v7313_v12, %v4068_v21  ;;  %v4235_v9 = vadd.f32 %v7315_v29, %v4066_v4  ;;  %v4067_v25 = vadd.f32 %v4038_v18, %v3898_v8 }
 0x25d   : > { %v4069_v32 = vadd.f32 %v7231_v36, %v3900_v48  ;;  %v4242_v49 = vadd.f32 %v5904_v23, %v4073_v35  ;;  %v4240_v52 = vadd.f32 %v4223_v27, %v4071_v41 }
 0x25e   : > { %v4236_v18 = vadd.f32 %v7243_v10, %v4067_v25 }
 0x25f   : > { %v4238_v36 = vadd.f32 %v7235_v50, %v4069_v32 }
 0x26c   : > { %v5923_v13 = vpop.f32.mrf.mxu0 }
 0x26d   : > { %v4406_v31 = vadd.f32 %v5923_v13, %v4237_v20  ;;  %v5927_v34 = vpop.f32.mrf.mxu1 }
 0x26e   : > { %v4410_v42 = vadd.f32 %v5927_v34, %v4241_v28  ;;  %v4373_v44 = vpop.f32.mrf.mxu0 }
 0x26f   : > { %v4421_v46 = vmul.f32 %v5021_v33, %v4406_v31  ;;  %v4404_v39 = vadd.f32 %v4373_v44, %v4235_v9  ;;  %v4389_v37 = vpop.f32.mrf.mxu1 }
 0x270   : > { %v4425_v43 = vmul.f32 %v5021_v33, %v4410_v42  ;;  %v4408_v56 = vadd.f32 %v4389_v37, %v4239_v30  ;;  %v5924_v58 = vpop.f32.mrf.mxu0 }
 0x271   : > { %v4419_v40 = vmul.f32 %v5021_v33, %v4404_v39  ;;  %v4407_v47 = vadd.f32 %v5924_v58, %v4238_v36  ;;  %v5928_v3 = vpop.f32.mrf.mxu1  ;;  %v4436_v57 = vadd.f32 %v5022_v38, %v4421_v46 }
 0x272   : > { %v4423_v15 = vmul.f32 %v5021_v33, %v4408_v56  ;;  %v4411_v45 = vadd.f32 %v5928_v3, %v4242_v49  ;;  %v4376_v50 = vpop.f32.mrf.mxu0  ;;  %v4440_v60 = vadd.f32 %v5022_v38, %v4425_v43 }
 0x273   : > { %v4422_v51 = vmul.f32 %v5021_v33, %v4407_v47  ;;  %v4405_v54 = vadd.f32 %v4376_v50, %v4236_v18  ;;  %v4392_v59 = vpop.f32.mrf.mxu1  ;;  %v4434_v16 = vadd.f32 %v5022_v38, %v4419_v40  ;;  %v4444_v61 = vmax.f32 %v4436_v57, 0.0 }
 0x274   : > { %v4426_v62 = vmul.f32 %v5021_v33, %v4411_v45  ;;  %v4409_v0 = vadd.f32 %v4392_v59, %v4240_v52  ;;  %v4438_v21 = vadd.f32 %v5022_v38, %v4423_v15  ;;  %v4448_v55 = vmax.f32 %v4440_v60, 0.0 }
 0x275   : > { %v4437_v53 = vadd.f32 %v5022_v38, %v4422_v51  ;;  %v4420_v2 = vmul.f32 %v5021_v33, %v4405_v54  ;;  %v4442_v48 = vmax.f32 %v4434_v16, 0.0 }
 0x276   : > { %v4441_v23 = vadd.f32 %v5022_v38, %v4426_v62  ;;  %v4424_v10 = vmul.f32 %v5021_v33, %v4409_v0  ;;  %v4446_v63 = vmax.f32 %v4438_v21, 0.0 }
 0x277   : > { %v4445_v19 = vmax.f32 %v4437_v53, 0.0  ;;  %v4435_v24 = vadd.f32 %v5022_v38, %v4420_v2 }
 0x278   : > { %v4449_v26 = vmax.f32 %v4441_v23, 0.0  ;;  %v4439_v1 = vadd.f32 %v5022_v38, %v4424_v10 }
 0x279   : > { %v4470_v6 = vmax.f32 %v4444_v61, %v4445_v19  ;;  %v4443_v4 = vmax.f32 %v4435_v24, 0.0 }
 0x27a   : > { %v4490_v5 = vmax.f32 %v4448_v55, %v4449_v26  ;;  %v4447_v17 = vmax.f32 %v4439_v1, 0.0 }
 0x27b   : > { %v4460_v22 = vmax.f32 %v4442_v48, %v4443_v4 }
 0x27c   : > { %v4480_v7 = vmax.f32 %v4446_v63, %v4447_v17 }
 0x27d   : > { %4461 = vst [vmem:[#allocation3] sm:$0xff] %v4460_v22 }
 0x284   : > { %v4462_v8 = vld [vmem:[#allocation3] ss:$2 sm:$0xf]  ;;  %v4464_v12 = vld [vmem:[#allocation3 + $0x1] ss:$2 sm:$0xf] }
 0x285   : > { %v4465_v20 = vmax.f32 %v4462_v8, %v4464_v12  ;;  %4471 = vst [vmem:[#allocation3] sm:$0xff] %v4470_v6 }
 0x287   : > { %v4466_v32 = vpack.c.bf16 %v4465_v20, %v4465_v20 }
 0x289   : > { %4467 = vst [vmem:[%s197_s9] sm:$0x3] %v4466_v32 }
 0x28c   : > { %v4472_v27 = vld [vmem:[#allocation3] ss:$2 sm:$0xf]  ;;  %v4473_v14 = vld [vmem:[#allocation3 + $0x1] ss:$2 sm:$0xf] }
 0x28d   : > { %v4474_v11 = vmax.f32 %v4472_v27, %v4473_v14  ;;  %4481 = vst [vmem:[#allocation3] sm:$0xff] %v4480_v7 }
 0x28f   : > { %v4475_v28 = vpack.c.bf16 %v4474_v11, %v4474_v11 }
 0x291   : > { %5023 = vst [vmem:[%s197_s9 + $0x2] sm:$0x3] %v4475_v28 }
 0x294   : > { %v4482_v35 = vld [vmem:[#allocation3] ss:$2 sm:$0xf]  ;;  %v4483_v13 = vld [vmem:[#allocation3 + $0x1] ss:$2 sm:$0xf] }
 0x295   : > { %v4484_v33 = vmax.f32 %v4482_v35, %v4483_v13  ;;  %4491 = vst [vmem:[#allocation3] sm:$0xff] %v4490_v5 }
 0x297   : > { %v4485_v29 = vpack.c.bf16 %v4484_v33, %v4484_v33 }
 0x299   : > { %5024 = vst [vmem:[%s197_s9 + $0x4] sm:$0x3] %v4485_v29 }
 0x29c   : > { %v4492_v9 = vld [vmem:[#allocation3] ss:$2 sm:$0xf]  ;;  %v4493_v25 = vld [vmem:[#allocation3 + $0x1] ss:$2 sm:$0xf] }
 0x29d   : > { %v4494_v31 = vmax.f32 %v4492_v9, %v4493_v25 }
 0x29f   : > { %v4495_v34 = vpack.c.bf16 %v4494_v31, %v4494_v31 }
 0x2a1   : > { %5025 = vst [vmem:[%s197_s9 + $0x6] sm:$0x3] %v4495_v34 }
 0x2a2 PF: > { %s14_s15 = sadd.s32 1, %s6260_s15  }
 0x2a3   : > { %p11_p4 = scmp.ge.s32.totalorder %s14_s15, 4  }
 0x2a5   :  { %13 = sbr.rel (!%p11_p4) target bundleno = 1 (0x1), region = 74 }

</bundles_post_ra>
